<compile_context>
chip_gen: v7x
topology: tpu7x:2x2x1
jax: 0.10.0
libtpu: 0.0.40
codegen_flags: <defaults>
</compile_context>

<pallas_src>
import jax
import jax.numpy as jnp
from jax.experimental import pallas as pl
from jax.experimental.pallas import tpu as pltpu


_PAD_L = 16   # left/right column pad of the merged bf16 scratch (sublane-tile aligned)


# --------------------------------------------------------------------------
# Fused kernel.  Grid = (N, 3): axis 0 = batch ("parallel"),
# axis 1 = RDB index r ("arbitrary", state carried in scratch).
# --------------------------------------------------------------------------
def _rrdb_kernel(x_ref,
                 w1_ref, w2_ref, w3_ref, w4_ref, w5_ref,
                 b1_ref, b2_ref, b3_ref, b4_ref, b5_ref,
                 o_ref,
                 buf_ref, xres_ref):
    # x_ref   : (1, H, W, nf) f32       RRDB input block (constant over r)
    # w*_ref  : (1, 9, Cin_l, Cout_l)   bf16, this RDB's conv-l weights
    # b*_ref  : (1, 1, Cout_l)          f32
    # o_ref   : (1, H, W, nf)           written only at r == 2
    # buf_ref : (H+2, W+2*PAD, nf+4*gc) bf16 merged scratch:
    #           channels [0:nf] = current RDB input, [nf+i*gc:nf+(i+1)*gc] = x_{i+1}
    # xres_ref: (H, W, nf) f32          exact (f32) residual chain
    r = pl.program_id(1)
    n_r = pl.num_programs(1)

    H, W, nf = o_ref.shape[1], o_ref.shape[2], o_ref.shape[3]
    HP, WP, C = buf_ref.shape
    gc = (C - nf) // 4
    cs = _PAD_L                       # interior column start

    @pl.when(r == 0)
    def _init():
        # Zero only the borders that the conv windows actually read; the
        # interior is always written before it is read.
        zrow = jnp.zeros((1, WP, C), buf_ref.dtype)
        buf_ref[0:1, :, :] = zrow
        buf_ref[H + 1:H + 2, :, :] = zrow
        buf_ref[:, 0:cs, :] = jnp.zeros((HP, cs, C), buf_ref.dtype)
        buf_ref[:, cs + W:WP, :] = jnp.zeros((HP, WP - cs - W, C), buf_ref.dtype)
        x0 = x_ref[0]
        buf_ref[1:H + 1, cs:cs + W, 0:nf] = x0.astype(buf_ref.dtype)
        xres_ref[...] = x0.astype(jnp.float32)

    def conv(w_ref, b_ref, cin, act):
        # 3x3 "same" conv over the channel-concat prefix [0:cin]: 9 taps, one
        # bf16 MXU matmul per tap with f32 accumulation, dots chained directly
        # into a single accumulator.
        cout = w_ref.shape[-1]
        acc = jnp.zeros((H * W, cout), jnp.float32)
        for ky in range(3):
            for kx in range(3):
                patch = buf_ref[ky:ky + H, cs - 1 + kx:cs - 1 + kx + W, 0:cin]
                acc = acc + jnp.dot(patch.reshape(H * W, cin),
                                    w_ref[0, ky * 3 + kx, :, :],
                                    preferred_element_type=jnp.float32)
        y = acc + b_ref[0]                      # (H*W, cout) + (1, cout), f32
        if act:
            y = jnp.maximum(y, 0.2 * y)         # LeakyReLU(0.2), 2 VPU ops
        return y.reshape(H, W, cout)

    def write_slice(c0, cn, val):
        buf_ref[1:H + 1, cs:cs + W, c0:c0 + cn] = val.astype(buf_ref.dtype)

    # One dense block (5 convs) per grid step.
    x1 = conv(w1_ref, b1_ref, nf, True);              write_slice(nf, gc, x1)
    x2 = conv(w2_ref, b2_ref, nf + gc, True);         write_slice(nf + gc, gc, x2)
    x3 = conv(w3_ref, b3_ref, nf + 2 * gc, True);     write_slice(nf + 2 * gc, gc, x3)
    x4 = conv(w4_ref, b4_ref, nf + 3 * gc, True);     write_slice(nf + 3 * gc, gc, x4)
    x5 = conv(w5_ref, b5_ref, nf + 4 * gc, False)     # conv5: no activation

    new_xb = x5 * 0.2 + xres_ref[...]                 # RDB residual, exact f32
    xres_ref[...] = new_xb
    write_slice(0, nf, new_xb)                        # next RDB's conv input (bf16)

    @pl.when(r == n_r - 1)
    def _final():
        # Outer RRDB residual fused into the last step.
        o_ref[0] = (new_xb * 0.2 + x_ref[0].astype(jnp.float32)).astype(o_ref.dtype)


# --------------------------------------------------------------------------
# Wrapper
# --------------------------------------------------------------------------
def rrdb_forward(x, ws, bs):
    """x: (N, H, W, nf) NHWC.  ws[l]: (3,3,3,Cin_l,Cout_l) f32, bs[l]: (3,1,Cout_l) f32."""
    N, H, W, nf = x.shape
    gc = ws[0].shape[-1]
    C = nf + 4 * gc
    HP, WP = H + 2, W + 2 * _PAD_L

    # (rdb, kh, kw, cin, cout) -> (rdb, 9, cin, cout), bf16 MXU operands.
    ws_k = [w.reshape(3, 9, w.shape[3], w.shape[4]).astype(jnp.bfloat16) for w in ws]

    in_specs = [pl.BlockSpec((1, H, W, nf), lambda n, r: (n, 0, 0, 0))]
    in_specs += [pl.BlockSpec((1, 9) + w.shape[2:], lambda n, r: (r, 0, 0, 0))
                 for w in ws_k]
    in_specs += [pl.BlockSpec((1,) + b.shape[1:], lambda n, r: (r, 0, 0))
                 for b in bs]

    return pl.pallas_call(
        _rrdb_kernel,
        out_shape=jax.ShapeDtypeStruct((N, H, W, nf), x.dtype),
        grid=(N, 3),
        in_specs=in_specs,
        out_specs=pl.BlockSpec((1, H, W, nf), lambda n, r: (n, 0, 0, 0)),
        scratch_shapes=[
            pltpu.VMEM((HP, WP, C), jnp.bfloat16),   # merged padded concat scratch
            pltpu.VMEM((H, W, nf), jnp.float32),     # exact residual chain
        ],
        compiler_params=pltpu.CompilerParams(
            dimension_semantics=("parallel", "arbitrary"),
            vmem_limit_bytes=48 * 1024 * 1024),
    )(x, *ws_k, *bs)


# --------------------------------------------------------------------------
# Deterministic parameter init (kaiming_normal fan_in, scale 0.1, zero bias),
# stacked over the 3 RDBs per conv position.
# --------------------------------------------------------------------------
def init_rrdb_params(key, nf, gc):
    cins = [nf, nf + gc, nf + 2 * gc, nf + 3 * gc, nf + 4 * gc]
    couts = [gc, gc, gc, gc, nf]
    ws, bs = [], []
    for cin, cout in zip(cins, couts):
        key, sub = jax.random.split(key)
        std = (2.0 / (cin * 9)) ** 0.5              # kaiming_normal_, a=0, fan_in
        ws.append(jax.random.normal(sub, (3, 3, 3, cin, cout), jnp.float32) * std * 0.1)
        bs.append(jnp.zeros((3, 1, cout), jnp.float32))
    return ws, bs


# --------------------------------------------------------------------------
# Pure-JAX reference (f32) for correctness.
# --------------------------------------------------------------------------
def _conv_ref(x, w, b):
    y = jax.lax.conv_general_dilated(
        x, w, window_strides=(1, 1), padding="SAME",
        dimension_numbers=("NHWC", "HWIO", "NHWC"))
    return y + b[None, None, None, :]


def rrdb_reference(x, ws, bs):
    out = x
    for r in range(3):
        h = out
        feats = [h]
        for l in range(4):
            y = _conv_ref(jnp.concatenate(feats, axis=-1), ws[l][r], bs[l][r, 0])
            feats.append(jnp.maximum(y, 0.2 * y))
        y5 = _conv_ref(jnp.concatenate(feats, axis=-1), ws[4][r], bs[4][r, 0])
        out = y5 * 0.2 + h
    return out * 0.2 + x


if __name__ == "__main__":
    nf, gc = 16, 8
    N, H, W = 2, 16, 16

    key = jax.random.PRNGKey(0)
    k_x, k_p = jax.random.split(key)
    x = jax.random.normal(k_x, (N, H, W, nf), jnp.float32)   # layout: NHWC
    ws, bs = init_rrdb_params(k_p, nf, gc)

    out = jax.jit(rrdb_forward)(x, ws, bs)
    jax.block_until_ready(out)
    assert out.shape == (N, H, W, nf)

    ref = rrdb_reference(x, ws, bs)
    err = float(jnp.max(jnp.abs(out - ref)))
    assert jnp.allclose(out, ref, atol=2e-2, rtol=2e-2), err

    print("KERNEL_OK")
</pallas_src>

<mosaic_0001>
module attributes {stable_mosaic.version = 11 : i64} {
  func.func @_rrdb_kernel(%arg0: i32, %arg1: i32, %arg2: memref<1x16x16x16xf32, #tpu.memory_space<vmem>>, %arg3: memref<1x9x16x8xbf16, #tpu.memory_space<vmem>>, %arg4: memref<1x9x24x8xbf16, #tpu.memory_space<vmem>>, %arg5: memref<1x9x32x8xbf16, #tpu.memory_space<vmem>>, %arg6: memref<1x9x40x8xbf16, #tpu.memory_space<vmem>>, %arg7: memref<1x9x48x16xbf16, #tpu.memory_space<vmem>>, %arg8: memref<1x1x8xf32, #tpu.memory_space<vmem>>, %arg9: memref<1x1x8xf32, #tpu.memory_space<vmem>>, %arg10: memref<1x1x8xf32, #tpu.memory_space<vmem>>, %arg11: memref<1x1x8xf32, #tpu.memory_space<vmem>>, %arg12: memref<1x1x16xf32, #tpu.memory_space<vmem>>, %arg13: memref<1x16x16x16xf32, #tpu.memory_space<vmem>>, %arg14: memref<18x48x48xbf16, #tpu.memory_space<vmem>>, %arg15: memref<16x16x16xf32, #tpu.memory_space<vmem>>) attributes {dimension_semantics = [#tpu.dimension_semantics<parallel>, #tpu.dimension_semantics<arbitrary>], iteration_bounds = array<i64: 2, 3>, scalar_prefetch = 0 : i64, scratch_operands = 2 : i64, tpu.core_type = #tpu.core_type<tc>, window_params = [{transform_indices = @transform_0, window_bounds = array<i64: 1, 16, 16, 16>}, {transform_indices = @transform_1, window_bounds = array<i64: 1, 9, 16, 8>}, {transform_indices = @transform_2, window_bounds = array<i64: 1, 9, 24, 8>}, {transform_indices = @transform_3, window_bounds = array<i64: 1, 9, 32, 8>}, {transform_indices = @transform_4, window_bounds = array<i64: 1, 9, 40, 8>}, {transform_indices = @transform_5, window_bounds = array<i64: 1, 9, 48, 16>}, {transform_indices = @transform_6, window_bounds = array<i64: 1, 1, 8>}, {transform_indices = @transform_7, window_bounds = array<i64: 1, 1, 8>}, {transform_indices = @transform_8, window_bounds = array<i64: 1, 1, 8>}, {transform_indices = @transform_9, window_bounds = array<i64: 1, 1, 8>}, {transform_indices = @transform_10, window_bounds = array<i64: 1, 1, 16>}, {transform_indices = @transform_11, window_bounds = array<i64: 1, 16, 16, 16>}]} {
    %c0_i32 = arith.constant 0 : i32
    %0 = arith.cmpi eq, %arg1, %c0_i32 : i32
    %1 = arith.extui %0 : i1 to i32
    %c0_i32_0 = arith.constant 0 : i32
    %2 = arith.cmpi ne, %1, %c0_i32_0 : i32
    scf.if %2 {
      %cst_392 = arith.constant 0.000000e+00 : bf16
      %333 = vector.broadcast %cst_392 : bf16 to vector<1x48x48xbf16>
      %c0_393 = arith.constant 0 : index
      %c0_394 = arith.constant 0 : index
      %c0_395 = arith.constant 0 : index
      %334 = vector.load %arg14[%c0_393, %c0_394, %c0_395] : memref<18x48x48xbf16, #tpu.memory_space<vmem>>, vector<1x48x48xbf16>
      tpu.vector_store %arg14[%c0_393, %c0_394, %c0_395], %333 {strides = array<i32>} : memref<18x48x48xbf16, #tpu.memory_space<vmem>>, vector<1x48x48xbf16>,
      %c17_396 = arith.constant 17 : index
      %c0_397 = arith.constant 0 : index
      %c0_398 = arith.constant 0 : index
      %335 = vector.load %arg14[%c17_396, %c0_397, %c0_398] : memref<18x48x48xbf16, #tpu.memory_space<vmem>>, vector<1x48x48xbf16>
      tpu.vector_store %arg14[%c17_396, %c0_397, %c0_398], %333 {strides = array<i32>} : memref<18x48x48xbf16, #tpu.memory_space<vmem>>, vector<1x48x48xbf16>,
      %cst_399 = arith.constant 0.000000e+00 : bf16
      %336 = vector.broadcast %cst_399 : bf16 to vector<18x16x48xbf16>
      %c0_400 = arith.constant 0 : index
      %c0_401 = arith.constant 0 : index
      %c0_402 = arith.constant 0 : index
      %337 = vector.load %arg14[%c0_400, %c0_401, %c0_402] : memref<18x48x48xbf16, #tpu.memory_space<vmem>>, vector<18x16x48xbf16>
      tpu.vector_store %arg14[%c0_400, %c0_401, %c0_402], %336 {strides = array<i32>} : memref<18x48x48xbf16, #tpu.memory_space<vmem>>, vector<18x16x48xbf16>,
      %cst_403 = arith.constant 0.000000e+00 : bf16
      %338 = vector.broadcast %cst_403 : bf16 to vector<18x16x48xbf16>
      %c0_404 = arith.constant 0 : index
      %c32_405 = arith.constant 32 : index
      %c0_406 = arith.constant 0 : index
      %339 = vector.load %arg14[%c0_404, %c32_405, %c0_406] : memref<18x48x48xbf16, #tpu.memory_space<vmem>>, vector<18x16x48xbf16>
      tpu.vector_store %arg14[%c0_404, %c32_405, %c0_406], %338 {strides = array<i32>} : memref<18x48x48xbf16, #tpu.memory_space<vmem>>, vector<18x16x48xbf16>,
      %c0_407 = arith.constant 0 : index
      %c0_408 = arith.constant 0 : index
      %c0_409 = arith.constant 0 : index
      %c0_410 = arith.constant 0 : index
      %340 = vector.load %arg2[%c0_407, %c0_408, %c0_409, %c0_410] : memref<1x16x16x16xf32, #tpu.memory_space<vmem>>, vector<1x16x16x16xf32>
      %341 = vector.shape_cast %340 : vector<1x16x16x16xf32> to vector<16x16x16xf32>
      %342 = arith.truncf %341 : vector<16x16x16xf32> to vector<16x16x16xbf16>
      %c1_411 = arith.constant 1 : index
      %c16_412 = arith.constant 16 : index
      %c0_413 = arith.constant 0 : index
      %343 = vector.load %arg14[%c1_411, %c16_412, %c0_413] : memref<18x48x48xbf16, #tpu.memory_space<vmem>>, vector<16x16x16xbf16>
      tpu.vector_store %arg14[%c1_411, %c16_412, %c0_413], %342 {strides = array<i32>} : memref<18x48x48xbf16, #tpu.memory_space<vmem>>, vector<16x16x16xbf16>,
      %c0_414 = arith.constant 0 : index
      %c0_415 = arith.constant 0 : index
      %c0_416 = arith.constant 0 : index
      %344 = vector.load %arg15[%c0_414, %c0_415, %c0_416] : memref<16x16x16xf32, #tpu.memory_space<vmem>>, vector<16x16x16xf32>
      tpu.vector_store %arg15[%c0_414, %c0_415, %c0_416], %341 {strides = array<i32>} : memref<16x16x16xf32, #tpu.memory_space<vmem>>, vector<16x16x16xf32>,
    } else {
    }
    %cst = arith.constant 0.000000e+00 : f32
    %3 = vector.broadcast %cst : f32 to vector<256x8xf32>
    %c0 = arith.constant 0 : index
    %c15 = arith.constant 15 : index
    %c0_1 = arith.constant 0 : index
    %4 = vector.load %arg14[%c0, %c15, %c0_1] : memref<18x48x48xbf16, #tpu.memory_space<vmem>>, vector<16x16x16xbf16>
    %5 = vector.shape_cast %4 : vector<16x16x16xbf16> to vector<256x16xbf16>
    %c0_2 = arith.constant 0 : index
    %c0_3 = arith.constant 0 : index
    %c0_4 = arith.constant 0 : index
    %c0_5 = arith.constant 0 : index
    %6 = vector.load %arg3[%c0_2, %c0_3, %c0_4, %c0_5] : memref<1x9x16x8xbf16, #tpu.memory_space<vmem>>, vector<1x1x16x8xbf16>
    %7 = vector.shape_cast %6 : vector<1x1x16x8xbf16> to vector<16x8xbf16>
    %cst_6 = arith.constant dense<0.000000e+00> : vector<256x8xf32>
    %8 = tpu.matmul %5, %7, %cst_6 {dimension_numbers = #tpu.dot_dimension_numbers<[1], [0], [0], [1], [0, 0, 1, 1], [], []>} : vector<256x16xbf16>, vector<16x8xbf16>, vector<256x8xf32> -> vector<256x8xf32>
    %9 = arith.addf %3, %8 : vector<256x8xf32>
    %c0_7 = arith.constant 0 : index
    %c16 = arith.constant 16 : index
    %c0_8 = arith.constant 0 : index
    %10 = vector.load %arg14[%c0_7, %c16, %c0_8] : memref<18x48x48xbf16, #tpu.memory_space<vmem>>, vector<16x16x16xbf16>
    %11 = vector.shape_cast %10 : vector<16x16x16xbf16> to vector<256x16xbf16>
    %c0_9 = arith.constant 0 : index
    %c1 = arith.constant 1 : index
    %c0_10 = arith.constant 0 : index
    %c0_11 = arith.constant 0 : index
    %12 = vector.load %arg3[%c0_9, %c1, %c0_10, %c0_11] : memref<1x9x16x8xbf16, #tpu.memory_space<vmem>>, vector<1x1x16x8xbf16>
    %13 = vector.shape_cast %12 : vector<1x1x16x8xbf16> to vector<16x8xbf16>
    %cst_12 = arith.constant dense<0.000000e+00> : vector<256x8xf32>
    %14 = tpu.matmul %11, %13, %cst_12 {dimension_numbers = #tpu.dot_dimension_numbers<[1], [0], [0], [1], [0, 0, 1, 1], [], []>} : vector<256x16xbf16>, vector<16x8xbf16>, vector<256x8xf32> -> vector<256x8xf32>
    %15 = arith.addf %9, %14 : vector<256x8xf32>
    %c0_13 = arith.constant 0 : index
    %c17 = arith.constant 17 : index
    %c0_14 = arith.constant 0 : index
    %16 = vector.load %arg14[%c0_13, %c17, %c0_14] : memref<18x48x48xbf16, #tpu.memory_space<vmem>>, vector<16x16x16xbf16>
    %17 = vector.shape_cast %16 : vector<16x16x16xbf16> to vector<256x16xbf16>
    %c0_15 = arith.constant 0 : index
    %c2 = arith.constant 2 : index
    %c0_16 = arith.constant 0 : index
    %c0_17 = arith.constant 0 : index
    %18 = vector.load %arg3[%c0_15, %c2, %c0_16, %c0_17] : memref<1x9x16x8xbf16, #tpu.memory_space<vmem>>, vector<1x1x16x8xbf16>
    %19 = vector.shape_cast %18 : vector<1x1x16x8xbf16> to vector<16x8xbf16>
    %cst_18 = arith.constant dense<0.000000e+00> : vector<256x8xf32>
    %20 = tpu.matmul %17, %19, %cst_18 {dimension_numbers = #tpu.dot_dimension_numbers<[1], [0], [0], [1], [0, 0, 1, 1], [], []>} : vector<256x16xbf16>, vector<16x8xbf16>, vector<256x8xf32> -> vector<256x8xf32>
    %21 = arith.addf %15, %20 : vector<256x8xf32>
    %c1_19 = arith.constant 1 : index
    %c15_20 = arith.constant 15 : index
    %c0_21 = arith.constant 0 : index
    %22 = vector.load %arg14[%c1_19, %c15_20, %c0_21] : memref<18x48x48xbf16, #tpu.memory_space<vmem>>, vector<16x16x16xbf16>
    %23 = vector.shape_cast %22 : vector<16x16x16xbf16> to vector<256x16xbf16>
    %c0_22 = arith.constant 0 : index
    %c3 = arith.constant 3 : index
    %c0_23 = arith.constant 0 : index
    %c0_24 = arith.constant 0 : index
    %24 = vector.load %arg3[%c0_22, %c3, %c0_23, %c0_24] : memref<1x9x16x8xbf16, #tpu.memory_space<vmem>>, vector<1x1x16x8xbf16>
    %25 = vector.shape_cast %24 : vector<1x1x16x8xbf16> to vector<16x8xbf16>
    %cst_25 = arith.constant dense<0.000000e+00> : vector<256x8xf32>
    %26 = tpu.matmul %23, %25, %cst_25 {dimension_numbers = #tpu.dot_dimension_numbers<[1], [0], [0], [1], [0, 0, 1, 1], [], []>} : vector<256x16xbf16>, vector<16x8xbf16>, vector<256x8xf32> -> vector<256x8xf32>
    %27 = arith.addf %21, %26 : vector<256x8xf32>
    %c1_26 = arith.constant 1 : index
    %c16_27 = arith.constant 16 : index
    %c0_28 = arith.constant 0 : index
    %28 = vector.load %arg14[%c1_26, %c16_27, %c0_28] : memref<18x48x48xbf16, #tpu.memory_space<vmem>>, vector<16x16x16xbf16>
    %29 = vector.shape_cast %28 : vector<16x16x16xbf16> to vector<256x16xbf16>
    %c0_29 = arith.constant 0 : index
    %c4 = arith.constant 4 : index
    %c0_30 = arith.constant 0 : index
    %c0_31 = arith.constant 0 : index
    %30 = vector.load %arg3[%c0_29, %c4, %c0_30, %c0_31] : memref<1x9x16x8xbf16, #tpu.memory_space<vmem>>, vector<1x1x16x8xbf16>
    %31 = vector.shape_cast %30 : vector<1x1x16x8xbf16> to vector<16x8xbf16>
    %cst_32 = arith.constant dense<0.000000e+00> : vector<256x8xf32>
    %32 = tpu.matmul %29, %31, %cst_32 {dimension_numbers = #tpu.dot_dimension_numbers<[1], [0], [0], [1], [0, 0, 1, 1], [], []>} : vector<256x16xbf16>, vector<16x8xbf16>, vector<256x8xf32> -> vector<256x8xf32>
    %33 = arith.addf %27, %32 : vector<256x8xf32>
    %c1_33 = arith.constant 1 : index
    %c17_34 = arith.constant 17 : index
    %c0_35 = arith.constant 0 : index
    %34 = vector.load %arg14[%c1_33, %c17_34, %c0_35] : memref<18x48x48xbf16, #tpu.memory_space<vmem>>, vector<16x16x16xbf16>
    %35 = vector.shape_cast %34 : vector<16x16x16xbf16> to vector<256x16xbf16>
    %c0_36 = arith.constant 0 : index
    %c5 = arith.constant 5 : index
    %c0_37 = arith.constant 0 : index
    %c0_38 = arith.constant 0 : index
    %36 = vector.load %arg3[%c0_36, %c5, %c0_37, %c0_38] : memref<1x9x16x8xbf16, #tpu.memory_space<vmem>>, vector<1x1x16x8xbf16>
    %37 = vector.shape_cast %36 : vector<1x1x16x8xbf16> to vector<16x8xbf16>
    %cst_39 = arith.constant dense<0.000000e+00> : vector<256x8xf32>
    %38 = tpu.matmul %35, %37, %cst_39 {dimension_numbers = #tpu.dot_dimension_numbers<[1], [0], [0], [1], [0, 0, 1, 1], [], []>} : vector<256x16xbf16>, vector<16x8xbf16>, vector<256x8xf32> -> vector<256x8xf32>
    %39 = arith.addf %33, %38 : vector<256x8xf32>
    %c2_40 = arith.constant 2 : index
    %c15_41 = arith.constant 15 : index
    %c0_42 = arith.constant 0 : index
    %40 = vector.load %arg14[%c2_40, %c15_41, %c0_42] : memref<18x48x48xbf16, #tpu.memory_space<vmem>>, vector<16x16x16xbf16>
    %41 = vector.shape_cast %40 : vector<16x16x16xbf16> to vector<256x16xbf16>
    %c0_43 = arith.constant 0 : index
    %c6 = arith.constant 6 : index
    %c0_44 = arith.constant 0 : index
    %c0_45 = arith.constant 0 : index
    %42 = vector.load %arg3[%c0_43, %c6, %c0_44, %c0_45] : memref<1x9x16x8xbf16, #tpu.memory_space<vmem>>, vector<1x1x16x8xbf16>
    %43 = vector.shape_cast %42 : vector<1x1x16x8xbf16> to vector<16x8xbf16>
    %cst_46 = arith.constant dense<0.000000e+00> : vector<256x8xf32>
    %44 = tpu.matmul %41, %43, %cst_46 {dimension_numbers = #tpu.dot_dimension_numbers<[1], [0], [0], [1], [0, 0, 1, 1], [], []>} : vector<256x16xbf16>, vector<16x8xbf16>, vector<256x8xf32> -> vector<256x8xf32>
    %45 = arith.addf %39, %44 : vector<256x8xf32>
    %c2_47 = arith.constant 2 : index
    %c16_48 = arith.constant 16 : index
    %c0_49 = arith.constant 0 : index
    %46 = vector.load %arg14[%c2_47, %c16_48, %c0_49] : memref<18x48x48xbf16, #tpu.memory_space<vmem>>, vector<16x16x16xbf16>
    %47 = vector.shape_cast %46 : vector<16x16x16xbf16> to vector<256x16xbf16>
    %c0_50 = arith.constant 0 : index
    %c7 = arith.constant 7 : index
    %c0_51 = arith.constant 0 : index
    %c0_52 = arith.constant 0 : index
    %48 = vector.load %arg3[%c0_50, %c7, %c0_51, %c0_52] : memref<1x9x16x8xbf16, #tpu.memory_space<vmem>>, vector<1x1x16x8xbf16>
    %49 = vector.shape_cast %48 : vector<1x1x16x8xbf16> to vector<16x8xbf16>
    %cst_53 = arith.constant dense<0.000000e+00> : vector<256x8xf32>
    %50 = tpu.matmul %47, %49, %cst_53 {dimension_numbers = #tpu.dot_dimension_numbers<[1], [0], [0], [1], [0, 0, 1, 1], [], []>} : vector<256x16xbf16>, vector<16x8xbf16>, vector<256x8xf32> -> vector<256x8xf32>
    %51 = arith.addf %45, %50 : vector<256x8xf32>
    %c2_54 = arith.constant 2 : index
    %c17_55 = arith.constant 17 : index
    %c0_56 = arith.constant 0 : index
    %52 = vector.load %arg14[%c2_54, %c17_55, %c0_56] : memref<18x48x48xbf16, #tpu.memory_space<vmem>>, vector<16x16x16xbf16>
    %53 = vector.shape_cast %52 : vector<16x16x16xbf16> to vector<256x16xbf16>
    %c0_57 = arith.constant 0 : index
    %c8 = arith.constant 8 : index
    %c0_58 = arith.constant 0 : index
    %c0_59 = arith.constant 0 : index
    %54 = vector.load %arg3[%c0_57, %c8, %c0_58, %c0_59] : memref<1x9x16x8xbf16, #tpu.memory_space<vmem>>, vector<1x1x16x8xbf16>
    %55 = vector.shape_cast %54 : vector<1x1x16x8xbf16> to vector<16x8xbf16>
    %cst_60 = arith.constant dense<0.000000e+00> : vector<256x8xf32>
    %56 = tpu.matmul %53, %55, %cst_60 {dimension_numbers = #tpu.dot_dimension_numbers<[1], [0], [0], [1], [0, 0, 1, 1], [], []>} : vector<256x16xbf16>, vector<16x8xbf16>, vector<256x8xf32> -> vector<256x8xf32>
    %57 = arith.addf %51, %56 : vector<256x8xf32>
    %c0_61 = arith.constant 0 : index
    %c0_62 = arith.constant 0 : index
    %c0_63 = arith.constant 0 : index
    %58 = vector.load %arg8[%c0_61, %c0_62, %c0_63] : memref<1x1x8xf32, #tpu.memory_space<vmem>>, vector<1x1x8xf32>
    %59 = vector.shape_cast %58 : vector<1x1x8xf32> to vector<1x8xf32>
    %60 = vector.broadcast %59 : vector<1x8xf32> to vector<256x8xf32>
    %61 = arith.addf %57, %60 : vector<256x8xf32>
    %cst_64 = arith.constant 2.000000e-01 : f32
    %62 = vector.broadcast %cst_64 : f32 to vector<256x8xf32>
    %63 = arith.mulf %62, %61 : vector<256x8xf32>
    %64 = arith.maximumf %61, %63 : vector<256x8xf32>
    %65 = vector.shape_cast %64 : vector<256x8xf32> to vector<16x16x8xf32>
    %66 = arith.truncf %65 : vector<16x16x8xf32> to vector<16x16x8xbf16>
    %c1_65 = arith.constant 1 : index
    %c16_66 = arith.constant 16 : index
    %c16_67 = arith.constant 16 : index
    %67 = vector.load %arg14[%c1_65, %c16_66, %c16_67] : memref<18x48x48xbf16, #tpu.memory_space<vmem>>, vector<16x16x8xbf16>
    tpu.vector_store %arg14[%c1_65, %c16_66, %c16_67], %66 {strides = array<i32>} : memref<18x48x48xbf16, #tpu.memory_space<vmem>>, vector<16x16x8xbf16>,
    %cst_68 = arith.constant 0.000000e+00 : f32
    %68 = vector.broadcast %cst_68 : f32 to vector<256x8xf32>
    %c0_69 = arith.constant 0 : index
    %c15_70 = arith.constant 15 : index
    %c0_71 = arith.constant 0 : index
    %69 = vector.load %arg14[%c0_69, %c15_70, %c0_71] : memref<18x48x48xbf16, #tpu.memory_space<vmem>>, vector<16x16x24xbf16>
    %70 = vector.shape_cast %69 : vector<16x16x24xbf16> to vector<256x24xbf16>
    %c0_72 = arith.constant 0 : index
    %c0_73 = arith.constant 0 : index
    %c0_74 = arith.constant 0 : index
    %c0_75 = arith.constant 0 : index
    %71 = vector.load %arg4[%c0_72, %c0_73, %c0_74, %c0_75] : memref<1x9x24x8xbf16, #tpu.memory_space<vmem>>, vector<1x1x24x8xbf16>
    %72 = vector.shape_cast %71 : vector<1x1x24x8xbf16> to vector<24x8xbf16>
    %cst_76 = arith.constant dense<0.000000e+00> : vector<256x8xf32>
    %73 = tpu.matmul %70, %72, %cst_76 {dimension_numbers = #tpu.dot_dimension_numbers<[1], [0], [0], [1], [0, 0, 1, 1], [], []>} : vector<256x24xbf16>, vector<24x8xbf16>, vector<256x8xf32> -> vector<256x8xf32>
    %74 = arith.addf %68, %73 : vector<256x8xf32>
    %c0_77 = arith.constant 0 : index
    %c16_78 = arith.constant 16 : index
    %c0_79 = arith.constant 0 : index
    %75 = vector.load %arg14[%c0_77, %c16_78, %c0_79] : memref<18x48x48xbf16, #tpu.memory_space<vmem>>, vector<16x16x24xbf16>
    %76 = vector.shape_cast %75 : vector<16x16x24xbf16> to vector<256x24xbf16>
    %c0_80 = arith.constant 0 : index
    %c1_81 = arith.constant 1 : index
    %c0_82 = arith.constant 0 : index
    %c0_83 = arith.constant 0 : index
    %77 = vector.load %arg4[%c0_80, %c1_81, %c0_82, %c0_83] : memref<1x9x24x8xbf16, #tpu.memory_space<vmem>>, vector<1x1x24x8xbf16>
    %78 = vector.shape_cast %77 : vector<1x1x24x8xbf16> to vector<24x8xbf16>
    %cst_84 = arith.constant dense<0.000000e+00> : vector<256x8xf32>
    %79 = tpu.matmul %76, %78, %cst_84 {dimension_numbers = #tpu.dot_dimension_numbers<[1], [0], [0], [1], [0, 0, 1, 1], [], []>} : vector<256x24xbf16>, vector<24x8xbf16>, vector<256x8xf32> -> vector<256x8xf32>
    %80 = arith.addf %74, %79 : vector<256x8xf32>
    %c0_85 = arith.constant 0 : index
    %c17_86 = arith.constant 17 : index
    %c0_87 = arith.constant 0 : index
    %81 = vector.load %arg14[%c0_85, %c17_86, %c0_87] : memref<18x48x48xbf16, #tpu.memory_space<vmem>>, vector<16x16x24xbf16>
    %82 = vector.shape_cast %81 : vector<16x16x24xbf16> to vector<256x24xbf16>
    %c0_88 = arith.constant 0 : index
    %c2_89 = arith.constant 2 : index
    %c0_90 = arith.constant 0 : index
    %c0_91 = arith.constant 0 : index
    %83 = vector.load %arg4[%c0_88, %c2_89, %c0_90, %c0_91] : memref<1x9x24x8xbf16, #tpu.memory_space<vmem>>, vector<1x1x24x8xbf16>
    %84 = vector.shape_cast %83 : vector<1x1x24x8xbf16> to vector<24x8xbf16>
    %cst_92 = arith.constant dense<0.000000e+00> : vector<256x8xf32>
    %85 = tpu.matmul %82, %84, %cst_92 {dimension_numbers = #tpu.dot_dimension_numbers<[1], [0], [0], [1], [0, 0, 1, 1], [], []>} : vector<256x24xbf16>, vector<24x8xbf16>, vector<256x8xf32> -> vector<256x8xf32>
    %86 = arith.addf %80, %85 : vector<256x8xf32>
    %c1_93 = arith.constant 1 : index
    %c15_94 = arith.constant 15 : index
    %c0_95 = arith.constant 0 : index
    %87 = vector.load %arg14[%c1_93, %c15_94, %c0_95] : memref<18x48x48xbf16, #tpu.memory_space<vmem>>, vector<16x16x24xbf16>
    %88 = vector.shape_cast %87 : vector<16x16x24xbf16> to vector<256x24xbf16>
    %c0_96 = arith.constant 0 : index
    %c3_97 = arith.constant 3 : index
    %c0_98 = arith.constant 0 : index
    %c0_99 = arith.constant 0 : index
    %89 = vector.load %arg4[%c0_96, %c3_97, %c0_98, %c0_99] : memref<1x9x24x8xbf16, #tpu.memory_space<vmem>>, vector<1x1x24x8xbf16>
    %90 = vector.shape_cast %89 : vector<1x1x24x8xbf16> to vector<24x8xbf16>
    %cst_100 = arith.constant dense<0.000000e+00> : vector<256x8xf32>
    %91 = tpu.matmul %88, %90, %cst_100 {dimension_numbers = #tpu.dot_dimension_numbers<[1], [0], [0], [1], [0, 0, 1, 1], [], []>} : vector<256x24xbf16>, vector<24x8xbf16>, vector<256x8xf32> -> vector<256x8xf32>
    %92 = arith.addf %86, %91 : vector<256x8xf32>
    %c1_101 = arith.constant 1 : index
    %c16_102 = arith.constant 16 : index
    %c0_103 = arith.constant 0 : index
    %93 = vector.load %arg14[%c1_101, %c16_102, %c0_103] : memref<18x48x48xbf16, #tpu.memory_space<vmem>>, vector<16x16x24xbf16>
    %94 = vector.shape_cast %93 : vector<16x16x24xbf16> to vector<256x24xbf16>
    %c0_104 = arith.constant 0 : index
    %c4_105 = arith.constant 4 : index
    %c0_106 = arith.constant 0 : index
    %c0_107 = arith.constant 0 : index
    %95 = vector.load %arg4[%c0_104, %c4_105, %c0_106, %c0_107] : memref<1x9x24x8xbf16, #tpu.memory_space<vmem>>, vector<1x1x24x8xbf16>
    %96 = vector.shape_cast %95 : vector<1x1x24x8xbf16> to vector<24x8xbf16>
    %cst_108 = arith.constant dense<0.000000e+00> : vector<256x8xf32>
    %97 = tpu.matmul %94, %96, %cst_108 {dimension_numbers = #tpu.dot_dimension_numbers<[1], [0], [0], [1], [0, 0, 1, 1], [], []>} : vector<256x24xbf16>, vector<24x8xbf16>, vector<256x8xf32> -> vector<256x8xf32>
    %98 = arith.addf %92, %97 : vector<256x8xf32>
    %c1_109 = arith.constant 1 : index
    %c17_110 = arith.constant 17 : index
    %c0_111 = arith.constant 0 : index
    %99 = vector.load %arg14[%c1_109, %c17_110, %c0_111] : memref<18x48x48xbf16, #tpu.memory_space<vmem>>, vector<16x16x24xbf16>
    %100 = vector.shape_cast %99 : vector<16x16x24xbf16> to vector<256x24xbf16>
    %c0_112 = arith.constant 0 : index
    %c5_113 = arith.constant 5 : index
    %c0_114 = arith.constant 0 : index
    %c0_115 = arith.constant 0 : index
    %101 = vector.load %arg4[%c0_112, %c5_113, %c0_114, %c0_115] : memref<1x9x24x8xbf16, #tpu.memory_space<vmem>>, vector<1x1x24x8xbf16>
    %102 = vector.shape_cast %101 : vector<1x1x24x8xbf16> to vector<24x8xbf16>
    %cst_116 = arith.constant dense<0.000000e+00> : vector<256x8xf32>
    %103 = tpu.matmul %100, %102, %cst_116 {dimension_numbers = #tpu.dot_dimension_numbers<[1], [0], [0], [1], [0, 0, 1, 1], [], []>} : vector<256x24xbf16>, vector<24x8xbf16>, vector<256x8xf32> -> vector<256x8xf32>
    %104 = arith.addf %98, %103 : vector<256x8xf32>
    %c2_117 = arith.constant 2 : index
    %c15_118 = arith.constant 15 : index
    %c0_119 = arith.constant 0 : index
    %105 = vector.load %arg14[%c2_117, %c15_118, %c0_119] : memref<18x48x48xbf16, #tpu.memory_space<vmem>>, vector<16x16x24xbf16>
    %106 = vector.shape_cast %105 : vector<16x16x24xbf16> to vector<256x24xbf16>
    %c0_120 = arith.constant 0 : index
    %c6_121 = arith.constant 6 : index
    %c0_122 = arith.constant 0 : index
    %c0_123 = arith.constant 0 : index
    %107 = vector.load %arg4[%c0_120, %c6_121, %c0_122, %c0_123] : memref<1x9x24x8xbf16, #tpu.memory_space<vmem>>, vector<1x1x24x8xbf16>
    %108 = vector.shape_cast %107 : vector<1x1x24x8xbf16> to vector<24x8xbf16>
    %cst_124 = arith.constant dense<0.000000e+00> : vector<256x8xf32>
    %109 = tpu.matmul %106, %108, %cst_124 {dimension_numbers = #tpu.dot_dimension_numbers<[1], [0], [0], [1], [0, 0, 1, 1], [], []>} : vector<256x24xbf16>, vector<24x8xbf16>, vector<256x8xf32> -> vector<256x8xf32>
    %110 = arith.addf %104, %109 : vector<256x8xf32>
    %c2_125 = arith.constant 2 : index
    %c16_126 = arith.constant 16 : index
    %c0_127 = arith.constant 0 : index
    %111 = vector.load %arg14[%c2_125, %c16_126, %c0_127] : memref<18x48x48xbf16, #tpu.memory_space<vmem>>, vector<16x16x24xbf16>
    %112 = vector.shape_cast %111 : vector<16x16x24xbf16> to vector<256x24xbf16>
    %c0_128 = arith.constant 0 : index
    %c7_129 = arith.constant 7 : index
    %c0_130 = arith.constant 0 : index
    %c0_131 = arith.constant 0 : index
    %113 = vector.load %arg4[%c0_128, %c7_129, %c0_130, %c0_131] : memref<1x9x24x8xbf16, #tpu.memory_space<vmem>>, vector<1x1x24x8xbf16>
    %114 = vector.shape_cast %113 : vector<1x1x24x8xbf16> to vector<24x8xbf16>
    %cst_132 = arith.constant dense<0.000000e+00> : vector<256x8xf32>
    %115 = tpu.matmul %112, %114, %cst_132 {dimension_numbers = #tpu.dot_dimension_numbers<[1], [0], [0], [1], [0, 0, 1, 1], [], []>} : vector<256x24xbf16>, vector<24x8xbf16>, vector<256x8xf32> -> vector<256x8xf32>
    %116 = arith.addf %110, %115 : vector<256x8xf32>
    %c2_133 = arith.constant 2 : index
    %c17_134 = arith.constant 17 : index
    %c0_135 = arith.constant 0 : index
    %117 = vector.load %arg14[%c2_133, %c17_134, %c0_135] : memref<18x48x48xbf16, #tpu.memory_space<vmem>>, vector<16x16x24xbf16>
    %118 = vector.shape_cast %117 : vector<16x16x24xbf16> to vector<256x24xbf16>
    %c0_136 = arith.constant 0 : index
    %c8_137 = arith.constant 8 : index
    %c0_138 = arith.constant 0 : index
    %c0_139 = arith.constant 0 : index
    %119 = vector.load %arg4[%c0_136, %c8_137, %c0_138, %c0_139] : memref<1x9x24x8xbf16, #tpu.memory_space<vmem>>, vector<1x1x24x8xbf16>
    %120 = vector.shape_cast %119 : vector<1x1x24x8xbf16> to vector<24x8xbf16>
    %cst_140 = arith.constant dense<0.000000e+00> : vector<256x8xf32>
    %121 = tpu.matmul %118, %120, %cst_140 {dimension_numbers = #tpu.dot_dimension_numbers<[1], [0], [0], [1], [0, 0, 1, 1], [], []>} : vector<256x24xbf16>, vector<24x8xbf16>, vector<256x8xf32> -> vector<256x8xf32>
    %122 = arith.addf %116, %121 : vector<256x8xf32>
    %c0_141 = arith.constant 0 : index
    %c0_142 = arith.constant 0 : index
    %c0_143 = arith.constant 0 : index
    %123 = vector.load %arg9[%c0_141, %c0_142, %c0_143] : memref<1x1x8xf32, #tpu.memory_space<vmem>>, vector<1x1x8xf32>
    %124 = vector.shape_cast %123 : vector<1x1x8xf32> to vector<1x8xf32>
    %125 = vector.broadcast %124 : vector<1x8xf32> to vector<256x8xf32>
    %126 = arith.addf %122, %125 : vector<256x8xf32>
    %cst_144 = arith.constant 2.000000e-01 : f32
    %127 = vector.broadcast %cst_144 : f32 to vector<256x8xf32>
    %128 = arith.mulf %127, %126 : vector<256x8xf32>
    %129 = arith.maximumf %126, %128 : vector<256x8xf32>
    %130 = vector.shape_cast %129 : vector<256x8xf32> to vector<16x16x8xf32>
    %131 = arith.truncf %130 : vector<16x16x8xf32> to vector<16x16x8xbf16>
    %c1_145 = arith.constant 1 : index
    %c16_146 = arith.constant 16 : index
    %c24 = arith.constant 24 : index
    %132 = vector.load %arg14[%c1_145, %c16_146, %c24] : memref<18x48x48xbf16, #tpu.memory_space<vmem>>, vector<16x16x8xbf16>
    tpu.vector_store %arg14[%c1_145, %c16_146, %c24], %131 {strides = array<i32>} : memref<18x48x48xbf16, #tpu.memory_space<vmem>>, vector<16x16x8xbf16>,
    %cst_147 = arith.constant 0.000000e+00 : f32
    %133 = vector.broadcast %cst_147 : f32 to vector<256x8xf32>
    %c0_148 = arith.constant 0 : index
    %c15_149 = arith.constant 15 : index
    %c0_150 = arith.constant 0 : index
    %134 = vector.load %arg14[%c0_148, %c15_149, %c0_150] : memref<18x48x48xbf16, #tpu.memory_space<vmem>>, vector<16x16x32xbf16>
    %135 = vector.shape_cast %134 : vector<16x16x32xbf16> to vector<256x32xbf16>
    %c0_151 = arith.constant 0 : index
    %c0_152 = arith.constant 0 : index
    %c0_153 = arith.constant 0 : index
    %c0_154 = arith.constant 0 : index
    %136 = vector.load %arg5[%c0_151, %c0_152, %c0_153, %c0_154] : memref<1x9x32x8xbf16, #tpu.memory_space<vmem>>, vector<1x1x32x8xbf16>
    %137 = vector.shape_cast %136 : vector<1x1x32x8xbf16> to vector<32x8xbf16>
    %cst_155 = arith.constant dense<0.000000e+00> : vector<256x8xf32>
    %138 = tpu.matmul %135, %137, %cst_155 {dimension_numbers = #tpu.dot_dimension_numbers<[1], [0], [0], [1], [0, 0, 1, 1], [], []>} : vector<256x32xbf16>, vector<32x8xbf16>, vector<256x8xf32> -> vector<256x8xf32>
    %139 = arith.addf %133, %138 : vector<256x8xf32>
    %c0_156 = arith.constant 0 : index
    %c16_157 = arith.constant 16 : index
    %c0_158 = arith.constant 0 : index
    %140 = vector.load %arg14[%c0_156, %c16_157, %c0_158] : memref<18x48x48xbf16, #tpu.memory_space<vmem>>, vector<16x16x32xbf16>
    %141 = vector.shape_cast %140 : vector<16x16x32xbf16> to vector<256x32xbf16>
    %c0_159 = arith.constant 0 : index
    %c1_160 = arith.constant 1 : index
    %c0_161 = arith.constant 0 : index
    %c0_162 = arith.constant 0 : index
    %142 = vector.load %arg5[%c0_159, %c1_160, %c0_161, %c0_162] : memref<1x9x32x8xbf16, #tpu.memory_space<vmem>>, vector<1x1x32x8xbf16>
    %143 = vector.shape_cast %142 : vector<1x1x32x8xbf16> to vector<32x8xbf16>
    %cst_163 = arith.constant dense<0.000000e+00> : vector<256x8xf32>
    %144 = tpu.matmul %141, %143, %cst_163 {dimension_numbers = #tpu.dot_dimension_numbers<[1], [0], [0], [1], [0, 0, 1, 1], [], []>} : vector<256x32xbf16>, vector<32x8xbf16>, vector<256x8xf32> -> vector<256x8xf32>
    %145 = arith.addf %139, %144 : vector<256x8xf32>
    %c0_164 = arith.constant 0 : index
    %c17_165 = arith.constant 17 : index
    %c0_166 = arith.constant 0 : index
    %146 = vector.load %arg14[%c0_164, %c17_165, %c0_166] : memref<18x48x48xbf16, #tpu.memory_space<vmem>>, vector<16x16x32xbf16>
    %147 = vector.shape_cast %146 : vector<16x16x32xbf16> to vector<256x32xbf16>
    %c0_167 = arith.constant 0 : index
    %c2_168 = arith.constant 2 : index
    %c0_169 = arith.constant 0 : index
    %c0_170 = arith.constant 0 : index
    %148 = vector.load %arg5[%c0_167, %c2_168, %c0_169, %c0_170] : memref<1x9x32x8xbf16, #tpu.memory_space<vmem>>, vector<1x1x32x8xbf16>
    %149 = vector.shape_cast %148 : vector<1x1x32x8xbf16> to vector<32x8xbf16>
    %cst_171 = arith.constant dense<0.000000e+00> : vector<256x8xf32>
    %150 = tpu.matmul %147, %149, %cst_171 {dimension_numbers = #tpu.dot_dimension_numbers<[1], [0], [0], [1], [0, 0, 1, 1], [], []>} : vector<256x32xbf16>, vector<32x8xbf16>, vector<256x8xf32> -> vector<256x8xf32>
    %151 = arith.addf %145, %150 : vector<256x8xf32>
    %c1_172 = arith.constant 1 : index
    %c15_173 = arith.constant 15 : index
    %c0_174 = arith.constant 0 : index
    %152 = vector.load %arg14[%c1_172, %c15_173, %c0_174] : memref<18x48x48xbf16, #tpu.memory_space<vmem>>, vector<16x16x32xbf16>
    %153 = vector.shape_cast %152 : vector<16x16x32xbf16> to vector<256x32xbf16>
    %c0_175 = arith.constant 0 : index
    %c3_176 = arith.constant 3 : index
    %c0_177 = arith.constant 0 : index
    %c0_178 = arith.constant 0 : index
    %154 = vector.load %arg5[%c0_175, %c3_176, %c0_177, %c0_178] : memref<1x9x32x8xbf16, #tpu.memory_space<vmem>>, vector<1x1x32x8xbf16>
    %155 = vector.shape_cast %154 : vector<1x1x32x8xbf16> to vector<32x8xbf16>
    %cst_179 = arith.constant dense<0.000000e+00> : vector<256x8xf32>
    %156 = tpu.matmul %153, %155, %cst_179 {dimension_numbers = #tpu.dot_dimension_numbers<[1], [0], [0], [1], [0, 0, 1, 1], [], []>} : vector<256x32xbf16>, vector<32x8xbf16>, vector<256x8xf32> -> vector<256x8xf32>
    %157 = arith.addf %151, %156 : vector<256x8xf32>
    %c1_180 = arith.constant 1 : index
    %c16_181 = arith.constant 16 : index
    %c0_182 = arith.constant 0 : index
    %158 = vector.load %arg14[%c1_180, %c16_181, %c0_182] : memref<18x48x48xbf16, #tpu.memory_space<vmem>>, vector<16x16x32xbf16>
    %159 = vector.shape_cast %158 : vector<16x16x32xbf16> to vector<256x32xbf16>
    %c0_183 = arith.constant 0 : index
    %c4_184 = arith.constant 4 : index
    %c0_185 = arith.constant 0 : index
    %c0_186 = arith.constant 0 : index
    %160 = vector.load %arg5[%c0_183, %c4_184, %c0_185, %c0_186] : memref<1x9x32x8xbf16, #tpu.memory_space<vmem>>, vector<1x1x32x8xbf16>
    %161 = vector.shape_cast %160 : vector<1x1x32x8xbf16> to vector<32x8xbf16>
    %cst_187 = arith.constant dense<0.000000e+00> : vector<256x8xf32>
    %162 = tpu.matmul %159, %161, %cst_187 {dimension_numbers = #tpu.dot_dimension_numbers<[1], [0], [0], [1], [0, 0, 1, 1], [], []>} : vector<256x32xbf16>, vector<32x8xbf16>, vector<256x8xf32> -> vector<256x8xf32>
    %163 = arith.addf %157, %162 : vector<256x8xf32>
    %c1_188 = arith.constant 1 : index
    %c17_189 = arith.constant 17 : index
    %c0_190 = arith.constant 0 : index
    %164 = vector.load %arg14[%c1_188, %c17_189, %c0_190] : memref<18x48x48xbf16, #tpu.memory_space<vmem>>, vector<16x16x32xbf16>
    %165 = vector.shape_cast %164 : vector<16x16x32xbf16> to vector<256x32xbf16>
    %c0_191 = arith.constant 0 : index
    %c5_192 = arith.constant 5 : index
    %c0_193 = arith.constant 0 : index
    %c0_194 = arith.constant 0 : index
    %166 = vector.load %arg5[%c0_191, %c5_192, %c0_193, %c0_194] : memref<1x9x32x8xbf16, #tpu.memory_space<vmem>>, vector<1x1x32x8xbf16>
    %167 = vector.shape_cast %166 : vector<1x1x32x8xbf16> to vector<32x8xbf16>
    %cst_195 = arith.constant dense<0.000000e+00> : vector<256x8xf32>
    %168 = tpu.matmul %165, %167, %cst_195 {dimension_numbers = #tpu.dot_dimension_numbers<[1], [0], [0], [1], [0, 0, 1, 1], [], []>} : vector<256x32xbf16>, vector<32x8xbf16>, vector<256x8xf32> -> vector<256x8xf32>
    %169 = arith.addf %163, %168 : vector<256x8xf32>
    %c2_196 = arith.constant 2 : index
    %c15_197 = arith.constant 15 : index
    %c0_198 = arith.constant 0 : index
    %170 = vector.load %arg14[%c2_196, %c15_197, %c0_198] : memref<18x48x48xbf16, #tpu.memory_space<vmem>>, vector<16x16x32xbf16>
    %171 = vector.shape_cast %170 : vector<16x16x32xbf16> to vector<256x32xbf16>
    %c0_199 = arith.constant 0 : index
    %c6_200 = arith.constant 6 : index
    %c0_201 = arith.constant 0 : index
    %c0_202 = arith.constant 0 : index
    %172 = vector.load %arg5[%c0_199, %c6_200, %c0_201, %c0_202] : memref<1x9x32x8xbf16, #tpu.memory_space<vmem>>, vector<1x1x32x8xbf16>
    %173 = vector.shape_cast %172 : vector<1x1x32x8xbf16> to vector<32x8xbf16>
    %cst_203 = arith.constant dense<0.000000e+00> : vector<256x8xf32>
    %174 = tpu.matmul %171, %173, %cst_203 {dimension_numbers = #tpu.dot_dimension_numbers<[1], [0], [0], [1], [0, 0, 1, 1], [], []>} : vector<256x32xbf16>, vector<32x8xbf16>, vector<256x8xf32> -> vector<256x8xf32>
    %175 = arith.addf %169, %174 : vector<256x8xf32>
    %c2_204 = arith.constant 2 : index
    %c16_205 = arith.constant 16 : index
    %c0_206 = arith.constant 0 : index
    %176 = vector.load %arg14[%c2_204, %c16_205, %c0_206] : memref<18x48x48xbf16, #tpu.memory_space<vmem>>, vector<16x16x32xbf16>
    %177 = vector.shape_cast %176 : vector<16x16x32xbf16> to vector<256x32xbf16>
    %c0_207 = arith.constant 0 : index
    %c7_208 = arith.constant 7 : index
    %c0_209 = arith.constant 0 : index
    %c0_210 = arith.constant 0 : index
    %178 = vector.load %arg5[%c0_207, %c7_208, %c0_209, %c0_210] : memref<1x9x32x8xbf16, #tpu.memory_space<vmem>>, vector<1x1x32x8xbf16>
    %179 = vector.shape_cast %178 : vector<1x1x32x8xbf16> to vector<32x8xbf16>
    %cst_211 = arith.constant dense<0.000000e+00> : vector<256x8xf32>
    %180 = tpu.matmul %177, %179, %cst_211 {dimension_numbers = #tpu.dot_dimension_numbers<[1], [0], [0], [1], [0, 0, 1, 1], [], []>} : vector<256x32xbf16>, vector<32x8xbf16>, vector<256x8xf32> -> vector<256x8xf32>
    %181 = arith.addf %175, %180 : vector<256x8xf32>
    %c2_212 = arith.constant 2 : index
    %c17_213 = arith.constant 17 : index
    %c0_214 = arith.constant 0 : index
    %182 = vector.load %arg14[%c2_212, %c17_213, %c0_214] : memref<18x48x48xbf16, #tpu.memory_space<vmem>>, vector<16x16x32xbf16>
    %183 = vector.shape_cast %182 : vector<16x16x32xbf16> to vector<256x32xbf16>
    %c0_215 = arith.constant 0 : index
    %c8_216 = arith.constant 8 : index
    %c0_217 = arith.constant 0 : index
    %c0_218 = arith.constant 0 : index
    %184 = vector.load %arg5[%c0_215, %c8_216, %c0_217, %c0_218] : memref<1x9x32x8xbf16, #tpu.memory_space<vmem>>, vector<1x1x32x8xbf16>
    %185 = vector.shape_cast %184 : vector<1x1x32x8xbf16> to vector<32x8xbf16>
    %cst_219 = arith.constant dense<0.000000e+00> : vector<256x8xf32>
    %186 = tpu.matmul %183, %185, %cst_219 {dimension_numbers = #tpu.dot_dimension_numbers<[1], [0], [0], [1], [0, 0, 1, 1], [], []>} : vector<256x32xbf16>, vector<32x8xbf16>, vector<256x8xf32> -> vector<256x8xf32>
    %187 = arith.addf %181, %186 : vector<256x8xf32>
    %c0_220 = arith.constant 0 : index
    %c0_221 = arith.constant 0 : index
    %c0_222 = arith.constant 0 : index
    %188 = vector.load %arg10[%c0_220, %c0_221, %c0_222] : memref<1x1x8xf32, #tpu.memory_space<vmem>>, vector<1x1x8xf32>
    %189 = vector.shape_cast %188 : vector<1x1x8xf32> to vector<1x8xf32>
    %190 = vector.broadcast %189 : vector<1x8xf32> to vector<256x8xf32>
    %191 = arith.addf %187, %190 : vector<256x8xf32>
    %cst_223 = arith.constant 2.000000e-01 : f32
    %192 = vector.broadcast %cst_223 : f32 to vector<256x8xf32>
    %193 = arith.mulf %192, %191 : vector<256x8xf32>
    %194 = arith.maximumf %191, %193 : vector<256x8xf32>
    %195 = vector.shape_cast %194 : vector<256x8xf32> to vector<16x16x8xf32>
    %196 = arith.truncf %195 : vector<16x16x8xf32> to vector<16x16x8xbf16>
    %c1_224 = arith.constant 1 : index
    %c16_225 = arith.constant 16 : index
    %c32 = arith.constant 32 : index
    %197 = vector.load %arg14[%c1_224, %c16_225, %c32] : memref<18x48x48xbf16, #tpu.memory_space<vmem>>, vector<16x16x8xbf16>
    tpu.vector_store %arg14[%c1_224, %c16_225, %c32], %196 {strides = array<i32>} : memref<18x48x48xbf16, #tpu.memory_space<vmem>>, vector<16x16x8xbf16>,
    %cst_226 = arith.constant 0.000000e+00 : f32
    %198 = vector.broadcast %cst_226 : f32 to vector<256x8xf32>
    %c0_227 = arith.constant 0 : index
    %c15_228 = arith.constant 15 : index
    %c0_229 = arith.constant 0 : index
    %199 = vector.load %arg14[%c0_227, %c15_228, %c0_229] : memref<18x48x48xbf16, #tpu.memory_space<vmem>>, vector<16x16x40xbf16>
    %200 = vector.shape_cast %199 : vector<16x16x40xbf16> to vector<256x40xbf16>
    %c0_230 = arith.constant 0 : index
    %c0_231 = arith.constant 0 : index
    %c0_232 = arith.constant 0 : index
    %c0_233 = arith.constant 0 : index
    %201 = vector.load %arg6[%c0_230, %c0_231, %c0_232, %c0_233] : memref<1x9x40x8xbf16, #tpu.memory_space<vmem>>, vector<1x1x40x8xbf16>
    %202 = vector.shape_cast %201 : vector<1x1x40x8xbf16> to vector<40x8xbf16>
    %cst_234 = arith.constant dense<0.000000e+00> : vector<256x8xf32>
    %203 = tpu.matmul %200, %202, %cst_234 {dimension_numbers = #tpu.dot_dimension_numbers<[1], [0], [0], [1], [0, 0, 1, 1], [], []>} : vector<256x40xbf16>, vector<40x8xbf16>, vector<256x8xf32> -> vector<256x8xf32>
    %204 = arith.addf %198, %203 : vector<256x8xf32>
    %c0_235 = arith.constant 0 : index
    %c16_236 = arith.constant 16 : index
    %c0_237 = arith.constant 0 : index
    %205 = vector.load %arg14[%c0_235, %c16_236, %c0_237] : memref<18x48x48xbf16, #tpu.memory_space<vmem>>, vector<16x16x40xbf16>
    %206 = vector.shape_cast %205 : vector<16x16x40xbf16> to vector<256x40xbf16>
    %c0_238 = arith.constant 0 : index
    %c1_239 = arith.constant 1 : index
    %c0_240 = arith.constant 0 : index
    %c0_241 = arith.constant 0 : index
    %207 = vector.load %arg6[%c0_238, %c1_239, %c0_240, %c0_241] : memref<1x9x40x8xbf16, #tpu.memory_space<vmem>>, vector<1x1x40x8xbf16>
    %208 = vector.shape_cast %207 : vector<1x1x40x8xbf16> to vector<40x8xbf16>
    %cst_242 = arith.constant dense<0.000000e+00> : vector<256x8xf32>
    %209 = tpu.matmul %206, %208, %cst_242 {dimension_numbers = #tpu.dot_dimension_numbers<[1], [0], [0], [1], [0, 0, 1, 1], [], []>} : vector<256x40xbf16>, vector<40x8xbf16>, vector<256x8xf32> -> vector<256x8xf32>
    %210 = arith.addf %204, %209 : vector<256x8xf32>
    %c0_243 = arith.constant 0 : index
    %c17_244 = arith.constant 17 : index
    %c0_245 = arith.constant 0 : index
    %211 = vector.load %arg14[%c0_243, %c17_244, %c0_245] : memref<18x48x48xbf16, #tpu.memory_space<vmem>>, vector<16x16x40xbf16>
    %212 = vector.shape_cast %211 : vector<16x16x40xbf16> to vector<256x40xbf16>
    %c0_246 = arith.constant 0 : index
    %c2_247 = arith.constant 2 : index
    %c0_248 = arith.constant 0 : index
    %c0_249 = arith.constant 0 : index
    %213 = vector.load %arg6[%c0_246, %c2_247, %c0_248, %c0_249] : memref<1x9x40x8xbf16, #tpu.memory_space<vmem>>, vector<1x1x40x8xbf16>
    %214 = vector.shape_cast %213 : vector<1x1x40x8xbf16> to vector<40x8xbf16>
    %cst_250 = arith.constant dense<0.000000e+00> : vector<256x8xf32>
    %215 = tpu.matmul %212, %214, %cst_250 {dimension_numbers = #tpu.dot_dimension_numbers<[1], [0], [0], [1], [0, 0, 1, 1], [], []>} : vector<256x40xbf16>, vector<40x8xbf16>, vector<256x8xf32> -> vector<256x8xf32>
    %216 = arith.addf %210, %215 : vector<256x8xf32>
    %c1_251 = arith.constant 1 : index
    %c15_252 = arith.constant 15 : index
    %c0_253 = arith.constant 0 : index
    %217 = vector.load %arg14[%c1_251, %c15_252, %c0_253] : memref<18x48x48xbf16, #tpu.memory_space<vmem>>, vector<16x16x40xbf16>
    %218 = vector.shape_cast %217 : vector<16x16x40xbf16> to vector<256x40xbf16>
    %c0_254 = arith.constant 0 : index
    %c3_255 = arith.constant 3 : index
    %c0_256 = arith.constant 0 : index
    %c0_257 = arith.constant 0 : index
    %219 = vector.load %arg6[%c0_254, %c3_255, %c0_256, %c0_257] : memref<1x9x40x8xbf16, #tpu.memory_space<vmem>>, vector<1x1x40x8xbf16>
    %220 = vector.shape_cast %219 : vector<1x1x40x8xbf16> to vector<40x8xbf16>
    %cst_258 = arith.constant dense<0.000000e+00> : vector<256x8xf32>
    %221 = tpu.matmul %218, %220, %cst_258 {dimension_numbers = #tpu.dot_dimension_numbers<[1], [0], [0], [1], [0, 0, 1, 1], [], []>} : vector<256x40xbf16>, vector<40x8xbf16>, vector<256x8xf32> -> vector<256x8xf32>
    %222 = arith.addf %216, %221 : vector<256x8xf32>
    %c1_259 = arith.constant 1 : index
    %c16_260 = arith.constant 16 : index
    %c0_261 = arith.constant 0 : index
    %223 = vector.load %arg14[%c1_259, %c16_260, %c0_261] : memref<18x48x48xbf16, #tpu.memory_space<vmem>>, vector<16x16x40xbf16>
    %224 = vector.shape_cast %223 : vector<16x16x40xbf16> to vector<256x40xbf16>
    %c0_262 = arith.constant 0 : index
    %c4_263 = arith.constant 4 : index
    %c0_264 = arith.constant 0 : index
    %c0_265 = arith.constant 0 : index
    %225 = vector.load %arg6[%c0_262, %c4_263, %c0_264, %c0_265] : memref<1x9x40x8xbf16, #tpu.memory_space<vmem>>, vector<1x1x40x8xbf16>
    %226 = vector.shape_cast %225 : vector<1x1x40x8xbf16> to vector<40x8xbf16>
    %cst_266 = arith.constant dense<0.000000e+00> : vector<256x8xf32>
    %227 = tpu.matmul %224, %226, %cst_266 {dimension_numbers = #tpu.dot_dimension_numbers<[1], [0], [0], [1], [0, 0, 1, 1], [], []>} : vector<256x40xbf16>, vector<40x8xbf16>, vector<256x8xf32> -> vector<256x8xf32>
    %228 = arith.addf %222, %227 : vector<256x8xf32>
    %c1_267 = arith.constant 1 : index
    %c17_268 = arith.constant 17 : index
    %c0_269 = arith.constant 0 : index
    %229 = vector.load %arg14[%c1_267, %c17_268, %c0_269] : memref<18x48x48xbf16, #tpu.memory_space<vmem>>, vector<16x16x40xbf16>
    %230 = vector.shape_cast %229 : vector<16x16x40xbf16> to vector<256x40xbf16>
    %c0_270 = arith.constant 0 : index
    %c5_271 = arith.constant 5 : index
    %c0_272 = arith.constant 0 : index
    %c0_273 = arith.constant 0 : index
    %231 = vector.load %arg6[%c0_270, %c5_271, %c0_272, %c0_273] : memref<1x9x40x8xbf16, #tpu.memory_space<vmem>>, vector<1x1x40x8xbf16>
    %232 = vector.shape_cast %231 : vector<1x1x40x8xbf16> to vector<40x8xbf16>
    %cst_274 = arith.constant dense<0.000000e+00> : vector<256x8xf32>
    %233 = tpu.matmul %230, %232, %cst_274 {dimension_numbers = #tpu.dot_dimension_numbers<[1], [0], [0], [1], [0, 0, 1, 1], [], []>} : vector<256x40xbf16>, vector<40x8xbf16>, vector<256x8xf32> -> vector<256x8xf32>
    %234 = arith.addf %228, %233 : vector<256x8xf32>
    %c2_275 = arith.constant 2 : index
    %c15_276 = arith.constant 15 : index
    %c0_277 = arith.constant 0 : index
    %235 = vector.load %arg14[%c2_275, %c15_276, %c0_277] : memref<18x48x48xbf16, #tpu.memory_space<vmem>>, vector<16x16x40xbf16>
    %236 = vector.shape_cast %235 : vector<16x16x40xbf16> to vector<256x40xbf16>
    %c0_278 = arith.constant 0 : index
    %c6_279 = arith.constant 6 : index
    %c0_280 = arith.constant 0 : index
    %c0_281 = arith.constant 0 : index
    %237 = vector.load %arg6[%c0_278, %c6_279, %c0_280, %c0_281] : memref<1x9x40x8xbf16, #tpu.memory_space<vmem>>, vector<1x1x40x8xbf16>
    %238 = vector.shape_cast %237 : vector<1x1x40x8xbf16> to vector<40x8xbf16>
    %cst_282 = arith.constant dense<0.000000e+00> : vector<256x8xf32>
    %239 = tpu.matmul %236, %238, %cst_282 {dimension_numbers = #tpu.dot_dimension_numbers<[1], [0], [0], [1], [0, 0, 1, 1], [], []>} : vector<256x40xbf16>, vector<40x8xbf16>, vector<256x8xf32> -> vector<256x8xf32>
    %240 = arith.addf %234, %239 : vector<256x8xf32>
    %c2_283 = arith.constant 2 : index
    %c16_284 = arith.constant 16 : index
    %c0_285 = arith.constant 0 : index
    %241 = vector.load %arg14[%c2_283, %c16_284, %c0_285] : memref<18x48x48xbf16, #tpu.memory_space<vmem>>, vector<16x16x40xbf16>
    %242 = vector.shape_cast %241 : vector<16x16x40xbf16> to vector<256x40xbf16>
    %c0_286 = arith.constant 0 : index
    %c7_287 = arith.constant 7 : index
    %c0_288 = arith.constant 0 : index
    %c0_289 = arith.constant 0 : index
    %243 = vector.load %arg6[%c0_286, %c7_287, %c0_288, %c0_289] : memref<1x9x40x8xbf16, #tpu.memory_space<vmem>>, vector<1x1x40x8xbf16>
    %244 = vector.shape_cast %243 : vector<1x1x40x8xbf16> to vector<40x8xbf16>
    %cst_290 = arith.constant dense<0.000000e+00> : vector<256x8xf32>
    %245 = tpu.matmul %242, %244, %cst_290 {dimension_numbers = #tpu.dot_dimension_numbers<[1], [0], [0], [1], [0, 0, 1, 1], [], []>} : vector<256x40xbf16>, vector<40x8xbf16>, vector<256x8xf32> -> vector<256x8xf32>
    %246 = arith.addf %240, %245 : vector<256x8xf32>
    %c2_291 = arith.constant 2 : index
    %c17_292 = arith.constant 17 : index
    %c0_293 = arith.constant 0 : index
    %247 = vector.load %arg14[%c2_291, %c17_292, %c0_293] : memref<18x48x48xbf16, #tpu.memory_space<vmem>>, vector<16x16x40xbf16>
    %248 = vector.shape_cast %247 : vector<16x16x40xbf16> to vector<256x40xbf16>
    %c0_294 = arith.constant 0 : index
    %c8_295 = arith.constant 8 : index
    %c0_296 = arith.constant 0 : index
    %c0_297 = arith.constant 0 : index
    %249 = vector.load %arg6[%c0_294, %c8_295, %c0_296, %c0_297] : memref<1x9x40x8xbf16, #tpu.memory_space<vmem>>, vector<1x1x40x8xbf16>
    %250 = vector.shape_cast %249 : vector<1x1x40x8xbf16> to vector<40x8xbf16>
    %cst_298 = arith.constant dense<0.000000e+00> : vector<256x8xf32>
    %251 = tpu.matmul %248, %250, %cst_298 {dimension_numbers = #tpu.dot_dimension_numbers<[1], [0], [0], [1], [0, 0, 1, 1], [], []>} : vector<256x40xbf16>, vector<40x8xbf16>, vector<256x8xf32> -> vector<256x8xf32>
    %252 = arith.addf %246, %251 : vector<256x8xf32>
    %c0_299 = arith.constant 0 : index
    %c0_300 = arith.constant 0 : index
    %c0_301 = arith.constant 0 : index
    %253 = vector.load %arg11[%c0_299, %c0_300, %c0_301] : memref<1x1x8xf32, #tpu.memory_space<vmem>>, vector<1x1x8xf32>
    %254 = vector.shape_cast %253 : vector<1x1x8xf32> to vector<1x8xf32>
    %255 = vector.broadcast %254 : vector<1x8xf32> to vector<256x8xf32>
    %256 = arith.addf %252, %255 : vector<256x8xf32>
    %cst_302 = arith.constant 2.000000e-01 : f32
    %257 = vector.broadcast %cst_302 : f32 to vector<256x8xf32>
    %258 = arith.mulf %257, %256 : vector<256x8xf32>
    %259 = arith.maximumf %256, %258 : vector<256x8xf32>
    %260 = vector.shape_cast %259 : vector<256x8xf32> to vector<16x16x8xf32>
    %261 = arith.truncf %260 : vector<16x16x8xf32> to vector<16x16x8xbf16>
    %c1_303 = arith.constant 1 : index
    %c16_304 = arith.constant 16 : index
    %c40 = arith.constant 40 : index
    %262 = vector.load %arg14[%c1_303, %c16_304, %c40] : memref<18x48x48xbf16, #tpu.memory_space<vmem>>, vector<16x16x8xbf16>
    tpu.vector_store %arg14[%c1_303, %c16_304, %c40], %261 {strides = array<i32>} : memref<18x48x48xbf16, #tpu.memory_space<vmem>>, vector<16x16x8xbf16>,
    %cst_305 = arith.constant 0.000000e+00 : f32
    %263 = vector.broadcast %cst_305 : f32 to vector<256x16xf32>
    %c0_306 = arith.constant 0 : index
    %c15_307 = arith.constant 15 : index
    %c0_308 = arith.constant 0 : index
    %264 = vector.load %arg14[%c0_306, %c15_307, %c0_308] : memref<18x48x48xbf16, #tpu.memory_space<vmem>>, vector<16x16x48xbf16>
    %265 = vector.shape_cast %264 : vector<16x16x48xbf16> to vector<256x48xbf16>
    %c0_309 = arith.constant 0 : index
    %c0_310 = arith.constant 0 : index
    %c0_311 = arith.constant 0 : index
    %c0_312 = arith.constant 0 : index
    %266 = vector.load %arg7[%c0_309, %c0_310, %c0_311, %c0_312] : memref<1x9x48x16xbf16, #tpu.memory_space<vmem>>, vector<1x1x48x16xbf16>
    %267 = vector.shape_cast %266 : vector<1x1x48x16xbf16> to vector<48x16xbf16>
    %cst_313 = arith.constant dense<0.000000e+00> : vector<256x16xf32>
    %268 = tpu.matmul %265, %267, %cst_313 {dimension_numbers = #tpu.dot_dimension_numbers<[1], [0], [0], [1], [0, 0, 1, 1], [], []>} : vector<256x48xbf16>, vector<48x16xbf16>, vector<256x16xf32> -> vector<256x16xf32>
    %269 = arith.addf %263, %268 : vector<256x16xf32>
    %c0_314 = arith.constant 0 : index
    %c16_315 = arith.constant 16 : index
    %c0_316 = arith.constant 0 : index
    %270 = vector.load %arg14[%c0_314, %c16_315, %c0_316] : memref<18x48x48xbf16, #tpu.memory_space<vmem>>, vector<16x16x48xbf16>
    %271 = vector.shape_cast %270 : vector<16x16x48xbf16> to vector<256x48xbf16>
    %c0_317 = arith.constant 0 : index
    %c1_318 = arith.constant 1 : index
    %c0_319 = arith.constant 0 : index
    %c0_320 = arith.constant 0 : index
    %272 = vector.load %arg7[%c0_317, %c1_318, %c0_319, %c0_320] : memref<1x9x48x16xbf16, #tpu.memory_space<vmem>>, vector<1x1x48x16xbf16>
    %273 = vector.shape_cast %272 : vector<1x1x48x16xbf16> to vector<48x16xbf16>
    %cst_321 = arith.constant dense<0.000000e+00> : vector<256x16xf32>
    %274 = tpu.matmul %271, %273, %cst_321 {dimension_numbers = #tpu.dot_dimension_numbers<[1], [0], [0], [1], [0, 0, 1, 1], [], []>} : vector<256x48xbf16>, vector<48x16xbf16>, vector<256x16xf32> -> vector<256x16xf32>
    %275 = arith.addf %269, %274 : vector<256x16xf32>
    %c0_322 = arith.constant 0 : index
    %c17_323 = arith.constant 17 : index
    %c0_324 = arith.constant 0 : index
    %276 = vector.load %arg14[%c0_322, %c17_323, %c0_324] : memref<18x48x48xbf16, #tpu.memory_space<vmem>>, vector<16x16x48xbf16>
    %277 = vector.shape_cast %276 : vector<16x16x48xbf16> to vector<256x48xbf16>
    %c0_325 = arith.constant 0 : index
    %c2_326 = arith.constant 2 : index
    %c0_327 = arith.constant 0 : index
    %c0_328 = arith.constant 0 : index
    %278 = vector.load %arg7[%c0_325, %c2_326, %c0_327, %c0_328] : memref<1x9x48x16xbf16, #tpu.memory_space<vmem>>, vector<1x1x48x16xbf16>
    %279 = vector.shape_cast %278 : vector<1x1x48x16xbf16> to vector<48x16xbf16>
    %cst_329 = arith.constant dense<0.000000e+00> : vector<256x16xf32>
    %280 = tpu.matmul %277, %279, %cst_329 {dimension_numbers = #tpu.dot_dimension_numbers<[1], [0], [0], [1], [0, 0, 1, 1], [], []>} : vector<256x48xbf16>, vector<48x16xbf16>, vector<256x16xf32> -> vector<256x16xf32>
    %281 = arith.addf %275, %280 : vector<256x16xf32>
    %c1_330 = arith.constant 1 : index
    %c15_331 = arith.constant 15 : index
    %c0_332 = arith.constant 0 : index
    %282 = vector.load %arg14[%c1_330, %c15_331, %c0_332] : memref<18x48x48xbf16, #tpu.memory_space<vmem>>, vector<16x16x48xbf16>
    %283 = vector.shape_cast %282 : vector<16x16x48xbf16> to vector<256x48xbf16>
    %c0_333 = arith.constant 0 : index
    %c3_334 = arith.constant 3 : index
    %c0_335 = arith.constant 0 : index
    %c0_336 = arith.constant 0 : index
    %284 = vector.load %arg7[%c0_333, %c3_334, %c0_335, %c0_336] : memref<1x9x48x16xbf16, #tpu.memory_space<vmem>>, vector<1x1x48x16xbf16>
    %285 = vector.shape_cast %284 : vector<1x1x48x16xbf16> to vector<48x16xbf16>
    %cst_337 = arith.constant dense<0.000000e+00> : vector<256x16xf32>
    %286 = tpu.matmul %283, %285, %cst_337 {dimension_numbers = #tpu.dot_dimension_numbers<[1], [0], [0], [1], [0, 0, 1, 1], [], []>} : vector<256x48xbf16>, vector<48x16xbf16>, vector<256x16xf32> -> vector<256x16xf32>
    %287 = arith.addf %281, %286 : vector<256x16xf32>
    %c1_338 = arith.constant 1 : index
    %c16_339 = arith.constant 16 : index
    %c0_340 = arith.constant 0 : index
    %288 = vector.load %arg14[%c1_338, %c16_339, %c0_340] : memref<18x48x48xbf16, #tpu.memory_space<vmem>>, vector<16x16x48xbf16>
    %289 = vector.shape_cast %288 : vector<16x16x48xbf16> to vector<256x48xbf16>
    %c0_341 = arith.constant 0 : index
    %c4_342 = arith.constant 4 : index
    %c0_343 = arith.constant 0 : index
    %c0_344 = arith.constant 0 : index
    %290 = vector.load %arg7[%c0_341, %c4_342, %c0_343, %c0_344] : memref<1x9x48x16xbf16, #tpu.memory_space<vmem>>, vector<1x1x48x16xbf16>
    %291 = vector.shape_cast %290 : vector<1x1x48x16xbf16> to vector<48x16xbf16>
    %cst_345 = arith.constant dense<0.000000e+00> : vector<256x16xf32>
    %292 = tpu.matmul %289, %291, %cst_345 {dimension_numbers = #tpu.dot_dimension_numbers<[1], [0], [0], [1], [0, 0, 1, 1], [], []>} : vector<256x48xbf16>, vector<48x16xbf16>, vector<256x16xf32> -> vector<256x16xf32>
    %293 = arith.addf %287, %292 : vector<256x16xf32>
    %c1_346 = arith.constant 1 : index
    %c17_347 = arith.constant 17 : index
    %c0_348 = arith.constant 0 : index
    %294 = vector.load %arg14[%c1_346, %c17_347, %c0_348] : memref<18x48x48xbf16, #tpu.memory_space<vmem>>, vector<16x16x48xbf16>
    %295 = vector.shape_cast %294 : vector<16x16x48xbf16> to vector<256x48xbf16>
    %c0_349 = arith.constant 0 : index
    %c5_350 = arith.constant 5 : index
    %c0_351 = arith.constant 0 : index
    %c0_352 = arith.constant 0 : index
    %296 = vector.load %arg7[%c0_349, %c5_350, %c0_351, %c0_352] : memref<1x9x48x16xbf16, #tpu.memory_space<vmem>>, vector<1x1x48x16xbf16>
    %297 = vector.shape_cast %296 : vector<1x1x48x16xbf16> to vector<48x16xbf16>
    %cst_353 = arith.constant dense<0.000000e+00> : vector<256x16xf32>
    %298 = tpu.matmul %295, %297, %cst_353 {dimension_numbers = #tpu.dot_dimension_numbers<[1], [0], [0], [1], [0, 0, 1, 1], [], []>} : vector<256x48xbf16>, vector<48x16xbf16>, vector<256x16xf32> -> vector<256x16xf32>
    %299 = arith.addf %293, %298 : vector<256x16xf32>
    %c2_354 = arith.constant 2 : index
    %c15_355 = arith.constant 15 : index
    %c0_356 = arith.constant 0 : index
    %300 = vector.load %arg14[%c2_354, %c15_355, %c0_356] : memref<18x48x48xbf16, #tpu.memory_space<vmem>>, vector<16x16x48xbf16>
    %301 = vector.shape_cast %300 : vector<16x16x48xbf16> to vector<256x48xbf16>
    %c0_357 = arith.constant 0 : index
    %c6_358 = arith.constant 6 : index
    %c0_359 = arith.constant 0 : index
    %c0_360 = arith.constant 0 : index
    %302 = vector.load %arg7[%c0_357, %c6_358, %c0_359, %c0_360] : memref<1x9x48x16xbf16, #tpu.memory_space<vmem>>, vector<1x1x48x16xbf16>
    %303 = vector.shape_cast %302 : vector<1x1x48x16xbf16> to vector<48x16xbf16>
    %cst_361 = arith.constant dense<0.000000e+00> : vector<256x16xf32>
    %304 = tpu.matmul %301, %303, %cst_361 {dimension_numbers = #tpu.dot_dimension_numbers<[1], [0], [0], [1], [0, 0, 1, 1], [], []>} : vector<256x48xbf16>, vector<48x16xbf16>, vector<256x16xf32> -> vector<256x16xf32>
    %305 = arith.addf %299, %304 : vector<256x16xf32>
    %c2_362 = arith.constant 2 : index
    %c16_363 = arith.constant 16 : index
    %c0_364 = arith.constant 0 : index
    %306 = vector.load %arg14[%c2_362, %c16_363, %c0_364] : memref<18x48x48xbf16, #tpu.memory_space<vmem>>, vector<16x16x48xbf16>
    %307 = vector.shape_cast %306 : vector<16x16x48xbf16> to vector<256x48xbf16>
    %c0_365 = arith.constant 0 : index
    %c7_366 = arith.constant 7 : index
    %c0_367 = arith.constant 0 : index
    %c0_368 = arith.constant 0 : index
    %308 = vector.load %arg7[%c0_365, %c7_366, %c0_367, %c0_368] : memref<1x9x48x16xbf16, #tpu.memory_space<vmem>>, vector<1x1x48x16xbf16>
    %309 = vector.shape_cast %308 : vector<1x1x48x16xbf16> to vector<48x16xbf16>
    %cst_369 = arith.constant dense<0.000000e+00> : vector<256x16xf32>
    %310 = tpu.matmul %307, %309, %cst_369 {dimension_numbers = #tpu.dot_dimension_numbers<[1], [0], [0], [1], [0, 0, 1, 1], [], []>} : vector<256x48xbf16>, vector<48x16xbf16>, vector<256x16xf32> -> vector<256x16xf32>
    %311 = arith.addf %305, %310 : vector<256x16xf32>
    %c2_370 = arith.constant 2 : index
    %c17_371 = arith.constant 17 : index
    %c0_372 = arith.constant 0 : index
    %312 = vector.load %arg14[%c2_370, %c17_371, %c0_372] : memref<18x48x48xbf16, #tpu.memory_space<vmem>>, vector<16x16x48xbf16>
    %313 = vector.shape_cast %312 : vector<16x16x48xbf16> to vector<256x48xbf16>
    %c0_373 = arith.constant 0 : index
    %c8_374 = arith.constant 8 : index
    %c0_375 = arith.constant 0 : index
    %c0_376 = arith.constant 0 : index
    %314 = vector.load %arg7[%c0_373, %c8_374, %c0_375, %c0_376] : memref<1x9x48x16xbf16, #tpu.memory_space<vmem>>, vector<1x1x48x16xbf16>
    %315 = vector.shape_cast %314 : vector<1x1x48x16xbf16> to vector<48x16xbf16>
    %cst_377 = arith.constant dense<0.000000e+00> : vector<256x16xf32>
    %316 = tpu.matmul %313, %315, %cst_377 {dimension_numbers = #tpu.dot_dimension_numbers<[1], [0], [0], [1], [0, 0, 1, 1], [], []>} : vector<256x48xbf16>, vector<48x16xbf16>, vector<256x16xf32> -> vector<256x16xf32>
    %317 = arith.addf %311, %316 : vector<256x16xf32>
    %c0_378 = arith.constant 0 : index
    %c0_379 = arith.constant 0 : index
    %c0_380 = arith.constant 0 : index
    %318 = vector.load %arg12[%c0_378, %c0_379, %c0_380] : memref<1x1x16xf32, #tpu.memory_space<vmem>>, vector<1x1x16xf32>
    %319 = vector.shape_cast %318 : vector<1x1x16xf32> to vector<1x16xf32>
    %320 = vector.broadcast %319 : vector<1x16xf32> to vector<256x16xf32>
    %321 = arith.addf %317, %320 : vector<256x16xf32>
    %322 = vector.shape_cast %321 : vector<256x16xf32> to vector<16x16x16xf32>
    %cst_381 = arith.constant 2.000000e-01 : f32
    %323 = vector.broadcast %cst_381 : f32 to vector<16x16x16xf32>
    %324 = arith.mulf %322, %323 : vector<16x16x16xf32>
    %c0_382 = arith.constant 0 : index
    %c0_383 = arith.constant 0 : index
    %c0_384 = arith.constant 0 : index
    %325 = vector.load %arg15[%c0_382, %c0_383, %c0_384] : memref<16x16x16xf32, #tpu.memory_space<vmem>>, vector<16x16x16xf32>
    %326 = arith.addf %324, %325 : vector<16x16x16xf32>
    %c0_385 = arith.constant 0 : index
    %c0_386 = arith.constant 0 : index
    %c0_387 = arith.constant 0 : index
    %327 = vector.load %arg15[%c0_385, %c0_386, %c0_387] : memref<16x16x16xf32, #tpu.memory_space<vmem>>, vector<16x16x16xf32>
    tpu.vector_store %arg15[%c0_385, %c0_386, %c0_387], %326 {strides = array<i32>} : memref<16x16x16xf32, #tpu.memory_space<vmem>>, vector<16x16x16xf32>,
    %328 = arith.truncf %326 : vector<16x16x16xf32> to vector<16x16x16xbf16>
    %c1_388 = arith.constant 1 : index
    %c16_389 = arith.constant 16 : index
    %c0_390 = arith.constant 0 : index
    %329 = vector.load %arg14[%c1_388, %c16_389, %c0_390] : memref<18x48x48xbf16, #tpu.memory_space<vmem>>, vector<16x16x16xbf16>
    tpu.vector_store %arg14[%c1_388, %c16_389, %c0_390], %328 {strides = array<i32>} : memref<18x48x48xbf16, #tpu.memory_space<vmem>>, vector<16x16x16xbf16>,
    %c2_i32 = arith.constant 2 : i32
    %330 = arith.cmpi eq, %arg1, %c2_i32 : i32
    %331 = arith.extui %330 : i1 to i32
    %c0_i32_391 = arith.constant 0 : i32
    %332 = arith.cmpi ne, %331, %c0_i32_391 : i32
    scf.if %332 {
      %cst_392 = arith.constant 2.000000e-01 : f32
      %333 = vector.broadcast %cst_392 : f32 to vector<16x16x16xf32>
      %334 = arith.mulf %326, %333 : vector<16x16x16xf32>
      %c0_393 = arith.constant 0 : index
      %c0_394 = arith.constant 0 : index
      %c0_395 = arith.constant 0 : index
      %c0_396 = arith.constant 0 : index
      %335 = vector.load %arg2[%c0_393, %c0_394, %c0_395, %c0_396] : memref<1x16x16x16xf32, #tpu.memory_space<vmem>>, vector<1x16x16x16xf32>
      %336 = vector.shape_cast %335 : vector<1x16x16x16xf32> to vector<16x16x16xf32>
      %337 = arith.addf %334, %336 : vector<16x16x16xf32>
      %c0_397 = arith.constant 0 : index
      %c0_398 = arith.constant 0 : index
      %c0_399 = arith.constant 0 : index
      %c0_400 = arith.constant 0 : index
      %338 = vector.load %arg13[%c0_397, %c0_398, %c0_399, %c0_400] : memref<1x16x16x16xf32, #tpu.memory_space<vmem>>, vector<1x16x16x16xf32>
      %339 = vector.shape_cast %338 : vector<1x16x16x16xf32> to vector<16x16x16xf32>
      %340 = vector.shape_cast %337 : vector<16x16x16xf32> to vector<1x16x16x16xf32>
      tpu.vector_store %arg13[%c0_397, %c0_398, %c0_399, %c0_400], %340 {strides = array<i32>} : memref<1x16x16x16xf32, #tpu.memory_space<vmem>>, vector<1x16x16x16xf32>,
    } else {
    }
    return
  }
  func.func @transform_0(%arg0: i32, %arg1: i32) -> (i32, i32, i32, i32) {
    %c0_i32 = arith.constant 0 : i32
    %c0_i32_0 = arith.constant 0 : i32
    %c0_i32_1 = arith.constant 0 : i32
    %c0_i32_2 = arith.constant 0 : i32
    return %arg0, %c0_i32, %c0_i32_0, %c0_i32_1 : i32, i32, i32, i32
  }
  func.func @transform_1(%arg0: i32, %arg1: i32) -> (i32, i32, i32, i32) {
    %c0_i32 = arith.constant 0 : i32
    %c0_i32_0 = arith.constant 0 : i32
    %c0_i32_1 = arith.constant 0 : i32
    %c0_i32_2 = arith.constant 0 : i32
    return %arg1, %c0_i32, %c0_i32_0, %c0_i32_1 : i32, i32, i32, i32
  }
  func.func @transform_2(%arg0: i32, %arg1: i32) -> (i32, i32, i32, i32) {
    %c0_i32 = arith.constant 0 : i32
    %c0_i32_0 = arith.constant 0 : i32
    %c0_i32_1 = arith.constant 0 : i32
    %c0_i32_2 = arith.constant 0 : i32
    return %arg1, %c0_i32, %c0_i32_0, %c0_i32_1 : i32, i32, i32, i32
  }
  func.func @transform_3(%arg0: i32, %arg1: i32) -> (i32, i32, i32, i32) {
    %c0_i32 = arith.constant 0 : i32
    %c0_i32_0 = arith.constant 0 : i32
    %c0_i32_1 = arith.constant 0 : i32
    %c0_i32_2 = arith.constant 0 : i32
    return %arg1, %c0_i32, %c0_i32_0, %c0_i32_1 : i32, i32, i32, i32
  }
  func.func @transform_4(%arg0: i32, %arg1: i32) -> (i32, i32, i32, i32) {
    %c0_i32 = arith.constant 0 : i32
    %c0_i32_0 = arith.constant 0 : i32
    %c0_i32_1 = arith.constant 0 : i32
    %c0_i32_2 = arith.constant 0 : i32
    return %arg1, %c0_i32, %c0_i32_0, %c0_i32_1 : i32, i32, i32, i32
  }
  func.func @transform_5(%arg0: i32, %arg1: i32) -> (i32, i32, i32, i32) {
    %c0_i32 = arith.constant 0 : i32
    %c0_i32_0 = arith.constant 0 : i32
    %c0_i32_1 = arith.constant 0 : i32
    %c0_i32_2 = arith.constant 0 : i32
    return %arg1, %c0_i32, %c0_i32_0, %c0_i32_1 : i32, i32, i32, i32
  }
  func.func @transform_6(%arg0: i32, %arg1: i32) -> (i32, i32, i32) {
    %c0_i32 = arith.constant 0 : i32
    %c0_i32_0 = arith.constant 0 : i32
    %c0_i32_1 = arith.constant 0 : i32
    return %arg1, %c0_i32, %c0_i32_0 : i32, i32, i32
  }
  func.func @transform_7(%arg0: i32, %arg1: i32) -> (i32, i32, i32) {
    %c0_i32 = arith.constant 0 : i32
    %c0_i32_0 = arith.constant 0 : i32
    %c0_i32_1 = arith.constant 0 : i32
    return %arg1, %c0_i32, %c0_i32_0 : i32, i32, i32
  }
  func.func @transform_8(%arg0: i32, %arg1: i32) -> (i32, i32, i32) {
    %c0_i32 = arith.constant 0 : i32
    %c0_i32_0 = arith.constant 0 : i32
    %c0_i32_1 = arith.constant 0 : i32
    return %arg1, %c0_i32, %c0_i32_0 : i32, i32, i32
  }
  func.func @transform_9(%arg0: i32, %arg1: i32) -> (i32, i32, i32) {
    %c0_i32 = arith.constant 0 : i32
    %c0_i32_0 = arith.constant 0 : i32
    %c0_i32_1 = arith.constant 0 : i32
    return %arg1, %c0_i32, %c0_i32_0 : i32, i32, i32
  }
  func.func @transform_10(%arg0: i32, %arg1: i32) -> (i32, i32, i32) {
    %c0_i32 = arith.constant 0 : i32
    %c0_i32_0 = arith.constant 0 : i32
    %c0_i32_1 = arith.constant 0 : i32
    return %arg1, %c0_i32, %c0_i32_0 : i32, i32, i32
  }
  func.func @transform_11(%arg0: i32, %arg1: i32) -> (i32, i32, i32, i32) {
    %c0_i32 = arith.constant 0 : i32
    %c0_i32_0 = arith.constant 0 : i32
    %c0_i32_1 = arith.constant 0 : i32
    %c0_i32_2 = arith.constant 0 : i32
    return %arg0, %c0_i32, %c0_i32_0, %c0_i32_1 : i32, i32, i32, i32
  }
}

</mosaic_0001>

<bundles_post_ra>
// kernel: rrdb_forward.1
= control target key start
LH: loop header
LB: loop body
LE: loop exit
PB: predicated region body
PF: predicated region fallthrough
CT: control target
= control target key end

     0   :  { %s30130_s0 = inlined_call_operand.vmem [shape: f32[2,16,16,16], index: 0, kind: input, shape index: {}]   ;;  %s30131_s1 = inlined_call_operand.vmem [shape: bf16[3,9,16,8], index: 1, kind: input, shape index: {}]   ;;  %s30132_s2 = inlined_call_operand.vmem [shape: bf16[3,9,24,8], index: 2, kind: input, shape index: {}]   ;;  %s30133_s3 = inlined_call_operand.vmem [shape: bf16[3,9,32,8], index: 3, kind: input, shape index: {}]   ;;  %s30134_s4 = inlined_call_operand.vmem [shape: bf16[3,9,40,8], index: 4, kind: input, shape index: {}]   ;;  %s30135_s5 = inlined_call_operand.vmem [shape: bf16[3,9,48,16], index: 5, kind: input, shape index: {}]   ;;  %s30136_s6 = inlined_call_operand.vmem [shape: f32[3,1,8], index: 6, kind: input, shape index: {}]   ;;  %s30137_s7 = inlined_call_operand.vmem [shape: f32[3,1,8], index: 7, kind: input, shape index: {}]   ;;  %s30138_s8 = inlined_call_operand.vmem [shape: f32[3,1,8], index: 8, kind: input, shape index: {}]   ;;  %s30139_s9 = inlined_call_operand.vmem [shape: f32[3,1,8], index: 9, kind: input, shape index: {}]   ;;  %s30140_s10 = inlined_call_operand.vmem [shape: f32[3,1,16], index: 10, kind: input, shape index: {}]   ;;  %s30141_s11 = inlined_call_operand.hbm [shape: f32[2,16,16,16], index: 11, kind: output, shape index: {}]  }
   0x1   :  { %30254 = sst [smem:[#allocation19_spill]] %s30130_s0 }
   0x2   :  { %30255 = sst [smem:[#allocation20_spill]] %s30131_s1 }
   0x3   :  { %30256 = sst [smem:[#allocation21_spill]] %s30132_s2 }
   0x4   :  { %30257 = sst [smem:[#allocation22_spill]] %s30133_s3 }
   0x5   :  { %30258 = sst [smem:[#allocation23_spill]] %s30134_s4 }
   0x6   :  { %30259 = sst [smem:[#allocation24_spill]] %s30141_s11 }
   0x7   :  { %16 = vsyncpa [#allocation5], 0 }
   0x8   :  { %18 = vsyncpa [#allocation5 + $0x1], 0  ;;  %s24995_s17 = smov 0   ;;  %s24997_s18 = smov 0  }
   0x9   :  { %s24999_s19 = smov 0   ;;  %s25001_s20 = smov 0  }
   0xa   :  { %s25003_s21 = smov 0   ;;  %s25005_s22 = smov 0  }
   0xb   :  { %s25007_s23 = smov 0   ;;  %s25009_s24 = smov 0  }
   0xc LB: > { %30260 = sst [smem:[#allocation7_spill]] %s24897_s17  ;;  %s19866_s25 = sadd.s32 4294967295, %s24925_s24   ;;  %s24925_s24 = sphi %s25009_s24, %s24_s24   ;;  %s24921_s23 = sphi %s25007_s23, %s30393_s23   ;;  %s24917_s22 = sphi %s25005_s22, %s30392_s22   ;;  %s24913_s21 = sphi %s25003_s21, %s30391_s21   ;;  %s24909_s20 = sphi %s25001_s20, %s30390_s20   ;;  %s24905_s19 = sphi %s24999_s19, %s30389_s19   ;;  %s24901_s18 = sphi %s24997_s18, %s30388_s18   ;;  %s24897_s17 = sphi %s24995_s17, %s30387_s17  }
   0xd   : > { %30261 = sst [smem:[#allocation8_spill]] %s24901_s18  ;;  %s19867_s26 = sadd.s32 4294967294, %s24925_s24  }
   0xe   : > { %30262 = sst [smem:[#allocation9_spill]] %s24905_s19  ;;  %s33_s27 = sadd.s32 1, %s24917_s22 }
   0xf   : > { %30263 = sst [smem:[#allocation10_spill]] %s24913_s21  ;;  %p34_p0 = scmp.ge.s32.totalorder %s33_s27, 3 }
  0x10   : > { %30264 = sst [smem:[#allocation11_spill]] %s24917_s22  ;;  %s36_s28 = sadd.s32 1, %s24921_s23 }
  0x11   : > { %30265 = sst [smem:[#allocation12_spill]] %s24921_s23  ;;  %p339_p1 = scmp.ne.s32.totalorder %s24905_s19, %s24901_s18 }
  0x12   : > { %30266 = sst [smem:[#allocation13_spill]] %s24925_s24  ;;  %p340_p2 = scmp.eq.s32.totalorder %s19866_s25, 5 }
  0x13   : > { %s30395_s27 = smov (%p34_p0, %s33_s27), 0  ;;  %s30397_s28 = smov (!%p34_p0, %s36_s28), %s24921_s23 }
  0x14   : > { %30267 = sst [smem:[#allocation14_spill]] %s30395_s27  ;;  %p25044_p3 = por %p340_p2, %p339_p1 }
  0x15   : > { %p345_p4 = scmp.ne.s32.totalorder %s24901_s18, %s24897_s17  ;;  %p38_p5 = scmp.ge.s32.totalorder %s30397_s28, 2 }
  0x16   : > { %s30268_s29 = scalar_select %p25044_p3, 1, 0 }
  0x17   : > { %p346_p6 = scmp.eq.s32.totalorder %s19867_s26, 5  ;;  %p19870_p7 = scmp.ge.s32.totalorder %s24925_s24, 1 }
  0x18   : > { %30269 = sst [smem:[#allocation15_spill]] %s30268_s29  ;;  %p442_p8 = scmp.lt.s32.totalorder %s24925_s24, 7 }
  0x19   : > { %s30399_s28 = smov (%p38_p5, %s30397_s28), 0  ;;  %p25054_p9 = por %p346_p6, %p345_p4 }
  0x1a   : > { %30270 = sst [smem:[#allocation16_spill]] %s30399_s28  ;;  %p443_p10 = pnand %p19870_p7, %p442_p8 }
  0x1b   : > { %s30271_s30 = scalar_select %p25054_p9, 1, 0 }
  0x1c   : > { %s326_s12 = ssub.s32 %s24921_s23, %s30399_s28  ;;  %s329_s13 = sadd.s32 1, %s24905_s19 }
  0x1d   : > { %30272 = sst [smem:[#allocation17_spill]] %s30271_s30  ;;  %p327_p11 = scmp.eq.s32.totalorder %s326_s12, 0 }
  0x1e   : > { %446 = sbr.rel (%p443_p10) target bundleno = 4068 (0xfe4), region = 64  ;;  %s30143_s15 = sand.u32 (!%p443_p10), 1, %s24901_s18  }
  0x1f   : > { %s25062_s14 = scalar_select %p327_p11, %s24905_s19, %s329_s13  }
  0x20   : > { %p522_p12 = scmp.lt.s32.totalorder (!%p443_p10), %s24913_s21, 1  ;;  %s19871_s16 = sshll.u32 (!%p443_p10), %s30143_s15, 8 }
  0x21   : > { %30273 = sst [smem:[#allocation18_spill]] %s25062_s14  ;;  %p527_p13 = scmp.lt.s32.totalorder (!%p443_p10), %s24909_s20, 2 }
  0x22   : > { %s30274_s0 = sld [smem:[#allocation19_spill]] (!%p443_p10)  ;;  %s30275_s1 = sld [smem:[#allocation20_spill]] (!%p443_p10) }
  0x23   : > { %s30276_s2 = sld [smem:[#allocation21_spill]] (!%p443_p10)  ;;  %s30277_s3 = sld [smem:[#allocation22_spill]] (!%p443_p10) }
  0x24   : > { %s30278_s4 = sld [smem:[#allocation23_spill]] (!%p443_p10)  ;;  %p19879_p0 = scmp.ne.s32.totalorder (!%p443_p10), %s24909_s20, 0 }
  0x25   : > { %s523_s25 = scalar_select %p522_p12, %s24913_s21, 1 }
  0x26   : > { %s25071_s26 = scalar_select %p527_p13, %s24909_s20, 2 }
  0x27   : > { %s20870_s12 = sshll.u32 %s523_s25, 8  ;;  %vm572_vm0 = vcmask (!%p19879_p0), 392192   ;;  %vm665_vm1 = vcmask (!%p19879_p0), 130048   ;;  %v24927_v3 = vmov (!%p19879_p0), 0  }
  0x28   : > { %s25076_s27 = scalar_lea.vmem %s30274_s0, %s20870_s12  ;;  %s24629_s15 = smul.u32 72, %s25071_s26  ;;  %573 = vst.msk [vmem:[#allocation2] sm:$0xff] (!%p19879_p0), %vm572_vm0, %v24927_v3  ;;  %574 = vst.msk [vmem:[#allocation2 + $0x8] sm:$0xff] (!%p19879_p0), %vm572_vm0, %v24927_v3 }
  0x29   : > { %s24630_s23 = smul.u32 108, %s25071_s26  ;;  %s566_s14 = scalar_lea.vmem %s30140_s10, %s25071_s26  ;;  %v25132_v0 = vld [vmem:[%s25076_s27] sm:$0xff] (!%p19879_p0)  ;;  %v617_v1 = vld [vmem:[%s25076_s27 + $0x8] sm:$0xff] (!%p19879_p0)  ;;  %v25136_v2 = vld [vmem:[%s25076_s27 + $0x10] sm:$0xff] (!%p19879_p0)  ;;  %575 = vst.msk [vmem:[#allocation2 + $0x10] sm:$0xff] (!%p19879_p0), %vm572_vm0, %v24927_v3 }
  0x2a   : > { %s25087_s24 = scalar_lea.vmem %s30275_s1, %s24629_s15  ;;  %s24631_s11 = smul.u32 144, %s25071_s26  ;;  %577 = vst.msk [vmem:[#allocation2 + $0x198] sm:$0xff] (!%p19879_p0), %vm572_vm0, %v24927_v3  ;;  %578 = vst.msk [vmem:[#allocation2 + $0x1a0] sm:$0xff] (!%p19879_p0), %vm572_vm0, %v24927_v3  ;;  %v648_v4 = vpack.c.bf16 (!%p19879_p0), %v617_v1, %v25132_v0  ;;  %v619_v5 = vld [vmem:[%s25076_s27 + $0x18] sm:$0xff] (!%p19879_p0)  ;;  %v620_v6 = vld [vmem:[%s25076_s27 + $0x20] sm:$0xff] (!%p19879_p0) }
  0x2b   : > { %s25093_s18 = scalar_lea.vmem %s30276_s2, %s24630_s23  ;;  %s24632_s28 = smul.u32 180, %s25071_s26  ;;  %579 = vst.msk [vmem:[#allocation2 + $0x1a8] sm:$0xff] (!%p19879_p0), %vm572_vm0, %v24927_v3  ;;  %581 = vst.msk [vmem:[#allocation2 + $0x18] sm:$0xff] (!%p19879_p0), %vm572_vm0, %v24927_v3  ;;  %v621_v7 = vld [vmem:[%s25076_s27 + $0x28] sm:$0xff] (!%p19879_p0)  ;;  %v649_v8 = vpack.c.bf16 (!%p19879_p0), %v619_v5, %v25136_v2  ;;  %v622_v10 = vld [vmem:[%s25076_s27 + $0x30] sm:$0xff] (!%p19879_p0) }
  0x2c   : > { %s25099_s0 = scalar_lea.vmem %s30277_s3, %s24631_s11  ;;  %s24633_s21 = smul.u32 216, %s25071_s26  ;;  %582 = vst.msk [vmem:[#allocation2 + $0x30] sm:$0xff] (!%p19879_p0), %vm572_vm0, %v24927_v3  ;;  %583 = vst.msk [vmem:[#allocation2 + $0x48] sm:$0xff] (!%p19879_p0), %vm572_vm0, %v24927_v3  ;;  %v650_v9 = vpack.c.bf16 (!%p19879_p0), %v621_v7, %v620_v6  ;;  %v623_v11 = vld [vmem:[%s25076_s27 + $0x38] sm:$0xff] (!%p19879_p0)  ;;  %v624_v12 = vld [vmem:[%s25076_s27 + $0x40] sm:$0xff] (!%p19879_p0) }
  0x2d   : > { %s25105_s19 = scalar_lea.vmem %s30278_s4, %s24632_s28  ;;  %s557_s15 = scalar_lea.vmem %s30137_s7, %s25071_s26  ;;  %584 = vst.msk [vmem:[#allocation2 + $0x60] sm:$0xff] (!%p19879_p0), %vm572_vm0, %v24927_v3  ;;  %585 = vst.msk [vmem:[#allocation2 + $0x78] sm:$0xff] (!%p19879_p0), %vm572_vm0, %v24927_v3  ;;  %v651_v13 = vpack.c.bf16 (!%p19879_p0), %v623_v11, %v622_v10  ;;  %v625_v14 = vld [vmem:[%s25076_s27 + $0x48] sm:$0xff] (!%p19879_p0)  ;;  %v626_v15 = vld [vmem:[%s25076_s27 + $0x50] sm:$0xff] (!%p19879_p0) }
  0x2e   : > { %s25114_s23 = scalar_lea.vmem %s30135_s5, %s24633_s21  ;;  %s560_s11 = scalar_lea.vmem %s30138_s8, %s25071_s26  ;;  %586 = vst.msk [vmem:[#allocation2 + $0x90] sm:$0xff] (!%p19879_p0), %vm572_vm0, %v24927_v3  ;;  %587 = vst.msk [vmem:[#allocation2 + $0xa8] sm:$0xff] (!%p19879_p0), %vm572_vm0, %v24927_v3  ;;  %v627_v16 = vld [vmem:[%s25076_s27 + $0x58] sm:$0xff] (!%p19879_p0)  ;;  %v652_v17 = vpack.c.bf16 (!%p19879_p0), %v625_v14, %v624_v12  ;;  %v628_v19 = vld [vmem:[%s25076_s27 + $0x60] sm:$0xff] (!%p19879_p0) }
  0x2f   : > { %s563_s3 = scalar_lea.vmem %s30139_s9, %s25071_s26  ;;  %s25128_s4 = scalar_lea.vmem [#allocation4], %s19871_s16  ;;  %588 = vst.msk [vmem:[#allocation2 + $0xc0] sm:$0xff] (!%p19879_p0), %vm572_vm0, %v24927_v3  ;;  %589 = vst.msk [vmem:[#allocation2 + $0xd8] sm:$0xff] (!%p19879_p0), %vm572_vm0, %v24927_v3  ;;  %v653_v18 = vpack.c.bf16 (!%p19879_p0), %v627_v16, %v626_v15  ;;  %v629_v20 = vld [vmem:[%s25076_s27 + $0x68] sm:$0xff] (!%p19879_p0)  ;;  %v630_v21 = vld [vmem:[%s25076_s27 + $0x70] sm:$0xff] (!%p19879_p0) }
  0x30   : > { %571 = sbr.rel (%p19879_p0) target bundleno = 86 (0x56), region = 68  ;;  %590 = vst.msk [vmem:[#allocation2 + $0xf0] sm:$0xff] (!%p19879_p0), %vm572_vm0, %v24927_v3  ;;  %591 = vst.msk [vmem:[#allocation2 + $0x108] sm:$0xff] (!%p19879_p0), %vm572_vm0, %v24927_v3  ;;  %v654_v22 = vpack.c.bf16 (!%p19879_p0), %v629_v20, %v628_v19  ;;  %v631_v23 = vld [vmem:[%s25076_s27 + $0x78] sm:$0xff] (!%p19879_p0)  ;;  %v632_v24 = vld [vmem:[%s25076_s27 + $0x80] sm:$0xff] (!%p19879_p0) }
  0x31   : > { %592 = vst.msk [vmem:[#allocation2 + $0x120] sm:$0xff] (!%p19879_p0), %vm572_vm0, %v24927_v3  ;;  %593 = vst.msk [vmem:[#allocation2 + $0x138] sm:$0xff] (!%p19879_p0), %vm572_vm0, %v24927_v3  ;;  %v633_v25 = vld [vmem:[%s25076_s27 + $0x88] sm:$0xff] (!%p19879_p0)  ;;  %v655_v26 = vpack.c.bf16 (!%p19879_p0), %v631_v23, %v630_v21  ;;  %v634_v28 = vld [vmem:[%s25076_s27 + $0x90] sm:$0xff] (!%p19879_p0) }
  0x32   : > { %594 = vst.msk [vmem:[#allocation2 + $0x150] sm:$0xff] (!%p19879_p0), %vm572_vm0, %v24927_v3  ;;  %595 = vst.msk [vmem:[#allocation2 + $0x168] sm:$0xff] (!%p19879_p0), %vm572_vm0, %v24927_v3  ;;  %v656_v27 = vpack.c.bf16 (!%p19879_p0), %v633_v25, %v632_v24  ;;  %v635_v29 = vld [vmem:[%s25076_s27 + $0x98] sm:$0xff] (!%p19879_p0)  ;;  %v636_v30 = vld [vmem:[%s25076_s27 + $0xa0] sm:$0xff] (!%p19879_p0) }
  0x33   : > { %596 = vst.msk [vmem:[#allocation2 + $0x180] sm:$0xff] (!%p19879_p0), %vm572_vm0, %v24927_v3  ;;  %599 = vst.msk [vmem:[#allocation2 + $0x28] sm:$0xff] (!%p19879_p0), %vm572_vm0, %v24927_v3  ;;  %v657_v31 = vpack.c.bf16 (!%p19879_p0), %v635_v29, %v634_v28  ;;  %v637_v32 = vld [vmem:[%s25076_s27 + $0xa8] sm:$0xff] (!%p19879_p0)  ;;  %v638_v33 = vld [vmem:[%s25076_s27 + $0xb0] sm:$0xff] (!%p19879_p0) }
  0x34   : > { %600 = vst.msk [vmem:[#allocation2 + $0x40] sm:$0xff] (!%p19879_p0), %vm572_vm0, %v24927_v3  ;;  %601 = vst.msk [vmem:[#allocation2 + $0x58] sm:$0xff] (!%p19879_p0), %vm572_vm0, %v24927_v3  ;;  %v639_v34 = vld [vmem:[%s25076_s27 + $0xb8] sm:$0xff] (!%p19879_p0)  ;;  %v658_v35 = vpack.c.bf16 (!%p19879_p0), %v637_v32, %v636_v30  ;;  %v640_v37 = vld [vmem:[%s25076_s27 + $0xc0] sm:$0xff] (!%p19879_p0) }
  0x35   : > { %602 = vst.msk [vmem:[#allocation2 + $0x70] sm:$0xff] (!%p19879_p0), %vm572_vm0, %v24927_v3  ;;  %603 = vst.msk [vmem:[#allocation2 + $0x88] sm:$0xff] (!%p19879_p0), %vm572_vm0, %v24927_v3  ;;  %v659_v36 = vpack.c.bf16 (!%p19879_p0), %v639_v34, %v638_v33  ;;  %v641_v38 = vld [vmem:[%s25076_s27 + $0xc8] sm:$0xff] (!%p19879_p0)  ;;  %v642_v39 = vld [vmem:[%s25076_s27 + $0xd0] sm:$0xff] (!%p19879_p0) }
  0x36   : > { %604 = vst.msk [vmem:[#allocation2 + $0xa0] sm:$0xff] (!%p19879_p0), %vm572_vm0, %v24927_v3  ;;  %605 = vst.msk [vmem:[#allocation2 + $0xb8] sm:$0xff] (!%p19879_p0), %vm572_vm0, %v24927_v3  ;;  %v660_v40 = vpack.c.bf16 (!%p19879_p0), %v641_v38, %v640_v37  ;;  %v643_v41 = vld [vmem:[%s25076_s27 + $0xd8] sm:$0xff] (!%p19879_p0)  ;;  %v644_v42 = vld [vmem:[%s25076_s27 + $0xe0] sm:$0xff] (!%p19879_p0) }
  0x37   : > { %606 = vst.msk [vmem:[#allocation2 + $0xd0] sm:$0xff] %vm572_vm0, %v24927_v3  ;;  %607 = vst.msk [vmem:[#allocation2 + $0xe8] sm:$0xff] %vm572_vm0, %v24927_v3  ;;  %v645_v43 = vld [vmem:[%s25076_s27 + $0xe8] sm:$0xff]  ;;  %v661_v44 = vpack.c.bf16 %v643_v41, %v642_v39  ;;  %v646_v46 = vld [vmem:[%s25076_s27 + $0xf0] sm:$0xff] }
  0x38   : > { %608 = vst.msk [vmem:[#allocation2 + $0x100] sm:$0xff] %vm572_vm0, %v24927_v3  ;;  %609 = vst.msk [vmem:[#allocation2 + $0x118] sm:$0xff] %vm572_vm0, %v24927_v3  ;;  %v662_v45 = vpack.c.bf16 %v645_v43, %v644_v42  ;;  %v647_v47 = vld [vmem:[%s25076_s27 + $0xf8] sm:$0xff] }
  0x39   : > { %610 = vst.msk [vmem:[#allocation2 + $0x130] sm:$0xff] %vm572_vm0, %v24927_v3  ;;  %611 = vst.msk [vmem:[#allocation2 + $0x148] sm:$0xff] %vm572_vm0, %v24927_v3  ;;  %v663_v48 = vpack.c.bf16 %v647_v47, %v646_v46 }
  0x3a   : > { %612 = vst.msk [vmem:[#allocation2 + $0x160] sm:$0xff] %vm572_vm0, %v24927_v3  ;;  %613 = vst.msk [vmem:[#allocation2 + $0x178] sm:$0xff] %vm572_vm0, %v24927_v3 }
  0x3b   : > { %614 = vst.msk [vmem:[#allocation2 + $0x190] sm:$0xff] %vm572_vm0, %v24927_v3  ;;  %580 = vst.msk [vmem:[#allocation2] sm:$0xff] %vm572_vm0, %v24927_v3 }
  0x3c   : > { %682 = vst.msk [vmem:[#allocation3] sm:$0xff] %vm665_vm1, %v25132_v0  ;;  %683 = vst.msk [vmem:[#allocation3 + $0x8] sm:$0xff] %vm665_vm1, %v617_v1 }
  0x3d   : > { %684 = vst.msk [vmem:[#allocation3 + $0x10] sm:$0xff] %vm665_vm1, %v25136_v2  ;;  %685 = vst.msk [vmem:[#allocation3 + $0x18] sm:$0xff] %vm665_vm1, %v619_v5 }
  0x3e   : > { %597 = vst.msk [vmem:[#allocation2 + $0x198] sm:$0xff] %vm572_vm0, %v24927_v3  ;;  %598 = vst.msk [vmem:[#allocation2 + $0x10] sm:$0xff] %vm572_vm0, %v24927_v3 }
  0x3f   : > { %615 = vst.msk [vmem:[#allocation2 + $0x1a8] sm:$0xff] %vm572_vm0, %v24927_v3 }
  0x40   : > { %686 = vst.msk [vmem:[#allocation3 + $0x20] sm:$0xff] %vm665_vm1, %v620_v6  ;;  %687 = vst.msk [vmem:[#allocation3 + $0x28] sm:$0xff] %vm665_vm1, %v621_v7 }
  0x41   : > { %666 = vst.msk [vmem:[#allocation2 + $0x20] sm:$0xff] %vm665_vm1, %v648_v4  ;;  %688 = vst.msk [vmem:[#allocation3 + $0x30] sm:$0xff] %vm665_vm1, %v622_v10 }
  0x42   : > { %689 = vst.msk [vmem:[#allocation3 + $0x38] sm:$0xff] %vm665_vm1, %v623_v11  ;;  %690 = vst.msk [vmem:[#allocation3 + $0x40] sm:$0xff] %vm665_vm1, %v624_v12 }
  0x43   : > { %667 = vst.msk [vmem:[#allocation2 + $0x38] sm:$0xff] %vm665_vm1, %v649_v8  ;;  %668 = vst.msk [vmem:[#allocation2 + $0x50] sm:$0xff] %vm665_vm1, %v650_v9 }
  0x44   : > { %691 = vst.msk [vmem:[#allocation3 + $0x48] sm:$0xff] %vm665_vm1, %v625_v14  ;;  %692 = vst.msk [vmem:[#allocation3 + $0x50] sm:$0xff] %vm665_vm1, %v626_v15 }
  0x45   : > { %693 = vst.msk [vmem:[#allocation3 + $0x58] sm:$0xff] %vm665_vm1, %v627_v16  ;;  %669 = vst.msk [vmem:[#allocation2 + $0x68] sm:$0xff] %vm665_vm1, %v651_v13 }
  0x46   : > { %694 = vst.msk [vmem:[#allocation3 + $0x60] sm:$0xff] %vm665_vm1, %v628_v19  ;;  %695 = vst.msk [vmem:[#allocation3 + $0x68] sm:$0xff] %vm665_vm1, %v629_v20 }
  0x47   : > { %696 = vst.msk [vmem:[#allocation3 + $0x70] sm:$0xff] %vm665_vm1, %v630_v21  ;;  %670 = vst.msk [vmem:[#allocation2 + $0x80] sm:$0xff] %vm665_vm1, %v652_v17 }
  0x48   : > { %671 = vst.msk [vmem:[#allocation2 + $0x98] sm:$0xff] %vm665_vm1, %v653_v18  ;;  %697 = vst.msk [vmem:[#allocation3 + $0x78] sm:$0xff] %vm665_vm1, %v631_v23 }
  0x49   : > { %698 = vst.msk [vmem:[#allocation3 + $0x80] sm:$0xff] %vm665_vm1, %v632_v24  ;;  %699 = vst.msk [vmem:[#allocation3 + $0x88] sm:$0xff] %vm665_vm1, %v633_v25 }
  0x4a   : > { %672 = vst.msk [vmem:[#allocation2 + $0xb0] sm:$0xff] %vm665_vm1, %v654_v22  ;;  %700 = vst.msk [vmem:[#allocation3 + $0x90] sm:$0xff] %vm665_vm1, %v634_v28 }
  0x4b   : > { %701 = vst.msk [vmem:[#allocation3 + $0x98] sm:$0xff] %vm665_vm1, %v635_v29  ;;  %702 = vst.msk [vmem:[#allocation3 + $0xa0] sm:$0xff] %vm665_vm1, %v636_v30 }
  0x4c   : > { %673 = vst.msk [vmem:[#allocation2 + $0xc8] sm:$0xff] %vm665_vm1, %v655_v26  ;;  %674 = vst.msk [vmem:[#allocation2 + $0xe0] sm:$0xff] %vm665_vm1, %v656_v27 }
  0x4d   : > { %703 = vst.msk [vmem:[#allocation3 + $0xa8] sm:$0xff] %vm665_vm1, %v637_v32  ;;  %704 = vst.msk [vmem:[#allocation3 + $0xb0] sm:$0xff] %vm665_vm1, %v638_v33 }
  0x4e   : > { %705 = vst.msk [vmem:[#allocation3 + $0xb8] sm:$0xff] %vm665_vm1, %v639_v34  ;;  %675 = vst.msk [vmem:[#allocation2 + $0xf8] sm:$0xff] %vm665_vm1, %v657_v31 }
  0x4f   : > { %706 = vst.msk [vmem:[#allocation3 + $0xc0] sm:$0xff] %vm665_vm1, %v640_v37  ;;  %707 = vst.msk [vmem:[#allocation3 + $0xc8] sm:$0xff] %vm665_vm1, %v641_v38 }
  0x50   : > { %708 = vst.msk [vmem:[#allocation3 + $0xd0] sm:$0xff] %vm665_vm1, %v642_v39  ;;  %676 = vst.msk [vmem:[#allocation2 + $0x110] sm:$0xff] %vm665_vm1, %v658_v35 }
  0x51   : > { %677 = vst.msk [vmem:[#allocation2 + $0x128] sm:$0xff] %vm665_vm1, %v659_v36  ;;  %709 = vst.msk [vmem:[#allocation3 + $0xd8] sm:$0xff] %vm665_vm1, %v643_v41 }
  0x52   : > { %710 = vst.msk [vmem:[#allocation3 + $0xe0] sm:$0xff] %vm665_vm1, %v644_v42  ;;  %711 = vst.msk [vmem:[#allocation3 + $0xe8] sm:$0xff] %vm665_vm1, %v645_v43 }
  0x53   : > { %678 = vst.msk [vmem:[#allocation2 + $0x140] sm:$0xff] %vm665_vm1, %v660_v40  ;;  %712 = vst.msk [vmem:[#allocation3 + $0xf0] sm:$0xff] %vm665_vm1, %v646_v46 }
  0x54   : > { %713 = vst.msk [vmem:[#allocation3 + $0xf8] sm:$0xff] %vm665_vm1, %v647_v47  ;;  %679 = vst.msk [vmem:[#allocation2 + $0x158] sm:$0xff] %vm665_vm1, %v661_v44 }
  0x55   : > { %680 = vst.msk [vmem:[#allocation2 + $0x170] sm:$0xff] %vm665_vm1, %v662_v45  ;;  %681 = vst.msk [vmem:[#allocation2 + $0x188] sm:$0xff] %vm665_vm1, %v663_v48 }
  0x56 PF: > { %v24712_v49 = vld [vmem:[%s25087_s24 + $0x8] sm:$0xff]   ;;  %v24713_v50 = vld [vmem:[%s25087_s24 + $0x20] sm:$0xff]   ;;  %vm950_vm2 = vcmask 130048   ;;  %v25270_v54 = vld [vmem:[#allocation2 + $0x38] sm:$0xff]  ;;  %vm1391_vm3 = vsmask.f32 7424  ;;  %s30281_s21 = scalar_lea.vmem %s30136_s6, %s25071_s26 }
  0x57   : > { %21691 = vmatprep.subr.bf16.mxu1 %v24712_v49  ;;  %v25263_v51 = vld [vmem:[#allocation2 + $0x8] sm:$0xff]  ;;  %v25265_v52 = vld [vmem:[#allocation2 + $0x20] sm:$0xff]  ;;  %21827 = vmatprep.subr.bf16.mxu0 %v24713_v50  ;;  %v25277_v56 = vld [vmem:[#allocation2 + $0x50] sm:$0xff]  ;;  %v1887_v4 = vshll.u32 %v25270_v54, 16  ;;  %v1884_v10 = vshrl.u32 %v25270_v54, 16  ;;  %vm4673_vm5 = vcmask 1043456  }
  0x58   : > { %21692 = vmatpush3.bf16.msra.mxu1 %v24712_v49  ;;  %21828 = vmatpush3.bf16.msra.mxu0 %v24713_v50  ;;  %v24714_v53 = vld [vmem:[%s25087_s24] sm:$0xff]   ;;  %v24715_v55 = vld [vmem:[%s25087_s24 + $0x28] sm:$0xff]   ;;  %v24716_v57 = vld [vmem:[%s25087_s24 + $0x30] sm:$0xff]   ;;  %v1875_v60 = vshll.u32 %v25265_v52, 16  ;;  %v1872_v0 = vshrl.u32 %v25265_v52, 16  ;;  %v1899_v5 = vshll.u32 %v25277_v56, 16 }
  0x59   : > { %21693 = vmatprep.mubr.msk.bf16.mxu1 %vm950_vm2, %v25263_v51  ;;  %21829 = vmatprep.mubr.msk.bf16.mxu0 %vm950_vm2, %v25265_v52  ;;  %v25286_v58 = vld [vmem:[#allocation2 + $0x68] sm:$0xff]  ;;  %v25288_v59 = vld [vmem:[#allocation2 + $0x80] sm:$0xff]  ;;  %v25300_v62 = vld [vmem:[%s25087_s24 + $0x10] sm:$0xff]   ;;  %v2592_v12 = vrot.slane %v1887_v4, 1  ;;  %v1896_v14 = vshrl.u32 %v25277_v56, 16  ;;  %vm4640_vm6 = vcmask 195584  }
  0x5a   : > { %21725 = vmatprep.subr.bf16.mxu1 %v24714_v53  ;;  %21861 = vmatprep.subr.bf16.mxu0 %v24715_v55  ;;  %v2544_v61 = vld [vmem:[#allocation2 + $0x28] sm:$0x1]  ;;  %v25302_v63 = vld [vmem:[#allocation2 + $0x98] sm:$0xff]  ;;  %v25306_v1 = vld [vmem:[#allocation2 + $0xb0] sm:$0xff]  ;;  %v2580_v2 = vrot.slane %v1875_v60, 1  ;;  %v2604_v16 = vrot.slane %v1899_v5, 1 }
  0x5b   : > { %21694 = vmatmul.mubr.msk.bf16.vlgmr.msra.gmra.mrb[0].mxu1 %vm950_vm2, %v25265_v52  ;;  %21830 = vmatmul.mubr.msk.bf16.vlgmr.msra.gmra.mrb[0].mxu0 %vm950_vm2, %v25270_v54  ;;  %v2583_v3 = vshll.u32 %v2544_v61, 16  ;;  %v2546_v8 = vld [vmem:[#allocation2 + $0x40] sm:$0x1]  ;;  %v2548_v9 = vld [vmem:[#allocation2 + $0x58] sm:$0x1]  ;;  %v25325_v11 = vld [vmem:[#allocation2 + $0xc8] sm:$0xff]  ;;  %v25344_v19 = vor.u32 %v2592_v12, %v1884_v10 }
  0x5c   : > { %21726 = vmatpush3.bf16.msra.mxu1 %v24714_v53  ;;  %21697 = vmatprep.mubr.msk.bf16.mxu1 %vm950_vm2, %v25270_v54  ;;  %v25322_v6 = vor.u32 %v2580_v2, %v1872_v0  ;;  %v2595_v13 = vshll.u32 %v2546_v8, 16  ;;  %v2607_v17 = vshll.u32 %v2548_v9, 16  ;;  %v1911_v18 = vshll.u32 %v25286_v58, 16  ;;  %v2550_v24 = vld [vmem:[#allocation2 + $0x70] sm:$0x1]  ;;  %v25351_v26 = vld [vmem:[#allocation2 + $0xe0] sm:$0xff] }
  0x5d   : > { %21862 = vmatpush3.bf16.msra.mxu0 %v24715_v55  ;;  %21833 = vmatprep.mubr.msk.bf16.mxu0 %vm950_vm2, %v25277_v56  ;;  %v2585_v7 = vrot.slane %v2583_v3, 1  ;;  %v1923_v21 = vshll.u32 %v25288_v59, 16  ;;  %v25349_v22 = vor.u32 %v2604_v16, %v1896_v14  ;;  %v2552_v25 = vld [vmem:[#allocation2 + $0x88] sm:$0x1]  ;;  %v1908_v27 = vshrl.u32 %v25286_v58, 16  ;;  %v25356_v29 = vld [vmem:[#allocation2 + $0xf8] sm:$0xff] }
  0x5e   : > { %21895 = vmatprep.subr.bf16.mxu0 %v24716_v57  ;;  %21759 = vmatprep.subr.bf16.mxu1 %v25300_v62  ;;  %v2597_v20 = vrot.slane %v2595_v13, 1  ;;  %v2609_v23 = vrot.slane %v2607_v17, 1  ;;  %v2616_v30 = vrot.slane %v1911_v18, 1  ;;  %v2619_v31 = vshll.u32 %v2550_v24, 16  ;;  %v25366_v36 = vld [vmem:[%s25087_s24 + $0x38] sm:$0xff]   ;;  %v25381_v45 = vld [vmem:[#allocation2 + $0x110] sm:$0xff] }
  0x5f   : > { %v2586_v15 = vsel %vm1391_vm3, %v25322_v6, %v2585_v7  ;;  %v1920_v32 = vshrl.u32 %v25288_v59, 16  ;;  %v2628_v34 = vrot.slane %v1923_v21, 1  ;;  %v2631_v35 = vshll.u32 %v2552_v25, 16  ;;  %v2554_v43 = vld [vmem:[#allocation2 + $0xa0] sm:$0x1]  ;;  %v25385_v48 = vld [vmem:[#allocation2 + $0x128] sm:$0xff] }
  0x60   : > { %v2598_v28 = vsel %vm1391_vm3, %v25344_v19, %v2597_v20  ;;  %v2610_v33 = vsel %vm1391_vm3, %v25349_v22, %v2609_v23  ;;  %v1935_v37 = vshll.u32 %v25302_v63, 16  ;;  %v2617_v38 = vor.u32 %v2616_v30, %v1908_v27  ;;  %v2556_v44 = vld [vmem:[#allocation2 + $0xb8] sm:$0x1]  ;;  %v714_v16 = vld [vmem:[#allocation2] sm:$0x80]  ;;  %s24929_s17 = smov 24  }
  0x61   : > { %v2621_v39 = vrot.slane %v2619_v31, 1  ;;  %v1947_v40 = vshll.u32 %v25306_v1, 16  ;;  %v2629_v41 = vor.u32 %v2628_v34, %v1920_v32  ;;  %v2633_v42 = vrot.slane %v2631_v35, 1  ;;  %v2560_v17 = vld [vmem:[#allocation2 + $0xe8] sm:$0x1]  ;;  %v25410_v25 = vld [vmem:[#allocation2 + $0x140] sm:$0xff] }
  0x62   : > { %v1932_v46 = vshrl.u32 %v25302_v63, 16  ;;  %v2640_v49 = vrot.slane %v1935_v37, 1  ;;  %v2643_v50 = vshll.u32 %v2554_v43, 16  ;;  %v1944_v53 = vshrl.u32 %v25306_v1, 16  ;;  %v25413_v30 = vld [vmem:[#allocation2 + $0x158] sm:$0xff]  ;;  %p20864_p1 = scmp.ne.s32.totalorder %s24909_s20, 2 }
  0x63   : > { %21698 = vmatmul.mubr.msk.bf16.gmra.mrb[4].mxu1 %vm950_vm2, %v25277_v56  ;;  %21834 = vmatmul.mubr.msk.bf16.gmra.mrb[4].mxu0 %vm950_vm2, %v25286_v58  ;;  %v2622_v47 = vsel %vm1391_vm3, %v2617_v38, %v2621_v39  ;;  %v2634_v55 = vsel %vm1391_vm3, %v2629_v41, %v2633_v42  ;;  %v2655_v61 = vshll.u32 %v2556_v44, 16  ;;  %v30156_v2 = vshrl.u32 %v25263_v51, 16 }
  0x64   : > { %21701 = vmatprep.mubr.msk.bf16.mxu1 %vm950_vm2, %v25286_v58  ;;  %21837 = vmatprep.mubr.msk.bf16.mxu0 %vm950_vm2, %v25288_v59  ;;  %v1959_v3 = vshll.u32 %v25325_v11, 16  ;;  %v2641_v7 = vor.u32 %v2640_v49, %v1932_v46  ;;  %v2645_v8 = vrot.slane %v2643_v50, 1  ;;  %v863_v9 = vshll.u32 %v25351_v26, 16  ;;  %v716_v50 = vld [vmem:[#allocation2 + $0x18] sm:$0x80] }
  0x65   : > { %v2657_v13 = vrot.slane %v2655_v61, 1  ;;  %v754_v20 = vrot.slane %v30156_v2, 7  ;;  %v30157_v23 = vshll.u32 %v25263_v51, 16  ;;  %v1956_v24 = vshrl.u32 %v25325_v11, 16 }
  0x66   : > { %v2664_v31 = vrot.slane %v1959_v3, 1  ;;  %v748_v34 = vshrl.u32 %v714_v16, 16  ;;  %v860_v35 = vshrl.u32 %v25351_v26, 16  ;;  %v2676_v39 = vrot.slane %v863_v9, 1  ;;  %v2564_v16 = vld [vmem:[#allocation2 + $0x118] sm:$0x1] }
  0x67   : > { %v2679_v41 = vshll.u32 %v2560_v17, 16  ;;  %v875_v42 = vshll.u32 %v25356_v29, 16  ;;  %vm746_vm4 = vsmask.f32 256  ;;  %v757_v43 = vor.u32 %v30157_v23, %v754_v20  ;;  %v25441_v20 = vld [vmem:[#allocation2 + $0x170] sm:$0xff]  ;;  %v25486_v23 = vld [vmem:[%s25087_s24 + $0x18] sm:$0xff]  }
  0x68   : > { %v2665_v44 = vor.u32 %v2664_v31, %v1956_v24  ;;  %v750_v49 = vrot.slane %v748_v34, 7  ;;  %v884_v17 = vshrl.u32 %v25381_v45, 16  ;;  %v935_v56 = vshll.u32 %v25441_v20, 16 }
  0x69   : > { %v2681_v61 = vrot.slane %v2679_v41, 1  ;;  %v2688_v31 = vrot.slane %v875_v42, 1  ;;  %v2703_v41 = vshll.u32 %v2564_v16, 16  ;;  %v722_v16 = vld [vmem:[#allocation2 + $0x60] sm:$0x80]  ;;  %vm4383_vm7 = vcmask 195712  }
  0x6a   : > { %v758_v34 = vsel %vm746_vm4, %v750_v49, %v757_v43  ;;  %v1910_v43 = vrot.slane %v1908_v27, 7  ;;  %v911_v49 = vshll.u32 %v25410_v25, 16  ;;  %vm8391_vm8 = vcmask 261120  }
  0x6b   : > { %21702 = vmatmul.mubr.msk.bf16.gmra.mrb[8].mxu1 %vm950_vm2, %v25288_v59  ;;  %21838 = vmatmul.mubr.msk.bf16.gmra.mrb[8].mxu0 %vm950_vm2, %v25302_v63  ;;  %vm8129_vm9 = vcmask 261312   ;;  %vm12150_vm10 = vcmask 326656   ;;  %vm11883_vm11 = vcmask 326912   ;;  %vm15972_vm12 = vcmask 392192  }
  0x6c   : > { %21705 = vmatprep.mubr.msk.bf16.mxu1 %vm950_vm2, %v25302_v63  ;;  %21841 = vmatprep.mubr.msk.bf16.mxu0 %vm950_vm2, %v25306_v1  ;;  %vm15700_vm13 = vcmask 392512  }
  0x73   : > { %21706 = vmatmul.mubr.msk.bf16.gmra.mrb[12].mxu1 %vm950_vm2, %v25306_v1  ;;  %21842 = vmatmul.mubr.msk.bf16.gmra.mrb[12].mxu0 %vm950_vm2, %v25325_v11  ;;  %v862_v1 = vrot.slane %v860_v35, 7 }
  0x74   : > { %21709 = vmatprep.mubr.msk.bf16.mxu1 %vm950_vm2, %v25325_v11  ;;  %21863 = vmatprep.mubr.msk.bf16.mxu0 %vm950_vm2, %v2586_v15  ;;  %v2558_v15 = vld [vmem:[#allocation2 + $0xd0] sm:$0x1] }
  0x7b   : > { %21710 = vmatmul.mubr.msk.bf16.gmra.mrb[16].mxu1 %vm950_vm2, %v25351_v26  ;;  %21864 = vmatmul.mubr.msk.bf16.vlgmr.msra.gmra.mrb[0].mxu0 %vm950_vm2, %v2598_v28  ;;  %v2646_v28 = vsel %vm1391_vm3, %v2641_v7, %v2645_v8  ;;  %v2562_v7 = vld [vmem:[#allocation2 + $0x100] sm:$0x1]  ;;  %v718_v8 = vld [vmem:[#allocation2 + $0x30] sm:$0x80] }
  0x7c   : > { %21713 = vmatprep.mubr.msk.bf16.mxu1 %vm950_vm2, %v25356_v29  ;;  %21896 = vmatpush3.bf16.msra.mxu0 %v24716_v57  ;;  %v2652_v57 = vrot.slane %v1947_v40, 1 }
  0x7d   : > { %21867 = vmatprep.mubr.msk.bf16.mxu0 %vm950_vm2, %v2610_v33  ;;  %21929 = vmatprep.subr.bf16.mxu0 %v25366_v36  ;;  %v2667_v33 = vshll.u32 %v2558_v15, 16  ;;  %v872_v15 = vshrl.u32 %v25356_v29, 16 }
  0x7e   : > { %v2653_v12 = vor.u32 %v2652_v57, %v1944_v53  ;;  %v2677_v57 = vor.u32 %v2676_v39, %v860_v35 }
  0x80   : > { %v2658_v38 = vsel %vm1391_vm3, %v2653_v12, %v2657_v13  ;;  %v1874_v12 = vrot.slane %v1872_v0, 7  ;;  %v1886_v13 = vrot.slane %v1884_v10, 7  ;;  %v772_v0 = vshrl.u32 %v718_v8, 16 }
  0x81   : > { %v2682_v39 = vsel %vm1391_vm3, %v2677_v57, %v2681_v61  ;;  %v2566_v61 = vld [vmem:[#allocation2 + $0x130] sm:$0x1] }
  0x82   : > { %v25452_v2 = vor.u32 %v1875_v60, %v1874_v12  ;;  %v720_v60 = vld [vmem:[#allocation2 + $0x48] sm:$0x80]  ;;  %v25470_v27 = vor.u32 %v1887_v4, %v1886_v13  ;;  %v2705_v12 = vrot.slane %v2703_v41, 1  ;;  %v2715_v4 = vshll.u32 %v2566_v61, 16  ;;  %v724_v61 = vld [vmem:[#allocation2 + $0x78] sm:$0x80] }
  0x83   : > { %21714 = vmatmul.mubr.msk.bf16.gmra.mrb[20].mxu1 %vm950_vm2, %v25381_v45  ;;  %21868 = vmatmul.mubr.msk.bf16.gmra.mrb[4].mxu0 %vm950_vm2, %v2622_v47  ;;  %v2669_v47 = vrot.slane %v2667_v33, 1  ;;  %v796_v13 = vshrl.u32 %v722_v16, 16  ;;  %v726_v16 = vld [vmem:[#allocation2 + $0x90] sm:$0x80] }
  0x84   : > { %21717 = vmatprep.mubr.msk.bf16.mxu1 %vm950_vm2, %v25385_v48  ;;  %21871 = vmatprep.mubr.msk.bf16.mxu0 %vm950_vm2, %v2634_v55  ;;  %v887_v55 = vshll.u32 %v25381_v45, 16 }
  0x85   : > { %v2670_v33 = vsel %vm1391_vm3, %v2665_v44, %v2669_v47  ;;  %v896_v44 = vshrl.u32 %v25385_v48, 16  ;;  %v899_v47 = vshll.u32 %v25385_v48, 16 }
  0x86   : > { %v2700_v10 = vrot.slane %v887_v55, 1 }
  0x87   : > { %v2712_v54 = vrot.slane %v899_v47, 1  ;;  %v898_v26 = vrot.slane %v896_v44, 7 }
  0x88   : > { %v2701_v8 = vor.u32 %v2700_v10, %v884_v17  ;;  %v2724_v10 = vrot.slane %v911_v49, 1 }
  0x8b   : > { %21718 = vmatmul.mubr.msk.bf16.gmra.mrb[24].mxu1 %vm950_vm2, %v25410_v25  ;;  %21872 = vmatmul.mubr.msk.bf16.gmra.mrb[8].mxu0 %vm950_vm2, %v2646_v28  ;;  %v760_v28 = vshrl.u32 %v716_v50, 16  ;;  %v1898_v50 = vrot.slane %v1896_v14, 7  ;;  %v2689_v14 = vor.u32 %v2688_v31, %v872_v15  ;;  %v784_v31 = vshrl.u32 %v720_v60, 16 }
  0x8c   : > { %21721 = vmatprep.mubr.msk.bf16.mxu1 %vm950_vm2, %v25413_v30  ;;  %21875 = vmatprep.mubr.msk.bf16.mxu0 %vm950_vm2, %v2658_v38  ;;  %v2691_v38 = vshll.u32 %v2562_v7, 16  ;;  %v774_v7 = vrot.slane %v772_v0, 7  ;;  %v923_v60 = vshll.u32 %v25413_v30, 16 }
  0x8d   : > { %v762_v52 = vrot.slane %v760_v28, 7  ;;  %v2568_v28 = vld [vmem:[#allocation2 + $0x148] sm:$0x1] }
  0x8e   : > { %v2693_v57 = vrot.slane %v2691_v38, 1  ;;  %v782_v0 = vsel %vm746_vm4, %v774_v7, %v25470_v27  ;;  %v2727_v41 = vshll.u32 %v2568_v28, 16  ;;  %v2713_v7 = vor.u32 %v2712_v54, %v896_v44 }
  0x8f   : > { %v920_v28 = vshrl.u32 %v25413_v30, 16  ;;  %v2736_v58 = vrot.slane %v923_v60, 1 }
  0x90   : > { %v2694_v38 = vsel %vm1391_vm3, %v2689_v14, %v2693_v57  ;;  %v786_v14 = vrot.slane %v784_v31, 7  ;;  %v25496_v57 = vor.u32 %v1899_v5, %v1898_v50  ;;  %v2729_v50 = vrot.slane %v2727_v41, 1  ;;  %v2572_v31 = vld [vmem:[#allocation2 + $0x178] sm:$0x1] }
  0x91   : > { %v2751_v41 = vshll.u32 %v2572_v31, 16  ;;  %v1958_v31 = vrot.slane %v1956_v24, 7 }
  0x93   : > { %21722 = vmatmul.mubr.msk.bf16.gmra.mrb[28].mxu1 %vm950_vm2, %v25441_v20  ;;  %21876 = vmatmul.mubr.msk.bf16.gmra.mrb[12].mxu0 %vm950_vm2, %v2670_v33  ;;  %v908_v33 = vshrl.u32 %v25410_v25, 16 }
  0x94   : > { %21727 = vmatprep.mubr.msk.bf16.mxu1 %vm950_vm2, %v758_v34  ;;  %21879 = vmatprep.mubr.msk.bf16.mxu0 %vm950_vm2, %v2682_v39  ;;  %v770_v34 = vsel %vm746_vm4, %v762_v52, %v25452_v2  ;;  %v2706_v39 = vsel %vm1391_vm3, %v2701_v8, %v2705_v12  ;;  %v1922_v52 = vrot.slane %v1920_v32, 7  ;;  %v2717_v32 = vrot.slane %v2715_v4, 1 }
  0x95   : > { %v798_v8 = vrot.slane %v796_v13, 7  ;;  %v25504_v12 = vor.u32 %v1911_v18, %v1910_v43  ;;  %v2725_v5 = vor.u32 %v2724_v10, %v908_v33  ;;  %v1934_v43 = vrot.slane %v1932_v46, 7 }
  0x96   : > { %v2718_v54 = vsel %vm1391_vm3, %v2713_v7, %v2717_v32  ;;  %v820_v13 = vshrl.u32 %v726_v16, 16  ;;  %v2748_v10 = vrot.slane %v935_v56, 1  ;;  %v2737_v7 = vor.u32 %v2736_v58, %v920_v28  ;;  %v728_v16 = vld [vmem:[#allocation2 + $0xa8] sm:$0x80] }
  0x97   : > { %v806_v4 = vsel %vm746_vm4, %v798_v8, %v25504_v12  ;;  %v832_v58 = vshrl.u32 %v728_v16, 16  ;;  %v3020_v16 = vld [vmem:[#allocation2 + $0x48] sm:$0x80]  ;;  %v910_v45 = vrot.slane %v908_v33, 7 }
  0x98   : > { %v822_v8 = vrot.slane %v820_v13, 7  ;;  %v744_v33 = vld [vmem:[#allocation2 + $0x168] sm:$0x80] }
  0x9b   : > { %21728 = vmatmul.mubr.msk.bf16.vlgmr.msra.gmra.mrb[0].mxu1 %vm950_vm2, %v770_v34  ;;  %21880 = vmatmul.mubr.msk.bf16.gmra.mrb[16].mxu0 %vm950_vm2, %v2694_v38  ;;  %v808_v34 = vshrl.u32 %v724_v61, 16  ;;  %v794_v38 = vsel %vm746_vm4, %v786_v14, %v25496_v57  ;;  %v25524_v14 = vld [vmem:[#allocation2 + $0x188] sm:$0xff]  ;;  %v25531_v61 = vor.u32 %v1923_v21, %v1922_v52  ;;  %v2753_v21 = vrot.slane %v2751_v41, 1  ;;  %v730_v52 = vld [vmem:[#allocation2 + $0xc0] sm:$0x80] }
  0x9c   : > { %21760 = vmatpush3.bf16.msra.mxu1 %v25300_v62  ;;  %21731 = vmatprep.mubr.msk.bf16.mxu1 %vm950_vm2, %v782_v0  ;;  %v2570_v62 = vld [vmem:[#allocation2 + $0x160] sm:$0x1]  ;;  %v932_v0 = vshrl.u32 %v25441_v20, 16  ;;  %v732_v41 = vld [vmem:[#allocation2 + $0xd8] sm:$0x80] }
  0x9d   : > { %21883 = vmatprep.mubr.msk.bf16.mxu0 %vm950_vm2, %v2706_v39  ;;  %21793 = vmatprep.subr.bf16.mxu1 %v25486_v23  ;;  %v2739_v18 = vshll.u32 %v2570_v62, 16  ;;  %v2730_v39 = vsel %vm1391_vm3, %v2725_v5, %v2729_v50  ;;  %v810_v46 = vrot.slane %v808_v34, 7  ;;  %v25538_v62 = vor.u32 %v1935_v37, %v1934_v43  ;;  %v2574_v5 = vld [vmem:[#allocation2 + $0x190] sm:$0x1] }
  0x9e   : > { %v2758_v50 = vshll.u32 %v25524_v14, 16  ;;  %v2749_v59 = vor.u32 %v2748_v10, %v932_v0  ;;  %v1946_v34 = vrot.slane %v1944_v53, 7  ;;  %v844_v53 = vshrl.u32 %v730_v52, 16 }
  0x9f   : > { %v2741_v32 = vrot.slane %v2739_v18, 1  ;;  %v818_v63 = vsel %vm746_vm4, %v810_v46, %v25531_v61  ;;  %v2756_v18 = vshrl.u32 %v25524_v14, 16  ;;  %v830_v43 = vsel %vm746_vm4, %v822_v8, %v25538_v62 }
  0xa0   : > { %v2754_v13 = vsel %vm1391_vm3, %v2749_v59, %v2753_v21  ;;  %v25561_v10 = vor.u32 %v1947_v40, %v1946_v34  ;;  %v25568_v8 = vor.u32 %v1959_v3, %v1958_v31  ;;  %v3022_v40 = vld [vmem:[#allocation2 + $0x60] sm:$0x80]  ;;  %v874_v21 = vrot.slane %v872_v15, 7 }
  0xa1   : > { %v2742_v37 = vsel %vm1391_vm3, %v2737_v7, %v2741_v32  ;;  %v846_v32 = vrot.slane %v844_v53, 7  ;;  %v856_v34 = vshrl.u32 %v732_v41, 16  ;;  %v3063_v3 = vshrl.u32 %v3020_v16, 16  ;;  %v3024_v53 = vld [vmem:[#allocation2 + $0x78] sm:$0x80] }
  0xa2   : > { %v25586_v15 = vor.u32 %v863_v9, %v862_v1  ;;  %v3026_v41 = vld [vmem:[#allocation2 + $0x90] sm:$0x80] }
  0xa3   : > { %21732 = vmatmul.mubr.msk.bf16.gmra.mrb[4].mxu1 %vm950_vm2, %v794_v38  ;;  %21884 = vmatmul.mubr.msk.bf16.gmra.mrb[20].mxu0 %vm950_vm2, %v2718_v54  ;;  %v3018_v38 = vld [vmem:[#allocation2 + $0x30] sm:$0x80]  ;;  %v2760_v54 = vrot.slane %v2758_v50, 1  ;;  %v854_v11 = vsel %vm746_vm4, %v846_v32, %v25568_v8  ;;  %v858_v35 = vrot.slane %v856_v34, 7  ;;  %v3099_v16 = vshrl.u32 %v3026_v41, 16 }
  0xa4   : > { %21735 = vmatprep.mubr.msk.bf16.mxu1 %vm950_vm2, %v806_v4  ;;  %21887 = vmatprep.mubr.msk.bf16.mxu0 %vm950_vm2, %v2730_v39  ;;  %v2763_v4 = vshll.u32 %v2574_v5, 16  ;;  %v3051_v24 = vshrl.u32 %v3018_v38, 16  ;;  %v834_v39 = vrot.slane %v832_v58, 7  ;;  %v734_v5 = vld [vmem:[#allocation2 + $0xf0] sm:$0x80]  ;;  %v3065_v58 = vrot.slane %v3063_v3, 7 }
  0xa5   : > { %v2761_v46 = vor.u32 %v2760_v54, %v2756_v18  ;;  %v868_v31 = vshrl.u32 %v734_v5, 16  ;;  %v25591_v54 = vor.u32 %v875_v42, %v874_v21  ;;  %v866_v9 = vsel %vm746_vm4, %v858_v35, %v25586_v15  ;;  %v25606_v5 = vld [vmem:[%s25087_s24 + $0x40] sm:$0xff]  }
  0xa6   : > { %v2765_v7 = vrot.slane %v2763_v4, 1  ;;  %v3053_v59 = vrot.slane %v3051_v24, 7  ;;  %v842_v52 = vsel %vm746_vm4, %v834_v39, %v25561_v10  ;;  %v736_v4 = vld [vmem:[#allocation2 + $0x108] sm:$0x80]  ;;  %v738_v39 = vld [vmem:[#allocation2 + $0x120] sm:$0x80]  ;;  %v3073_v29 = vsel %vm746_vm4, %v3065_v58, %v25496_v57 }
  0xa7   : > { %v892_v32 = vshrl.u32 %v738_v39, 16  ;;  %v25619_v21 = vor.u32 %v899_v47, %v898_v26  ;;  %v3101_v34 = vrot.slane %v3099_v16, 7  ;;  %v3036_v39 = vld [vmem:[#allocation2 + $0x108] sm:$0x80]  ;;  %v934_v41 = vrot.slane %v932_v0, 7 }
  0xa8   : > { %v2766_v38 = vsel %vm1391_vm3, %v2761_v46, %v2765_v7  ;;  %v880_v46 = vshrl.u32 %v736_v4, 16  ;;  %v3087_v7 = vshrl.u32 %v3024_v53, 16  ;;  %v1366_v0 = vld [vmem:[#allocation2 + $0x58] sm:$0x1] }
  0xa9   : > { %v3109_v4 = vsel %vm746_vm4, %v3101_v34, %v25538_v62 }
  0xaa   : > { %v882_v44 = vrot.slane %v880_v46, 7  ;;  %v3089_v1 = vrot.slane %v3087_v7, 7  ;;  %v1364_v46 = vld [vmem:[#allocation2 + $0x40] sm:$0x1] }
  0xab   : > { %21736 = vmatmul.mubr.msk.bf16.gmra.mrb[8].mxu1 %vm950_vm2, %v818_v63  ;;  %21888 = vmatmul.mubr.msk.bf16.gmra.mrb[24].mxu0 %vm950_vm2, %v2742_v37  ;;  %v3061_v63 = vsel %vm746_vm4, %v3053_v59, %v25470_v27  ;;  %v3075_v37 = vshrl.u32 %v3022_v40, 16  ;;  %v894_v40 = vrot.slane %v892_v32, 7 }
  0xac   : > { %21739 = vmatprep.mubr.msk.bf16.mxu1 %vm950_vm2, %v830_v43  ;;  %21891 = vmatprep.mubr.msk.bf16.mxu0 %vm950_vm2, %v2754_v13  ;;  %v870_v43 = vrot.slane %v868_v31, 7  ;;  %v886_v13 = vrot.slane %v884_v17, 7  ;;  %v922_v31 = vrot.slane %v920_v28, 7  ;;  %v3034_v28 = vld [vmem:[#allocation2 + $0xf0] sm:$0x80] }
  0xad   : > { %v3077_v24 = vrot.slane %v3075_v37, 7  ;;  %v902_v37 = vsel %vm746_vm4, %v894_v40, %v25619_v21 }
  0xae   : > { %v878_v42 = vsel %vm746_vm4, %v870_v43, %v25591_v54  ;;  %v25613_v59 = vor.u32 %v887_v55, %v886_v13  ;;  %v3030_v55 = vld [vmem:[#allocation2 + $0xc0] sm:$0x80]  ;;  %v3032_v43 = vld [vmem:[#allocation2 + $0xd8] sm:$0x80]  ;;  %v1360_v13 = vld [vmem:[#allocation2 + $0x10] sm:$0x1]  ;;  %v25648_v32 = vor.u32 %v923_v60, %v922_v31 }
  0xaf   : > { %v3085_v17 = vsel %vm746_vm4, %v3077_v24, %v25504_v12  ;;  %v3123_v53 = vshrl.u32 %v3030_v55, 16  ;;  %v1362_v24 = vld [vmem:[#allocation2 + $0x28] sm:$0x1]  ;;  %v1400_v40 = vshll.u32 %v1360_v13, 16  ;;  %v1436_v60 = vshll.u32 %v1366_v0, 16 }
  0xb0   : > { %v890_v48 = vsel %vm746_vm4, %v882_v44, %v25613_v59  ;;  %v928_v44 = vshrl.u32 %v744_v33, 16  ;;  %v1412_v25 = vshll.u32 %v1362_v24, 16  ;;  %v25658_v31 = vld [vmem:[#allocation2 + $0x68] sm:$0xff]  ;;  %v25669_v33 = vld [vmem:[#allocation2 + $0x80] sm:$0xff] }
  0xb1   : > { %v3125_v16 = vrot.slane %v3123_v53, 7  ;;  %v1438_v20 = vrot.slane %v1436_v60, 1  ;;  %v1455_v0 = vshll.u32 %v25669_v33, 16 }
  0xb2   : > { %v1414_v13 = vrot.slane %v1412_v25, 1  ;;  %v3046_v25 = vld [vmem:[#allocation2 + $0x180] sm:$0x80] }
  0xb3   : > { %21740 = vmatmul.mubr.msk.bf16.gmra.mrb[12].mxu1 %vm950_vm2, %v842_v52  ;;  %21892 = vmatmul.mubr.msk.bf16.gmra.mrb[28].mxu0 %vm950_vm2, %v2766_v38  ;;  %v740_v52 = vld [vmem:[#allocation2 + $0x138] sm:$0x80]  ;;  %v3028_v38 = vld [vmem:[#allocation2 + $0xa8] sm:$0x80] }
  0xb4   : > { %21743 = vmatprep.mubr.msk.bf16.mxu1 %vm950_vm2, %v854_v11  ;;  %21897 = vmatprep.mubr.msk.bf16.mxu0 %vm950_vm2, %v3061_v63  ;;  %v742_v11 = vld [vmem:[#allocation2 + $0x150] sm:$0x80]  ;;  %v904_v47 = vshrl.u32 %v740_v52, 16  ;;  %v3097_v63 = vsel %vm746_vm4, %v3089_v1, %v25531_v61  ;;  %v3111_v35 = vshrl.u32 %v3028_v38, 16  ;;  %v3135_v1 = vshrl.u32 %v3032_v43, 16 }
  0xb5   : > { %v916_v58 = vshrl.u32 %v742_v11, 16  ;;  %v3147_v52 = vshrl.u32 %v3034_v28, 16  ;;  %v1424_v38 = vshll.u32 %v1364_v46, 16  ;;  %v1370_v28 = vld [vmem:[#allocation2 + $0x88] sm:$0x1] }
  0xb6   : > { %v906_v26 = vrot.slane %v904_v47, 7  ;;  %v25665_v47 = vor.u32 %v935_v56, %v934_v41  ;;  %v3137_v43 = vrot.slane %v3135_v1, 7  ;;  %v1441_v41 = vshrl.u32 %v25658_v31, 16  ;;  %v1371_v1 = vld [vmem:[#allocation2 + $0x98] sm:$0xff] }
  0xb7   : > { %v918_v7 = vrot.slane %v916_v58, 7  ;;  %v3042_v58 = vld [vmem:[#allocation2 + $0x150] sm:$0x80]  ;;  %v3149_v53 = vrot.slane %v3147_v52, 7  ;;  %v1453_v52 = vshrl.u32 %v25669_v33, 16 }
  0xb9   : > { %v926_v30 = vsel %vm746_vm4, %v918_v7, %v25648_v32 }
  0xbb   : > { %21744 = vmatmul.mubr.msk.bf16.gmra.mrb[16].mxu1 %vm950_vm2, %v866_v9  ;;  %21898 = vmatmul.mubr.msk.bf16.vlgmr.msra.gmra.mrb[0].mxu0 %vm950_vm2, %v3073_v29  ;;  %v25643_v9 = vor.u32 %v911_v49, %v910_v45  ;;  %v3038_v29 = vld [vmem:[#allocation2 + $0x120] sm:$0x80]  ;;  %v3159_v49 = vshrl.u32 %v3036_v39, 16  ;;  %v1426_v39 = vrot.slane %v1424_v38, 1  ;;  %v1457_v38 = vrot.slane %v1455_v0, 1 }
  0xbc   : > { %21747 = vmatprep.mubr.msk.bf16.mxu1 %vm950_vm2, %v878_v42  ;;  %21930 = vmatpush3.bf16.msra.mxu0 %v25366_v36  ;;  %v30279_v36 = vshll.u32 %v25263_v51, 16  ;;  %v3113_v42 = vrot.slane %v3111_v35, 7  ;;  %v3171_v11 = vshrl.u32 %v3038_v29, 16  ;;  %v1368_v35 = vld [vmem:[#allocation2 + $0x70] sm:$0x1]  ;;  %v3195_v29 = vshrl.u32 %v3042_v58, 16 }
  0xbd   : > { %21901 = vmatprep.mubr.msk.bf16.mxu0 %vm950_vm2, %v3085_v17  ;;  %21963 = vmatprep.subr.bf16.mxu0 %v25606_v5  ;;  %v3040_v17 = vld [vmem:[#allocation2 + $0x138] sm:$0x80]  ;;  %v914_v34 = vsel %vm746_vm4, %v906_v26, %v25643_v9  ;;  %v3161_v24 = vrot.slane %v3159_v49, 7  ;;  %v1448_v46 = vshll.u32 %v1368_v35, 16  ;;  %v1374_v35 = vld [vmem:[#allocation2 + $0xb8] sm:$0x1] }
  0xbe   : > { %v1397_v3 = vrot.slane %v30279_v36, 1  ;;  %v3121_v45 = vsel %vm746_vm4, %v3113_v42, %v25561_v10  ;;  %v3183_v55 = vshrl.u32 %v3040_v17, 16  ;;  %v3133_v36 = vsel %vm746_vm4, %v3125_v16, %v25568_v8  ;;  %v3044_v16 = vld [vmem:[#allocation2 + $0x168] sm:$0x80] }
  0xbf   : > { %v3173_v26 = vrot.slane %v3171_v11, 7  ;;  %v3145_v42 = vsel %vm746_vm4, %v3137_v43, %v25586_v15  ;;  %v1460_v17 = vshll.u32 %v1370_v28, 16  ;;  %v1372_v15 = vld [vmem:[#allocation2 + $0xa0] sm:$0x1]  ;;  %v1450_v49 = vrot.slane %v1448_v46, 1 }
  0xc0   : > { %v3185_v56 = vrot.slane %v3183_v55, 7  ;;  %v3207_v11 = vshrl.u32 %v3044_v16, 16  ;;  %v3169_v60 = vsel %vm746_vm4, %v3161_v24, %v25613_v59  ;;  %v1472_v55 = vshll.u32 %v1372_v15, 16  ;;  %v25698_v59 = vld [vmem:[#allocation2 + $0x1a0] sm:$0xff]  ;;  %v1375_v24 = vld [vmem:[#allocation2 + $0xc8] sm:$0xff] }
  0xc1   : > { %v3225_v58 = vrot.slane %v2756_v18, 7  ;;  %v1439_v28 = vsel %vm1391_vm3, %v25349_v22, %v1438_v20  ;;  %v1484_v18 = vshll.u32 %v1374_v35, 16  ;;  %v25719_v46 = vld [vmem:[#allocation2 + $0xe0] sm:$0xff]  ;;  %v25724_v22 = vor.u32 %v1457_v38, %v1453_v52 }
  0xc2   : > { %v1474_v33 = vrot.slane %v1472_v55, 1  ;;  %v25756_v55 = vld [vmem:[#allocation2 + $0x110] sm:$0xff] }
  0xc3   : > { %21748 = vmatmul.mubr.msk.bf16.gmra.mrb[20].mxu1 %vm950_vm2, %v890_v48  ;;  %21902 = vmatmul.mubr.msk.bf16.gmra.mrb[4].mxu0 %vm950_vm2, %v3097_v63  ;;  %v930_v48 = vrot.slane %v928_v44, 7  ;;  %v30280_v63 = vshrl.u32 %v25263_v51, 16  ;;  %v1443_v51 = vshll.u32 %v25658_v31, 16  ;;  %v3157_v44 = vsel %vm746_vm4, %v3149_v53, %v25591_v54 }
  0xc4   : > { %21751 = vmatprep.mubr.msk.bf16.mxu1 %vm950_vm2, %v902_v37  ;;  %21905 = vmatprep.mubr.msk.bf16.mxu0 %vm950_vm2, %v3109_v4  ;;  %v1402_v4 = vrot.slane %v1400_v40, 1  ;;  %v1467_v54 = vshll.u32 %v1371_v1, 16  ;;  %v1427_v31 = vsel %vm1391_vm3, %v25344_v19, %v1426_v39  ;;  %v3193_v39 = vsel %vm746_vm4, %v3185_v56, %v25643_v9  ;;  %v1378_v56 = vld [vmem:[#allocation2 + $0xe8] sm:$0x1] }
  0xc5   : > { %v1398_v37 = vor.u32 %v1397_v3, %v30280_v63  ;;  %v938_v3 = vsel %vm746_vm4, %v930_v48, %v25665_v47  ;;  %v1445_v40 = vrot.slane %v1443_v51, 1  ;;  %v3181_v48 = vsel %vm746_vm4, %v3173_v26, %v25619_v21  ;;  %v1373_v63 = vld [vmem:[#allocation2 + $0xb0] sm:$0xff] }
  0xc6   : > { %v1469_v21 = vrot.slane %v1467_v54, 1  ;;  %v1477_v43 = vshrl.u32 %v1373_v63, 16  ;;  %v1479_v53 = vshll.u32 %v1373_v63, 16 }
  0xc7   : > { %v1403_v7 = vsel %vm1391_vm3, %v1398_v37, %v1402_v4  ;;  %v1465_v37 = vshrl.u32 %v1371_v1, 16  ;;  %v25702_v19 = vor.u32 %v1445_v40, %v1441_v41  ;;  %v25707_v4 = vld [vmem:[%s25087_s24 + $0x20] sm:$0xff]   ;;  %v3235_v41 = vshrl.u32 %v25698_v59, 16  ;;  %v25737_v40 = vld [vmem:[#allocation2 + $0xf8] sm:$0xff]  ;;  %s24928_s24 = smov 16  }
  0xc8   : > { %v1481_v9 = vrot.slane %v1479_v53, 1  ;;  %v24812_v53 = vld [vmem:[#allocation2 + $0x38] sm:$0xff] }
  0xc9   : > { %v1451_v26 = vsel %vm1391_vm3, %v25702_v19, %v1450_v49  ;;  %v3237_v0 = vrot.slane %v3235_v41, 7 }
  0xca   : > { %v25747_v49 = vor.u32 %v1481_v9, %v1477_v43  ;;  %v1382_v43 = vld [vmem:[#allocation2 + $0x118] sm:$0x1] }
  0xcb   : > { %21752 = vmatmul.mubr.msk.bf16.gmra.mrb[24].mxu1 %vm950_vm2, %v914_v34  ;;  %21906 = vmatmul.mubr.msk.bf16.gmra.mrb[8].mxu0 %vm950_vm2, %v3121_v45  ;;  %v3197_v34 = vrot.slane %v3195_v29, 7  ;;  %v1462_v45 = vrot.slane %v1460_v17, 1  ;;  %v25727_v29 = vor.u32 %v1469_v21, %v1465_v37  ;;  %v1489_v17 = vshrl.u32 %v1375_v24, 16  ;;  %v25763_v37 = vld [vmem:[#allocation2 + $0x128] sm:$0xff] }
  0xcc   : > { %21755 = vmatprep.mubr.msk.bf16.mxu1 %vm950_vm2, %v926_v30  ;;  %21909 = vmatprep.mubr.msk.bf16.mxu0 %vm950_vm2, %v3133_v36  ;;  %v1415_v30 = vsel %vm1391_vm3, %v25322_v6, %v1414_v13  ;;  %v3219_v36 = vshrl.u32 %v3046_v25, 16  ;;  %v3209_v6 = vrot.slane %v3207_v11, 7  ;;  %v3048_v13 = vld [vmem:[#allocation2 + $0x198] sm:$0x80]  ;;  %v1380_v11 = vld [vmem:[#allocation2 + $0x100] sm:$0x1] }
  0xcd   : > { %v3205_v51 = vsel %vm746_vm4, %v3197_v34, %v25648_v32  ;;  %v3231_v20 = vshrl.u32 %v3048_v13, 16  ;;  %v3238_v32 = vshll.u32 %v25698_v59, 16  ;;  %v1463_v1 = vsel %vm1391_vm3, %v25724_v22, %v1462_v45 }
  0xce   : > { %v3217_v52 = vsel %vm746_vm4, %v3209_v6, %v25665_v47  ;;  %v1475_v15 = vsel %vm1391_vm3, %v25727_v29, %v1474_v33  ;;  %v1486_v34 = vrot.slane %v1484_v18, 1  ;;  %v1520_v63 = vshll.u32 %v1380_v11, 16 }
  0xcf   : > { %v3233_v38 = vrot.slane %v3231_v20, 7  ;;  %v3240_v47 = vor.u32 %v3238_v32, %v3237_v0  ;;  %v1527_v33 = vshll.u32 %v25756_v55, 16  ;;  %v1525_v18 = vshrl.u32 %v25756_v55, 16  ;;  %v25796_v0 = vld [vmem:[#allocation2 + $0x158] sm:$0xff] }
  0xd0   : > { %v1487_v6 = vsel %vm1391_vm3, %v25747_v49, %v1486_v34  ;;  %v1537_v20 = vshrl.u32 %v25763_v37, 16  ;;  %v1563_v34 = vshll.u32 %v25796_v0, 16 }
  0xd1   : > { %v3241_v35 = vsel %vm746_vm4, %v3233_v38, %v3240_v47  ;;  %v1388_v38 = vld [vmem:[#allocation2 + $0x160] sm:$0x1] }
  0xd3   : > { %21756 = vmatmul.mubr.msk.bf16.gmra.mrb[28].mxu1 %vm950_vm2, %v938_v3  ;;  %21910 = vmatmul.mubr.msk.bf16.gmra.mrb[12].mxu0 %vm950_vm2, %v3145_v42  ;;  %v1376_v3 = vld [vmem:[#allocation2 + $0xd0] sm:$0x1]  ;;  %v1491_v42 = vshll.u32 %v1375_v24, 16  ;;  %v1539_v24 = vshll.u32 %v25763_v37, 16 }
  0xd4   : > { %21761 = vmatprep.mubr.msk.bf16.mxu1 %vm950_vm2, %v1403_v7  ;;  %21913 = vmatprep.mubr.msk.bf16.mxu0 %vm950_vm2, %v3157_v44  ;;  %v3228_v7 = vor.u32 %v3225_v58, %v2758_v50  ;;  %v1496_v16 = vshll.u32 %v1376_v3, 16  ;;  %v1503_v44 = vshll.u32 %v25719_v46, 16  ;;  %v1508_v50 = vshll.u32 %v1378_v56, 16 }
  0xd5   : > { %v1493_v14 = vrot.slane %v1491_v42, 1  ;;  %v1532_v3 = vshll.u32 %v1382_v43, 16  ;;  %v1541_v56 = vrot.slane %v1539_v24, 1 }
  0xd6   : > { %v1498_v54 = vrot.slane %v1496_v16, 1 }
  0xd7   : > { %v25752_v45 = vor.u32 %v1493_v14, %v1489_v17  ;;  %v24813_v17 = vld [vmem:[#allocation2 + $0x50] sm:$0xff]  ;;  %v25810_v14 = vor.u32 %v1541_v56, %v1537_v20 }
  0xd9   : > { %v1499_v21 = vsel %vm1391_vm3, %v25752_v45, %v1498_v54 }
  0xdb   : > { %21762 = vmatmul.mubr.msk.bf16.vlgmr.msra.gmra.mrb[0].mxu1 %vm950_vm2, %v1415_v30  ;;  %21914 = vmatmul.mubr.msk.bf16.gmra.mrb[16].mxu0 %vm950_vm2, %v3169_v60  ;;  %v1515_v30 = vshll.u32 %v25737_v40, 16  ;;  %v1501_v60 = vshrl.u32 %v25719_v46, 16 }
  0xdc   : > { %21794 = vmatpush3.bf16.msra.mxu1 %v25486_v23  ;;  %21765 = vmatprep.mubr.msk.bf16.mxu1 %vm950_vm2, %v1427_v31  ;;  %v3221_v23 = vrot.slane %v3219_v36, 7  ;;  %v1505_v36 = vrot.slane %v1503_v44, 1  ;;  %v1510_v31 = vrot.slane %v1508_v50, 1 }
  0xdd   : > { %21917 = vmatprep.mubr.msk.bf16.mxu0 %vm950_vm2, %v3181_v48  ;;  %23329 = vmatprep.subr.bf16.mxu1 %v25707_v4  ;;  %v1513_v48 = vshrl.u32 %v25737_v40, 16  ;;  %v1517_v58 = vrot.slane %v1515_v30, 1 }
  0xde   : > { %v3229_v25 = vsel %vm746_vm4, %v3221_v23, %v3228_v7  ;;  %v25776_v23 = vor.u32 %v1505_v36, %v1501_v60  ;;  %v25794_v7 = vld [vmem:[#allocation2 + $0x140] sm:$0xff] }
  0xdf   : > { %v25781_v13 = vor.u32 %v1517_v58, %v1513_v48  ;;  %v1549_v47 = vshrl.u32 %v25794_v7, 16 }
  0xe3   : > { %21766 = vmatmul.mubr.msk.bf16.gmra.mrb[4].mxu1 %vm950_vm2, %v1439_v28  ;;  %21918 = vmatmul.mubr.msk.bf16.gmra.mrb[20].mxu0 %vm950_vm2, %v3193_v39  ;;  %v1522_v28 = vrot.slane %v1520_v63, 1  ;;  %v1384_v39 = vld [vmem:[#allocation2 + $0x130] sm:$0x1]  ;;  %v1565_v63 = vrot.slane %v1563_v34, 1 }
  0xe4   : > { %21769 = vmatprep.mubr.msk.bf16.mxu1 %vm950_vm2, %v1451_v26  ;;  %21921 = vmatprep.mubr.msk.bf16.mxu0 %vm950_vm2, %v3205_v51  ;;  %v1511_v26 = vsel %vm1391_vm3, %v25776_v23, %v1510_v31  ;;  %v1529_v51 = vrot.slane %v1527_v33, 1  ;;  %v1544_v42 = vshll.u32 %v1384_v39, 16  ;;  %v1561_v31 = vshrl.u32 %v25796_v0, 16 }
  0xe5   : > { %v1523_v9 = vsel %vm1391_vm3, %v25781_v13, %v1522_v28  ;;  %v24816_v28 = vld [vmem:[#allocation2 + $0x98] sm:$0xff] }
  0xe6   : > { %v25803_v16 = vor.u32 %v1529_v51, %v1525_v18  ;;  %v1546_v50 = vrot.slane %v1544_v42, 1  ;;  %v25836_v39 = vor.u32 %v1565_v63, %v1561_v31  ;;  %v1390_v51 = vld [vmem:[#allocation2 + $0x178] sm:$0x1] }
  0xe8   : > { %v1547_v36 = vsel %vm1391_vm3, %v25810_v14, %v1546_v50  ;;  %v24817_v50 = vld [vmem:[#allocation2 + $0xb0] sm:$0xff] }
  0xeb   : > { %21770 = vmatmul.mubr.msk.bf16.gmra.mrb[8].mxu1 %vm950_vm2, %v1463_v1  ;;  %21922 = vmatmul.mubr.msk.bf16.gmra.mrb[24].mxu0 %vm950_vm2, %v3217_v52  ;;  %v1534_v1 = vrot.slane %v1532_v3, 1  ;;  %v1551_v52 = vshll.u32 %v25794_v7, 16  ;;  %v1835_v3 = vld [vmem:[#allocation2 + $0x18] sm:$0x80] }
  0xec   : > { %21773 = vmatprep.mubr.msk.bf16.mxu1 %vm950_vm2, %v1475_v15  ;;  %21925 = vmatprep.mubr.msk.bf16.mxu0 %vm950_vm2, %v3229_v25  ;;  %v24814_v15 = vld [vmem:[#allocation2 + $0x68] sm:$0xff] }
  0xed   : > { %v1386_v25 = vld [vmem:[#allocation2 + $0x148] sm:$0x1]  ;;  %v1535_v11 = vsel %vm1391_vm3, %v25803_v16, %v1534_v1 }
  0xee   : > { %v1556_v54 = vshll.u32 %v1386_v25, 16 }
  0xf0   : > { %v1558_v43 = vrot.slane %v1556_v54, 1  ;;  %v1837_v54 = vld [vmem:[#allocation2 + $0x30] sm:$0x80] }
  0xf3   : > { %21774 = vmatmul.mubr.msk.bf16.gmra.mrb[12].mxu1 %vm950_vm2, %v1487_v6  ;;  %21926 = vmatmul.mubr.msk.bf16.gmra.mrb[28].mxu0 %vm950_vm2, %v3241_v35  ;;  %v1568_v6 = vshll.u32 %v1388_v38, 16  ;;  %v25823_v35 = vld [vmem:[#allocation2 + $0x170] sm:$0xff] }
  0xf4   : > { %21777 = vmatprep.mubr.msk.bf16.mxu1 %vm950_vm2, %v1499_v21  ;;  %21931 = vmatprep.mubr.msk.bf16.mxu0 %vm950_vm2, %v24812_v53  ;;  %v24815_v21 = vld [vmem:[#allocation2 + $0x80] sm:$0xff]  ;;  %v1575_v53 = vshll.u32 %v25823_v35, 16  ;;  %v1573_v56 = vshrl.u32 %v25823_v35, 16 }
  0xf6   : > { %v1577_v42 = vrot.slane %v1575_v53, 1 }
  0xf8   : > { %v25850_v25 = vor.u32 %v1577_v42, %v1573_v56  ;;  %v1843_v42 = vld [vmem:[#allocation2 + $0x78] sm:$0x80] }
  0xfb   : > { %21778 = vmatmul.mubr.msk.bf16.gmra.mrb[16].mxu1 %vm950_vm2, %v1511_v26  ;;  %21932 = vmatmul.mubr.msk.bf16.vlgmr.msra.gmra.mrb[0].mxu0 %vm950_vm2, %v24813_v17  ;;  %v1570_v26 = vrot.slane %v1568_v6, 1  ;;  %v1580_v17 = vshll.u32 %v1390_v51, 16  ;;  %v1880_v6 = vshrl.u32 %v1837_v54, 16  ;;  %v24820_v51 = vld [vmem:[#allocation2 + $0xf8] sm:$0xff]  ;;  %v1847_v54 = vld [vmem:[#allocation2 + $0xa8] sm:$0x80] }
  0xfc   : > { %21781 = vmatprep.mubr.msk.bf16.mxu1 %vm950_vm2, %v1523_v9  ;;  %21964 = vmatpush3.bf16.msra.mxu0 %v25606_v5  ;;  %v1553_v5 = vrot.slane %v1551_v52, 1 }
  0xfd   : > { %21935 = vmatprep.mubr.msk.bf16.mxu0 %vm950_vm2, %v24814_v15  ;;  %v1571_v1 = vsel %vm1391_vm3, %v25836_v39, %v1570_v26  ;;  %v1868_v15 = vshrl.u32 %v1835_v3, 16  ;;  %v1582_v38 = vrot.slane %v1580_v17, 1  ;;  %v1882_v26 = vrot.slane %v1880_v6, 7  ;;  %v1841_v3 = vld [vmem:[#allocation2 + $0x60] sm:$0x80] }
  0xfe   : > { %v25830_v58 = vor.u32 %v1553_v5, %v1549_v47  ;;  %v1940_v6 = vshrl.u32 %v1847_v54, 16 }
  0xff   : > { %v1870_v5 = vrot.slane %v1868_v15, 7  ;;  %v1583_v63 = vsel %vm1391_vm3, %v25850_v25, %v1582_v38  ;;  %v1890_v17 = vsel %vm746_vm4, %v1882_v26, %v25470_v27  ;;  %v1845_v27 = vld [vmem:[#allocation2 + $0x90] sm:$0x80]  ;;  %v24824_v26 = vld [vmem:[#allocation2 + $0x158] sm:$0xff] }
 0x100   : > { %v1559_v9 = vsel %vm1391_vm3, %v25830_v58, %v1558_v43 }
 0x103   : > { %21782 = vmatmul.mubr.msk.bf16.gmra.mrb[20].mxu1 %vm950_vm2, %v1535_v11  ;;  %21936 = vmatmul.mubr.msk.bf16.gmra.mrb[4].mxu0 %vm950_vm2, %v24815_v21  ;;  %v24818_v11 = vld [vmem:[#allocation2 + $0xc8] sm:$0xff]  ;;  %v1878_v21 = vsel %vm746_vm4, %v1870_v5, %v25452_v2  ;;  %v1916_v2 = vshrl.u32 %v1843_v42, 16  ;;  %v3727_v42 = vld [vmem:[#allocation2 + $0x40] sm:$0x1] }
 0x104   : > { %21785 = vmatprep.mubr.msk.bf16.mxu1 %vm950_vm2, %v1547_v36  ;;  %21939 = vmatprep.mubr.msk.bf16.mxu0 %vm950_vm2, %v24816_v28  ;;  %v1839_v36 = vld [vmem:[#allocation2 + $0x48] sm:$0x80]  ;;  %v24819_v28 = vld [vmem:[#allocation2 + $0xe0] sm:$0xff] }
 0x105   : > { %v1892_v43 = vshrl.u32 %v1839_v36, 16  ;;  %v1918_v5 = vrot.slane %v1916_v2, 7 }
 0x10b   : > { %21786 = vmatmul.mubr.msk.bf16.gmra.mrb[24].mxu1 %vm950_vm2, %v1559_v9  ;;  %21940 = vmatmul.mubr.msk.bf16.gmra.mrb[8].mxu0 %vm950_vm2, %v24817_v50  ;;  %v1894_v9 = vrot.slane %v1892_v43, 7  ;;  %v24821_v50 = vld [vmem:[#allocation2 + $0x110] sm:$0xff] }
 0x10c   : > { %21789 = vmatprep.mubr.msk.bf16.mxu1 %vm950_vm2, %v1571_v1  ;;  %21943 = vmatprep.mubr.msk.bf16.mxu0 %vm950_vm2, %v24818_v11  ;;  %v1904_v1 = vshrl.u32 %v1841_v3, 16  ;;  %v24822_v11 = vld [vmem:[#allocation2 + $0x128] sm:$0xff] }
 0x10d   : > { %v1902_v15 = vsel %vm746_vm4, %v1894_v9, %v25496_v57  ;;  %v1928_v57 = vshrl.u32 %v1845_v27, 16  ;;  %v24825_v27 = vld [vmem:[#allocation2 + $0x170] sm:$0xff] }
 0x10e   : > { %v1906_v38 = vrot.slane %v1904_v1, 7  ;;  %v1970_v1 = vrot.slane %v1501_v60, 7  ;;  %v24826_v60 = vld [vmem:[#allocation2 + $0x188] sm:$0xff] }
 0x10f   : > { %v1930_v43 = vrot.slane %v1928_v57, 7 }
 0x110   : > { %v1914_v36 = vsel %vm746_vm4, %v1906_v38, %v25504_v12  ;;  %v1851_v12 = vld [vmem:[#allocation2 + $0xd8] sm:$0x80]  ;;  %v3766_v38 = vshll.u32 %v3727_v42, 16  ;;  %v1973_v54 = vor.u32 %v1970_v1, %v1503_v44  ;;  %v1994_v42 = vrot.slane %v1525_v18, 7 }
 0x112   : > { %v1997_v18 = vor.u32 %v1994_v42, %v1527_v33  ;;  %v2018_v33 = vrot.slane %v1549_v47, 7 }
 0x113   : > { %21790 = vmatmul.mubr.msk.bf16.gmra.mrb[28].mxu1 %vm950_vm2, %v1583_v63  ;;  %21944 = vmatmul.mubr.msk.bf16.gmra.mrb[12].mxu0 %vm950_vm2, %v24819_v28  ;;  %v1926_v63 = vsel %vm746_vm4, %v1918_v5, %v25531_v61  ;;  %v1849_v28 = vld [vmem:[#allocation2 + $0xc0] sm:$0x80]  ;;  %v1938_v61 = vsel %vm746_vm4, %v1930_v43, %v25538_v62  ;;  %v3731_v43 = vld [vmem:[#allocation2 + $0x70] sm:$0x1] }
 0x114   : > { %21795 = vmatprep.mubr.msk.bf16.mxu1 %vm950_vm2, %v1878_v21  ;;  %21947 = vmatprep.mubr.msk.bf16.mxu0 %vm950_vm2, %v24820_v51  ;;  %v24823_v21 = vld [vmem:[#allocation2 + $0x140] sm:$0xff]  ;;  %v1942_v51 = vrot.slane %v1940_v6, 7  ;;  %v1952_v9 = vshrl.u32 %v1849_v28, 16  ;;  %v3729_v6 = vld [vmem:[#allocation2 + $0x58] sm:$0x1]  ;;  %v2021_v47 = vor.u32 %v2018_v33, %v1551_v52  ;;  %v2042_v52 = vrot.slane %v1573_v56, 7 }
 0x116   : > { %v1950_v2 = vsel %vm746_vm4, %v1942_v51, %v25561_v10  ;;  %v1954_v5 = vrot.slane %v1952_v9, 7  ;;  %v1853_v10 = vld [vmem:[#allocation2 + $0xf0] sm:$0x80]  ;;  %v1982_v51 = vrot.slane %v1513_v48, 7 }
 0x118   : > { %v1985_v48 = vor.u32 %v1982_v51, %v1515_v30  ;;  %v1863_v51 = vld [vmem:[#allocation2 + $0x168] sm:$0x80] }
 0x11b   : > { %21796 = vmatmul.mubr.msk.bf16.vlgmr.msra.gmra.mrb[0].mxu1 %vm950_vm2, %v1890_v17  ;;  %21948 = vmatmul.mubr.msk.bf16.gmra.mrb[16].mxu0 %vm950_vm2, %v24821_v50  ;;  %v1964_v17 = vshrl.u32 %v1851_v12, 16 }
 0x11c   : > { %23330 = vmatpush3.bf16.msra.mxu1 %v25707_v4  ;;  %21799 = vmatprep.mubr.msk.bf16.mxu1 %vm950_vm2, %v1902_v15  ;;  %v3726_v4 = vld [vmem:[#allocation2 + $0x38] sm:$0xff] }
 0x11d   : > { %21951 = vmatprep.mubr.msk.bf16.mxu0 %vm950_vm2, %v24822_v11  ;;  %v3761_v3 = vshll.u32 %v3726_v4, 16  ;;  %v3759_v15 = vshrl.u32 %v3726_v4, 16  ;;  %v3728_v11 = vld [vmem:[#allocation2 + $0x50] sm:$0xff]  ;;  %v1966_v62 = vrot.slane %v1964_v17, 7  ;;  %v1855_v4 = vld [vmem:[#allocation2 + $0x108] sm:$0x80] }
 0x11e   : > { %v3771_v44 = vshrl.u32 %v3728_v11, 16  ;;  %v1988_v9 = vshrl.u32 %v1855_v4, 16  ;;  %v3790_v17 = vshll.u32 %v3731_v43, 16 }
 0x11f   : > { %v3763_v50 = vrot.slane %v3761_v3, 1  ;;  %v1974_v28 = vsel %vm746_vm4, %v1966_v62, %v1973_v54  ;;  %v3778_v3 = vshll.u32 %v3729_v6, 16 }
 0x121   : > { %v3764_v57 = vor.u32 %v3763_v50, %v3759_v15  ;;  %v1990_v15 = vrot.slane %v1988_v9, 7  ;;  %v1857_v50 = vld [vmem:[#allocation2 + $0x120] sm:$0x80] }
 0x122   : > { %v2000_v54 = vshrl.u32 %v1857_v50, 16 }
 0x123   : > { %21800 = vmatmul.mubr.msk.bf16.gmra.mrb[4].mxu1 %vm950_vm2, %v1914_v36  ;;  %21952 = vmatmul.mubr.msk.bf16.gmra.mrb[20].mxu0 %vm950_vm2, %v24823_v21  ;;  %v3773_v36 = vshll.u32 %v3728_v11, 16  ;;  %v1962_v21 = vsel %vm746_vm4, %v1954_v5, %v25568_v8  ;;  %v3792_v11 = vrot.slane %v3790_v17, 1  ;;  %v1859_v5 = vld [vmem:[#allocation2 + $0x138] sm:$0x80]  ;;  %v2036_v17 = vshrl.u32 %v1863_v51, 16 }
 0x124   : > { %21803 = vmatprep.mubr.msk.bf16.mxu1 %vm950_vm2, %v1926_v63  ;;  %21955 = vmatprep.mubr.msk.bf16.mxu0 %vm950_vm2, %v24824_v26  ;;  %v3768_v63 = vrot.slane %v3766_v38, 1  ;;  %v1976_v26 = vshrl.u32 %v1853_v10, 16  ;;  %v3733_v38 = vld [vmem:[#allocation2 + $0x88] sm:$0x1] }
 0x125   : > { %v3775_v12 = vrot.slane %v3773_v36, 1  ;;  %v3802_v30 = vshll.u32 %v3733_v38, 16  ;;  %v1998_v36 = vsel %vm746_vm4, %v1990_v15, %v1997_v18  ;;  %v2038_v15 = vrot.slane %v2036_v17, 7  ;;  %v1865_v18 = vld [vmem:[#allocation2 + $0x180] sm:$0x80] }
 0x126   : > { %v1978_v8 = vrot.slane %v1976_v26, 7  ;;  %v3737_v26 = vld [vmem:[#allocation2 + $0xb8] sm:$0x1]  ;;  %v3741_v38 = vld [vmem:[#allocation2 + $0xe8] sm:$0x1] }
 0x127   : > { %v3776_v1 = vor.u32 %v3775_v12, %v3771_v44  ;;  %v3739_v44 = vld [vmem:[#allocation2 + $0xd0] sm:$0x1] }
 0x128   : > { %v1986_v62 = vsel %vm746_vm4, %v1978_v8, %v1985_v48  ;;  %v25932_v8 = vld [vmem:[#allocation2 + $0x188] sm:$0xff] }
 0x12b   : > { %21804 = vmatmul.mubr.msk.bf16.gmra.mrb[8].mxu1 %vm950_vm2, %v1938_v61  ;;  %21956 = vmatmul.mubr.msk.bf16.gmra.mrb[24].mxu0 %vm950_vm2, %v24825_v27  ;;  %v3769_v61 = vsel %vm1391_vm3, %v3764_v57, %v3768_v63  ;;  %v3735_v27 = vld [vmem:[#allocation2 + $0xa0] sm:$0x1]  ;;  %v2012_v57 = vshrl.u32 %v1859_v5, 16  ;;  %v3793_v63 = vsel %vm1391_vm3, %v25702_v19, %v3792_v11 }
 0x12c   : > { %21807 = vmatprep.mubr.msk.bf16.mxu1 %vm950_vm2, %v1950_v2  ;;  %21959 = vmatprep.mubr.msk.bf16.mxu0 %vm950_vm2, %v24826_v60  ;;  %v3780_v2 = vrot.slane %v3778_v3, 1  ;;  %v2006_v60 = vrot.slane %v1537_v20, 7  ;;  %v3814_v6 = vshll.u32 %v3735_v27, 16  ;;  %v2002_v20 = vrot.slane %v2000_v54, 7  ;;  %v3743_v11 = vld [vmem:[#allocation2 + $0x100] sm:$0x1] }
 0x12d   : > { %v2014_v43 = vrot.slane %v2012_v57, 7  ;;  %v2048_v27 = vshrl.u32 %v1865_v18, 16 }
 0x12e   : > { %v3781_v10 = vsel %vm1391_vm3, %v3776_v1, %v3780_v2  ;;  %v2009_v4 = vor.u32 %v2006_v60, %v1539_v24  ;;  %v3816_v19 = vrot.slane %v3814_v6, 1  ;;  %v2030_v24 = vrot.slane %v1561_v31, 7  ;;  %v3747_v6 = vld [vmem:[#allocation2 + $0x130] sm:$0x1] }
 0x12f   : > { %v2022_v42 = vsel %vm746_vm4, %v2014_v43, %v2021_v47  ;;  %v3838_v1 = vshll.u32 %v3739_v44, 16  ;;  %v2052_v2 = vshrl.u32 %v25932_v8, 16  ;;  %v3886_v43 = vshll.u32 %v3747_v6, 16 }
 0x130   : > { %v2010_v12 = vsel %vm746_vm4, %v2002_v20, %v2009_v4  ;;  %v3817_v48 = vsel %vm1391_vm3, %v25727_v29, %v3816_v19  ;;  %v2033_v31 = vor.u32 %v2030_v24, %v1563_v34  ;;  %v2045_v29 = vor.u32 %v2042_v52, %v1575_v53  ;;  %v3749_v19 = vld [vmem:[#allocation2 + $0x148] sm:$0x1] }
 0x131   : > { %v3840_v50 = vrot.slane %v3838_v1, 1  ;;  %v2055_v34 = vshll.u32 %v25932_v8, 16  ;;  %v3898_v51 = vshll.u32 %v3749_v19, 16 }
 0x132   : > { %v2046_v60 = vsel %vm746_vm4, %v2038_v15, %v2045_v29 }
 0x133   : > { %21808 = vmatmul.mubr.msk.bf16.gmra.mrb[12].mxu1 %vm950_vm2, %v1962_v21  ;;  %21960 = vmatmul.mubr.msk.bf16.gmra.mrb[28].mxu0 %vm950_vm2, %v25698_v59  ;;  %v3804_v21 = vrot.slane %v3802_v30, 1  ;;  %v3850_v30 = vshll.u32 %v3741_v38, 16  ;;  %v3841_v53 = vsel %vm1391_vm3, %v25752_v45, %v3840_v50 }
 0x134   : > { %21811 = vmatprep.mubr.msk.bf16.mxu1 %vm950_vm2, %v1974_v28  ;;  %21965 = vmatprep.mubr.msk.bf16.mxu0 %vm950_vm2, %v3769_v61  ;;  %v1861_v28 = vld [vmem:[#allocation2 + $0x150] sm:$0x80]  ;;  %v3826_v61 = vshll.u32 %v3737_v26, 16  ;;  %v3751_v26 = vld [vmem:[#allocation2 + $0x160] sm:$0x1] }
 0x135   : > { %v3805_v3 = vsel %vm1391_vm3, %v25724_v22, %v3804_v21  ;;  %v2024_v9 = vshrl.u32 %v1861_v28, 16  ;;  %v3852_v33 = vrot.slane %v3850_v30, 1  ;;  %v3888_v28 = vrot.slane %v3886_v43, 1 }
 0x136   : > { %v3828_v56 = vrot.slane %v3826_v61, 1  ;;  %v3910_v44 = vshll.u32 %v3751_v26, 16 }
 0x137   : > { %v2026_v22 = vrot.slane %v2024_v9, 7  ;;  %v3853_v45 = vsel %vm1391_vm3, %v25776_v23, %v3852_v33  ;;  %v3755_v9 = vld [vmem:[#allocation2 + $0x190] sm:$0x1] }
 0x138   : > { %v3829_v54 = vsel %vm1391_vm3, %v25747_v49, %v3828_v56  ;;  %v3745_v49 = vld [vmem:[#allocation2 + $0x118] sm:$0x1] }
 0x139   : > { %v2034_v5 = vsel %vm746_vm4, %v2026_v22, %v2033_v31  ;;  %v3874_v4 = vshll.u32 %v3745_v49, 16 }
 0x13b   : > { %21812 = vmatmul.mubr.msk.bf16.gmra.mrb[16].mxu1 %vm950_vm2, %v1986_v62  ;;  %21966 = vmatmul.mubr.msk.bf16.vlgmr.msra.gmra.mrb[0].mxu0 %vm950_vm2, %v3781_v10  ;;  %v2054_v62 = vrot.slane %v2052_v2, 7  ;;  %v3862_v10 = vshll.u32 %v3743_v11, 16  ;;  %v3876_v47 = vrot.slane %v3874_v4, 1 }
 0x13c   : > { %21815 = vmatprep.mubr.msk.bf16.mxu1 %vm950_vm2, %v1998_v36  ;;  %21969 = vmatprep.mubr.msk.bf16.mxu0 %vm950_vm2, %v3793_v63  ;;  %v2050_v36 = vrot.slane %v2048_v27, 7 }
 0x13d   : > { %v2057_v57 = vor.u32 %v2055_v34, %v2054_v62  ;;  %v3864_v63 = vrot.slane %v3862_v10, 1  ;;  %v3877_v23 = vsel %vm1391_vm3, %v25803_v16, %v3876_v47 }
 0x13f   : > { %v2058_v20 = vsel %vm746_vm4, %v2050_v36, %v2057_v57  ;;  %v3865_v21 = vsel %vm1391_vm3, %v25781_v13, %v3864_v63  ;;  %v3889_v13 = vsel %vm1391_vm3, %v25810_v14, %v3888_v28 }
 0x143   : > { %21816 = vmatmul.mubr.msk.bf16.gmra.mrb[20].mxu1 %vm950_vm2, %v2010_v12  ;;  %21970 = vmatmul.mubr.msk.bf16.gmra.mrb[4].mxu0 %vm950_vm2, %v3805_v3  ;;  %v3912_v12 = vrot.slane %v3910_v44, 1  ;;  %v3753_v3 = vld [vmem:[#allocation2 + $0x178] sm:$0x1] }
 0x144   : > { %21819 = vmatprep.mubr.msk.bf16.mxu1 %vm950_vm2, %v2022_v42  ;;  %21973 = vmatprep.mubr.msk.bf16.mxu0 %vm950_vm2, %v3817_v48  ;;  %v3922_v24 = vshll.u32 %v3753_v3, 16  ;;  %v3931_v42 = vrot.slane %v2055_v34, 1 }
 0x145   : > { %v3913_v14 = vsel %vm1391_vm3, %v25836_v39, %v3912_v12  ;;  %v3757_v39 = vld [vmem:[#allocation2 + $0x1a8] sm:$0x1] }
 0x146   : > { %v3946_v52 = vshll.u32 %v3757_v39, 16 }
 0x14b   : > { %21820 = vmatmul.mubr.msk.bf16.gmra.mrb[24].mxu1 %vm950_vm2, %v2034_v5  ;;  %21974 = vmatmul.mubr.msk.bf16.gmra.mrb[8].mxu0 %vm950_vm2, %v3829_v54  ;;  %v26028_v54 = vld [vmem:[%s30281_s21] ss:$0 sm:$0xff] }
 0x14c   : > { %21823 = vmatprep.mubr.msk.bf16.mxu1 %vm950_vm2, %v2046_v60  ;;  %21977 = vmatprep.mubr.msk.bf16.mxu0 %vm950_vm2, %v3841_v53 }
 0x153   : > { %21824 = vmatmul.mubr.msk.bf16.gmra.mrb[28].mxu1 %vm950_vm2, %v2058_v20  ;;  %21978 = vmatmul.mubr.msk.bf16.gmra.mrb[12].mxu0 %vm950_vm2, %v3853_v45  ;;  %v26033_v45 = vld [vmem:[#allocation2 + $0x8] sm:$0xff] }
 0x154   : > { %21845 = vmatprep.mubr.msk.bf16.mxu1 %vm950_vm2, %v25719_v46  ;;  %21981 = vmatprep.mubr.msk.bf16.mxu0 %vm950_vm2, %v3865_v21  ;;  %v3900_v46 = vrot.slane %v3898_v51, 1 }
 0x156   : > { %v3901_v16 = vsel %vm1391_vm3, %v25830_v58, %v3900_v46  ;;  %v3932_v58 = vor.u32 %v3931_v42, %v2052_v2 }
 0x15b   : > { %21846 = vmatmul.mubr.msk.bf16.vlgmr.msra.gmra.mrb[16].mxu1 %vm950_vm2, %v25737_v40  ;;  %21982 = vmatmul.mubr.msk.bf16.gmra.mrb[16].mxu0 %vm950_vm2, %v3877_v23  ;;  %v3934_v40 = vshll.u32 %v3755_v9, 16 }
 0x15c   : > { %21849 = vmatprep.mubr.msk.bf16.mxu1 %vm950_vm2, %v25756_v55  ;;  %21985 = vmatprep.mubr.msk.bf16.mxu0 %vm950_vm2, %v3889_v13  ;;  %v3924_v55 = vrot.slane %v3922_v24, 1 }
 0x15d   : > { %v3936_v61 = vrot.slane %v3934_v40, 1 }
 0x15e   : > { %v3925_v17 = vsel %vm1391_vm3, %v25850_v25, %v3924_v55  ;;  %v3948_v25 = vrot.slane %v3946_v52, 1 }
 0x15f   : > { %v3937_v48 = vsel %vm1391_vm3, %v3932_v58, %v3936_v61 }
 0x163   : > { %21850 = vmatmul.mubr.msk.bf16.gmra.mrb[20].mxu1 %vm950_vm2, %v25763_v37  ;;  %21986 = vmatmul.mubr.msk.bf16.gmra.mrb[20].mxu0 %vm950_vm2, %v3901_v16  ;;  %v3943_v37 = vrot.slane %v3238_v32, 1  ;;  %v24721_v32 = vld [vmem:[%s25093_s18 + $0xc] sm:$0xff]  }
 0x164   : > { %21853 = vmatprep.mubr.msk.bf16.mxu1 %vm950_vm2, %v25794_v7  ;;  %21989 = vmatprep.mubr.msk.bf16.mxu0 %vm950_vm2, %v3913_v14  ;;  %v26040_v14 = vld [vmem:[%s25093_s18] sm:$0xff]  }
 0x165   : > { %v3944_v7 = vor.u32 %v3943_v37, %v3235_v41  ;;  %21997 = vmatprep.subr.bf16.mxu1 %v24721_v32 }
 0x166   : > { %21998 = vmatpush3.bf16.msra.mxu1 %v24721_v32 }
 0x167   : > { %v3949_v1 = vsel %vm1391_vm3, %v3944_v7, %v3948_v25 }
 0x16b   : > { %21854 = vmatmul.mubr.msk.bf16.gmra.mrb[24].mxu1 %vm950_vm2, %v25796_v0  ;;  %21990 = vmatmul.mubr.msk.bf16.gmra.mrb[24].mxu0 %vm950_vm2, %v3925_v17  ;;  %v24722_v0 = vld [vmem:[%s25093_s18 + $0x14] ss:$0 sps:$4 sm:$0xff]  }
 0x16c   : > { %21857 = vmatprep.mubr.msk.bf16.mxu1 %vm950_vm2, %v25823_v35  ;;  %21993 = vmatprep.mubr.msk.bf16.mxu0 %vm950_vm2, %v3937_v48  ;;  %v4675_v35 = vsel %vm4673_vm5, %v24722_v0, 0 }
 0x16d   : > { %24611 = vmatprep.subr.msk.bf16.mxu1 %vm4673_vm5, %v24722_v0 }
 0x16e   : > { %22000 = vmatpush3.bf16.msra.mxu1 %v4675_v35 }
 0x16f   : > { %22033 = vmatprep.subr.bf16.mxu1 %v26040_v14 }
 0x173   : > { %21858 = vmatmul.mubr.msk.bf16.gmra.mrb[28].mxu1 %vm950_vm2, %v25932_v8  ;;  %21994 = vmatmul.mubr.msk.bf16.gmra.mrb[28].mxu0 %vm950_vm2, %v3949_v1 }
 0x174   : > { %22001 = vmatprep.mubr.msk.bf16.mxu1 %vm4640_vm6, %v26033_v45 }
 0x1ee   : > { %v21797_v59 = vpop.f32.mrb[0].mxu1 }
 0x1ef   : > { %v2150_v41 = vpop.f32.mrb[1].mxu1 }
 0x1f0   : > { %v21798_v22 = vpop.f32.mrb[2].mxu1 }
 0x1f1   : > { %v2153_v31 = vpop.f32.mrb[3].mxu1 }
 0x1f6   : > { %v21801_v2 = vpop.f32.mrb[4].mxu1 }
 0x1f7   : > { %v2166_v56 = vpop.f32.mrb[5].mxu1 }
 0x1f8   : > { %v21802_v8 = vpop.f32.mrb[6].mxu1 }
 0x1f9   : > { %v2169_v15 = vpop.f32.mrb[7].mxu1 }
 0x1fe   : > { %v21805_v29 = vpop.f32.mrb[8].mxu1 }
 0x1ff   : > { %v2182_v18 = vpop.f32.mrb[9].mxu1 }
 0x200   : > { %v26011_v50 = vpop.f32.mrb[10].mxu1 }
 0x201   : > { %v26013_v38 = vpop.f32.mrb[11].mxu1 }
 0x206   : > { %v26015_v11 = vpop.f32.mrb[12].mxu1 }
 0x207   : > { %v26017_v5 = vpop.f32.mrb[13].mxu1 }
 0x208   : > { %v26019_v27 = vpop.f32.mrb[14].mxu1 }
 0x209   : > { %v26021_v62 = vpop.f32.mrb[15].mxu1 }
 0x20e   : > { %v21967_v34 = vpop.f32.mrb[0].mxu0 }
 0x20f   : > { %v23331_v60 = vadd.f32 %v21967_v34, %v21797_v59  ;;  %v4041_v30 = vpop.f32.mrb[1].mxu0 }
 0x210   : > { %v23332_v53 = vadd.f32 %v4041_v30, %v2150_v41  ;;  %v21968_v10 = vpop.f32.mrb[2].mxu0 }
 0x211   : > { %v4209_v36 = vadd.f32 %v23331_v60, %v26028_v54  ;;  %v23333_v57 = vadd.f32 %v21968_v10, %v21798_v22  ;;  %v4044_v33 = vpop.f32.mrb[3].mxu0 }
 0x212   : > { %v4207_v63 = vadd.f32 %v23332_v53, %v26028_v54  ;;  %v23334_v49 = vadd.f32 %v4044_v33, %v2153_v31 }
 0x213   : > { %v4241_v6 = vmul.f32 0.2, %v4209_v36  ;;  %v4210_v20 = vadd.f32 %v23333_v57, %v26028_v54 }
 0x214   : > { %v4239_v4 = vmul.f32 0.2, %v4207_v63  ;;  %v4208_v21 = vadd.f32 %v23334_v49, %v26028_v54 }
 0x215   : > { %v4242_v43 = vmul.f32 0.2, %v4210_v20  ;;  %v4273_v19 = vmax.f32 %v4209_v36, %v4241_v6 }
 0x216   : > { %v4240_v47 = vmul.f32 0.2, %v4208_v21  ;;  %v21971_v28 = vpop.f32.mrb[4].mxu0  ;;  %v4271_v46 = vmax.f32 %v4207_v63, %v4239_v4 }
 0x217   : > { %v4274_v26 = vmax.f32 %v4210_v20, %v4242_v43  ;;  %v23335_v23 = vadd.f32 %v21971_v28, %v21801_v2  ;;  %v4057_v51 = vpop.f32.mrb[5].mxu0 }
 0x218   : > { %v23336_v13 = vadd.f32 %v4057_v51, %v2166_v56  ;;  %v21972_v44 = vpop.f32.mrb[6].mxu0  ;;  %v4272_v12 = vmax.f32 %v4208_v21, %v4240_v47 }
 0x219   : > { %v4213_v3 = vadd.f32 %v23335_v23, %v26028_v54  ;;  %v23337_v9 = vadd.f32 %v21972_v44, %v21802_v8  ;;  %v4060_v16 = vpop.f32.mrb[7].mxu0  ;;  %v4304_v24 = vpack.c.bf16 %v4274_v26, %v4273_v19 }
 0x21a   : > { %v4211_v42 = vadd.f32 %v23336_v13, %v26028_v54  ;;  %v23338_v40 = vadd.f32 %v4060_v16, %v2169_v15  ;;  %v4303_v55 = vpack.c.bf16 %v4272_v12, %v4271_v46 }
 0x21b   : > { %v4245_v58 = vmul.f32 0.2, %v4213_v3  ;;  %v4214_v61 = vadd.f32 %v23337_v9, %v26028_v54 }
 0x21c   : > { %v4243_v39 = vmul.f32 0.2, %v4211_v42  ;;  %v4212_v17 = vadd.f32 %v23338_v40, %v26028_v54  ;;  %4335 = vrot.lane.b32.xlu0 %v4303_v55, %s24928_s24 }
 0x21d   : > { %v4246_v37 = vmul.f32 0.2, %v4214_v61  ;;  %v4277_v7 = vmax.f32 %v4213_v3, %v4245_v58 }
 0x21e   : > { %v4244_v52 = vmul.f32 0.2, %v4212_v17  ;;  %v21975_v48 = vpop.f32.mrb[8].mxu0  ;;  %v4275_v59 = vmax.f32 %v4211_v42, %v4243_v39 }
 0x21f   : > { %v4278_v25 = vmax.f32 %v4214_v61, %v4246_v37  ;;  %v23339_v1 = vadd.f32 %v21975_v48, %v21805_v29  ;;  %v4073_v32 = vpop.f32.mrb[9].mxu0 }
 0x220   : > { %v23340_v0 = vadd.f32 %v4073_v32, %v2182_v18  ;;  %v21976_v35 = vpop.f32.mrb[10].mxu0  ;;  %4337 = vrot.lane.b32.xlu0 %v4304_v24, %s24928_s24  ;;  %v4276_v41 = vmax.f32 %v4212_v17, %v4244_v52 }
 0x221   : > { %v4217_v22 = vadd.f32 %v23339_v1, %v26028_v54  ;;  %v23341_v31 = vadd.f32 %v21976_v35, %v26011_v50  ;;  %v4076_v2 = vpop.f32.mrb[11].mxu0  ;;  %v4306_v56 = vpack.c.bf16 %v4278_v25, %v4277_v7 }
 0x222   : > { %v4215_v8 = vadd.f32 %v23340_v0, %v26028_v54  ;;  %v23342_v15 = vadd.f32 %v4076_v2, %v26013_v38  ;;  %v4305_v34 = vpack.c.bf16 %v4276_v41, %v4275_v59 }
 0x223   : > { %v4249_v60 = vmul.f32 0.2, %v4217_v22  ;;  %v4218_v29 = vadd.f32 %v23341_v31, %v26028_v54 }
 0x224   : > { %v4247_v18 = vmul.f32 0.2, %v4215_v8  ;;  %v4216_v30 = vadd.f32 %v23342_v15, %v26028_v54  ;;  %4339 = vrot.lane.b32.xlu1 %v4305_v34, %s24928_s24 }
 0x225   : > { %v4250_v53 = vmul.f32 0.2, %v4218_v29  ;;  %v4281_v57 = vmax.f32 %v4217_v22, %v4249_v60 }
 0x226   : > { %v4248_v10 = vmul.f32 0.2, %v4216_v30  ;;  %v21979_v36 = vpop.f32.mrb[12].mxu0  ;;  %v4279_v49 = vmax.f32 %v4215_v8, %v4247_v18 }
 0x227   : > { %v4282_v50 = vmax.f32 %v4218_v29, %v4250_v53  ;;  %v23343_v33 = vadd.f32 %v21979_v36, %v26015_v11  ;;  %v4089_v63 = vpop.f32.mrb[13].mxu0 }
 0x228   : > { %v4280_v6 = vmax.f32 %v4216_v30, %v4248_v10  ;;  %v23344_v38 = vadd.f32 %v4089_v63, %v26017_v5  ;;  %v21980_v20 = vpop.f32.mrb[14].mxu0  ;;  %4341 = vrot.lane.b32.xlu1 %v4306_v56, %s24928_s24 }
 0x229   : > { %v4221_v4 = vadd.f32 %v23343_v33, %v26028_v54  ;;  %v23345_v21 = vadd.f32 %v21980_v20, %v26019_v27  ;;  %v4092_v43 = vpop.f32.mrb[15].mxu0  ;;  %v4308_v47 = vpack.c.bf16 %v4282_v50, %v4281_v57 }
 0x22a   : > { %v4219_v28 = vadd.f32 %v23344_v38, %v26028_v54  ;;  %v23346_v19 = vadd.f32 %v4092_v43, %v26021_v62  ;;  %v4307_v26 = vpack.c.bf16 %v4280_v6, %v4279_v49 }
 0x22b   : > { %v4253_v11 = vmul.f32 0.2, %v4221_v4  ;;  %v4222_v23 = vadd.f32 %v23345_v21, %v26028_v54 }
 0x22c   : > { %v4251_v51 = vmul.f32 0.2, %v4219_v28  ;;  %v4220_v5 = vadd.f32 %v23346_v19, %v26028_v54  ;;  %4345 = vrot.lane.b32.xlu1 %v4308_v47, %s24928_s24  ;;  %4343 = vrot.lane.b32.xlu0 %v4307_v26, %s24928_s24 }
 0x22d   : > { %v4254_v13 = vmul.f32 0.2, %v4222_v23  ;;  %v4285_v3 = vmax.f32 %v4221_v4, %v4253_v11 }
 0x22e   : > { %v21847_v44 = vpop.f32.mrb[16].mxu1  ;;  %v4252_v27 = vmul.f32 0.2, %v4220_v5  ;;  %v21983_v46 = vpop.f32.mrb[16].mxu0  ;;  %v4283_v42 = vmax.f32 %v4219_v28, %v4251_v51 }
 0x22f   : > { %v2448_v12 = vpop.f32.mrb[17].mxu1  ;;  %v4286_v9 = vmax.f32 %v4222_v23, %v4254_v13  ;;  %v23347_v16 = vadd.f32 %v21983_v46, %v21847_v44  ;;  %v4105_v62 = vpop.f32.mrb[17].mxu0 }
 0x230   : > { %v21848_v24 = vpop.f32.mrb[18].mxu1  ;;  %v4284_v40 = vmax.f32 %v4220_v5, %v4252_v27  ;;  %v23348_v55 = vadd.f32 %v4105_v62, %v2448_v12  ;;  %v21984_v58 = vpop.f32.mrb[18].mxu0 }
 0x231   : > { %v2451_v61 = vpop.f32.mrb[19].mxu1  ;;  %v4225_v39 = vadd.f32 %v23347_v16, %v26028_v54  ;;  %v23349_v17 = vadd.f32 %v21984_v58, %v21848_v24  ;;  %v4108_v37 = vpop.f32.mrb[19].mxu0  ;;  %v4310_v52 = vpack.c.bf16 %v4286_v9, %v4285_v3 }
 0x232   : > { %v4223_v48 = vadd.f32 %v23348_v55, %v26028_v54  ;;  %v23350_v7 = vadd.f32 %v4108_v37, %v2451_v61  ;;  %v4309_v25 = vpack.c.bf16 %v4284_v40, %v4283_v42 }
 0x233   : > { %v4257_v1 = vmul.f32 0.2, %v4225_v39  ;;  %v4226_v32 = vadd.f32 %v23349_v17, %v26028_v54  ;;  %4349 = vrot.lane.b32.xlu1 %v4310_v52, %s24928_s24 }
 0x234   : > { %v4255_v0 = vmul.f32 0.2, %v4223_v48  ;;  %v4224_v35 = vadd.f32 %v23350_v7, %v26028_v54  ;;  %4347 = vrot.lane.b32.xlu0 %v4309_v25, %s24928_s24 }
 0x235   : > { %v4258_v59 = vmul.f32 0.2, %v4226_v32  ;;  %v4289_v56 = vmax.f32 %v4225_v39, %v4257_v1 }
 0x236   : > { %v21851_v41 = vpop.f32.mrb[20].mxu1  ;;  %v4256_v22 = vmul.f32 0.2, %v4224_v35  ;;  %v21987_v31 = vpop.f32.mrb[20].mxu0  ;;  %v4287_v29 = vmax.f32 %v4223_v48, %v4255_v0 }
 0x237   : > { %v2464_v2 = vpop.f32.mrb[21].mxu1  ;;  %v4290_v8 = vmax.f32 %v4226_v32, %v4258_v59  ;;  %v23351_v15 = vadd.f32 %v21987_v31, %v21851_v41  ;;  %v4121_v34 = vpop.f32.mrb[21].mxu0 }
 0x238   : > { %v21852_v60 = vpop.f32.mrb[22].mxu1  ;;  %v4288_v18 = vmax.f32 %v4224_v35, %v4256_v22  ;;  %v23352_v30 = vadd.f32 %v4121_v34, %v2464_v2  ;;  %v21988_v53 = vpop.f32.mrb[22].mxu0 }
 0x239   : > { %v2467_v10 = vpop.f32.mrb[23].mxu1  ;;  %v4229_v36 = vadd.f32 %v23351_v15, %v26028_v54  ;;  %v23353_v57 = vadd.f32 %v21988_v53, %v21852_v60  ;;  %v4124_v50 = vpop.f32.mrb[23].mxu0  ;;  %v4312_v33 = vpack.c.bf16 %v4290_v8, %v4289_v56 }
 0x23a   : > { %v4227_v63 = vadd.f32 %v23352_v30, %v26028_v54  ;;  %v23354_v49 = vadd.f32 %v4124_v50, %v2467_v10  ;;  %v4311_v6 = vpack.c.bf16 %v4288_v18, %v4287_v29 }
 0x23b   : > { %v4261_v38 = vmul.f32 0.2, %v4229_v36  ;;  %v4230_v20 = vadd.f32 %v23353_v57, %v26028_v54  ;;  %4353 = vrot.lane.b32.xlu1 %v4312_v33, %s24928_s24 }
 0x23c   : > { %v4259_v4 = vmul.f32 0.2, %v4227_v63  ;;  %v4228_v21 = vadd.f32 %v23354_v49, %v26028_v54  ;;  %4351 = vrot.lane.b32.xlu0 %v4311_v6, %s24928_s24 }
 0x23d   : > { %v4262_v43 = vmul.f32 0.2, %v4230_v20  ;;  %v4293_v11 = vmax.f32 %v4229_v36, %v4261_v38 }
 0x23e   : > { %v21855_v47 = vpop.f32.mrb[24].mxu1  ;;  %v4260_v28 = vmul.f32 0.2, %v4228_v21  ;;  %v21991_v19 = vpop.f32.mrb[24].mxu0  ;;  %v4291_v44 = vmax.f32 %v4227_v63, %v4259_v4 }
 0x23f   : > { %v2480_v26 = vpop.f32.mrb[25].mxu1  ;;  %v4294_v23 = vmax.f32 %v4230_v20, %v4262_v43  ;;  %v23355_v51 = vadd.f32 %v21991_v19, %v21855_v47  ;;  %v4137_v5 = vpop.f32.mrb[25].mxu0  ;;  %v24724_v43 = vld [vmem:[%s25093_s18 + $0x8] ss:$0 sps:$4 sm:$0xff]  }
 0x240   : > { %v21856_v13 = vpop.f32.mrb[26].mxu1  ;;  %v4292_v27 = vmax.f32 %v4228_v21, %v4260_v28  ;;  %v23356_v46 = vadd.f32 %v4137_v5, %v2480_v26  ;;  %v21992_v12 = vpop.f32.mrb[26].mxu0  ;;  %v4896_v19 = vsel %vm4673_vm5, %v24724_v43, 0  ;;  %v26104_v26 = vld [vmem:[%s25093_s18 + $0x18] sm:$0xff]  }
 0x241   : > { %v2483_v3 = vpop.f32.mrb[27].mxu1  ;;  %v4233_v9 = vadd.f32 %v23355_v51, %v26028_v54  ;;  %v23357_v16 = vadd.f32 %v21992_v12, %v21856_v13  ;;  %v4140_v62 = vpop.f32.mrb[27].mxu0  ;;  %v4314_v24 = vpack.c.bf16 %v4294_v23, %v4293_v11 }
 0x242   : > { %v4231_v42 = vadd.f32 %v23356_v46, %v26028_v54  ;;  %v23358_v40 = vadd.f32 %v4140_v62, %v2483_v3  ;;  %v4313_v55 = vpack.c.bf16 %v4292_v27, %v4291_v44 }
 0x243   : > { %v4265_v58 = vmul.f32 0.2, %v4233_v9  ;;  %v4234_v61 = vadd.f32 %v23357_v16, %v26028_v54  ;;  %4357 = vrot.lane.b32.xlu1 %v4314_v24, %s24928_s24 }
 0x244   : > { %v4263_v39 = vmul.f32 0.2, %v4231_v42  ;;  %v4232_v17 = vadd.f32 %v23358_v40, %v26028_v54  ;;  %4355 = vrot.lane.b32.xlu0 %v4313_v55, %s24928_s24 }
 0x245   : > { %v4266_v37 = vmul.f32 0.2, %v4234_v61  ;;  %v4297_v1 = vmax.f32 %v4233_v9, %v4265_v58 }
 0x246   : > { %v21859_v52 = vpop.f32.mrb[28].mxu1  ;;  %v4264_v48 = vmul.f32 0.2, %v4232_v17  ;;  %v21995_v7 = vpop.f32.mrb[28].mxu0  ;;  %v4295_v41 = vmax.f32 %v4231_v42, %v4263_v39 }
 0x247   : > { %v2496_v25 = vpop.f32.mrb[29].mxu1  ;;  %v4298_v32 = vmax.f32 %v4234_v61, %v4266_v37  ;;  %v23359_v0 = vadd.f32 %v21995_v7, %v21859_v52  ;;  %v4153_v35 = vpop.f32.mrb[29].mxu0  ;;  %v4437_v37 = vshrl.u32 %v26033_v45, 16  ;;  %v4400_v52 = vld [vmem:[#allocation2] sm:$0x80]  ;;  %v4440_v7 = vshll.u32 %v26033_v45, 16 }
 0x248   : > { %v21860_v59 = vpop.f32.mrb[30].mxu1  ;;  %v4296_v22 = vmax.f32 %v4232_v17, %v4264_v48  ;;  %v23360_v31 = vadd.f32 %v4153_v35, %v2496_v25  ;;  %v21996_v2 = vpop.f32.mrb[30].mxu0 }
 0x249   : > { %v2499_v56 = vpop.f32.mrb[31].mxu1  ;;  %v4237_v8 = vadd.f32 %v23359_v0, %v26028_v54  ;;  %v23361_v15 = vadd.f32 %v21996_v2, %v21860_v59  ;;  %v4156_v34 = vpop.f32.mrb[31].mxu0  ;;  %v4316_v60 = vpack.c.bf16 %v4298_v32, %v4297_v1  ;;  %v4439_v48 = vrot.slane %v4437_v37, 7  ;;  %v4402_v2 = vld [vmem:[#allocation2 + $0x18] sm:$0x80] }
 0x24a   : > { %v4235_v29 = vadd.f32 %v23360_v31, %v26028_v54  ;;  %v23362_v18 = vadd.f32 %v4156_v34, %v2499_v56  ;;  %v4315_v30 = vpack.c.bf16 %v4296_v22, %v4295_v41  ;;  %v4433_v1 = vshrl.u32 %v4400_v52, 16  ;;  %v4404_v56 = vld [vmem:[#allocation2 + $0x30] sm:$0x80] }
 0x24b   : > { %v4269_v53 = vmul.f32 0.2, %v4237_v8  ;;  %v4238_v10 = vadd.f32 %v23361_v15, %v26028_v54  ;;  %4361 = vrot.lane.b32.xlu1 %v4316_v60, %s24928_s24  ;;  %v4442_v59 = vor.u32 %v4440_v7, %v4439_v48 }
 0x24c   : > { %v4267_v36 = vmul.f32 0.2, %v4235_v29  ;;  %v4236_v57 = vadd.f32 %v23362_v18, %v26028_v54  ;;  %4359 = vrot.lane.b32.xlu0 %v4315_v30, %s24928_s24  ;;  %v4435_v41 = vrot.slane %v4433_v1, 7  ;;  %v4412_v1 = vld [vmem:[#allocation2 + $0x90] sm:$0x80] }
 0x24d   : > { %v4270_v50 = vmul.f32 0.2, %v4238_v10  ;;  %v4301_v63 = vmax.f32 %v4237_v8, %v4269_v53  ;;  %v4457_v53 = vshrl.u32 %v4404_v56, 16 }
 0x24e   : > { %v4268_v33 = vmul.f32 0.2, %v4236_v57  ;;  %v4299_v6 = vmax.f32 %v4235_v29, %v4267_v36  ;;  %v4443_v8 = vsel %vm746_vm4, %v4435_v41, %v4442_v59  ;;  %v4445_v29 = vshrl.u32 %v4402_v2, 16 }
 0x24f   : > { %v4302_v49 = vmax.f32 %v4238_v10, %v4270_v50 }
 0x250   : > { %v4300_v38 = vmax.f32 %v4236_v57, %v4268_v33 }
 0x251   : > { %v4318_v20 = vpack.c.bf16 %v4302_v49, %v4301_v63  ;;  %v4447_v63 = vrot.slane %v4445_v29, 7 }
 0x252   : > { %v4317_v4 = vpack.c.bf16 %v4300_v38, %v4299_v6 }
 0x253   : > { %4365 = vrot.lane.b32.xlu1 %v4318_v20, %s24928_s24  ;;  %v4459_v20 = vrot.slane %v4457_v53, 7 }
 0x254   : > { %4363 = vrot.lane.b32.xlu0 %v4317_v4, %s24928_s24 }
 0x28e   : > { %v4336_v21 = vpop.permute.xlu0 %4335 }
 0x28f   : > { %4384 = vst.msk [vmem:[#allocation2 + $0x20] sm:$0xff] %vm4383_vm7, %v4336_v21  ;;  %v4406_v21 = vld [vmem:[#allocation2 + $0x48] sm:$0x80] }
 0x292   : > { %v4338_v54 = vpop.permute.xlu0 %4337 }
 0x293   : > { %4385 = vst.msk [vmem:[#allocation2 + $0x38] sm:$0xff] %vm4383_vm7, %v4338_v54  ;;  %v4408_v54 = vld [vmem:[#allocation2 + $0x60] sm:$0x80] }
 0x296   : > { %v4340_v47 = vpop.permute.xlu1 %4339  ;;  %v26095_v28 = vld [vmem:[#allocation2 + $0x20] sm:$0xff] }
 0x297   : > { %4386 = vst.msk [vmem:[#allocation2 + $0x50] sm:$0xff] %vm4383_vm7, %v4340_v47  ;;  %22002 = vmatmul.mubr.msk.bf16.vlgmr.msra.gmra.mrb[32].mxu1 %vm4640_vm6, %v26095_v28  ;;  %v4449_v22 = vshrl.u32 %v26095_v28, 16  ;;  %v4452_v10 = vshll.u32 %v26095_v28, 16 }
 0x298   : > { %22034 = vmatpush3.bf16.msra.mxu1 %v26040_v14 }
 0x299   : > { %24612 = vmatprep.subr.msk.bf16.mxu1 %vm4673_vm5, %v24724_v43  ;;  %v4451_v34 = vrot.slane %v4449_v22, 7  ;;  %v24726_v43 = vld [vmem:[%s25093_s18 + $0x20] ss:$0 sps:$4 sm:$0xff]  }
 0x29a   : > { %v4342_v11 = vpop.permute.xlu1 %4341  ;;  %v26106_v23 = vld [vmem:[#allocation2 + $0x38] sm:$0xff] }
 0x29b   : > { %4387 = vst.msk [vmem:[#allocation2 + $0x68] sm:$0xff] %vm4383_vm7, %v4342_v11  ;;  %22005 = vmatprep.mubr.msk.bf16.mxu1 %vm4640_vm6, %v26106_v23  ;;  %v4461_v31 = vshrl.u32 %v26106_v23, 16  ;;  %v4464_v50 = vshll.u32 %v26106_v23, 16  ;;  %v26201_v49 = vor.u32 %v4452_v10, %v4451_v34  ;;  %v4469_v11 = vshrl.u32 %v4406_v21, 16 }
 0x29c   : > { %22036 = vmatpush3.bf16.msra.mxu1 %v4896_v19 }
 0x29d   : > { %22069 = vmatprep.subr.bf16.mxu1 %v26104_v26  ;;  %v4463_v30 = vrot.slane %v4461_v31, 7  ;;  %v4455_v19 = vsel %vm746_vm4, %v4447_v63, %v26201_v49  ;;  %v5120_v45 = vrot.slane %v4464_v50, 1 }
 0x29e   : > { %v4346_v51 = vpop.permute.xlu1 %4345  ;;  %v4344_v5 = vpop.permute.xlu0 %4343  ;;  %v26112_v14 = vld [vmem:[#allocation2 + $0x50] sm:$0xff] }
 0x29f   : > { %4389 = vst.msk [vmem:[#allocation2 + $0x98] sm:$0xff] %vm4383_vm7, %v4346_v51  ;;  %4388 = vst.msk [vmem:[#allocation2 + $0x80] sm:$0xff] %vm4383_vm7, %v4344_v5  ;;  %22006 = vmatmul.mubr.msk.bf16.gmra.mrb[36].mxu1 %vm4640_vm6, %v26112_v14  ;;  %v4473_v33 = vshrl.u32 %v26112_v14, 16  ;;  %v26210_v4 = vor.u32 %v4464_v50, %v4463_v30 }
 0x2a1   : > { %v4475_v47 = vrot.slane %v4473_v33, 7  ;;  %v4467_v5 = vsel %vm746_vm4, %v4459_v20, %v26210_v4 }
 0x2a2   : > { %v26118_v13 = vld [vmem:[#allocation2 + $0x68] sm:$0xff] }
 0x2a3   : > { %22009 = vmatprep.mubr.msk.bf16.mxu1 %vm4640_vm6, %v26118_v13  ;;  %v4485_v38 = vshrl.u32 %v26118_v13, 16 }
 0x2a5   : > { %v4350_v44 = vpop.permute.xlu1 %4349  ;;  %v4487_v51 = vrot.slane %v4485_v38, 7 }
 0x2a6   : > { %4391 = vst.msk [vmem:[#allocation2 + $0xc8] sm:$0xff] %vm4383_vm7, %v4350_v44  ;;  %v4348_v27 = vpop.permute.xlu0 %4347  ;;  %v26123_v46 = vld [vmem:[#allocation2 + $0x80] sm:$0xff]  ;;  %v26125_v12 = vld [vmem:[#allocation2 + $0x98] sm:$0xff]  ;;  %v4481_v44 = vshrl.u32 %v4408_v54, 16  ;;  %v4414_v54 = vld [vmem:[#allocation2 + $0xa8] sm:$0x80] }
 0x2a7   : > { %4390 = vst.msk [vmem:[#allocation2 + $0xb0] sm:$0xff] %vm4383_vm7, %v4348_v27  ;;  %22010 = vmatmul.mubr.msk.bf16.gmra.mrb[40].mxu1 %vm4640_vm6, %v26123_v46  ;;  %v4476_v27 = vshll.u32 %v26112_v14, 16  ;;  %v4509_v52 = vshrl.u32 %v26125_v12, 16  ;;  %v4500_v34 = vshll.u32 %v26123_v46, 16  ;;  %v4512_v29 = vshll.u32 %v26125_v12, 16 }
 0x2a8   : > { %22013 = vmatprep.mubr.msk.bf16.mxu1 %vm4640_vm6, %v26125_v12  ;;  %v4483_v48 = vrot.slane %v4481_v44, 7 }
 0x2a9   : > { %v4511_v2 = vrot.slane %v4509_v52, 7  ;;  %v5132_v50 = vrot.slane %v4476_v27, 1 }
 0x2ab   : > { %v26262_v21 = vor.u32 %v4512_v29, %v4511_v2  ;;  %v4418_v2 = vld [vmem:[#allocation2 + $0xd8] sm:$0x80] }
 0x2ad   : > { %v4354_v3 = vpop.permute.xlu1 %4353  ;;  %v26138_v62 = vld [vmem:[#allocation2 + $0xc8] sm:$0xff] }
 0x2ae   : > { %4393 = vst.msk [vmem:[#allocation2 + $0xf8] sm:$0xff] %vm4383_vm7, %v4354_v3  ;;  %v4352_v9 = vpop.permute.xlu0 %4351  ;;  %v26133_v16 = vld [vmem:[#allocation2 + $0xb0] sm:$0xff]  ;;  %v4488_v3 = vshll.u32 %v26118_v13, 16  ;;  %v30170_v63 = vshrl.u32 %v26138_v62, 16 }
 0x2af   : > { %4392 = vst.msk [vmem:[#allocation2 + $0xe0] sm:$0xff] %vm4383_vm7, %v4352_v9  ;;  %22014 = vmatmul.mubr.msk.bf16.gmra.mrb[44].mxu1 %vm4640_vm6, %v26133_v16  ;;  %v5345_v9 = vsel %vm4673_vm5, %v24726_v43, 0  ;;  %v30171_v30 = vshrl.u32 %v26133_v16, 16 }
 0x2b0   : > { %22017 = vmatprep.mubr.msk.bf16.mxu1 %vm4640_vm6, %v26138_v62 }
 0x2b5   : > { %v4358_v24 = vpop.permute.xlu1 %4357  ;;  %v26148_v55 = vld [vmem:[#allocation2 + $0xf8] sm:$0xff] }
 0x2b6   : > { %4395 = vst.msk [vmem:[#allocation2 + $0x128] sm:$0xff] %vm4383_vm7, %v4358_v24  ;;  %v4356_v42 = vpop.permute.xlu0 %4355  ;;  %v26143_v40 = vld [vmem:[#allocation2 + $0xe0] sm:$0xff] }
 0x2b7   : > { %4394 = vst.msk [vmem:[#allocation2 + $0x110] sm:$0xff] %vm4383_vm7, %v4356_v42  ;;  %22018 = vmatmul.mubr.msk.bf16.gmra.mrb[48].mxu1 %vm4640_vm6, %v26143_v40  ;;  %v26229_v24 = vld [vmem:[%s25093_s18 + $0x24] sm:$0xff]   ;;  %v4497_v42 = vshrl.u32 %v26123_v46, 16 }
 0x2b8   : > { %22021 = vmatprep.mubr.msk.bf16.mxu1 %vm4640_vm6, %v26148_v55 }
 0x2bd   : > { %v4362_v58 = vpop.permute.xlu1 %4361  ;;  %v26158_v17 = vld [vmem:[#allocation2 + $0x128] sm:$0xff] }
 0x2be   : > { %4397 = vst.msk [vmem:[#allocation2 + $0x158] sm:$0xff] %vm4383_vm7, %v4362_v58  ;;  %v4360_v61 = vpop.permute.xlu0 %4359  ;;  %v26153_v39 = vld [vmem:[#allocation2 + $0x110] sm:$0xff]  ;;  %v4471_v58 = vrot.slane %v4469_v11, 7  ;;  %v4517_v11 = vshrl.u32 %v4414_v54, 16 }
 0x2bf   : > { %4396 = vst.msk [vmem:[#allocation2 + $0x140] sm:$0xff] %vm4383_vm7, %v4360_v61  ;;  %22022 = vmatmul.mubr.msk.bf16.gmra.mrb[52].mxu1 %vm4640_vm6, %v26153_v39  ;;  %v26234_v61 = vor.u32 %v4476_v27, %v4475_v47  ;;  %v4523_v47 = vrot.slane %v30171_v30, 7  ;;  %v5133_v27 = vor.u32 %v5132_v50, %v4473_v33 }
 0x2c0   : > { %22025 = vmatprep.mubr.msk.bf16.mxu1 %vm4640_vm6, %v26158_v17 }
 0x2c1   : > { %v4479_v59 = vsel %vm746_vm4, %v4471_v58, %v26234_v61  ;;  %v4536_v58 = vshll.u32 %v26138_v62, 16 }
 0x2c5   : > { %v4366_v25 = vpop.permute.xlu1 %4365  ;;  %v26172_v35 = vld [vmem:[#allocation2 + $0x158] sm:$0xff] }
 0x2c6   : > { %4399 = vst.msk [vmem:[#allocation2 + $0x188] sm:$0xff] %vm4383_vm7, %v4366_v25  ;;  %v4364_v32 = vpop.permute.xlu0 %4363  ;;  %v26167_v0 = vld [vmem:[#allocation2 + $0x140] sm:$0xff]  ;;  %v4410_v25 = vld [vmem:[#allocation2 + $0x78] sm:$0x80] }
 0x2c7   : > { %4398 = vst.msk [vmem:[#allocation2 + $0x170] sm:$0xff] %vm4383_vm7, %v4364_v32  ;;  %22026 = vmatmul.mubr.msk.bf16.gmra.mrb[56].mxu1 %vm4640_vm6, %v26167_v0  ;;  %v4499_v32 = vrot.slane %v4497_v42, 7  ;;  %v4493_v41 = vshrl.u32 %v4410_v25, 16  ;;  %v4519_v25 = vrot.slane %v4517_v11, 7  ;;  %v30164_v11 = vshll.u32 %v26148_v55, 16 }
 0x2c8   : > { %22029 = vmatprep.mubr.msk.bf16.mxu1 %vm4640_vm6, %v26172_v35 }
 0x2c9   : > { %v4495_v53 = vrot.slane %v4493_v41, 7 }
 0x2cd   : > { %v26181_v15 = vld [vmem:[#allocation2 + $0x188] sm:$0xff] }
 0x2ce   : > { %v26185_v60 = vld [vmem:[#allocation2 + $0x170] sm:$0xff]  ;;  %v30158_v18 = vshll.u32 %v26181_v15, 16  ;;  %v30159_v36 = vshrl.u32 %v26181_v15, 16 }
 0x2cf   : > { %22030 = vmatmul.mubr.msk.bf16.gmra.mrb[60].mxu1 %vm4640_vm6, %v26185_v60 }
 0x2d0   : > { %22037 = vmatprep.mubr.msk.bf16.mxu1 %vm4640_vm6, %v4443_v8  ;;  %v6479_v57 = vrot.slane %v30158_v18, 1  ;;  %v4505_v8 = vshrl.u32 %v4412_v1, 16 }
 0x2d2   : > { %v26205_v6 = vor.u32 %v6479_v57, %v30159_v36  ;;  %v26257_v57 = vor.u32 %v4500_v34, %v4499_v32  ;;  %v4507_v20 = vrot.slane %v4505_v8, 7  ;;  %v30160_v32 = vshrl.u32 %v26148_v55, 16 }
 0x2d4   : > { %v4559_v54 = vrot.slane %v30160_v32, 7  ;;  %v30166_v32 = vshll.u32 %v26158_v17, 16 }
 0x2d7   : > { %22038 = vmatmul.mubr.msk.bf16.vlgmr.msra.gmra.mrb[32].mxu1 %vm4640_vm6, %v4455_v19  ;;  %v4503_v19 = vsel %vm746_vm4, %v4495_v53, %v26257_v57 }
 0x2d8   : > { %22041 = vmatprep.mubr.msk.bf16.mxu1 %vm4640_vm6, %v4467_v5  ;;  %22070 = vmatpush3.bf16.msra.mxu1 %v26104_v26  ;;  %v26239_v26 = vor.u32 %v4488_v3, %v4487_v51  ;;  %v4535_v51 = vrot.slane %v30170_v63, 7  ;;  %v4515_v5 = vsel %vm746_vm4, %v4507_v20, %v26262_v21  ;;  %v4541_v20 = vshrl.u32 %v4418_v2, 16 }
 0x2d9   : > { %24613 = vmatprep.subr.msk.bf16.mxu1 %vm4673_vm5, %v24726_v43  ;;  %v4416_v43 = vld [vmem:[#allocation2 + $0xc0] sm:$0x80] }
 0x2da   : > { %v4491_v56 = vsel %vm746_vm4, %v4483_v48, %v26239_v26  ;;  %v4529_v44 = vshrl.u32 %v4416_v43, 16  ;;  %v30162_v48 = vshrl.u32 %v26143_v40, 16  ;;  %v26284_v41 = vor.u32 %v4536_v58, %v4535_v51 }
 0x2db   : > { %v30161_v51 = vshrl.u32 %v26153_v39, 16 }
 0x2dc   : > { %22072 = vmatpush3.bf16.msra.mxu1 %v5345_v9  ;;  %v4524_v9 = vshll.u32 %v26133_v16, 16  ;;  %v4547_v8 = vrot.slane %v30162_v48, 7 }
 0x2dd   : > { %22105 = vmatprep.subr.bf16.mxu1 %v26229_v24 }
 0x2de   : > { %v26279_v1 = vor.u32 %v4524_v9, %v4523_v47 }
 0x2df   : > { %22042 = vmatmul.mubr.msk.bf16.gmra.mrb[36].mxu1 %vm4640_vm6, %v4479_v59  ;;  %v4531_v59 = vrot.slane %v4529_v44, 7 }
 0x2e0   : > { %22045 = vmatprep.mubr.msk.bf16.mxu1 %vm4640_vm6, %v4491_v56  ;;  %v4420_v56 = vld [vmem:[#allocation2 + $0xf0] sm:$0x80]  ;;  %v4527_v53 = vsel %vm746_vm4, %v4519_v25, %v26279_v1  ;;  %v30163_v25 = vshrl.u32 %v26158_v17, 16 }
 0x2e1   : > { %v4539_v43 = vsel %vm746_vm4, %v4531_v59, %v26284_v41  ;;  %v4553_v47 = vshrl.u32 %v4420_v56, 16  ;;  %v26306_v59 = vor.u32 %v30164_v11, %v4559_v54  ;;  %v4422_v56 = vld [vmem:[#allocation2 + $0x108] sm:$0x80]  ;;  %v30165_v54 = vshll.u32 %v26153_v39, 16 }
 0x2e3   : > { %v4555_v2 = vrot.slane %v4553_v47, 7 }
 0x2e5   : > { %v4563_v47 = vsel %vm746_vm4, %v4555_v2, %v26306_v59 }
 0x2e7   : > { %22046 = vmatmul.mubr.msk.bf16.gmra.mrb[40].mxu1 %vm4640_vm6, %v4503_v19  ;;  %v30168_v19 = vshll.u32 %v26143_v40, 16 }
 0x2e8   : > { %22049 = vmatprep.mubr.msk.bf16.mxu1 %vm4640_vm6, %v4515_v5  ;;  %v4543_v5 = vrot.slane %v4541_v20, 7  ;;  %v4565_v20 = vshrl.u32 %v4422_v56, 16  ;;  %v30169_v56 = vshrl.u32 %v26172_v35, 16 }
 0x2e9   : > { %v26301_v44 = vor.u32 %v30168_v19, %v4547_v8  ;;  %v4583_v8 = vrot.slane %v30163_v25, 7  ;;  %v4428_v25 = vld [vmem:[#allocation2 + $0x150] sm:$0x80] }
 0x2ea   : > { %v4567_v48 = vrot.slane %v4565_v20, 7 }
 0x2eb   : > { %v4551_v18 = vsel %vm746_vm4, %v4543_v5, %v26301_v44  ;;  %v26328_v2 = vor.u32 %v30166_v32, %v4583_v8  ;;  %v4596_v8 = vshll.u32 %v26167_v0, 16  ;;  %v30173_v32 = vshll.u32 %v26172_v35, 16 }
 0x2ef   : > { %22050 = vmatmul.mubr.msk.bf16.gmra.mrb[44].mxu1 %vm4640_vm6, %v4527_v53  ;;  %v4424_v53 = vld [vmem:[#allocation2 + $0x120] sm:$0x80] }
 0x2f0   : > { %22053 = vmatprep.mubr.msk.bf16.mxu1 %vm4640_vm6, %v4539_v43  ;;  %v4571_v43 = vrot.slane %v30161_v51, 7  ;;  %v4577_v36 = vshrl.u32 %v4424_v53, 16  ;;  %v30167_v51 = vshrl.u32 %v26167_v0, 16  ;;  %v4426_v53 = vld [vmem:[#allocation2 + $0x138] sm:$0x80] }
 0x2f1   : > { %v4589_v20 = vshrl.u32 %v4426_v53, 16  ;;  %v5060_v53 = vld [vmem:[#allocation2 + $0x10] sm:$0x1] }
 0x2f2   : > { %v26323_v5 = vor.u32 %v30165_v54, %v4571_v43  ;;  %v4607_v43 = vrot.slane %v30169_v56, 7  ;;  %v4601_v54 = vshrl.u32 %v4428_v25, 16  ;;  %v4430_v25 = vld [vmem:[#allocation2 + $0x168] sm:$0x80] }
 0x2f3   : > { %v4591_v19 = vrot.slane %v4589_v20, 7  ;;  %v4613_v30 = vshrl.u32 %v4430_v25, 16  ;;  %v5064_v25 = vld [vmem:[#allocation2 + $0x40] sm:$0x1] }
 0x2f4   : > { %v4575_v11 = vsel %vm746_vm4, %v4567_v48, %v26323_v5  ;;  %v4603_v56 = vrot.slane %v4601_v54, 7 }
 0x2f7   : > { %22054 = vmatmul.mubr.msk.bf16.gmra.mrb[48].mxu1 %vm4640_vm6, %v4551_v18  ;;  %v4579_v18 = vrot.slane %v4577_v36, 7 }
 0x2f8   : > { %22057 = vmatprep.mubr.msk.bf16.mxu1 %vm4640_vm6, %v4563_v47  ;;  %v4595_v47 = vrot.slane %v30167_v51, 7  ;;  %v30172_v51 = vshrl.u32 %v26185_v60, 16 }
 0x2f9   : > { %v4587_v36 = vsel %vm746_vm4, %v4579_v18, %v26328_v2  ;;  %v5096_v18 = vrot.slane %v4440_v7, 1 }
 0x2fa   : > { %v26345_v48 = vor.u32 %v4596_v8, %v4595_v47  ;;  %v4619_v63 = vrot.slane %v30172_v51, 7  ;;  %v4620_v47 = vshll.u32 %v26185_v60, 16 }
 0x2fb   : > { %v5097_v7 = vor.u32 %v5096_v18, %v4437_v37  ;;  %v5123_v37 = vshll.u32 %v5064_v25, 16  ;;  %v5121_v18 = vor.u32 %v5120_v45, %v4461_v31 }
 0x2fc   : > { %v4599_v20 = vsel %vm746_vm4, %v4591_v19, %v26345_v48  ;;  %v26366_v51 = vor.u32 %v4620_v47, %v4619_v63  ;;  %v5062_v19 = vld [vmem:[#allocation2 + $0x28] sm:$0x1] }
 0x2ff   : > { %22058 = vmatmul.mubr.msk.bf16.gmra.mrb[52].mxu1 %vm4640_vm6, %v4575_v11  ;;  %v26349_v11 = vor.u32 %v30173_v32, %v4607_v43  ;;  %v5111_v32 = vshll.u32 %v5062_v19, 16 }
 0x300   : > { %22061 = vmatprep.mubr.msk.bf16.mxu1 %vm4640_vm6, %v4587_v36  ;;  %v5099_v36 = vshll.u32 %v5060_v53, 16  ;;  %v4615_v53 = vrot.slane %v4613_v30, 7 }
 0x301   : > { %v4611_v54 = vsel %vm746_vm4, %v4603_v56, %v26349_v11  ;;  %v5113_v63 = vrot.slane %v5111_v32, 1 }
 0x302   : > { %v5101_v43 = vrot.slane %v5099_v36, 1  ;;  %v4623_v56 = vsel %vm746_vm4, %v4615_v53, %v26366_v51  ;;  %v5125_v36 = vrot.slane %v5123_v37, 1  ;;  %v5072_v37 = vld [vmem:[#allocation2 + $0xa0] sm:$0x1] }
 0x304   : > { %v5126_v25 = vsel %vm1391_vm3, %v5121_v18, %v5125_v36  ;;  %v5168_v18 = vrot.slane %v4512_v29, 1 }
 0x307   : > { %22062 = vmatmul.mubr.msk.bf16.gmra.mrb[56].mxu1 %vm4640_vm6, %v4599_v20  ;;  %v5102_v20 = vsel %vm1391_vm3, %v5097_v7, %v5101_v43  ;;  %v5066_v7 = vld [vmem:[#allocation2 + $0x58] sm:$0x1]  ;;  %v24728_v43 = vld [vmem:[%s25093_s18 + $0x2c] ss:$0 sps:$4 sm:$0xff]  }
 0x308   : > { %22065 = vmatprep.mubr.msk.bf16.mxu1 %vm4640_vm6, %v4611_v54  ;;  %v5108_v54 = vrot.slane %v4452_v10, 1  ;;  %v5068_v10 = vld [vmem:[#allocation2 + $0x70] sm:$0x1]  ;;  %v5135_v19 = vshll.u32 %v5066_v7, 16  ;;  %v5826_v31 = vsel %vm4673_vm5, %v24728_v43, 0 }
 0x309   : > { %v5147_v32 = vshll.u32 %v5068_v10, 16  ;;  %v5169_v10 = vor.u32 %v5168_v18, %v4509_v52  ;;  %v30282_v52 = vshrl.u32 %v26133_v16, 16 }
 0x30a   : > { %v5109_v30 = vor.u32 %v5108_v54, %v4449_v22  ;;  %v5144_v22 = vrot.slane %v4488_v3, 1  ;;  %v5070_v3 = vld [vmem:[#allocation2 + $0x88] sm:$0x1] }
 0x30b   : > { %v5149_v45 = vrot.slane %v5147_v32, 1 }
 0x30c   : > { %v5114_v53 = vsel %vm1391_vm3, %v5109_v30, %v5113_v63  ;;  %v5145_v54 = vor.u32 %v5144_v22, %v4485_v38  ;;  %v5156_v30 = vrot.slane %v4500_v34, 1  ;;  %v5159_v63 = vshll.u32 %v5070_v3, 16  ;;  %v5074_v34 = vld [vmem:[#allocation2 + $0xb8] sm:$0x1] }
 0x30d   : > { %v5171_v38 = vshll.u32 %v5072_v37, 16  ;;  %v30284_v37 = vshll.u32 %v26143_v40, 16 }
 0x30e   : > { %v5150_v33 = vsel %vm1391_vm3, %v5145_v54, %v5149_v45  ;;  %v5157_v36 = vor.u32 %v5156_v30, %v4497_v42  ;;  %v5161_v7 = vrot.slane %v5159_v63, 1  ;;  %v5192_v42 = vrot.slane %v4536_v58, 1  ;;  %v5080_v45 = vld [vmem:[#allocation2 + $0x100] sm:$0x1] }
 0x30f   : > { %22066 = vmatmul.mubr.msk.bf16.gmra.mrb[60].mxu1 %vm4640_vm6, %v4623_v56  ;;  %v5137_v56 = vrot.slane %v5135_v19, 1  ;;  %v5180_v19 = vrot.slane %v4524_v9, 1  ;;  %v5078_v9 = vld [vmem:[#allocation2 + $0xe8] sm:$0x1]  ;;  %v30285_v63 = vshll.u32 %v26148_v55, 16  ;;  %v5219_v18 = vshll.u32 %v5080_v45, 16 }
 0x310   : > { %22073 = vmatprep.mubr.msk.bf16.mxu1 %vm4640_vm6, %v5102_v20  ;;  %v26394_v20 = vld [vmem:[%s25093_s18 + $0x30] sm:$0xff]   ;;  %v5162_v50 = vsel %vm1391_vm3, %v5157_v36, %v5161_v7  ;;  %v5207_v30 = vshll.u32 %v5078_v9, 16  ;;  %v30291_v9 = vshrl.u32 %v26158_v17, 16 }
 0x311   : > { %v5181_v32 = vor.u32 %v5180_v19, %v30282_v52  ;;  %v30289_v52 = vshll.u32 %v26158_v17, 16 }
 0x312   : > { %v5209_v7 = vrot.slane %v5207_v30, 1 }
 0x317   : > { %22074 = vmatmul.mubr.msk.bf16.vlgmr.msra.gmra.mrb[32].mxu1 %vm4640_vm6, %v5114_v53  ;;  %v5076_v53 = vld [vmem:[#allocation2 + $0xd0] sm:$0x1] }
 0x318   : > { %22077 = vmatprep.mubr.msk.bf16.mxu1 %vm4640_vm6, %v5126_v25  ;;  %22106 = vmatpush3.bf16.msra.mxu1 %v26229_v24  ;;  %v5138_v24 = vsel %vm1391_vm3, %v5133_v27, %v5137_v56  ;;  %v5183_v25 = vshll.u32 %v5074_v34, 16  ;;  %v5195_v22 = vshll.u32 %v5076_v53, 16  ;;  %v30283_v27 = vshrl.u32 %v26138_v62, 16  ;;  %v5082_v53 = vld [vmem:[#allocation2 + $0x118] sm:$0x1] }
 0x319   : > { %24614 = vmatprep.subr.msk.bf16.mxu1 %vm4673_vm5, %v24728_v43  ;;  %v5173_v43 = vrot.slane %v5171_v38, 1  ;;  %v30286_v38 = vshrl.u32 %v26143_v40, 16  ;;  %v5221_v34 = vrot.slane %v5219_v18, 1  ;;  %v30292_v18 = vshll.u32 %v26172_v35, 16 }
 0x31a   : > { %v5193_v56 = vor.u32 %v5192_v42, %v30283_v27  ;;  %v5197_v54 = vrot.slane %v5195_v22, 1  ;;  %v5231_v42 = vshll.u32 %v5082_v53, 16  ;;  %v30290_v27 = vshrl.u32 %v26153_v39, 16 }
 0x31b   : > { %v5174_v29 = vsel %vm1391_vm3, %v5169_v10, %v5173_v43  ;;  %v30287_v10 = vshrl.u32 %v26148_v55, 16 }
 0x31c   : > { %22108 = vmatpush3.bf16.msra.mxu1 %v5826_v31  ;;  %v5185_v31 = vrot.slane %v5183_v25, 1  ;;  %v5198_v58 = vsel %vm1391_vm3, %v5193_v56, %v5197_v54  ;;  %v30288_v25 = vshll.u32 %v26153_v39, 16  ;;  %v5233_v54 = vrot.slane %v5231_v42, 1 }
 0x31d   : > { %22141 = vmatprep.subr.bf16.mxu1 %v26394_v20 }
 0x31e   : > { %v5186_v3 = vsel %vm1391_vm3, %v5181_v32, %v5185_v31  ;;  %v5240_v32 = vrot.slane %v30289_v52, 1 }
 0x31f   : > { %22078 = vmatmul.mubr.msk.bf16.gmra.mrb[36].mxu1 %vm4640_vm6, %v5138_v24  ;;  %v5204_v24 = vrot.slane %v30284_v37, 1  ;;  %v5086_v37 = vld [vmem:[#allocation2 + $0x148] sm:$0x1] }
 0x320   : > { %22081 = vmatprep.mubr.msk.bf16.mxu1 %vm4640_vm6, %v5150_v33  ;;  %v5216_v33 = vrot.slane %v30285_v63, 1  ;;  %v5241_v45 = vor.u32 %v5240_v32, %v30291_v9  ;;  %v5255_v63 = vshll.u32 %v5086_v37, 16  ;;  %v30295_v32 = vshrl.u32 %v26185_v60, 16  ;;  %v5544_v9 = vld [vmem:[#allocation2 + $0x48] sm:$0x80] }
 0x321   : > { %v5205_v36 = vor.u32 %v5204_v24, %v30286_v38  ;;  %v5088_v24 = vld [vmem:[#allocation2 + $0x160] sm:$0x1]  ;;  %v5264_v38 = vrot.slane %v30292_v18, 1  ;;  %v5597_v37 = vshrl.u32 %v5544_v9, 16 }
 0x322   : > { %v5217_v43 = vor.u32 %v5216_v33, %v30287_v10 }
 0x323   : > { %v5210_v19 = vsel %vm1391_vm3, %v5205_v36, %v5209_v7  ;;  %v5267_v36 = vshll.u32 %v5088_v24, 16  ;;  %v30293_v7 = vshrl.u32 %v26167_v0, 16 }
 0x324   : > { %v5222_v22 = vsel %vm1391_vm3, %v5217_v43, %v5221_v34  ;;  %v5257_v43 = vrot.slane %v5255_v63, 1  ;;  %v30294_v34 = vshrl.u32 %v26172_v35, 16  ;;  %v5548_v63 = vld [vmem:[#allocation2 + $0x78] sm:$0x80] }
 0x326   : > { %v5265_v53 = vor.u32 %v5264_v38, %v30294_v34 }
 0x327   : > { %22082 = vmatmul.mubr.msk.bf16.gmra.mrb[40].mxu1 %vm4640_vm6, %v5162_v50  ;;  %v5084_v50 = vld [vmem:[#allocation2 + $0x130] sm:$0x1] }
 0x328   : > { %22085 = vmatprep.mubr.msk.bf16.mxu1 %vm4640_vm6, %v5174_v29  ;;  %v5228_v29 = vrot.slane %v30288_v25, 1  ;;  %v5243_v31 = vshll.u32 %v5084_v50, 16  ;;  %v5269_v50 = vrot.slane %v5267_v36, 1 }
 0x32a   : > { %v5229_v56 = vor.u32 %v5228_v29, %v30290_v27  ;;  %v5276_v29 = vrot.slane %v4620_v47, 1 }
 0x32c   : > { %v5234_v30 = vsel %vm1391_vm3, %v5229_v56, %v5233_v54  ;;  %v5542_v54 = vld [vmem:[#allocation2 + $0x30] sm:$0x80] }
 0x32f   : > { %22086 = vmatmul.mubr.msk.bf16.gmra.mrb[44].mxu1 %vm4640_vm6, %v5186_v3  ;;  %v5245_v3 = vrot.slane %v5243_v31, 1  ;;  %v5277_v31 = vor.u32 %v5276_v29, %v30295_v32  ;;  %v5554_v29 = vld [vmem:[#allocation2 + $0xc0] sm:$0x80] }
 0x330   : > { %22089 = vmatprep.mubr.msk.bf16.mxu1 %vm4640_vm6, %v5198_v58  ;;  %v5252_v58 = vrot.slane %v4596_v8, 1  ;;  %v5090_v8 = vld [vmem:[#allocation2 + $0x178] sm:$0x1] }
 0x331   : > { %v5246_v33 = vsel %vm1391_vm3, %v5241_v45, %v5245_v3  ;;  %v5279_v42 = vshll.u32 %v5090_v8, 16  ;;  %v5585_v3 = vshrl.u32 %v5542_v54, 16 }
 0x332   : > { %v5253_v10 = vor.u32 %v5252_v58, %v30293_v7  ;;  %v5546_v58 = vld [vmem:[#allocation2 + $0x60] sm:$0x80]  ;;  %v5621_v7 = vshrl.u32 %v5548_v63, 16 }
 0x333   : > { %v5281_v27 = vrot.slane %v5279_v42, 1  ;;  %v5587_v24 = vrot.slane %v5585_v3, 7  ;;  %v5609_v38 = vshrl.u32 %v5546_v58, 16  ;;  %v5556_v42 = vld [vmem:[#allocation2 + $0xd8] sm:$0x80] }
 0x334   : > { %v5258_v25 = vsel %vm1391_vm3, %v5253_v10, %v5257_v43  ;;  %v26485_v10 = vld [vmem:[%s25093_s18 + $0x3c] sm:$0xff]   ;;  %v5623_v34 = vrot.slane %v5621_v7, 7  ;;  %v5669_v32 = vshrl.u32 %v5556_v42, 16 }
 0x335   : > { %v5282_v45 = vsel %vm1391_vm3, %v5277_v31, %v5281_v27  ;;  %v5595_v18 = vsel %vm746_vm4, %v5587_v24, %v26210_v4  ;;  %v5611_v43 = vrot.slane %v5609_v38, 7  ;;  %v5550_v4 = vld [vmem:[#allocation2 + $0x90] sm:$0x80] }
 0x336   : > { %v5671_v31 = vrot.slane %v5669_v32, 7  ;;  %v5558_v27 = vld [vmem:[#allocation2 + $0xf0] sm:$0x80] }
 0x337   : > { %22090 = vmatmul.mubr.msk.bf16.gmra.mrb[48].mxu1 %vm4640_vm6, %v5210_v19  ;;  %v5540_v19 = vld [vmem:[#allocation2 + $0x18] sm:$0x80]  ;;  %v5681_v9 = vshrl.u32 %v5558_v27, 16 }
 0x338   : > { %22093 = vmatprep.mubr.msk.bf16.mxu1 %vm4640_vm6, %v5222_v22  ;;  %v5270_v22 = vsel %vm1391_vm3, %v5265_v53, %v5269_v50  ;;  %v5573_v52 = vshrl.u32 %v5540_v19, 16  ;;  %v5552_v53 = vld [vmem:[#allocation2 + $0xa8] sm:$0x80]  ;;  %v5633_v50 = vshrl.u32 %v5550_v4, 16 }
 0x339   : > { %v5645_v8 = vshrl.u32 %v5552_v53, 16  ;;  %v30296_v53 = vshrl.u32 %v26181_v15, 16 }
 0x33a   : > { %v5575_v56 = vrot.slane %v5573_v52, 7  ;;  %v5635_v19 = vrot.slane %v5633_v50, 7  ;;  %v5657_v52 = vshrl.u32 %v5554_v29, 16  ;;  %v30297_v50 = vshll.u32 %v26181_v15, 16 }
 0x33c   : > { %v5583_v47 = vsel %vm746_vm4, %v5575_v56, %v26201_v49  ;;  %v5560_v56 = vld [vmem:[#allocation2 + $0x108] sm:$0x80] }
 0x33f   : > { %22094 = vmatmul.mubr.msk.bf16.gmra.mrb[52].mxu1 %vm4640_vm6, %v5234_v30  ;;  %v5599_v30 = vrot.slane %v5597_v37, 7  ;;  %v5564_v37 = vld [vmem:[#allocation2 + $0x138] sm:$0x80] }
 0x340   : > { %22097 = vmatprep.mubr.msk.bf16.mxu1 %vm4640_vm6, %v5246_v33  ;;  %v24730_v33 = vld [vmem:[%s25093_s18 + $0x38] ss:$0 sps:$4 sm:$0xff]   ;;  %v5717_v58 = vshrl.u32 %v5564_v37, 16 }
 0x341   : > { %v5607_v36 = vsel %vm746_vm4, %v5599_v30, %v26234_v61  ;;  %v6067_v49 = vsel %vm4673_vm5, %v24730_v33, 0  ;;  %v5619_v61 = vsel %vm746_vm4, %v5611_v43, %v26239_v26  ;;  %v5570_v43 = vld [vmem:[#allocation2 + $0x180] sm:$0x80] }
 0x342   : > { %v5719_v63 = vrot.slane %v5717_v58, 7  ;;  %v5753_v4 = vshrl.u32 %v5570_v43, 16 }
 0x347   : > { %22098 = vmatmul.mubr.msk.bf16.gmra.mrb[56].mxu1 %vm4640_vm6, %v5258_v25  ;;  %v5647_v25 = vrot.slane %v5645_v8, 7  ;;  %v24732_v8 = vld [vmem:[%s25093_s18 + $0x44] ss:$0 sps:$4 sm:$0xff]  }
 0x348   : > { %22101 = vmatprep.mubr.msk.bf16.mxu1 %vm4640_vm6, %v5270_v22  ;;  %v5643_v22 = vsel %vm746_vm4, %v5635_v19, %v26262_v21  ;;  %v5679_v21 = vsel %vm746_vm4, %v5671_v31, %v26301_v44  ;;  %v24733_v19 = vld [vmem:[%s25093_s18 + $0x48] sm:$0xff]  }
 0x349   : > { %v5655_v26 = vsel %vm746_vm4, %v5647_v25, %v26279_v1  ;;  %v5683_v1 = vrot.slane %v5681_v9, 7 }
 0x34b   : > { %v5691_v24 = vsel %vm746_vm4, %v5683_v1, %v26306_v59  ;;  %v5727_v59 = vsel %vm746_vm4, %v5719_v63, %v26345_v48 }
 0x34f   : > { %22102 = vmatmul.mubr.msk.bf16.gmra.mrb[60].mxu1 %vm4640_vm6, %v5282_v45  ;;  %v5693_v45 = vshrl.u32 %v5560_v56, 16 }
 0x350   : > { %22109 = vmatprep.mubr.msk.bf16.mxu1 %vm4640_vm6, %v5583_v47  ;;  %v5562_v47 = vld [vmem:[#allocation2 + $0x120] sm:$0x80] }
 0x351   : > { %v5695_v3 = vrot.slane %v5693_v45, 7  ;;  %v5705_v30 = vshrl.u32 %v5562_v47, 16  ;;  %v24734_v45 = vld [vmem:[%s25093_s18 + $0x50] ss:$0 sps:$4 sm:$0xff]  }
 0x353   : > { %v5707_v44 = vrot.slane %v5705_v30, 7 }
 0x355   : > { %v5715_v38 = vsel %vm746_vm4, %v5707_v44, %v26328_v2  ;;  %v5759_v2 = vrot.slane %v30296_v53, 7  ;;  %v26612_v44 = vld [vmem:[#allocation2 + $0xb0] sm:$0xff] }
 0x356   : > { %v6369_v43 = vshll.u32 %v26612_v44, 16 }
 0x357   : > { %22110 = vmatmul.mubr.msk.bf16.vlgmr.msra.gmra.mrb[32].mxu1 %vm4640_vm6, %v5595_v18  ;;  %v5568_v18 = vld [vmem:[#allocation2 + $0x168] sm:$0x80] }
 0x358   : > { %22113 = vmatprep.mubr.msk.bf16.mxu1 %vm4640_vm6, %v5607_v36  ;;  %22142 = vmatpush3.bf16.msra.mxu1 %v26394_v20  ;;  %v5631_v20 = vsel %vm746_vm4, %v5623_v34, %v26257_v57  ;;  %v5659_v57 = vrot.slane %v5657_v52, 7  ;;  %v5741_v7 = vshrl.u32 %v5568_v18, 16  ;;  %v26618_v18 = vld [vmem:[%s25093_s18 + $0x54] sm:$0xff]  }
 0x359   : > { %24615 = vmatprep.subr.msk.bf16.mxu1 %vm4673_vm5, %v24730_v33  ;;  %v5566_v33 = vld [vmem:[#allocation2 + $0x150] sm:$0x80] }
 0x35a   : > { %v5667_v54 = vsel %vm746_vm4, %v5659_v57, %v26284_v41  ;;  %v5703_v41 = vsel %vm746_vm4, %v5695_v3, %v26323_v5  ;;  %v5729_v36 = vshrl.u32 %v5566_v33, 16  ;;  %v7029_v33 = vsel %vm4673_vm5, %v24734_v45, 0 }
 0x35c   : > { %22144 = vmatpush3.bf16.msra.mxu1 %v6067_v49  ;;  %v5731_v5 = vrot.slane %v5729_v36, 7  ;;  %v5743_v49 = vrot.slane %v5741_v7, 7 }
 0x35d   : > { %22177 = vmatprep.subr.bf16.mxu1 %v26485_v10 }
 0x35e   : > { %v5739_v34 = vsel %vm746_vm4, %v5731_v5, %v26349_v11  ;;  %v5751_v48 = vsel %vm746_vm4, %v5743_v49, %v26366_v51  ;;  %v6548_v51 = vsel %vm4673_vm5, %v24732_v8, 0  ;;  %v6273_v49 = vld [vmem:[#allocation2 + $0xa0] sm:$0x1] }
 0x35f   : > { %22114 = vmatmul.mubr.msk.bf16.gmra.mrb[36].mxu1 %vm4640_vm6, %v5619_v61  ;;  %v5755_v61 = vrot.slane %v5753_v4, 7 }
 0x360   : > { %22117 = vmatprep.mubr.msk.bf16.mxu1 %vm4640_vm6, %v5631_v20  ;;  %v26528_v20 = vor.u32 %v30297_v50, %v5759_v2  ;;  %v6362_v2 = vshll.u32 %v6273_v49, 16 }
 0x362   : > { %v5763_v11 = vsel %vm746_vm4, %v5755_v61, %v26528_v20  ;;  %v6371_v61 = vrot.slane %v6369_v43, 1 }
 0x367   : > { %22118 = vmatmul.mubr.msk.bf16.gmra.mrb[40].mxu1 %vm4640_vm6, %v5643_v22  ;;  %v26581_v22 = vld [vmem:[#allocation2 + $0x68] sm:$0xff] }
 0x368   : > { %22121 = vmatprep.mubr.msk.bf16.mxu1 %vm4640_vm6, %v5655_v26  ;;  %v26585_v26 = vld [vmem:[#allocation2 + $0x80] sm:$0xff]  ;;  %v6333_v31 = vshll.u32 %v26581_v22, 16  ;;  %v6331_v58 = vshrl.u32 %v26581_v22, 16 }
 0x369   : > { %v6345_v9 = vshll.u32 %v26585_v26, 16  ;;  %v6343_v63 = vshrl.u32 %v26585_v26, 16 }
 0x36a   : > { %v6335_v3 = vrot.slane %v6333_v31, 1 }
 0x36f   : > { %22122 = vmatmul.mubr.msk.bf16.gmra.mrb[44].mxu1 %vm4640_vm6, %v5667_v54  ;;  %v6269_v54 = vld [vmem:[#allocation2 + $0x70] sm:$0x1] }
 0x370   : > { %22125 = vmatprep.mubr.msk.bf16.mxu1 %vm4640_vm6, %v5679_v21  ;;  %v6271_v21 = vld [vmem:[#allocation2 + $0x88] sm:$0x1]  ;;  %v6338_v47 = vshll.u32 %v6269_v54, 16 }
 0x371   : > { %v6350_v30 = vshll.u32 %v6271_v21, 16 }
 0x372   : > { %v6340_v36 = vrot.slane %v6338_v47, 1 }
 0x373   : > { %v6352_v5 = vrot.slane %v6350_v30, 1  ;;  %v6283_v30 = vld [vmem:[#allocation2 + $0x118] sm:$0x1] }
 0x377   : > { %22126 = vmatmul.mubr.msk.bf16.gmra.mrb[48].mxu1 %vm4640_vm6, %v5691_v24  ;;  %v6347_v24 = vrot.slane %v6345_v9, 1 }
 0x378   : > { %22129 = vmatprep.mubr.msk.bf16.mxu1 %vm4640_vm6, %v5703_v41  ;;  %v26608_v41 = vld [vmem:[#allocation2 + $0x98] sm:$0xff] }
 0x379   : > { %v26627_v7 = vor.u32 %v6347_v24, %v6343_v63 }
 0x37f   : > { %22130 = vmatmul.mubr.msk.bf16.gmra.mrb[52].mxu1 %vm4640_vm6, %v5715_v38  ;;  %v26622_v38 = vor.u32 %v6335_v3, %v6331_v58 }
 0x380   : > { %22133 = vmatprep.mubr.msk.bf16.mxu1 %vm4640_vm6, %v5727_v59  ;;  %v6357_v59 = vshll.u32 %v26608_v41, 16 }
 0x381   : > { %v6341_v4 = vsel %vm1391_vm3, %v26622_v38, %v6340_v36 }
 0x382   : > { %v6359_v53 = vrot.slane %v6357_v59, 1 }
 0x387   : > { %22134 = vmatmul.mubr.msk.bf16.gmra.mrb[56].mxu1 %vm4640_vm6, %v5739_v34  ;;  %v6275_v34 = vld [vmem:[#allocation2 + $0xb8] sm:$0x1] }
 0x388   : > { %22137 = vmatprep.mubr.msk.bf16.mxu1 %vm4640_vm6, %v5751_v48  ;;  %v6353_v48 = vsel %vm1391_vm3, %v26627_v7, %v6352_v5  ;;  %v6374_v50 = vshll.u32 %v6275_v34, 16 }
 0x38f   : > { %22138 = vmatmul.mubr.msk.bf16.gmra.mrb[60].mxu1 %vm4640_vm6, %v5763_v11  ;;  %v26640_v11 = vld [vmem:[#allocation2 + $0xc8] sm:$0xff] }
 0x390   : > { %22145 = vmatprep.mubr.msk.bf16.mxu1 %vm4640_vm6, %v26095_v28  ;;  %v6262_v28 = vld [vmem:[#allocation2 + $0x20] sm:$0xff] }
 0x397   : > { %22146 = vmatmul.mubr.msk.bf16.vlgmr.msra.gmra.mrb[32].mxu1 %vm4640_vm6, %v26106_v23  ;;  %v6297_v23 = vshll.u32 %v6262_v28, 16 }
 0x398   : > { %22149 = vmatprep.mubr.msk.bf16.mxu1 %vm4640_vm6, %v26112_v14  ;;  %22178 = vmatpush3.bf16.msra.mxu1 %v26485_v10  ;;  %v6263_v14 = vld [vmem:[#allocation2 + $0x28] sm:$0x1]  ;;  %v6267_v10 = vld [vmem:[#allocation2 + $0x58] sm:$0x1] }
 0x399   : > { %24616 = vmatprep.subr.msk.bf16.mxu1 %vm4673_vm5, %v24732_v8  ;;  %v6326_v42 = vshll.u32 %v6267_v10, 16  ;;  %v6355_v8 = vshrl.u32 %v26608_v41, 16 }
 0x39b   : > { %v6328_v56 = vrot.slane %v6326_v42, 1  ;;  %v26666_v42 = vld [vmem:[#allocation2 + $0xf8] sm:$0xff] }
 0x39c   : > { %22180 = vmatpush3.bf16.msra.mxu1 %v6548_v51  ;;  %v26644_v51 = vld [vmem:[#allocation2 + $0xe0] sm:$0xff] }
 0x39d   : > { %22213 = vmatprep.subr.bf16.mxu1 %v24733_v19  ;;  %v6391_v54 = vshrl.u32 %v26644_v51, 16 }
 0x39f   : > { %22150 = vmatmul.mubr.msk.bf16.gmra.mrb[36].mxu1 %vm4640_vm6, %v26118_v13  ;;  %v6299_v13 = vrot.slane %v6297_v23, 1  ;;  %v6364_v23 = vrot.slane %v6362_v2, 1  ;;  %v6403_v2 = vshrl.u32 %v26666_v42, 16 }
 0x3a0   : > { %22153 = vmatprep.mubr.msk.bf16.mxu1 %vm4640_vm6, %v26123_v46  ;;  %v6302_v46 = vshll.u32 %v6263_v14, 16  ;;  %v6381_v14 = vshll.u32 %v26640_v11, 16 }
 0x3a2   : > { %v6383_v10 = vrot.slane %v6381_v14, 1 }
 0x3a7   : > { %22154 = vmatmul.mubr.msk.bf16.gmra.mrb[40].mxu1 %vm4640_vm6, %v26125_v12  ;;  %v26566_v12 = vld [vmem:[#allocation2 + $0x38] sm:$0xff] }
 0x3a8   : > { %22157 = vmatprep.mubr.msk.bf16.mxu1 %vm4640_vm6, %v26133_v16  ;;  %v26570_v16 = vld [vmem:[#allocation2 + $0x50] sm:$0xff]  ;;  %v6307_v52 = vshrl.u32 %v26566_v12, 16 }
 0x3a9   : > { %v6319_v32 = vshrl.u32 %v26570_v16, 16 }
 0x3af   : > { %22158 = vmatmul.mubr.msk.bf16.gmra.mrb[44].mxu1 %vm4640_vm6, %v26138_v62  ;;  %v6295_v62 = vshrl.u32 %v6262_v28, 16  ;;  %v26649_v28 = vor.u32 %v6359_v53, %v6355_v8  ;;  %v26692_v53 = vld [vmem:[#allocation2 + $0x128] sm:$0xff] }
 0x3b0   : > { %22161 = vmatprep.mubr.msk.bf16.mxu1 %vm4640_vm6, %v26143_v40  ;;  %v6309_v40 = vshll.u32 %v26566_v12, 16 }
 0x3b7   : > { %22162 = vmatmul.mubr.msk.bf16.gmra.mrb[48].mxu1 %vm4640_vm6, %v26148_v55  ;;  %v6300_v55 = vor.u32 %v6299_v13, %v6295_v62  ;;  %v6277_v62 = vld [vmem:[#allocation2 + $0xd0] sm:$0x1] }
 0x3b8   : > { %22165 = vmatprep.mubr.msk.bf16.mxu1 %vm4640_vm6, %v26153_v39  ;;  %v6304_v39 = vrot.slane %v6302_v46, 1  ;;  %v6376_v46 = vrot.slane %v6374_v50, 1 }
 0x3bf   : > { %22166 = vmatmul.mubr.msk.bf16.gmra.mrb[52].mxu1 %vm4640_vm6, %v26158_v17  ;;  %v6265_v17 = vld [vmem:[#allocation2 + $0x40] sm:$0x1] }
 0x3c0   : > { %22169 = vmatprep.mubr.msk.bf16.mxu1 %vm4640_vm6, %v26167_v0  ;;  %v6321_v0 = vshll.u32 %v26570_v16, 16  ;;  %v6314_v25 = vshll.u32 %v6265_v17, 16  ;;  %v6365_v17 = vsel %vm1391_vm3, %v26649_v28, %v6364_v23 }
 0x3c2   : > { %v6323_v29 = vrot.slane %v6321_v0, 1  ;;  %v6316_v57 = vrot.slane %v6314_v25, 1 }
 0x3c4   : > { %v26595_v27 = vor.u32 %v6323_v29, %v6319_v32 }
 0x3c6   : > { %v6329_v37 = vsel %vm1391_vm3, %v26595_v27, %v6328_v56  ;;  %v26670_v56 = vld [vmem:[#allocation2 + $0x110] sm:$0xff] }
 0x3c7   : > { %22170 = vmatmul.mubr.msk.bf16.gmra.mrb[56].mxu1 %vm4640_vm6, %v26172_v35  ;;  %v6311_v35 = vrot.slane %v6309_v40, 1  ;;  %v30178_v24 = vshll.u32 %v26670_v56, 16 }
 0x3c8   : > { %22173 = vmatprep.mubr.msk.bf16.mxu1 %vm4640_vm6, %v26185_v60  ;;  %v6305_v60 = vsel %vm1391_vm3, %v6300_v55, %v6304_v39  ;;  %v6393_v55 = vshll.u32 %v26644_v51, 16  ;;  %v6279_v39 = vld [vmem:[#allocation2 + $0xe8] sm:$0x1] }
 0x3c9   : > { %v6398_v29 = vshll.u32 %v6279_v39, 16  ;;  %v6419_v34 = vrot.slane %v30178_v24, 1  ;;  %v6743_v24 = vld [vmem:[#allocation2 + $0x30] sm:$0x80] }
 0x3cb   : > { %v6400_v47 = vrot.slane %v6398_v29, 1 }
 0x3cf   : > { %22174 = vmatmul.mubr.msk.bf16.gmra.mrb[60].mxu1 %vm4640_vm6, %v26181_v15  ;;  %v26590_v15 = vor.u32 %v6311_v35, %v6307_v52  ;;  %v6386_v35 = vshll.u32 %v6277_v62, 16 }
 0x3d0   : > { %22181 = vmatprep.mubr.msk.bf16.mxu1 %vm4640_vm6, %v6305_v60  ;;  %v6395_v60 = vrot.slane %v6393_v55, 1 }
 0x3d1   : > { %v6317_v1 = vsel %vm1391_vm3, %v26590_v15, %v6316_v57  ;;  %v6379_v57 = vshrl.u32 %v26640_v11, 16 }
 0x3d2   : > { %v26680_v3 = vor.u32 %v6395_v60, %v6391_v54 }
 0x3d3   : > { %v26675_v21 = vor.u32 %v6383_v10, %v6379_v57 }
 0x3d4   : > { %v6401_v49 = vsel %vm1391_vm3, %v26680_v3, %v6400_v47 }
 0x3d7   : > { %22182 = vmatmul.mubr.msk.bf16.vlgmr.msra.gmra.mrb[32].mxu1 %vm4640_vm6, %v6317_v1  ;;  %v6405_v1 = vshll.u32 %v26666_v42, 16 }
 0x3d8   : > { %22185 = vmatprep.mubr.msk.bf16.mxu1 %vm4640_vm6, %v6329_v37  ;;  %22214 = vmatpush3.bf16.msra.mxu1 %v24733_v19  ;;  %v6367_v19 = vshrl.u32 %v26612_v44, 16  ;;  %v6281_v37 = vld [vmem:[#allocation2 + $0x100] sm:$0x1] }
 0x3d9   : > { %24617 = vmatprep.subr.msk.bf16.mxu1 %vm4673_vm5, %v24734_v45  ;;  %v6388_v45 = vrot.slane %v6386_v35, 1  ;;  %v6407_v36 = vrot.slane %v6405_v1, 1  ;;  %v6410_v5 = vshll.u32 %v6281_v37, 16  ;;  %v6287_v35 = vld [vmem:[#allocation2 + $0x148] sm:$0x1] }
 0x3da   : > { %v26654_v13 = vor.u32 %v6371_v61, %v6367_v19  ;;  %v6415_v61 = vshrl.u32 %v26670_v56, 16  ;;  %v6446_v37 = vshll.u32 %v6287_v35, 16 }
 0x3db   : > { %v26701_v50 = vor.u32 %v6407_v36, %v6403_v2  ;;  %v6412_v23 = vrot.slane %v6410_v5, 1  ;;  %v26722_v36 = vld [vmem:[#allocation2 + $0x170] sm:$0xff] }
 0x3dc   : > { %22216 = vmatpush3.bf16.msra.mxu1 %v7029_v33  ;;  %v6377_v25 = vsel %vm1391_vm3, %v26654_v13, %v6376_v46  ;;  %v6389_v33 = vsel %vm1391_vm3, %v26675_v21, %v6388_v45  ;;  %v30176_v46 = vshll.u32 %v26692_v53, 16  ;;  %v26706_v62 = vor.u32 %v6419_v34, %v6415_v61 }
 0x3dd   : > { %22249 = vmatprep.subr.bf16.mxu1 %v26618_v18  ;;  %v30179_v35 = vshll.u32 %v26722_v36, 16 }
 0x3de   : > { %v6431_v60 = vrot.slane %v30176_v46, 1  ;;  %v30181_v46 = vshrl.u32 %v26722_v36, 16 }
 0x3df   : > { %22186 = vmatmul.mubr.msk.bf16.gmra.mrb[36].mxu1 %vm4640_vm6, %v6341_v4  ;;  %v6422_v4 = vshll.u32 %v6283_v30, 16  ;;  %v26718_v30 = vld [vmem:[#allocation2 + $0x158] sm:$0xff] }
 0x3e0   : > { %22189 = vmatprep.mubr.msk.bf16.mxu1 %vm4640_vm6, %v6353_v48  ;;  %v26696_v48 = vld [vmem:[#allocation2 + $0x140] sm:$0xff] }
 0x3e1   : > { %v6424_v39 = vrot.slane %v6422_v4, 1  ;;  %v30174_v10 = vshll.u32 %v26696_v48, 16  ;;  %v30175_v5 = vshrl.u32 %v26696_v48, 16  ;;  %v30177_v4 = vshll.u32 %v26718_v30, 16 }
 0x3e3   : > { %v6425_v45 = vsel %vm1391_vm3, %v26706_v62, %v6424_v39  ;;  %v6443_v47 = vrot.slane %v30174_v10, 1  ;;  %v6448_v39 = vrot.slane %v6446_v37, 1  ;;  %v6455_v10 = vrot.slane %v30177_v4, 1  ;;  %v6293_v4 = vld [vmem:[#allocation2 + $0x190] sm:$0x1] }
 0x3e7   : > { %22190 = vmatmul.mubr.msk.bf16.gmra.mrb[40].mxu1 %vm4640_vm6, %v6365_v17  ;;  %v6285_v17 = vld [vmem:[#allocation2 + $0x130] sm:$0x1] }
 0x3e8   : > { %22193 = vmatprep.mubr.msk.bf16.mxu1 %vm4640_vm6, %v6377_v25  ;;  %v6413_v25 = vsel %vm1391_vm3, %v26701_v50, %v6412_v23  ;;  %v6434_v29 = vshll.u32 %v6285_v17, 16  ;;  %v26732_v23 = vor.u32 %v6443_v47, %v30175_v5  ;;  %v6289_v17 = vld [vmem:[#allocation2 + $0x160] sm:$0x1]  ;;  %v6467_v47 = vrot.slane %v30179_v35, 1 }
 0x3e9   : > { %v6451_v5 = vshrl.u32 %v26718_v30, 16 }
 0x3ea   : > { %v6436_v34 = vrot.slane %v6434_v29, 1  ;;  %v6449_v29 = vsel %vm1391_vm3, %v26732_v23, %v6448_v39 }
 0x3ef   : > { %22194 = vmatmul.mubr.msk.bf16.gmra.mrb[44].mxu1 %vm4640_vm6, %v6389_v33  ;;  %v30180_v33 = vshrl.u32 %v26692_v53, 16 }
 0x3f0   : > { %22197 = vmatprep.mubr.msk.bf16.mxu1 %vm4640_vm6, %v6401_v49 }
 0x3f1   : > { %v26727_v49 = vor.u32 %v6431_v60, %v30180_v33  ;;  %v6458_v60 = vshll.u32 %v6289_v17, 16  ;;  %v6776_v33 = vshrl.u32 %v6743_v24, 16  ;;  %v6794_v24 = vrot.slane %v6319_v32, 7  ;;  %v6749_v32 = vld [vmem:[#allocation2 + $0x78] sm:$0x80] }
 0x3f3   : > { %v6460_v17 = vrot.slane %v6458_v60, 1 }
 0x3f7   : > { %22198 = vmatmul.mubr.msk.bf16.gmra.mrb[48].mxu1 %vm4640_vm6, %v6413_v25  ;;  %v6291_v25 = vld [vmem:[#allocation2 + $0x178] sm:$0x1] }
 0x3f8   : > { %22201 = vmatprep.mubr.msk.bf16.mxu1 %vm4640_vm6, %v6425_v45  ;;  %v6437_v45 = vsel %vm1391_vm3, %v26727_v49, %v6436_v34  ;;  %v6470_v37 = vshll.u32 %v6291_v25, 16  ;;  %v26749_v34 = vor.u32 %v6455_v10, %v6451_v5  ;;  %v6782_v10 = vrot.slane %v6307_v52, 7 }
 0x3fa   : > { %v6472_v39 = vrot.slane %v6470_v37, 1  ;;  %v6461_v25 = vsel %vm1391_vm3, %v26749_v34, %v6460_v17  ;;  %v6785_v37 = vor.u32 %v6782_v10, %v6309_v40  ;;  %v6747_v17 = vld [vmem:[#allocation2 + $0x60] sm:$0x80]  ;;  %v24736_v10 = vld [vmem:[%s25093_s18 + $0x5c] ss:$0 sps:$4 sm:$0xff]  }
 0x3ff   : > { %22202 = vmatmul.mubr.msk.bf16.gmra.mrb[52].mxu1 %vm4640_vm6, %v6437_v45  ;;  %v26753_v45 = vor.u32 %v6467_v47, %v30181_v46  ;;  %v6778_v47 = vrot.slane %v6776_v33, 7  ;;  %v6745_v46 = vld [vmem:[#allocation2 + $0x48] sm:$0x80]  ;;  %v6806_v33 = vrot.slane %v6331_v58, 7  ;;  %v6818_v58 = vrot.slane %v6343_v63, 7 }
 0x400   : > { %22205 = vmatprep.mubr.msk.bf16.mxu1 %vm4640_vm6, %v6449_v29  ;;  %v6482_v29 = vshll.u32 %v6293_v4, 16 }
 0x401   : > { %v6473_v35 = vsel %vm1391_vm3, %v26753_v45, %v6472_v39  ;;  %v6786_v52 = vsel %vm746_vm4, %v6778_v47, %v6785_v37  ;;  %v6797_v39 = vor.u32 %v6794_v24, %v6321_v0  ;;  %v6812_v47 = vshrl.u32 %v6749_v32, 16 }
 0x402   : > { %v6484_v60 = vrot.slane %v6482_v29, 1  ;;  %v6830_v0 = vrot.slane %v6355_v8, 7  ;;  %v6821_v63 = vor.u32 %v6818_v58, %v6345_v9  ;;  %v6755_v8 = vld [vmem:[#allocation2 + $0xc0] sm:$0x80]  ;;  %v6866_v58 = vrot.slane %v6391_v54, 7 }
 0x403   : > { %v6848_v9 = vshrl.u32 %v6755_v8, 16  ;;  %v6763_v54 = vld [vmem:[#allocation2 + $0x120] sm:$0x80]  ;;  %v30298_v8 = vshrl.u32 %v26692_v53, 16 }
 0x404   : > { %v6485_v4 = vsel %vm1391_vm3, %v26205_v6, %v6484_v60  ;;  %v6809_v6 = vor.u32 %v6806_v33, %v6333_v31  ;;  %v7270_v31 = vsel %vm4673_vm5, %v24736_v10, 0 }
 0x405   : > { %v6850_v32 = vrot.slane %v6848_v9, 7 }
 0x407   : > { %22206 = vmatmul.mubr.msk.bf16.gmra.mrb[56].mxu1 %vm4640_vm6, %v6461_v25  ;;  %v6788_v25 = vshrl.u32 %v6745_v46, 16  ;;  %v6751_v46 = vld [vmem:[#allocation2 + $0x90] sm:$0x80] }
 0x408   : > { %22209 = vmatprep.mubr.msk.bf16.mxu1 %vm4640_vm6, %v6473_v35  ;;  %v6800_v35 = vshrl.u32 %v6747_v17, 16  ;;  %v6824_v17 = vshrl.u32 %v6751_v46, 16 }
 0x409   : > { %v6790_v40 = vrot.slane %v6788_v25, 7  ;;  %v6814_v25 = vrot.slane %v6812_v47, 7 }
 0x40a   : > { %v6802_v29 = vrot.slane %v6800_v35, 7  ;;  %v6826_v24 = vrot.slane %v6824_v17, 7  ;;  %v6753_v35 = vld [vmem:[#allocation2 + $0xa8] sm:$0x80] }
 0x40b   : > { %v6798_v60 = vsel %vm746_vm4, %v6790_v40, %v6797_v39  ;;  %v6836_v33 = vshrl.u32 %v6753_v35, 16  ;;  %v6842_v40 = vrot.slane %v6367_v19, 7  ;;  %v6759_v19 = vld [vmem:[#allocation2 + $0xf0] sm:$0x80]  ;;  %v6896_v35 = vshrl.u32 %v6763_v54, 16 }
 0x40c   : > { %v6810_v37 = vsel %vm746_vm4, %v6802_v29, %v6809_v6  ;;  %v6854_v29 = vrot.slane %v6379_v57, 7 }
 0x40d   : > { %v6845_v6 = vor.u32 %v6842_v40, %v6369_v43  ;;  %v6878_v43 = vrot.slane %v6403_v2, 7  ;;  %v6898_v40 = vrot.slane %v6896_v35, 7  ;;  %v6773_v35 = vld [vmem:[#allocation2 + $0x198] sm:$0x80] }
 0x40e   : > { %v6857_v46 = vor.u32 %v6854_v29, %v6381_v14  ;;  %v6869_v14 = vor.u32 %v6866_v58, %v6393_v55  ;;  %v6902_v55 = vrot.slane %v30298_v8, 7  ;;  %v6765_v29 = vld [vmem:[#allocation2 + $0x138] sm:$0x80]  ;;  %v30302_v58 = vshll.u32 %v26696_v48, 16 }
 0x40f   : > { %22210 = vmatmul.mubr.msk.bf16.gmra.mrb[60].mxu1 %vm4640_vm6, %v6485_v4  ;;  %v26791_v4 = vld [vmem:[%s25093_s18 + $0x60] sm:$0xff]  }
 0x410   : > { %22217 = vmatprep.mubr.msk.bf16.mxu1 %vm4640_vm6, %v6786_v52  ;;  %v6833_v52 = vor.u32 %v6830_v0, %v6357_v59  ;;  %v6838_v59 = vrot.slane %v6836_v33, 7  ;;  %v6858_v57 = vsel %vm746_vm4, %v6850_v32, %v6857_v46  ;;  %v30301_v32 = vshrl.u32 %v26696_v48, 16 }
 0x412   : > { %v6834_v39 = vsel %vm746_vm4, %v6826_v24, %v6833_v52  ;;  %v6890_v52 = vrot.slane %v6415_v61, 7  ;;  %v6767_v61 = vld [vmem:[#allocation2 + $0x150] sm:$0x80]  ;;  %v6914_v46 = vrot.slane %v30301_v32, 7  ;;  %v24738_v32 = vld [vmem:[%s25093_s18 + $0x68] ss:$0 sps:$4 sm:$0xff]  }
 0x417   : > { %22218 = vmatmul.mubr.msk.bf16.vlgmr.msra.gmra.mrb[32].mxu1 %vm4640_vm6, %v6798_v60  ;;  %v6846_v60 = vsel %vm746_vm4, %v6838_v59, %v6845_v6  ;;  %v6908_v6 = vshrl.u32 %v6765_v29, 16 }
 0x418   : > { %22221 = vmatprep.mubr.msk.bf16.mxu1 %vm4640_vm6, %v6810_v37  ;;  %22250 = vmatpush3.bf16.msra.mxu1 %v26618_v18  ;;  %v6822_v18 = vsel %vm746_vm4, %v6814_v25, %v6821_v63  ;;  %v6872_v37 = vshrl.u32 %v6759_v19, 16  ;;  %v6761_v25 = vld [vmem:[#allocation2 + $0x108] sm:$0x80]  ;;  %v6920_v19 = vshrl.u32 %v6767_v61, 16 }
 0x419   : > { %24618 = vmatprep.subr.msk.bf16.mxu1 %vm4673_vm5, %v24736_v10  ;;  %v6757_v10 = vld [vmem:[#allocation2 + $0xd8] sm:$0x80]  ;;  %v6884_v24 = vshrl.u32 %v6761_v25, 16 }
 0x41a   : > { %v6860_v47 = vshrl.u32 %v6757_v10, 16  ;;  %v6874_v0 = vrot.slane %v6872_v37, 7  ;;  %v6922_v37 = vrot.slane %v6920_v19, 7 }
 0x41c   : > { %22252 = vmatpush3.bf16.msra.mxu1 %v7270_v31  ;;  %v6862_v17 = vrot.slane %v6860_v47, 7  ;;  %v6881_v31 = vor.u32 %v6878_v43, %v6405_v1  ;;  %v30299_v1 = vshll.u32 %v26670_v56, 16  ;;  %v6910_v47 = vrot.slane %v6908_v6, 7 }
 0x41d   : > { %22285 = vmatprep.subr.bf16.mxu1 %v26791_v4  ;;  %v30303_v43 = vshll.u32 %v26718_v30, 16 }
 0x41e   : > { %v6870_v63 = vsel %vm746_vm4, %v6862_v17, %v6869_v14  ;;  %v6882_v2 = vsel %vm746_vm4, %v6874_v0, %v6881_v31  ;;  %v6893_v33 = vor.u32 %v6890_v52, %v30299_v1  ;;  %v6769_v14 = vld [vmem:[#allocation2 + $0x168] sm:$0x80]  ;;  %v6771_v0 = vld [vmem:[#allocation2 + $0x180] sm:$0x80] }
 0x41f   : > { %22222 = vmatmul.mubr.msk.bf16.gmra.mrb[36].mxu1 %vm4640_vm6, %v6822_v18  ;;  %v6886_v18 = vrot.slane %v6884_v24, 7  ;;  %v26846_v31 = vld [vmem:[#allocation2 + $0x1a0] sm:$0xff]  ;;  %v6932_v54 = vshrl.u32 %v6769_v14, 16  ;;  %v6944_v52 = vshrl.u32 %v6771_v0, 16 }
 0x420   : > { %22225 = vmatprep.mubr.msk.bf16.mxu1 %vm4640_vm6, %v6834_v39  ;;  %v30300_v39 = vshll.u32 %v26692_v53, 16  ;;  %v7482_v14 = vld [vmem:[#allocation2 + $0x100] sm:$0x1] }
 0x421   : > { %v6894_v59 = vsel %vm746_vm4, %v6886_v18, %v6893_v33  ;;  %v6934_v8 = vrot.slane %v6932_v54, 7  ;;  %v6946_v1 = vrot.slane %v6944_v52, 7  ;;  %v6956_v33 = vshrl.u32 %v6773_v35, 16 }
 0x422   : > { %v6905_v9 = vor.u32 %v6902_v55, %v30300_v39  ;;  %v30305_v55 = vshll.u32 %v26722_v36, 16  ;;  %v6963_v39 = vshll.u32 %v26846_v31, 16  ;;  %v7601_v54 = vshll.u32 %v7482_v14, 16 }
 0x423   : > { %v6954_v29 = vsel %vm746_vm4, %v6946_v1, %v26528_v20  ;;  %v6958_v61 = vrot.slane %v6956_v33, 7  ;;  %v7751_v20 = vsel %vm4673_vm5, %v24738_v32, 0  ;;  %v7490_v1 = vld [vmem:[#allocation2 + $0x160] sm:$0x1] }
 0x424   : > { %v6906_v10 = vsel %vm746_vm4, %v6898_v40, %v6905_v9 }
 0x427   : > { %22226 = vmatmul.mubr.msk.bf16.gmra.mrb[40].mxu1 %vm4640_vm6, %v6846_v60  ;;  %v6926_v60 = vrot.slane %v6451_v5, 7 }
 0x428   : > { %22229 = vmatprep.mubr.msk.bf16.mxu1 %vm4640_vm6, %v6858_v57  ;;  %v6917_v57 = vor.u32 %v6914_v46, %v30302_v58 }
 0x429   : > { %v6929_v17 = vor.u32 %v6926_v60, %v30303_v43  ;;  %v7476_v60 = vld [vmem:[#allocation2 + $0xb8] sm:$0x1] }
 0x42a   : > { %v6918_v25 = vsel %vm746_vm4, %v6910_v47, %v6917_v57  ;;  %v7478_v47 = vld [vmem:[#allocation2 + $0xd0] sm:$0x1]  ;;  %v7565_v57 = vshll.u32 %v7476_v60, 16 }
 0x42b   : > { %v6930_v24 = vsel %vm746_vm4, %v6922_v37, %v6929_v17  ;;  %v7577_v37 = vshll.u32 %v7478_v47, 16  ;;  %v7480_v17 = vld [vmem:[#allocation2 + $0xe8] sm:$0x1] }
 0x42d   : > { %v7579_v43 = vrot.slane %v7577_v37, 1 }
 0x42f   : > { %22230 = vmatmul.mubr.msk.bf16.gmra.mrb[44].mxu1 %vm4640_vm6, %v6870_v63  ;;  %v30304_v63 = vshrl.u32 %v26722_v36, 16 }
 0x430   : > { %22233 = vmatprep.mubr.msk.bf16.mxu1 %vm4640_vm6, %v6882_v2  ;;  %v6960_v2 = vshrl.u32 %v26846_v31, 16 }
 0x431   : > { %v6938_v5 = vrot.slane %v30304_v63, 7  ;;  %v7603_v63 = vrot.slane %v7601_v54, 1  ;;  %v26973_v54 = vld [vmem:[%s25099_s0] sm:$0xff]  }
 0x432   : > { %v6962_v40 = vrot.slane %v6960_v2, 7 }
 0x433   : > { %v6941_v18 = vor.u32 %v6938_v5, %v30305_v55  ;;  %v7484_v5 = vld [vmem:[#allocation2 + $0x118] sm:$0x1] }
 0x434   : > { %v7613_v35 = vshll.u32 %v7484_v5, 16 }
 0x435   : > { %v6942_v9 = vsel %vm746_vm4, %v6934_v8, %v6941_v18  ;;  %v7488_v18 = vld [vmem:[#allocation2 + $0x148] sm:$0x1] }
 0x437   : > { %22234 = vmatmul.mubr.msk.bf16.gmra.mrb[48].mxu1 %vm4640_vm6, %v6894_v59  ;;  %v6965_v59 = vor.u32 %v6963_v39, %v6962_v40  ;;  %v7637_v40 = vshll.u32 %v7488_v18, 16 }
 0x438   : > { %22237 = vmatprep.mubr.msk.bf16.mxu1 %vm4640_vm6, %v6906_v10 }
 0x439   : > { %v6966_v6 = vsel %vm746_vm4, %v6958_v61, %v6965_v59  ;;  %v7492_v59 = vld [vmem:[#allocation2 + $0x178] sm:$0x1] }
 0x43f   : > { %22238 = vmatmul.mubr.msk.bf16.gmra.mrb[52].mxu1 %vm4640_vm6, %v6918_v25  ;;  %v7589_v25 = vshll.u32 %v7480_v17, 16 }
 0x440   : > { %22241 = vmatprep.mubr.msk.bf16.mxu1 %vm4640_vm6, %v6930_v24  ;;  %v7486_v24 = vld [vmem:[#allocation2 + $0x130] sm:$0x1] }
 0x441   : > { %v7625_v8 = vshll.u32 %v7486_v24, 16 }
 0x443   : > { %v7627_v55 = vrot.slane %v7625_v8, 1 }
 0x447   : > { %22242 = vmatmul.mubr.msk.bf16.gmra.mrb[56].mxu1 %vm4640_vm6, %v6942_v9  ;;  %v7649_v9 = vshll.u32 %v7490_v1, 16 }
 0x448   : > { %22245 = vmatprep.mubr.msk.bf16.mxu1 %vm4640_vm6, %v6954_v29  ;;  %v7639_v29 = vrot.slane %v7637_v40, 1 }
 0x449   : > { %v7651_v61 = vrot.slane %v7649_v9, 1 }
 0x44f   : > { %22246 = vmatmul.mubr.msk.bf16.gmra.mrb[60].mxu1 %vm4640_vm6, %v6966_v6 }
 0x450   : > { %22253 = vmatprep.mubr.msk.bf16.mxu1 %vm4640_vm6, %v26566_v12  ;;  %v7466_v12 = vld [vmem:[#allocation2 + $0x40] sm:$0x1] }
 0x457   : > { %22254 = vmatmul.mubr.msk.bf16.vlgmr.msra.gmra.mrb[32].mxu1 %vm4640_vm6, %v26570_v16  ;;  %v7505_v16 = vshll.u32 %v7466_v12, 16  ;;  %v7661_v12 = vshll.u32 %v7492_v59, 16 }
 0x458   : > { %22257 = vmatprep.mubr.msk.bf16.mxu1 %vm4640_vm6, %v26581_v22  ;;  %22286 = vmatpush3.bf16.msra.mxu1 %v26791_v4  ;;  %v24827_v22 = vld [vmem:[#allocation2 + $0x188] sm:$0xff] }
 0x459   : > { %24619 = vmatprep.subr.msk.bf16.mxu1 %vm4673_vm5, %v24738_v32  ;;  %v7494_v32 = vld [vmem:[#allocation2 + $0x190] sm:$0x1] }
 0x45c   : > { %22288 = vmatpush3.bf16.msra.mxu1 %v7751_v20  ;;  %v7640_v20 = vsel %vm1391_vm3, %v26732_v23, %v7639_v29  ;;  %v7682_v23 = vrot.slane %v6963_v39, 1  ;;  %v24739_v39 = vld [vmem:[%s25099_s0 + $0x10] sm:$0xff]  }
 0x45d   : > { %22321 = vmatprep.subr.bf16.mxu0 %v24739_v39 }
 0x45e   : > { %22322 = vmatpush3.bf16.msra.mxu0 %v24739_v39 }
 0x45f   : > { %22258 = vmatmul.mubr.msk.bf16.gmra.mrb[36].mxu1 %vm4640_vm6, %v26585_v26  ;;  %v7507_v26 = vrot.slane %v7505_v16, 1 }
 0x460   : > { %22261 = vmatprep.mubr.msk.bf16.mxu1 %vm4640_vm6, %v26608_v41  ;;  %v7468_v41 = vld [vmem:[#allocation2 + $0x58] sm:$0x1] }
 0x467   : > { %22262 = vmatmul.mubr.msk.bf16.gmra.mrb[40].mxu1 %vm4640_vm6, %v26612_v44  ;;  %v7470_v44 = vld [vmem:[#allocation2 + $0x70] sm:$0x1] }
 0x468   : > { %22265 = vmatprep.mubr.msk.bf16.mxu1 %vm4640_vm6, %v26640_v11  ;;  %v7517_v11 = vshll.u32 %v7468_v41, 16  ;;  %v7663_v41 = vrot.slane %v7661_v12, 1 }
 0x46f   : > { %22266 = vmatmul.mubr.msk.bf16.gmra.mrb[44].mxu1 %vm4640_vm6, %v26644_v51  ;;  %v7508_v51 = vsel %vm1391_vm3, %v26590_v15, %v7507_v26  ;;  %v7496_v26 = vld [vmem:[#allocation2 + $0x1a8] sm:$0x1] }
 0x470   : > { %22269 = vmatprep.mubr.msk.bf16.mxu1 %vm4640_vm6, %v26666_v42  ;;  %v7529_v42 = vshll.u32 %v7470_v44, 16 }
 0x477   : > { %22270 = vmatmul.mubr.msk.bf16.gmra.mrb[48].mxu1 %vm4640_vm6, %v26670_v56  ;;  %v7519_v56 = vrot.slane %v7517_v11, 1 }
 0x478   : > { %22273 = vmatprep.mubr.msk.bf16.mxu1 %vm4640_vm6, %v26692_v53  ;;  %v7531_v53 = vrot.slane %v7529_v42, 1  ;;  %v7664_v42 = vsel %vm1391_vm3, %v26753_v45, %v7663_v41  ;;  %v26961_v45 = vld [vmem:[%s557_s15] ss:$0 sm:$0xff]  ;;  %s24930_s15 = smov 32  }
 0x47a   : > { %v7532_v46 = vsel %vm1391_vm3, %v26622_v38, %v7531_v53  ;;  %v7567_v38 = vrot.slane %v7565_v57, 1 }
 0x47c   : > { %v7568_v0 = vsel %vm1391_vm3, %v26654_v13, %v7567_v38  ;;  %v7604_v13 = vsel %vm1391_vm3, %v26701_v50, %v7603_v63  ;;  %v7493_v50 = vld [vmem:[#allocation2 + $0x188] sm:$0xff] }
 0x47d   : > { %v7668_v6 = vshll.u32 %v7493_v50, 16 }
 0x47f   : > { %22274 = vmatmul.mubr.msk.bf16.gmra.mrb[52].mxu1 %vm4640_vm6, %v26696_v48  ;;  %v7472_v48 = vld [vmem:[#allocation2 + $0x88] sm:$0x1]  ;;  %v7670_v16 = vrot.slane %v7668_v6, 1 }
 0x480   : > { %22277 = vmatprep.mubr.msk.bf16.mxu1 %vm4640_vm6, %v26718_v30  ;;  %v7474_v30 = vld [vmem:[#allocation2 + $0xa0] sm:$0x1]  ;;  %v7541_v4 = vshll.u32 %v7472_v48, 16 }
 0x481   : > { %v7553_v10 = vshll.u32 %v7474_v30, 16  ;;  %v24740_v30 = vld [vmem:[%s25099_s0 + $0x18] sm:$0xff]  }
 0x482   : > { %v7543_v15 = vrot.slane %v7541_v4, 1  ;;  %22323 = vmatprep.subr.bf16.mxu0 %v24740_v30 }
 0x483   : > { %v7555_v19 = vrot.slane %v7553_v10, 1  ;;  %22324 = vmatpush3.bf16.msra.mxu0 %v24740_v30 }
 0x484   : > { %v7544_v58 = vsel %vm1391_vm3, %v26627_v7, %v7543_v15  ;;  %v7580_v7 = vsel %vm1391_vm3, %v26675_v21, %v7579_v43  ;;  %v7615_v21 = vrot.slane %v7613_v35, 1  ;;  %22357 = vmatprep.subr.bf16.mxu0 %v26973_v54 }
 0x486   : > { %v7616_v33 = vsel %vm1391_vm3, %v26706_v62, %v7615_v21  ;;  %v7652_v62 = vsel %vm1391_vm3, %v26749_v34, %v7651_v61 }
 0x487   : > { %22278 = vmatmul.mubr.msk.bf16.gmra.mrb[56].mxu1 %vm4640_vm6, %v26722_v36  ;;  %v7520_v36 = vsel %vm1391_vm3, %v26595_v27, %v7519_v56  ;;  %v7556_v27 = vsel %vm1391_vm3, %v26649_v28, %v7555_v19  ;;  %v7591_v28 = vrot.slane %v7589_v25, 1  ;;  %v7683_v56 = vor.u32 %v7682_v23, %v6960_v2 }
 0x488   : > { %22281 = vmatprep.mubr.msk.bf16.mxu1 %vm4640_vm6, %v24827_v22  ;;  %v7666_v22 = vshrl.u32 %v7493_v50, 16 }
 0x489   : > { %v7592_v52 = vsel %vm1391_vm3, %v26680_v3, %v7591_v28  ;;  %v7628_v3 = vsel %vm1391_vm3, %v26727_v49, %v7627_v55  ;;  %v7673_v49 = vshll.u32 %v7494_v32, 16 }
 0x48a   : > { %v7671_v44 = vor.u32 %v7670_v16, %v7666_v22 }
 0x48b   : > { %v7675_v11 = vrot.slane %v7673_v49, 1 }
 0x48d   : > { %v7676_v34 = vsel %vm1391_vm3, %v7671_v44, %v7675_v11 }
 0x48f   : > { %22282 = vmatmul.mubr.msk.bf16.gmra.mrb[60].mxu1 %vm4640_vm6, %v26846_v31 }
 0x490   : > { %22289 = vmatprep.mubr.msk.bf16.mxu1 %vm4640_vm6, %v7508_v51  ;;  %v7685_v51 = vshll.u32 %v7496_v26, 16 }
 0x492   : > { %v7687_v53 = vrot.slane %v7685_v51, 1 }
 0x494   : > { %v7688_v48 = vsel %vm1391_vm3, %v7683_v56, %v7687_v53 }
 0x497   : > { %22290 = vmatmul.mubr.msk.bf16.vlgmr.msra.gmra.mrb[32].mxu1 %vm4640_vm6, %v7520_v36 }
 0x498   : > { %22293 = vmatprep.mubr.msk.bf16.mxu1 %vm4640_vm6, %v7532_v46 }
 0x49f   : > { %22294 = vmatmul.mubr.msk.bf16.gmra.mrb[36].mxu1 %vm4640_vm6, %v7544_v58 }
 0x4a0   : > { %22297 = vmatprep.mubr.msk.bf16.mxu1 %vm4640_vm6, %v7556_v27  ;;  %v26967_v27 = vld [vmem:[#allocation2 + $0x8] sm:$0xff] }
 0x4a1   : > { %22325 = vmatprep.mubr.msk.bf16.mxu0 %vm8391_vm8, %v26967_v27 }
 0x4a7   : > { %22298 = vmatmul.mubr.msk.bf16.gmra.mrb[40].mxu1 %vm4640_vm6, %v7568_v0 }
 0x4a8   : > { %22301 = vmatprep.mubr.msk.bf16.mxu1 %vm4640_vm6, %v7580_v7 }
 0x4af   : > { %22302 = vmatmul.mubr.msk.bf16.gmra.mrb[44].mxu1 %vm4640_vm6, %v7592_v52 }
 0x4b0   : > { %22305 = vmatprep.mubr.msk.bf16.mxu1 %vm4640_vm6, %v7604_v13 }
 0x4b7   : > { %22306 = vmatmul.mubr.msk.bf16.gmra.mrb[48].mxu1 %vm4640_vm6, %v7616_v33 }
 0x4b8   : > { %22309 = vmatprep.mubr.msk.bf16.mxu1 %vm4640_vm6, %v7628_v3 }
 0x4bf   : > { %22310 = vmatmul.mubr.msk.bf16.gmra.mrb[52].mxu1 %vm4640_vm6, %v7640_v20 }
 0x4c0   : > { %22313 = vmatprep.mubr.msk.bf16.mxu1 %vm4640_vm6, %v7652_v62 }
 0x4c7   : > { %22314 = vmatmul.mubr.msk.bf16.gmra.mrb[56].mxu1 %vm4640_vm6, %v7664_v42 }
 0x4c8   : > { %22317 = vmatprep.mubr.msk.bf16.mxu1 %vm4640_vm6, %v7676_v34 }
 0x4cf   : > { %22318 = vmatmul.mubr.msk.bf16.gmra.mrb[60].mxu1 %vm4640_vm6, %v7688_v48 }
 0x56a   : > { %v22291_v36 = vpop.f32.mrb[32].mxu1 }
 0x56b   : > { %v7955_v31 = vadd.f32 %v22291_v36, %v26961_v45  ;;  %v7787_v2 = vpop.f32.mrb[33].mxu1 }
 0x56c   : > { %v7953_v4 = vadd.f32 %v26961_v45, %v7787_v2  ;;  %v22292_v46 = vpop.f32.mrb[34].mxu1 }
 0x56d   : > { %v7987_v10 = vmul.f32 0.2, %v7955_v31  ;;  %v7956_v15 = vadd.f32 %v22292_v46, %v26961_v45  ;;  %v7790_v19 = vpop.f32.mrb[35].mxu1 }
 0x56e   : > { %v7985_v60 = vmul.f32 0.2, %v7953_v4  ;;  %v7954_v47 = vadd.f32 %v26961_v45, %v7790_v19 }
 0x56f   : > { %v7988_v58 = vmul.f32 0.2, %v7956_v15  ;;  %v8019_v37 = vmax.f32 %v7955_v31, %v7987_v10 }
 0x570   : > { %v7986_v57 = vmul.f32 0.2, %v7954_v47  ;;  %v8017_v43 = vmax.f32 %v7953_v4, %v7985_v60 }
 0x571   : > { %v8020_v38 = vmax.f32 %v7956_v15, %v7988_v58 }
 0x572   : > { %v8018_v17 = vmax.f32 %v7954_v47, %v7986_v57  ;;  %v22295_v14 = vpop.f32.mrb[36].mxu1 }
 0x573   : > { %v7959_v0 = vadd.f32 %v22295_v14, %v26961_v45  ;;  %v7803_v25 = vpop.f32.mrb[37].mxu1  ;;  %v8050_v7 = vpack.c.bf16 %v8020_v38, %v8019_v37 }
 0x574   : > { %v7957_v28 = vadd.f32 %v26961_v45, %v7803_v25  ;;  %v22296_v63 = vpop.f32.mrb[38].mxu1  ;;  %v8049_v5 = vpack.c.bf16 %v8018_v17, %v8017_v43 }
 0x575   : > { %v7991_v24 = vmul.f32 0.2, %v7959_v0  ;;  %v7960_v52 = vadd.f32 %v22296_v63, %v26961_v45  ;;  %8083 = vrot.lane.b32.xlu1 %v8050_v7, %s24929_s17  ;;  %v7806_v35 = vpop.f32.mrb[39].mxu1 }
 0x576   : > { %v7989_v13 = vmul.f32 0.2, %v7957_v28  ;;  %v7958_v8 = vadd.f32 %v26961_v45, %v7806_v35  ;;  %8081 = vrot.lane.b32.xlu0 %v8049_v5, %s24929_s17 }
 0x577   : > { %v7992_v21 = vmul.f32 0.2, %v7960_v52  ;;  %v8023_v18 = vmax.f32 %v7959_v0, %v7991_v24 }
 0x578   : > { %v7990_v55 = vmul.f32 0.2, %v7958_v8  ;;  %v8021_v33 = vmax.f32 %v7957_v28, %v7989_v13 }
 0x579   : > { %v8024_v1 = vmax.f32 %v7960_v52, %v7992_v21 }
 0x57a   : > { %v8022_v40 = vmax.f32 %v7958_v8, %v7990_v55  ;;  %v22299_v3 = vpop.f32.mrb[40].mxu1 }
 0x57b   : > { %v7963_v9 = vadd.f32 %v22299_v3, %v26961_v45  ;;  %v7819_v50 = vpop.f32.mrb[41].mxu1  ;;  %v8052_v29 = vpack.c.bf16 %v8024_v1, %v8023_v18 }
 0x57c   : > { %v7961_v61 = vadd.f32 %v26961_v45, %v7819_v50  ;;  %v22300_v59 = vpop.f32.mrb[42].mxu1  ;;  %v8051_v6 = vpack.c.bf16 %v8022_v40, %v8021_v33 }
 0x57d   : > { %v7995_v32 = vmul.f32 0.2, %v7963_v9  ;;  %v7964_v20 = vadd.f32 %v22300_v59, %v26961_v45  ;;  %8087 = vrot.lane.b32.xlu1 %v8052_v29, %s24929_s17  ;;  %v7822_v12 = vpop.f32.mrb[43].mxu1 }
 0x57e   : > { %v7993_v62 = vmul.f32 0.2, %v7961_v61  ;;  %v7962_v16 = vadd.f32 %v26961_v45, %v7822_v12  ;;  %8085 = vrot.lane.b32.xlu0 %v8051_v6, %s24929_s17 }
 0x57f   : > { %v7996_v49 = vmul.f32 0.2, %v7964_v20  ;;  %v8027_v26 = vmax.f32 %v7963_v9, %v7995_v32 }
 0x580   : > { %v7994_v22 = vmul.f32 0.2, %v7962_v16  ;;  %v8025_v44 = vmax.f32 %v7961_v61, %v7993_v62 }
 0x581   : > { %v8028_v41 = vmax.f32 %v7964_v20, %v7996_v49 }
 0x582   : > { %v8026_v11 = vmax.f32 %v7962_v16, %v7994_v22  ;;  %v22303_v23 = vpop.f32.mrb[44].mxu1 }
 0x583   : > { %v7967_v51 = vadd.f32 %v22303_v23, %v26961_v45  ;;  %v7835_v42 = vpop.f32.mrb[45].mxu1  ;;  %v8054_v34 = vpack.c.bf16 %v8028_v41, %v8027_v26 }
 0x584   : > { %v7965_v56 = vadd.f32 %v26961_v45, %v7835_v42  ;;  %v22304_v53 = vpop.f32.mrb[46].mxu1  ;;  %v8053_v48 = vpack.c.bf16 %v8026_v11, %v8025_v44 }
 0x585   : > { %v7999_v39 = vmul.f32 0.2, %v7967_v51  ;;  %v7968_v30 = vadd.f32 %v22304_v53, %v26961_v45  ;;  %8091 = vrot.lane.b32.xlu1 %v8054_v34, %s24929_s17  ;;  %v7838_v36 = vpop.f32.mrb[47].mxu1 }
 0x586   : > { %v7997_v31 = vmul.f32 0.2, %v7965_v56  ;;  %v7966_v2 = vadd.f32 %v26961_v45, %v7838_v36  ;;  %8089 = vrot.lane.b32.xlu0 %v8053_v48, %s24929_s17 }
 0x587   : > { %v8000_v4 = vmul.f32 0.2, %v7968_v30  ;;  %v8031_v10 = vmax.f32 %v7967_v51, %v7999_v39 }
 0x588   : > { %v7998_v46 = vmul.f32 0.2, %v7966_v2  ;;  %v8029_v19 = vmax.f32 %v7965_v56, %v7997_v31 }
 0x589   : > { %v8032_v15 = vmax.f32 %v7968_v30, %v8000_v4 }
 0x58a   : > { %v8030_v60 = vmax.f32 %v7966_v2, %v7998_v46  ;;  %v22307_v47 = vpop.f32.mrb[48].mxu1 }
 0x58b   : > { %v7971_v58 = vadd.f32 %v22307_v47, %v26961_v45  ;;  %v7851_v57 = vpop.f32.mrb[49].mxu1  ;;  %v8056_v37 = vpack.c.bf16 %v8032_v15, %v8031_v10 }
 0x58c   : > { %v7969_v38 = vadd.f32 %v26961_v45, %v7851_v57  ;;  %v22308_v43 = vpop.f32.mrb[50].mxu1  ;;  %v8055_v17 = vpack.c.bf16 %v8030_v60, %v8029_v19 }
 0x58d   : > { %v8003_v14 = vmul.f32 0.2, %v7971_v58  ;;  %v7972_v0 = vadd.f32 %v22308_v43, %v26961_v45  ;;  %8095 = vrot.lane.b32.xlu1 %v8056_v37, %s24929_s17  ;;  %v7854_v25 = vpop.f32.mrb[51].mxu1 }
 0x58e   : > { %v8001_v7 = vmul.f32 0.2, %v7969_v38  ;;  %v7970_v28 = vadd.f32 %v26961_v45, %v7854_v25  ;;  %8093 = vrot.lane.b32.xlu0 %v8055_v17, %s24929_s17 }
 0x58f   : > { %v8004_v63 = vmul.f32 0.2, %v7972_v0  ;;  %v8035_v24 = vmax.f32 %v7971_v58, %v8003_v14 }
 0x590   : > { %v8002_v5 = vmul.f32 0.2, %v7970_v28  ;;  %v8033_v35 = vmax.f32 %v7969_v38, %v8001_v7 }
 0x591   : > { %v8036_v52 = vmax.f32 %v7972_v0, %v8004_v63 }
 0x592   : > { %v8034_v13 = vmax.f32 %v7970_v28, %v8002_v5  ;;  %v22311_v8 = vpop.f32.mrb[52].mxu1 }
 0x593   : > { %v7975_v21 = vadd.f32 %v22311_v8, %v26961_v45  ;;  %v7867_v55 = vpop.f32.mrb[53].mxu1  ;;  %v8058_v18 = vpack.c.bf16 %v8036_v52, %v8035_v24  ;;  %v24742_v52 = vld [vmem:[%s25099_s0 + $0x8] sm:$0xff]  }
 0x594   : > { %v7973_v1 = vadd.f32 %v26961_v45, %v7867_v55  ;;  %v22312_v33 = vpop.f32.mrb[54].mxu1  ;;  %v8057_v40 = vpack.c.bf16 %v8034_v13, %v8033_v35 }
 0x595   : > { %v8007_v3 = vmul.f32 0.2, %v7975_v21  ;;  %v7976_v9 = vadd.f32 %v22312_v33, %v26961_v45  ;;  %8099 = vrot.lane.b32.xlu1 %v8058_v18, %s24929_s17  ;;  %v7870_v50 = vpop.f32.mrb[55].mxu1 }
 0x596   : > { %v8005_v29 = vmul.f32 0.2, %v7973_v1  ;;  %v7974_v61 = vadd.f32 %v26961_v45, %v7870_v50  ;;  %8097 = vrot.lane.b32.xlu0 %v8057_v40, %s24929_s17 }
 0x597   : > { %v8008_v59 = vmul.f32 0.2, %v7976_v9  ;;  %v8039_v32 = vmax.f32 %v7975_v21, %v8007_v3  ;;  %v27034_v21 = vld [vmem:[%s25099_s0 + $0x20] sm:$0xff]  }
 0x598   : > { %v8006_v6 = vmul.f32 0.2, %v7974_v61  ;;  %v8037_v12 = vmax.f32 %v7973_v1, %v8005_v29 }
 0x599   : > { %v8040_v20 = vmax.f32 %v7976_v9, %v8008_v59 }
 0x59a   : > { %v8038_v62 = vmax.f32 %v7974_v61, %v8006_v6  ;;  %v22315_v16 = vpop.f32.mrb[56].mxu1 }
 0x59b   : > { %v7979_v49 = vadd.f32 %v22315_v16, %v26961_v45  ;;  %v7883_v22 = vpop.f32.mrb[57].mxu1  ;;  %v8060_v26 = vpack.c.bf16 %v8040_v20, %v8039_v32 }
 0x59c   : > { %v7977_v41 = vadd.f32 %v26961_v45, %v7883_v22  ;;  %v22316_v44 = vpop.f32.mrb[58].mxu1  ;;  %v8059_v11 = vpack.c.bf16 %v8038_v62, %v8037_v12 }
 0x59d   : > { %v8011_v23 = vmul.f32 0.2, %v7979_v49  ;;  %v7980_v51 = vadd.f32 %v22316_v44, %v26961_v45  ;;  %8103 = vrot.lane.b32.xlu1 %v8060_v26, %s24929_s17  ;;  %v7886_v42 = vpop.f32.mrb[59].mxu1  ;;  %v8183_v26 = vshrl.u32 %v26967_v27, 16 }
 0x59e   : > { %v8009_v34 = vmul.f32 0.2, %v7977_v41  ;;  %v7978_v56 = vadd.f32 %v26961_v45, %v7886_v42  ;;  %8101 = vrot.lane.b32.xlu0 %v8059_v11, %s24929_s17  ;;  %v8186_v11 = vshll.u32 %v26967_v27, 16 }
 0x59f   : > { %v8012_v53 = vmul.f32 0.2, %v7980_v51  ;;  %v8043_v39 = vmax.f32 %v7979_v49, %v8011_v23  ;;  %v8185_v44 = vrot.slane %v8183_v26, 7 }
 0x5a0   : > { %v8010_v48 = vmul.f32 0.2, %v7978_v56  ;;  %v8041_v36 = vmax.f32 %v7977_v41, %v8009_v34  ;;  %v8146_v41 = vld [vmem:[#allocation2] sm:$0x80] }
 0x5a1   : > { %v8044_v30 = vmax.f32 %v7980_v51, %v8012_v53  ;;  %v8179_v51 = vshrl.u32 %v8146_v41, 16  ;;  %v8188_v53 = vor.u32 %v8186_v11, %v8185_v44 }
 0x5a2   : > { %v8042_v31 = vmax.f32 %v7978_v56, %v8010_v48  ;;  %v22319_v2 = vpop.f32.mrb[60].mxu1 }
 0x5a3   : > { %v7983_v4 = vadd.f32 %v22319_v2, %v26961_v45  ;;  %v7899_v46 = vpop.f32.mrb[61].mxu1  ;;  %v8062_v10 = vpack.c.bf16 %v8044_v30, %v8043_v39  ;;  %v8181_v48 = vrot.slane %v8179_v51, 7 }
 0x5a4   : > { %v7981_v15 = vadd.f32 %v26961_v45, %v7899_v46  ;;  %v22320_v19 = vpop.f32.mrb[62].mxu1  ;;  %v8061_v60 = vpack.c.bf16 %v8042_v31, %v8041_v36  ;;  %v8148_v36 = vld [vmem:[#allocation2 + $0x18] sm:$0x80]  ;;  %v8150_v31 = vld [vmem:[#allocation2 + $0x30] sm:$0x80] }
 0x5a5   : > { %v8015_v47 = vmul.f32 0.2, %v7983_v4  ;;  %v7984_v58 = vadd.f32 %v22320_v19, %v26961_v45  ;;  %8107 = vrot.lane.b32.xlu1 %v8062_v10, %s24929_s17  ;;  %v7902_v57 = vpop.f32.mrb[63].mxu1  ;;  %v8189_v2 = vsel %vm746_vm4, %v8181_v48, %v8188_v53 }
 0x5a6   : > { %v8013_v37 = vmul.f32 0.2, %v7981_v15  ;;  %v7982_v38 = vadd.f32 %v26961_v45, %v7902_v57  ;;  %8105 = vrot.lane.b32.xlu0 %v8061_v60, %s24929_s17 }
 0x5a7   : > { %v8016_v43 = vmul.f32 0.2, %v7984_v58  ;;  %v8047_v14 = vmax.f32 %v7983_v4, %v8015_v47  ;;  %v8203_v47 = vshrl.u32 %v8150_v31, 16 }
 0x5a8   : > { %v8014_v17 = vmul.f32 0.2, %v7982_v38  ;;  %v8045_v25 = vmax.f32 %v7981_v15, %v8013_v37  ;;  %v8191_v15 = vshrl.u32 %v8148_v36, 16 }
 0x5a9   : > { %v8048_v0 = vmax.f32 %v7984_v58, %v8016_v43 }
 0x5aa   : > { %v8046_v7 = vmax.f32 %v7982_v38, %v8014_v17  ;;  %v8193_v17 = vrot.slane %v8191_v15, 7 }
 0x5ab   : > { %v8064_v28 = vpack.c.bf16 %v8048_v0, %v8047_v14 }
 0x5ac   : > { %v8063_v63 = vpack.c.bf16 %v8046_v7, %v8045_v25  ;;  %v8205_v7 = vrot.slane %v8203_v47, 7 }
 0x5ad   : > { %8111 = vrot.lane.b32.xlu1 %v8064_v28, %s24929_s17 }
 0x5ae   : > { %8109 = vrot.lane.b32.xlu0 %v8063_v63, %s24929_s17  ;;  %v8152_v63 = vld [vmem:[#allocation2 + $0x48] sm:$0x80] }
 0x5e7   : > { %v8084_v5 = vpop.permute.xlu1 %8083 }
 0x5e8   : > { %8131 = vst.msk [vmem:[#allocation2 + $0x38] sm:$0xff] %vm8129_vm9, %v8084_v5  ;;  %v8082_v45 = vpop.permute.xlu0 %8081  ;;  %v8154_v5 = vld [vmem:[#allocation2 + $0x60] sm:$0x80] }
 0x5e9   : > { %8130 = vst.msk [vmem:[#allocation2 + $0x20] sm:$0xff] %vm8129_vm9, %v8082_v45  ;;  %v24744_v45 = vld [vmem:[%s25099_s0 + $0x28] sm:$0xff]  }
 0x5ef   : > { %v8088_v24 = vpop.permute.xlu1 %8087  ;;  %v27028_v8 = vld [vmem:[#allocation2 + $0x38] sm:$0xff] }
 0x5f0   : > { %8133 = vst.msk [vmem:[#allocation2 + $0x68] sm:$0xff] %vm8129_vm9, %v8088_v24  ;;  %v8086_v35 = vpop.permute.xlu0 %8085  ;;  %v27023_v13 = vld [vmem:[#allocation2 + $0x20] sm:$0xff]  ;;  %v8207_v30 = vshrl.u32 %v27028_v8, 16  ;;  %v8210_v38 = vshll.u32 %v27028_v8, 16 }
 0x5f1   : > { %8132 = vst.msk [vmem:[#allocation2 + $0x50] sm:$0xff] %vm8129_vm9, %v8086_v35  ;;  %22326 = vmatmul.mubr.msk.bf16.vlgmr.msra.gmra.mrb[32].mxu0 %vm8391_vm8, %v27023_v13  ;;  %v8195_v39 = vshrl.u32 %v27023_v13, 16  ;;  %v8198_v58 = vshll.u32 %v27023_v13, 16  ;;  %v8215_v35 = vshrl.u32 %v8152_v63, 16  ;;  %v8160_v63 = vld [vmem:[#allocation2 + $0xa8] sm:$0x80] }
 0x5f2   : > { %22329 = vmatprep.mubr.msk.bf16.mxu0 %vm8391_vm8, %v27028_v8  ;;  %22358 = vmatpush3.bf16.msra.mxu0 %v26973_v54  ;;  %v8209_v60 = vrot.slane %v8207_v30, 7  ;;  %v8867_v27 = vrot.slane %v8210_v38, 1 }
 0x5f3   : > { %22359 = vmatprep.subr.bf16.mxu0 %v24742_v52  ;;  %v8197_v46 = vrot.slane %v8195_v39, 7 }
 0x5f4   : > { %v27135_v28 = vor.u32 %v8210_v38, %v8209_v60 }
 0x5f5   : > { %v27126_v14 = vor.u32 %v8198_v58, %v8197_v46 }
 0x5f6   : > { %22360 = vmatpush3.bf16.msra.mxu0 %v24742_v52 }
 0x5f7   : > { %v8092_v55 = vpop.permute.xlu1 %8091  ;;  %22393 = vmatprep.subr.bf16.mxu0 %v27034_v21  ;;  %v27043_v33 = vld [vmem:[#allocation2 + $0x68] sm:$0xff]  ;;  %v8201_v52 = vsel %vm746_vm4, %v8193_v17, %v27126_v14 }
 0x5f8   : > { %8135 = vst.msk [vmem:[#allocation2 + $0x98] sm:$0xff] %vm8129_vm9, %v8092_v55  ;;  %v8090_v18 = vpop.permute.xlu0 %8089  ;;  %v27038_v1 = vld [vmem:[#allocation2 + $0x50] sm:$0xff]  ;;  %v8231_v25 = vshrl.u32 %v27043_v33, 16 }
 0x5f9   : > { %8134 = vst.msk [vmem:[#allocation2 + $0x80] sm:$0xff] %vm8129_vm9, %v8090_v18  ;;  %22330 = vmatmul.mubr.msk.bf16.gmra.mrb[36].mxu0 %vm8391_vm8, %v27038_v1  ;;  %v8219_v43 = vshrl.u32 %v27038_v1, 16  ;;  %v8213_v18 = vsel %vm746_vm4, %v8205_v7, %v27135_v28 }
 0x5fa   : > { %22333 = vmatprep.mubr.msk.bf16.mxu0 %vm8391_vm8, %v27043_v33  ;;  %v8233_v55 = vrot.slane %v8231_v25, 7 }
 0x5fb   : > { %v8221_v24 = vrot.slane %v8219_v43, 7 }
 0x5ff   : > { %v8096_v54 = vpop.permute.xlu1 %8095  ;;  %v27053_v9 = vld [vmem:[#allocation2 + $0x98] sm:$0xff] }
 0x600   : > { %8137 = vst.msk [vmem:[#allocation2 + $0xc8] sm:$0xff] %vm8129_vm9, %v8096_v54  ;;  %v8094_v40 = vpop.permute.xlu0 %8093  ;;  %v27048_v3 = vld [vmem:[#allocation2 + $0x80] sm:$0xff]  ;;  %v8227_v54 = vshrl.u32 %v8154_v5, 16  ;;  %v8258_v46 = vshll.u32 %v27053_v9, 16 }
 0x601   : > { %8136 = vst.msk [vmem:[#allocation2 + $0xb0] sm:$0xff] %vm8129_vm9, %v8094_v40  ;;  %22334 = vmatmul.mubr.msk.bf16.gmra.mrb[40].mxu0 %vm8391_vm8, %v27048_v3  ;;  %v8222_v40 = vshll.u32 %v27038_v1, 16  ;;  %v8162_v5 = vld [vmem:[#allocation2 + $0xc0] sm:$0x80] }
 0x602   : > { %22337 = vmatprep.mubr.msk.bf16.mxu0 %vm8391_vm8, %v27053_v9  ;;  %v8229_v41 = vrot.slane %v8227_v54, 7 }
 0x603   : > { %v8879_v38 = vrot.slane %v8222_v40, 1 }
 0x607   : > { %v8100_v50 = vpop.permute.xlu1 %8099  ;;  %v27063_v59 = vld [vmem:[#allocation2 + $0xc8] sm:$0xff] }
 0x608   : > { %8139 = vst.msk [vmem:[#allocation2 + $0xf8] sm:$0xff] %vm8129_vm9, %v8100_v50  ;;  %v8098_v29 = vpop.permute.xlu0 %8097  ;;  %v27058_v61 = vld [vmem:[#allocation2 + $0xb0] sm:$0xff]  ;;  %v8234_v50 = vshll.u32 %v27043_v33, 16 }
 0x609   : > { %8138 = vst.msk [vmem:[#allocation2 + $0xe0] sm:$0xff] %vm8129_vm9, %v8098_v29  ;;  %22338 = vmatmul.mubr.msk.bf16.gmra.mrb[44].mxu0 %vm8391_vm8, %v27058_v61  ;;  %v27152_v29 = vld [vmem:[%s25099_s0 + $0x30] sm:$0xff]   ;;  %v30195_v15 = vshrl.u32 %v27058_v61, 16  ;;  %v8270_v54 = vshll.u32 %v27058_v61, 16 }
 0x60a   : > { %22341 = vmatprep.mubr.msk.bf16.mxu0 %vm8391_vm8, %v27063_v59  ;;  %v27162_v44 = vor.u32 %v8234_v50, %v8233_v55 }
 0x60c   : > { %v8237_v36 = vsel %vm746_vm4, %v8229_v41, %v27162_v44 }
 0x60f   : > { %v8104_v6 = vpop.permute.xlu1 %8103  ;;  %v27073_v12 = vld [vmem:[#allocation2 + $0xf8] sm:$0xff] }
 0x610   : > { %8141 = vst.msk [vmem:[#allocation2 + $0x128] sm:$0xff] %vm8129_vm9, %v8104_v6  ;;  %v8102_v32 = vpop.permute.xlu0 %8101  ;;  %v27068_v20 = vld [vmem:[#allocation2 + $0xe0] sm:$0xff]  ;;  %v8243_v6 = vshrl.u32 %v27048_v3, 16 }
 0x611   : > { %8140 = vst.msk [vmem:[#allocation2 + $0x110] sm:$0xff] %vm8129_vm9, %v8102_v32  ;;  %22342 = vmatmul.mubr.msk.bf16.gmra.mrb[48].mxu0 %vm8391_vm8, %v27068_v20  ;;  %v8217_v32 = vrot.slane %v8215_v35, 7  ;;  %v30186_v41 = vshrl.u32 %v27068_v20, 16 }
 0x612   : > { %22345 = vmatprep.mubr.msk.bf16.mxu0 %vm8391_vm8, %v27073_v12  ;;  %v8245_v51 = vrot.slane %v8243_v6, 7 }
 0x617   : > { %v8108_v62 = vpop.permute.xlu1 %8107  ;;  %v27083_v22 = vld [vmem:[#allocation2 + $0x128] sm:$0xff] }
 0x618   : > { %8143 = vst.msk [vmem:[#allocation2 + $0x158] sm:$0xff] %vm8129_vm9, %v8108_v62  ;;  %v8106_v16 = vpop.permute.xlu0 %8105  ;;  %v27078_v49 = vld [vmem:[#allocation2 + $0x110] sm:$0xff]  ;;  %v27157_v62 = vor.u32 %v8222_v40, %v8221_v24 }
 0x619   : > { %8142 = vst.msk [vmem:[#allocation2 + $0x140] sm:$0xff] %vm8129_vm9, %v8106_v16  ;;  %22346 = vmatmul.mubr.msk.bf16.gmra.mrb[52].mxu0 %vm8391_vm8, %v27078_v49  ;;  %v8255_v16 = vshrl.u32 %v27053_v9, 16 }
 0x61a   : > { %22349 = vmatprep.mubr.msk.bf16.mxu0 %vm8391_vm8, %v27083_v22 }
 0x61b   : > { %v8257_v48 = vrot.slane %v8255_v16, 7 }
 0x61d   : > { %v27185_v7 = vor.u32 %v8258_v46, %v8257_v48  ;;  %v8164_v48 = vld [vmem:[#allocation2 + $0xd8] sm:$0x80] }
 0x61f   : > { %v8112_v23 = vpop.permute.xlu1 %8111  ;;  %v27097_v56 = vld [vmem:[#allocation2 + $0x158] sm:$0xff] }
 0x620   : > { %8145 = vst.msk [vmem:[#allocation2 + $0x188] sm:$0xff] %vm8129_vm9, %v8112_v23  ;;  %v8110_v42 = vpop.permute.xlu0 %8109  ;;  %v27092_v34 = vld [vmem:[#allocation2 + $0x140] sm:$0xff]  ;;  %v8158_v23 = vld [vmem:[#allocation2 + $0x90] sm:$0x80] }
 0x621   : > { %8144 = vst.msk [vmem:[#allocation2 + $0x170] sm:$0xff] %vm8129_vm9, %v8110_v42  ;;  %22350 = vmatmul.mubr.msk.bf16.gmra.mrb[56].mxu0 %vm8391_vm8, %v27092_v34  ;;  %v8225_v42 = vsel %vm746_vm4, %v8217_v32, %v27157_v62  ;;  %v8251_v31 = vshrl.u32 %v8158_v23, 16  ;;  %v8282_v32 = vshll.u32 %v27063_v59, 16 }
 0x622   : > { %22353 = vmatprep.mubr.msk.bf16.mxu0 %vm8391_vm8, %v27097_v56 }
 0x623   : > { %v8253_v17 = vrot.slane %v8251_v31, 7  ;;  %v8293_v31 = vrot.slane %v30186_v41, 7 }
 0x625   : > { %v8261_v55 = vsel %vm746_vm4, %v8253_v17, %v27185_v7  ;;  %v8287_v17 = vshrl.u32 %v8164_v48, 16 }
 0x627   : > { %v27106_v4 = vld [vmem:[#allocation2 + $0x188] sm:$0xff] }
 0x628   : > { %v27110_v10 = vld [vmem:[#allocation2 + $0x170] sm:$0xff]  ;;  %v30182_v19 = vshll.u32 %v27106_v4, 16  ;;  %v30183_v57 = vshrl.u32 %v27106_v4, 16 }
 0x629   : > { %22354 = vmatmul.mubr.msk.bf16.gmra.mrb[60].mxu0 %vm8391_vm8, %v27110_v10 }
 0x62a   : > { %22361 = vmatprep.mubr.msk.bf16.mxu0 %vm8391_vm8, %v8189_v2  ;;  %v10229_v37 = vrot.slane %v30182_v19, 1  ;;  %v8246_v2 = vshll.u32 %v27048_v3, 16 }
 0x62c   : > { %v27130_v0 = vor.u32 %v10229_v37, %v30183_v57  ;;  %v27180_v47 = vor.u32 %v8246_v2, %v8245_v51  ;;  %v30194_v37 = vshrl.u32 %v27063_v59, 16  ;;  %v30184_v51 = vshrl.u32 %v27073_v12, 16 }
 0x62e   : > { %v8281_v35 = vrot.slane %v30194_v37, 7 }
 0x631   : > { %22362 = vmatmul.mubr.msk.bf16.vlgmr.msra.gmra.mrb[32].mxu0 %vm8391_vm8, %v8201_v52  ;;  %v8263_v52 = vshrl.u32 %v8160_v63, 16  ;;  %v8305_v63 = vrot.slane %v30184_v51, 7  ;;  %v30190_v51 = vshll.u32 %v27083_v22, 16 }
 0x632   : > { %22365 = vmatprep.mubr.msk.bf16.mxu0 %vm8391_vm8, %v8213_v18  ;;  %22394 = vmatpush3.bf16.msra.mxu0 %v27034_v21  ;;  %v8156_v21 = vld [vmem:[#allocation2 + $0x78] sm:$0x80]  ;;  %v8275_v18 = vshrl.u32 %v8162_v5, 16 }
 0x633   : > { %22395 = vmatprep.subr.bf16.mxu0 %v24744_v45  ;;  %v8239_v53 = vshrl.u32 %v8156_v21, 16  ;;  %v8265_v21 = vrot.slane %v8263_v52, 7  ;;  %v30188_v52 = vshll.u32 %v27073_v12, 16 }
 0x635   : > { %v8241_v60 = vrot.slane %v8239_v53, 7  ;;  %v27207_v53 = vor.u32 %v8282_v32, %v8281_v35  ;;  %v30185_v35 = vshrl.u32 %v27078_v49, 16 }
 0x636   : > { %22396 = vmatpush3.bf16.msra.mxu0 %v24744_v45  ;;  %v8269_v45 = vrot.slane %v30195_v15, 7 }
 0x637   : > { %22429 = vmatprep.subr.bf16.mxu0 %v27152_v29  ;;  %v8249_v24 = vsel %vm746_vm4, %v8241_v60, %v27180_v47 }
 0x638   : > { %v27202_v23 = vor.u32 %v8270_v54, %v8269_v45 }
 0x639   : > { %22366 = vmatmul.mubr.msk.bf16.gmra.mrb[36].mxu0 %vm8391_vm8, %v8225_v42  ;;  %v8277_v42 = vrot.slane %v8275_v18, 7 }
 0x63a   : > { %22369 = vmatprep.mubr.msk.bf16.mxu0 %vm8391_vm8, %v8237_v36  ;;  %v8166_v36 = vld [vmem:[#allocation2 + $0xf0] sm:$0x80]  ;;  %v8273_v60 = vsel %vm746_vm4, %v8265_v21, %v27202_v23  ;;  %v30187_v21 = vshrl.u32 %v27083_v22, 16 }
 0x63b   : > { %v8285_v5 = vsel %vm746_vm4, %v8277_v42, %v27207_v53  ;;  %v8299_v45 = vshrl.u32 %v8166_v36, 16  ;;  %v27229_v42 = vor.u32 %v30188_v52, %v8305_v63  ;;  %v8168_v36 = vld [vmem:[#allocation2 + $0x108] sm:$0x80]  ;;  %v30189_v63 = vshll.u32 %v27078_v49, 16 }
 0x63d   : > { %v8301_v48 = vrot.slane %v8299_v45, 7 }
 0x63f   : > { %v8309_v45 = vsel %vm746_vm4, %v8301_v48, %v27229_v42 }
 0x641   : > { %22370 = vmatmul.mubr.msk.bf16.gmra.mrb[40].mxu0 %vm8391_vm8, %v8249_v24  ;;  %v30192_v24 = vshll.u32 %v27068_v20, 16 }
 0x642   : > { %22373 = vmatprep.mubr.msk.bf16.mxu0 %vm8391_vm8, %v8261_v55  ;;  %v8289_v55 = vrot.slane %v8287_v17, 7  ;;  %v8311_v17 = vshrl.u32 %v8168_v36, 16  ;;  %v30193_v36 = vshrl.u32 %v27097_v56, 16 }
 0x643   : > { %v27224_v18 = vor.u32 %v30192_v24, %v8293_v31  ;;  %v8329_v31 = vrot.slane %v30187_v21, 7  ;;  %v8174_v21 = vld [vmem:[#allocation2 + $0x150] sm:$0x80] }
 0x644   : > { %v8313_v41 = vrot.slane %v8311_v17, 7 }
 0x645   : > { %v8297_v19 = vsel %vm746_vm4, %v8289_v55, %v27224_v18  ;;  %v27251_v48 = vor.u32 %v30190_v51, %v8329_v31  ;;  %v8342_v31 = vshll.u32 %v27092_v34, 16  ;;  %v30197_v51 = vshll.u32 %v27097_v56, 16 }
 0x649   : > { %22374 = vmatmul.mubr.msk.bf16.gmra.mrb[44].mxu0 %vm8391_vm8, %v8273_v60  ;;  %v8170_v60 = vld [vmem:[#allocation2 + $0x120] sm:$0x80] }
 0x64a   : > { %22377 = vmatprep.mubr.msk.bf16.mxu0 %vm8391_vm8, %v8285_v5  ;;  %v8317_v5 = vrot.slane %v30185_v35, 7  ;;  %v8323_v57 = vshrl.u32 %v8170_v60, 16  ;;  %v30191_v35 = vshrl.u32 %v27092_v34, 16  ;;  %v8172_v60 = vld [vmem:[#allocation2 + $0x138] sm:$0x80] }
 0x64b   : > { %v8335_v17 = vshrl.u32 %v8172_v60, 16  ;;  %v8807_v60 = vld [vmem:[#allocation2 + $0x10] sm:$0x1] }
 0x64c   : > { %v27246_v55 = vor.u32 %v30189_v63, %v8317_v5  ;;  %v8353_v5 = vrot.slane %v30193_v36, 7  ;;  %v8347_v63 = vshrl.u32 %v8174_v21, 16  ;;  %v8176_v21 = vld [vmem:[#allocation2 + $0x168] sm:$0x80] }
 0x64d   : > { %v8337_v24 = vrot.slane %v8335_v17, 7  ;;  %v8359_v15 = vshrl.u32 %v8176_v21, 16  ;;  %v8811_v21 = vld [vmem:[#allocation2 + $0x40] sm:$0x1] }
 0x64e   : > { %v8321_v52 = vsel %vm746_vm4, %v8313_v41, %v27246_v55  ;;  %v8349_v36 = vrot.slane %v8347_v63, 7 }
 0x651   : > { %22378 = vmatmul.mubr.msk.bf16.gmra.mrb[48].mxu0 %vm8391_vm8, %v8297_v19  ;;  %v8325_v19 = vrot.slane %v8323_v57, 7 }
 0x652   : > { %22381 = vmatprep.mubr.msk.bf16.mxu0 %vm8391_vm8, %v8309_v45  ;;  %v8341_v45 = vrot.slane %v30191_v35, 7  ;;  %v30196_v35 = vshrl.u32 %v27110_v10, 16 }
 0x653   : > { %v8333_v57 = vsel %vm746_vm4, %v8325_v19, %v27251_v48  ;;  %v8843_v19 = vrot.slane %v8186_v11, 1 }
 0x654   : > { %v27268_v41 = vor.u32 %v8342_v31, %v8341_v45  ;;  %v8365_v37 = vrot.slane %v30196_v35, 7  ;;  %v8366_v45 = vshll.u32 %v27110_v10, 16 }
 0x655   : > { %v8844_v11 = vor.u32 %v8843_v19, %v8183_v26  ;;  %v8870_v26 = vshll.u32 %v8811_v21, 16  ;;  %v8868_v19 = vor.u32 %v8867_v27, %v8207_v30  ;;  %v27315_v30 = vld [vmem:[%s25099_s0 + $0x40] sm:$0xff]   ;;  %v8817_v27 = vld [vmem:[#allocation2 + $0x88] sm:$0x1] }
 0x656   : > { %v8345_v17 = vsel %vm746_vm4, %v8337_v24, %v27268_v41  ;;  %v27289_v35 = vor.u32 %v8366_v45, %v8365_v37  ;;  %v8809_v24 = vld [vmem:[#allocation2 + $0x28] sm:$0x1] }
 0x659   : > { %22382 = vmatmul.mubr.msk.bf16.gmra.mrb[52].mxu0 %vm8391_vm8, %v8321_v52  ;;  %v27272_v52 = vor.u32 %v30197_v51, %v8353_v5  ;;  %v8858_v51 = vshll.u32 %v8809_v24, 16 }
 0x65a   : > { %22385 = vmatprep.mubr.msk.bf16.mxu0 %vm8391_vm8, %v8333_v57  ;;  %v8846_v57 = vshll.u32 %v8807_v60, 16  ;;  %v8361_v60 = vrot.slane %v8359_v15, 7 }
 0x65b   : > { %v8357_v63 = vsel %vm746_vm4, %v8349_v36, %v27272_v52  ;;  %v8860_v37 = vrot.slane %v8858_v51, 1 }
 0x65c   : > { %v8848_v5 = vrot.slane %v8846_v57, 1  ;;  %v8369_v36 = vsel %vm746_vm4, %v8361_v60, %v27289_v35  ;;  %v8872_v57 = vrot.slane %v8870_v26, 1  ;;  %v8819_v26 = vld [vmem:[#allocation2 + $0xa0] sm:$0x1] }
 0x65e   : > { %v8873_v21 = vsel %vm1391_vm3, %v8868_v19, %v8872_v57 }
 0x661   : > { %22386 = vmatmul.mubr.msk.bf16.gmra.mrb[56].mxu0 %vm8391_vm8, %v8345_v17  ;;  %v8849_v17 = vsel %vm1391_vm3, %v8844_v11, %v8848_v5  ;;  %v8813_v11 = vld [vmem:[#allocation2 + $0x58] sm:$0x1] }
 0x662   : > { %22389 = vmatprep.mubr.msk.bf16.mxu0 %vm8391_vm8, %v8357_v63  ;;  %v8855_v63 = vrot.slane %v8198_v58, 1  ;;  %v8815_v58 = vld [vmem:[#allocation2 + $0x70] sm:$0x1]  ;;  %v24746_v5 = vld [vmem:[%s25099_s0 + $0x38] sm:$0xff]   ;;  %v8882_v24 = vshll.u32 %v8813_v11, 16 }
 0x663   : > { %v8894_v51 = vshll.u32 %v8815_v58, 16 }
 0x664   : > { %v8856_v15 = vor.u32 %v8855_v63, %v8195_v39  ;;  %v8891_v39 = vrot.slane %v8234_v50, 1  ;;  %v8884_v40 = vrot.slane %v8882_v24, 1 }
 0x665   : > { %v8896_v63 = vrot.slane %v8894_v51, 1 }
 0x666   : > { %v8861_v60 = vsel %vm1391_vm3, %v8856_v15, %v8860_v37  ;;  %v8906_v15 = vshll.u32 %v8817_v27, 16  ;;  %v8915_v37 = vrot.slane %v8258_v46, 1 }
 0x668   : > { %v8908_v57 = vrot.slane %v8906_v15, 1  ;;  %v8916_v11 = vor.u32 %v8915_v37, %v8255_v16  ;;  %v30306_v16 = vshrl.u32 %v27058_v61, 16  ;;  %v30309_v15 = vshll.u32 %v27073_v12, 16 }
 0x669   : > { %22390 = vmatmul.mubr.msk.bf16.gmra.mrb[60].mxu0 %vm8391_vm8, %v8369_v36  ;;  %v8892_v36 = vor.u32 %v8891_v39, %v8231_v25  ;;  %v8918_v25 = vshll.u32 %v8819_v26, 16  ;;  %v30308_v26 = vshll.u32 %v27068_v20, 16 }
 0x66a   : > { %22397 = vmatprep.mubr.msk.bf16.mxu0 %vm8391_vm8, %v8849_v17  ;;  %v8880_v17 = vor.u32 %v8879_v38, %v8219_v43  ;;  %v8927_v38 = vrot.slane %v8270_v54, 1  ;;  %v8825_v54 = vld [vmem:[#allocation2 + $0xe8] sm:$0x1] }
 0x66b   : > { %v8897_v43 = vsel %vm1391_vm3, %v8892_v36, %v8896_v63  ;;  %v8920_v58 = vrot.slane %v8918_v25, 1  ;;  %v8827_v63 = vld [vmem:[#allocation2 + $0x100] sm:$0x1]  ;;  %v30310_v25 = vshrl.u32 %v27068_v20, 16 }
 0x66c   : > { %v8885_v50 = vsel %vm1391_vm3, %v8880_v17, %v8884_v40  ;;  %v8928_v39 = vor.u32 %v8927_v38, %v30306_v16  ;;  %v30307_v17 = vshrl.u32 %v27063_v59, 16  ;;  %v8966_v37 = vshll.u32 %v8827_v63, 16 }
 0x66d   : > { %v8921_v46 = vsel %vm1391_vm3, %v8916_v11, %v8920_v58  ;;  %v30311_v11 = vshrl.u32 %v27073_v12, 16  ;;  %v30313_v16 = vshll.u32 %v27083_v22, 16 }
 0x671   : > { %22398 = vmatmul.mubr.msk.bf16.vlgmr.msra.gmra.mrb[32].mxu0 %vm8391_vm8, %v8861_v60 }
 0x672   : > { %22401 = vmatprep.mubr.msk.bf16.mxu0 %vm8391_vm8, %v8873_v21  ;;  %22430 = vmatpush3.bf16.msra.mxu0 %v27152_v29  ;;  %v8903_v29 = vrot.slane %v8246_v2, 1  ;;  %v8821_v2 = vld [vmem:[#allocation2 + $0xb8] sm:$0x1] }
 0x673   : > { %22431 = vmatprep.subr.bf16.mxu0 %v24746_v5  ;;  %v8930_v24 = vshll.u32 %v8821_v2, 16  ;;  %v8968_v2 = vrot.slane %v8966_v37, 1  ;;  %v30316_v37 = vshll.u32 %v27097_v56, 16 }
 0x674   : > { %v8904_v19 = vor.u32 %v8903_v29, %v8243_v6  ;;  %v8939_v6 = vrot.slane %v8282_v32, 1  ;;  %v8954_v29 = vshll.u32 %v8825_v54, 16  ;;  %v30315_v54 = vshrl.u32 %v27083_v22, 16 }
 0x675   : > { %v8932_v51 = vrot.slane %v8930_v24, 1  ;;  %v30312_v24 = vshll.u32 %v27078_v49, 16 }
 0x676   : > { %22432 = vmatpush3.bf16.msra.mxu0 %v24746_v5  ;;  %v8823_v5 = vld [vmem:[#allocation2 + $0xd0] sm:$0x1]  ;;  %v8909_v60 = vsel %vm1391_vm3, %v8904_v19, %v8908_v57  ;;  %v8940_v40 = vor.u32 %v8939_v6, %v30307_v17  ;;  %v8956_v57 = vrot.slane %v8954_v29, 1  ;;  %v30314_v17 = vshrl.u32 %v27078_v49, 16 }
 0x677   : > { %22465 = vmatprep.subr.bf16.mxu0 %v27315_v30  ;;  %v8942_v21 = vshll.u32 %v8823_v5, 16  ;;  %v8933_v27 = vsel %vm1391_vm3, %v8928_v39, %v8932_v51  ;;  %v8829_v5 = vld [vmem:[#allocation2 + $0x118] sm:$0x1]  ;;  %v8987_v39 = vrot.slane %v30313_v16, 1 }
 0x678   : > { %v8978_v6 = vshll.u32 %v8829_v5, 16 }
 0x679   : > { %22402 = vmatmul.mubr.msk.bf16.gmra.mrb[36].mxu0 %vm8391_vm8, %v8885_v50  ;;  %v8944_v36 = vrot.slane %v8942_v21, 1  ;;  %v8951_v50 = vrot.slane %v30308_v26, 1  ;;  %v8988_v63 = vor.u32 %v8987_v39, %v30315_v54  ;;  %v8833_v26 = vld [vmem:[#allocation2 + $0x148] sm:$0x1]  ;;  %v30319_v39 = vshrl.u32 %v27110_v10, 16 }
 0x67a   : > { %22405 = vmatprep.mubr.msk.bf16.mxu0 %vm8391_vm8, %v8897_v43  ;;  %v8963_v43 = vrot.slane %v30309_v15, 1  ;;  %v9002_v15 = vshll.u32 %v8833_v26, 16  ;;  %v9292_v54 = vld [vmem:[#allocation2 + $0x48] sm:$0x80] }
 0x67b   : > { %v8945_v32 = vsel %vm1391_vm3, %v8940_v40, %v8944_v36  ;;  %v8952_v19 = vor.u32 %v8951_v50, %v30310_v25  ;;  %v8980_v36 = vrot.slane %v8978_v6, 1  ;;  %v8835_v50 = vld [vmem:[#allocation2 + $0x160] sm:$0x1]  ;;  %v9011_v25 = vrot.slane %v30316_v37, 1 }
 0x67c   : > { %v8964_v58 = vor.u32 %v8963_v43, %v30311_v11  ;;  %v9345_v26 = vshrl.u32 %v9292_v54, 16 }
 0x67d   : > { %v8957_v38 = vsel %vm1391_vm3, %v8952_v19, %v8956_v57  ;;  %v9014_v19 = vshll.u32 %v8835_v50, 16  ;;  %v30317_v57 = vshrl.u32 %v27092_v34, 16 }
 0x67e   : > { %v8969_v21 = vsel %vm1391_vm3, %v8964_v58, %v8968_v2  ;;  %v9004_v58 = vrot.slane %v9002_v15, 1  ;;  %v30318_v2 = vshrl.u32 %v27097_v56, 16  ;;  %v9296_v15 = vld [vmem:[#allocation2 + $0x78] sm:$0x80] }
 0x680   : > { %v9012_v5 = vor.u32 %v9011_v25, %v30318_v2  ;;  %v9298_v2 = vld [vmem:[#allocation2 + $0x90] sm:$0x80] }
 0x681   : > { %22406 = vmatmul.mubr.msk.bf16.gmra.mrb[40].mxu0 %vm8391_vm8, %v8909_v60  ;;  %v8831_v60 = vld [vmem:[#allocation2 + $0x130] sm:$0x1] }
 0x682   : > { %22409 = vmatprep.mubr.msk.bf16.mxu0 %vm8391_vm8, %v8921_v46  ;;  %v8975_v46 = vrot.slane %v30312_v24, 1  ;;  %v8990_v51 = vshll.u32 %v8831_v60, 16  ;;  %v9016_v60 = vrot.slane %v9014_v19, 1 }
 0x684   : > { %v8976_v40 = vor.u32 %v8975_v46, %v30314_v17  ;;  %v9023_v46 = vrot.slane %v8366_v45, 1 }
 0x686   : > { %v8981_v29 = vsel %vm1391_vm3, %v8976_v40, %v8980_v36  ;;  %v9290_v36 = vld [vmem:[#allocation2 + $0x30] sm:$0x80] }
 0x689   : > { %22410 = vmatmul.mubr.msk.bf16.gmra.mrb[44].mxu0 %vm8391_vm8, %v8933_v27  ;;  %v8992_v27 = vrot.slane %v8990_v51, 1  ;;  %v9024_v51 = vor.u32 %v9023_v46, %v30319_v39  ;;  %v9304_v46 = vld [vmem:[#allocation2 + $0xd8] sm:$0x80] }
 0x68a   : > { %22413 = vmatprep.mubr.msk.bf16.mxu0 %vm8391_vm8, %v8945_v32  ;;  %v8999_v32 = vrot.slane %v8342_v31, 1  ;;  %v8837_v31 = vld [vmem:[#allocation2 + $0x178] sm:$0x1] }
 0x68b   : > { %v8993_v43 = vsel %vm1391_vm3, %v8988_v63, %v8992_v27  ;;  %v9026_v6 = vshll.u32 %v8837_v31, 16  ;;  %v9333_v27 = vshrl.u32 %v9290_v36, 16 }
 0x68c   : > { %v9000_v11 = vor.u32 %v8999_v32, %v30317_v57  ;;  %v9294_v32 = vld [vmem:[#allocation2 + $0x60] sm:$0x80]  ;;  %v9369_v57 = vshrl.u32 %v9296_v15, 16  ;;  %v9314_v15 = vld [vmem:[#allocation2 + $0x150] sm:$0x80] }
 0x68d   : > { %v9028_v17 = vrot.slane %v9026_v6, 1  ;;  %v9335_v50 = vrot.slane %v9333_v27, 7  ;;  %v9357_v25 = vshrl.u32 %v9294_v32, 16  ;;  %v9310_v27 = vld [vmem:[#allocation2 + $0x120] sm:$0x80] }
 0x68e   : > { %v9005_v24 = vsel %vm1391_vm3, %v9000_v11, %v9004_v58  ;;  %v9371_v58 = vrot.slane %v9369_v57, 7 }
 0x68f   : > { %v9029_v63 = vsel %vm1391_vm3, %v9024_v51, %v9028_v17  ;;  %v9343_v37 = vsel %vm746_vm4, %v9335_v50, %v27135_v28  ;;  %v9359_v11 = vrot.slane %v9357_v25, 7  ;;  %v9306_v51 = vld [vmem:[#allocation2 + $0xf0] sm:$0x80]  ;;  %v9308_v17 = vld [vmem:[#allocation2 + $0x108] sm:$0x80]  ;;  %v9453_v50 = vshrl.u32 %v9310_v27, 16 }
 0x690   : > { %v9429_v36 = vshrl.u32 %v9306_v51, 16  ;;  %v9441_v54 = vshrl.u32 %v9308_v17, 16  ;;  %v9477_v25 = vshrl.u32 %v9314_v15, 16  ;;  %v10019_v17 = vld [vmem:[#allocation2 + $0x70] sm:$0x1] }
 0x691   : > { %22414 = vmatmul.mubr.msk.bf16.gmra.mrb[48].mxu0 %vm8391_vm8, %v8957_v38  ;;  %v9288_v38 = vld [vmem:[#allocation2 + $0x18] sm:$0x80]  ;;  %v9367_v28 = vsel %vm746_vm4, %v9359_v11, %v27162_v44  ;;  %v9318_v11 = vld [vmem:[#allocation2 + $0x180] sm:$0x80] }
 0x692   : > { %22417 = vmatprep.mubr.msk.bf16.mxu0 %vm8391_vm8, %v8969_v21  ;;  %v9017_v21 = vsel %vm1391_vm3, %v9012_v5, %v9016_v60  ;;  %v9321_v16 = vshrl.u32 %v9288_v38, 16  ;;  %v9300_v5 = vld [vmem:[#allocation2 + $0xa8] sm:$0x80]  ;;  %v9381_v60 = vshrl.u32 %v9298_v2, 16  ;;  %v9501_v2 = vshrl.u32 %v9318_v11, 16 }
 0x694   : > { %v9323_v40 = vrot.slane %v9321_v16, 7  ;;  %v9383_v31 = vrot.slane %v9381_v60, 7  ;;  %v9417_v16 = vshrl.u32 %v9304_v46, 16  ;;  %v30321_v60 = vshll.u32 %v27106_v4, 16  ;;  %v27498_v46 = vld [vmem:[#allocation2 + $0x68] sm:$0xff] }
 0x696   : > { %v9331_v45 = vsel %vm746_vm4, %v9323_v40, %v27126_v14  ;;  %v27404_v14 = vld [vmem:[%s25099_s0 + $0x50] sm:$0xff]   ;;  %v9391_v6 = vsel %vm746_vm4, %v9383_v31, %v27185_v7  ;;  %v9419_v39 = vrot.slane %v9417_v16, 7 }
 0x698   : > { %v9427_v7 = vsel %vm746_vm4, %v9419_v39, %v27224_v18  ;;  %v9455_v18 = vrot.slane %v9453_v50, 7  ;;  %v27525_v50 = vld [vmem:[#allocation2 + $0x98] sm:$0xff] }
 0x699   : > { %22418 = vmatmul.mubr.msk.bf16.gmra.mrb[52].mxu0 %vm8391_vm8, %v8981_v29  ;;  %v9347_v29 = vrot.slane %v9345_v26, 7 }
 0x69a   : > { %22421 = vmatprep.mubr.msk.bf16.mxu0 %vm8391_vm8, %v8993_v43  ;;  %v24748_v43 = vld [vmem:[%s25099_s0 + $0x48] sm:$0xff]  }
 0x69b   : > { %v9355_v19 = vsel %vm746_vm4, %v9347_v29, %v27157_v62  ;;  %v9379_v62 = vsel %vm746_vm4, %v9371_v58, %v27180_v47 }
 0x6a1   : > { %22422 = vmatmul.mubr.msk.bf16.gmra.mrb[56].mxu0 %vm8391_vm8, %v9005_v24  ;;  %v9302_v24 = vld [vmem:[#allocation2 + $0xc0] sm:$0x80] }
 0x6a2   : > { %22425 = vmatprep.mubr.msk.bf16.mxu0 %vm8391_vm8, %v9017_v21  ;;  %v9405_v21 = vshrl.u32 %v9302_v24, 16 }
 0x6a4   : > { %v9407_v47 = vrot.slane %v9405_v21, 7  ;;  %v27502_v21 = vld [vmem:[#allocation2 + $0x80] sm:$0xff] }
 0x6a6   : > { %v9415_v40 = vsel %vm746_vm4, %v9407_v47, %v27207_v53  ;;  %v10083_v47 = vshll.u32 %v27498_v46, 16 }
 0x6a9   : > { %22426 = vmatmul.mubr.msk.bf16.gmra.mrb[60].mxu0 %vm8391_vm8, %v9029_v63  ;;  %v9443_v63 = vrot.slane %v9441_v54, 7 }
 0x6aa   : > { %22433 = vmatprep.mubr.msk.bf16.mxu0 %vm8391_vm8, %v9331_v45  ;;  %v9312_v45 = vld [vmem:[#allocation2 + $0x138] sm:$0x80] }
 0x6ab   : > { %v9451_v53 = vsel %vm746_vm4, %v9443_v63, %v27246_v55  ;;  %v9465_v29 = vshrl.u32 %v9312_v45, 16  ;;  %v9479_v55 = vrot.slane %v9477_v25, 7  ;;  %v10088_v63 = vshll.u32 %v10019_v17, 16 }
 0x6ad   : > { %v9467_v32 = vrot.slane %v9465_v29, 7  ;;  %v9487_v58 = vsel %vm746_vm4, %v9479_v55, %v27272_v52  ;;  %v27529_v29 = vld [vmem:[#allocation2 + $0xb0] sm:$0xff] }
 0x6ae   : > { %v10119_v55 = vshll.u32 %v27529_v29, 16 }
 0x6b1   : > { %22434 = vmatmul.mubr.msk.bf16.vlgmr.msra.gmra.mrb[32].mxu0 %vm8391_vm8, %v9343_v37  ;;  %v9463_v37 = vsel %vm746_vm4, %v9455_v18, %v27251_v48  ;;  %v30320_v48 = vshrl.u32 %v27106_v4, 16  ;;  %v10093_v18 = vshrl.u32 %v27502_v21, 16 }
 0x6b2   : > { %22437 = vmatprep.mubr.msk.bf16.mxu0 %vm8391_vm8, %v9355_v19  ;;  %22466 = vmatpush3.bf16.msra.mxu0 %v27315_v30  ;;  %v9393_v30 = vshrl.u32 %v9300_v5, 16 }
 0x6b3   : > { %22467 = vmatprep.subr.bf16.mxu0 %v24748_v43  ;;  %v9507_v5 = vrot.slane %v30320_v48, 7 }
 0x6b4   : > { %v9395_v38 = vrot.slane %v9393_v30, 7  ;;  %v24750_v30 = vld [vmem:[%s25099_s0 + $0x58] sm:$0xff]  }
 0x6b6   : > { %22468 = vmatpush3.bf16.msra.mxu0 %v24748_v43  ;;  %v9403_v44 = vsel %vm746_vm4, %v9395_v38, %v27202_v23  ;;  %v9431_v23 = vrot.slane %v9429_v36, 7  ;;  %v9316_v43 = vld [vmem:[#allocation2 + $0x168] sm:$0x80]  ;;  %v10021_v36 = vld [vmem:[#allocation2 + $0x88] sm:$0x1] }
 0x6b7   : > { %22501 = vmatprep.subr.bf16.mxu0 %v27404_v14  ;;  %v9489_v19 = vshrl.u32 %v9316_v43, 16  ;;  %v10090_v43 = vrot.slane %v10088_v63, 1  ;;  %v10031_v63 = vld [vmem:[#allocation2 + $0x100] sm:$0x1] }
 0x6b8   : > { %v9439_v26 = vsel %vm746_vm4, %v9431_v23, %v27229_v42  ;;  %v9475_v42 = vsel %vm746_vm4, %v9467_v32, %v27268_v41  ;;  %v10085_v23 = vrot.slane %v10083_v47, 1  ;;  %v27533_v32 = vld [vmem:[%s25099_s0 + $0x70] sm:$0xff]  }
 0x6b9   : > { %22438 = vmatmul.mubr.msk.bf16.gmra.mrb[36].mxu0 %vm8391_vm8, %v9367_v28  ;;  %v9491_v57 = vrot.slane %v9489_v19, 7  ;;  %v9503_v28 = vrot.slane %v9501_v2, 7  ;;  %v10023_v19 = vld [vmem:[#allocation2 + $0xa0] sm:$0x1] }
 0x6ba   : > { %22441 = vmatprep.mubr.msk.bf16.mxu0 %vm8391_vm8, %v9379_v62  ;;  %v27447_v62 = vor.u32 %v30321_v60, %v9507_v5  ;;  %v10112_v2 = vshll.u32 %v10023_v19, 16  ;;  %v10121_v5 = vrot.slane %v10119_v55, 1  ;;  %v10105_v60 = vshrl.u32 %v27525_v50, 16 }
 0x6bb   : > { %v9499_v41 = vsel %vm746_vm4, %v9491_v57, %v27289_v35  ;;  %v24751_v35 = vld [vmem:[%s25099_s0 + $0x60] sm:$0xff]   ;;  %v10025_v57 = vld [vmem:[#allocation2 + $0xb8] sm:$0x1] }
 0x6bc   : > { %v9511_v52 = vsel %vm746_vm4, %v9503_v28, %v27447_v62  ;;  %v27555_v28 = vld [vmem:[#allocation2 + $0xc8] sm:$0xff] }
 0x6c1   : > { %22442 = vmatmul.mubr.msk.bf16.gmra.mrb[40].mxu0 %vm8391_vm8, %v9391_v6 }
 0x6c2   : > { %22445 = vmatprep.mubr.msk.bf16.mxu0 %vm8391_vm8, %v9403_v44 }
 0x6c9   : > { %22446 = vmatmul.mubr.msk.bf16.gmra.mrb[44].mxu0 %vm8391_vm8, %v9415_v40  ;;  %v10095_v40 = vshll.u32 %v27502_v21, 16 }
 0x6ca   : > { %22449 = vmatprep.mubr.msk.bf16.mxu0 %vm8391_vm8, %v9427_v7  ;;  %v24752_v7 = vld [vmem:[%s25099_s0 + $0x68] sm:$0xff]  }
 0x6cb   : > { %v10097_v45 = vrot.slane %v10095_v40, 1 }
 0x6cd   : > { %v27542_v25 = vor.u32 %v10097_v45, %v10093_v18  ;;  %v10033_v45 = vld [vmem:[#allocation2 + $0x118] sm:$0x1] }
 0x6d1   : > { %22450 = vmatmul.mubr.msk.bf16.gmra.mrb[48].mxu0 %vm8391_vm8, %v9439_v26  ;;  %v10100_v26 = vshll.u32 %v10021_v36, 16 }
 0x6d2   : > { %22453 = vmatprep.mubr.msk.bf16.mxu0 %vm8391_vm8, %v9451_v53  ;;  %v10081_v53 = vshrl.u32 %v27498_v46, 16 }
 0x6d4   : > { %v27537_v15 = vor.u32 %v10085_v23, %v10081_v53 }
 0x6d6   : > { %v10091_v11 = vsel %vm1391_vm3, %v27537_v15, %v10090_v43 }
 0x6d9   : > { %22454 = vmatmul.mubr.msk.bf16.gmra.mrb[52].mxu0 %vm8391_vm8, %v9463_v37  ;;  %v10107_v37 = vshll.u32 %v27525_v50, 16 }
 0x6da   : > { %22457 = vmatprep.mubr.msk.bf16.mxu0 %vm8391_vm8, %v9475_v42  ;;  %v10102_v42 = vrot.slane %v10100_v26, 1 }
 0x6dc   : > { %v10103_v48 = vsel %vm1391_vm3, %v27542_v25, %v10102_v42  ;;  %v10160_v42 = vshll.u32 %v10031_v63, 16 }
 0x6e1   : > { %22458 = vmatmul.mubr.msk.bf16.gmra.mrb[56].mxu0 %vm8391_vm8, %v9487_v58  ;;  %v10109_v58 = vrot.slane %v10107_v37, 1 }
 0x6e2   : > { %22461 = vmatprep.mubr.msk.bf16.mxu0 %vm8391_vm8, %v9499_v41  ;;  %v10124_v41 = vshll.u32 %v10025_v57, 16 }
 0x6e9   : > { %22462 = vmatmul.mubr.msk.bf16.gmra.mrb[60].mxu0 %vm8391_vm8, %v9511_v52  ;;  %v27559_v52 = vld [vmem:[#allocation2 + $0xe0] sm:$0xff] }
 0x6ea   : > { %22469 = vmatprep.mubr.msk.bf16.mxu0 %vm8391_vm8, %v27023_v13  ;;  %v10012_v13 = vld [vmem:[#allocation2 + $0x20] sm:$0xff] }
 0x6f1   : > { %22470 = vmatmul.mubr.msk.bf16.vlgmr.msra.gmra.mrb[32].mxu0 %vm8391_vm8, %v27028_v8  ;;  %v10047_v8 = vshll.u32 %v10012_v13, 16 }
 0x6f2   : > { %22473 = vmatprep.mubr.msk.bf16.mxu0 %vm8391_vm8, %v27038_v1  ;;  %22502 = vmatpush3.bf16.msra.mxu0 %v27404_v14  ;;  %v10013_v1 = vld [vmem:[#allocation2 + $0x28] sm:$0x1]  ;;  %v10017_v14 = vld [vmem:[#allocation2 + $0x58] sm:$0x1] }
 0x6f3   : > { %22503 = vmatprep.subr.bf16.mxu0 %v24750_v30  ;;  %v10076_v24 = vshll.u32 %v10017_v14, 16 }
 0x6f5   : > { %v10078_v51 = vrot.slane %v10076_v24, 1  ;;  %v10129_v24 = vshrl.u32 %v27555_v28, 16 }
 0x6f6   : > { %22504 = vmatpush3.bf16.msra.mxu0 %v24750_v30  ;;  %v10117_v30 = vshrl.u32 %v27529_v29, 16 }
 0x6f7   : > { %22537 = vmatprep.subr.bf16.mxu0 %v24751_v35 }
 0x6f9   : > { %22474 = vmatmul.mubr.msk.bf16.gmra.mrb[36].mxu0 %vm8391_vm8, %v27043_v33  ;;  %v10049_v33 = vrot.slane %v10047_v8, 1  ;;  %v10131_v8 = vshll.u32 %v27555_v28, 16 }
 0x6fa   : > { %22477 = vmatprep.mubr.msk.bf16.mxu0 %vm8391_vm8, %v27048_v3  ;;  %v10052_v3 = vshll.u32 %v10013_v1, 16  ;;  %v27569_v1 = vor.u32 %v10121_v5, %v10117_v30 }
 0x701   : > { %22478 = vmatmul.mubr.msk.bf16.gmra.mrb[40].mxu0 %vm8391_vm8, %v27053_v9  ;;  %v27483_v9 = vld [vmem:[#allocation2 + $0x38] sm:$0xff] }
 0x702   : > { %22481 = vmatprep.mubr.msk.bf16.mxu0 %vm8391_vm8, %v27058_v61  ;;  %v27487_v61 = vld [vmem:[#allocation2 + $0x50] sm:$0xff]  ;;  %v10057_v6 = vshrl.u32 %v27483_v9, 16 }
 0x703   : > { %v10069_v44 = vshrl.u32 %v27487_v61, 16 }
 0x709   : > { %22482 = vmatmul.mubr.msk.bf16.gmra.mrb[44].mxu0 %vm8391_vm8, %v27063_v59  ;;  %v10045_v59 = vshrl.u32 %v10012_v13, 16  ;;  %v10114_v13 = vrot.slane %v10112_v2, 1 }
 0x70a   : > { %22485 = vmatprep.mubr.msk.bf16.mxu0 %vm8391_vm8, %v27068_v20  ;;  %v10059_v20 = vshll.u32 %v27483_v9, 16 }
 0x711   : > { %22486 = vmatmul.mubr.msk.bf16.gmra.mrb[48].mxu0 %vm8391_vm8, %v27073_v12  ;;  %v10050_v12 = vor.u32 %v10049_v33, %v10045_v59  ;;  %v10126_v33 = vrot.slane %v10124_v41, 1  ;;  %v10143_v59 = vshll.u32 %v27559_v52, 16 }
 0x712   : > { %22489 = vmatprep.mubr.msk.bf16.mxu0 %vm8391_vm8, %v27078_v49  ;;  %v10054_v49 = vrot.slane %v10052_v3, 1  ;;  %v10027_v3 = vld [vmem:[#allocation2 + $0xd0] sm:$0x1] }
 0x713   : > { %v10136_v14 = vshll.u32 %v10027_v3, 16 }
 0x715   : > { %v10138_v36 = vrot.slane %v10136_v14, 1  ;;  %v10037_v14 = vld [vmem:[#allocation2 + $0x148] sm:$0x1] }
 0x716   : > { %v10196_v63 = vshll.u32 %v10037_v14, 16 }
 0x719   : > { %22490 = vmatmul.mubr.msk.bf16.gmra.mrb[52].mxu0 %vm8391_vm8, %v27083_v22  ;;  %v10015_v22 = vld [vmem:[#allocation2 + $0x40] sm:$0x1] }
 0x71a   : > { %22493 = vmatprep.mubr.msk.bf16.mxu0 %vm8391_vm8, %v27092_v34  ;;  %v10071_v34 = vshll.u32 %v27487_v61, 16  ;;  %v10064_v31 = vshll.u32 %v10015_v22, 16  ;;  %v10133_v22 = vrot.slane %v10131_v8, 1 }
 0x71c   : > { %v10073_v38 = vrot.slane %v10071_v34, 1  ;;  %v10066_v16 = vrot.slane %v10064_v31, 1  ;;  %v10145_v31 = vrot.slane %v10143_v59, 1  ;;  %v27590_v17 = vor.u32 %v10133_v22, %v10129_v24 }
 0x71e   : > { %v27512_v39 = vor.u32 %v10073_v38, %v10069_v44  ;;  %v27581_v38 = vld [vmem:[#allocation2 + $0xf8] sm:$0xff]  ;;  %v10139_v26 = vsel %vm1391_vm3, %v27590_v17, %v10138_v36 }
 0x71f   : > { %v10153_v2 = vshrl.u32 %v27581_v38, 16 }
 0x720   : > { %v10079_v27 = vsel %vm1391_vm3, %v27512_v39, %v10078_v51  ;;  %v10141_v51 = vshrl.u32 %v27559_v52, 16 }
 0x721   : > { %22494 = vmatmul.mubr.msk.bf16.gmra.mrb[56].mxu0 %vm8391_vm8, %v27097_v56  ;;  %v10061_v56 = vrot.slane %v10059_v20, 1 }
 0x722   : > { %22497 = vmatprep.mubr.msk.bf16.mxu0 %vm8391_vm8, %v27110_v10  ;;  %v10055_v10 = vsel %vm1391_vm3, %v10050_v12, %v10054_v49  ;;  %v10029_v12 = vld [vmem:[#allocation2 + $0xe8] sm:$0x1] }
 0x729   : > { %22498 = vmatmul.mubr.msk.bf16.gmra.mrb[60].mxu0 %vm8391_vm8, %v27106_v4  ;;  %v27507_v4 = vor.u32 %v10061_v56, %v10057_v6  ;;  %v10127_v56 = vsel %vm1391_vm3, %v27569_v1, %v10126_v33 }
 0x72a   : > { %22505 = vmatprep.mubr.msk.bf16.mxu0 %vm8391_vm8, %v10055_v10  ;;  %v10148_v10 = vshll.u32 %v10029_v12, 16 }
 0x72b   : > { %v10067_v54 = vsel %vm1391_vm3, %v27507_v4, %v10066_v16  ;;  %v27585_v16 = vld [vmem:[#allocation2 + $0x110] sm:$0xff] }
 0x72c   : > { %v10150_v23 = vrot.slane %v10148_v10, 1  ;;  %v10165_v5 = vshrl.u32 %v27585_v16, 16 }
 0x731   : > { %22506 = vmatmul.mubr.msk.bf16.vlgmr.msra.gmra.mrb[32].mxu0 %vm8391_vm8, %v10067_v54  ;;  %v27595_v54 = vor.u32 %v10145_v31, %v10141_v51 }
 0x732   : > { %22509 = vmatprep.mubr.msk.bf16.mxu0 %vm8391_vm8, %v10079_v27  ;;  %22538 = vmatpush3.bf16.msra.mxu0 %v24751_v35  ;;  %v27564_v35 = vor.u32 %v10109_v58, %v10105_v60  ;;  %v30202_v27 = vshll.u32 %v27585_v16, 16  ;;  %v27607_v58 = vld [vmem:[#allocation2 + $0x128] sm:$0xff] }
 0x733   : > { %22539 = vmatprep.subr.bf16.mxu0 %v24752_v7  ;;  %v10151_v19 = vsel %vm1391_vm3, %v27595_v54, %v10150_v23  ;;  %v30200_v33 = vshll.u32 %v27607_v58, 16 }
 0x734   : > { %v10115_v49 = vsel %vm1391_vm3, %v27564_v35, %v10114_v13  ;;  %v10169_v57 = vrot.slane %v30202_v27, 1  ;;  %v10162_v13 = vrot.slane %v10160_v42, 1  ;;  %v10494_v27 = vld [vmem:[#allocation2 + $0x30] sm:$0x80] }
 0x735   : > { %v10181_v31 = vrot.slane %v30200_v33, 1 }
 0x736   : > { %22540 = vmatpush3.bf16.msra.mxu0 %v24752_v7  ;;  %v10155_v7 = vshll.u32 %v27581_v38, 16  ;;  %v27621_v3 = vor.u32 %v10169_v57, %v10165_v5 }
 0x737   : > { %22573 = vmatprep.subr.bf16.mxu0 %v27533_v32 }
 0x738   : > { %v10157_v43 = vrot.slane %v10155_v7, 1 }
 0x739   : > { %22510 = vmatmul.mubr.msk.bf16.gmra.mrb[36].mxu0 %vm8391_vm8, %v10091_v11  ;;  %v10172_v11 = vshll.u32 %v10033_v45, 16  ;;  %v27633_v45 = vld [vmem:[#allocation2 + $0x158] sm:$0xff] }
 0x73a   : > { %22513 = vmatprep.mubr.msk.bf16.mxu0 %vm8391_vm8, %v10103_v48  ;;  %v27611_v48 = vld [vmem:[#allocation2 + $0x140] sm:$0xff]  ;;  %v27616_v41 = vor.u32 %v10157_v43, %v10153_v2  ;;  %v27637_v43 = vld [vmem:[#allocation2 + $0x170] sm:$0xff] }
 0x73b   : > { %v10174_v12 = vrot.slane %v10172_v11, 1  ;;  %v30198_v22 = vshll.u32 %v27611_v48, 16  ;;  %v30199_v42 = vshrl.u32 %v27611_v48, 16  ;;  %v30201_v11 = vshll.u32 %v27633_v45, 16 }
 0x73c   : > { %v30203_v14 = vshll.u32 %v27637_v43, 16  ;;  %v30205_v33 = vshrl.u32 %v27637_v43, 16 }
 0x73d   : > { %v10175_v36 = vsel %vm1391_vm3, %v27621_v3, %v10174_v12  ;;  %v10193_v23 = vrot.slane %v30198_v22, 1  ;;  %v10198_v12 = vrot.slane %v10196_v63, 1  ;;  %v10205_v22 = vrot.slane %v30201_v11, 1  ;;  %v10043_v11 = vld [vmem:[#allocation2 + $0x190] sm:$0x1] }
 0x741   : > { %22514 = vmatmul.mubr.msk.bf16.gmra.mrb[40].mxu0 %vm8391_vm8, %v10115_v49  ;;  %v10035_v49 = vld [vmem:[#allocation2 + $0x130] sm:$0x1] }
 0x742   : > { %22517 = vmatprep.mubr.msk.bf16.mxu0 %vm8391_vm8, %v10127_v56  ;;  %v10163_v56 = vsel %vm1391_vm3, %v27616_v41, %v10162_v13  ;;  %v10184_v10 = vshll.u32 %v10035_v49, 16  ;;  %v27647_v13 = vor.u32 %v10193_v23, %v30199_v42  ;;  %v10039_v49 = vld [vmem:[#allocation2 + $0x160] sm:$0x1]  ;;  %v10217_v23 = vrot.slane %v30203_v14, 1 }
 0x743   : > { %v10201_v42 = vshrl.u32 %v27633_v45, 16 }
 0x744   : > { %v10186_v57 = vrot.slane %v10184_v10, 1  ;;  %v10199_v10 = vsel %vm1391_vm3, %v27647_v13, %v10198_v12 }
 0x749   : > { %22518 = vmatmul.mubr.msk.bf16.gmra.mrb[44].mxu0 %vm8391_vm8, %v10139_v26  ;;  %v30204_v26 = vshrl.u32 %v27607_v58, 16 }
 0x74a   : > { %22521 = vmatprep.mubr.msk.bf16.mxu0 %vm8391_vm8, %v10151_v19 }
 0x74b   : > { %v27642_v19 = vor.u32 %v10181_v31, %v30204_v26  ;;  %v10208_v31 = vshll.u32 %v10039_v49, 16  ;;  %v10527_v26 = vshrl.u32 %v10494_v27, 16  ;;  %v10545_v27 = vrot.slane %v10069_v44, 7  ;;  %v10500_v44 = vld [vmem:[#allocation2 + $0x78] sm:$0x80] }
 0x74d   : > { %v10210_v49 = vrot.slane %v10208_v31, 1 }
 0x751   : > { %22522 = vmatmul.mubr.msk.bf16.gmra.mrb[48].mxu0 %vm8391_vm8, %v10163_v56  ;;  %v10041_v56 = vld [vmem:[#allocation2 + $0x178] sm:$0x1] }
 0x752   : > { %22525 = vmatprep.mubr.msk.bf16.mxu0 %vm8391_vm8, %v10175_v36  ;;  %v10187_v36 = vsel %vm1391_vm3, %v27642_v19, %v10186_v57  ;;  %v10220_v63 = vshll.u32 %v10041_v56, 16  ;;  %v27664_v57 = vor.u32 %v10205_v22, %v10201_v42  ;;  %v10533_v22 = vrot.slane %v10057_v6, 7 }
 0x754   : > { %v10222_v12 = vrot.slane %v10220_v63, 1  ;;  %v10211_v56 = vsel %vm1391_vm3, %v27664_v57, %v10210_v49  ;;  %v10536_v63 = vor.u32 %v10533_v22, %v10059_v20  ;;  %v10498_v49 = vld [vmem:[#allocation2 + $0x60] sm:$0x80]  ;;  %v24754_v22 = vld [vmem:[%s25099_s0 + $0x78] sm:$0xff]  }
 0x759   : > { %22526 = vmatmul.mubr.msk.bf16.gmra.mrb[52].mxu0 %vm8391_vm8, %v10187_v36  ;;  %v27668_v36 = vor.u32 %v10217_v23, %v30205_v33  ;;  %v10529_v23 = vrot.slane %v10527_v26, 7  ;;  %v10496_v33 = vld [vmem:[#allocation2 + $0x48] sm:$0x80]  ;;  %v10557_v26 = vrot.slane %v10081_v53, 7  ;;  %v10569_v53 = vrot.slane %v10093_v18, 7 }
 0x75a   : > { %22529 = vmatprep.mubr.msk.bf16.mxu0 %vm8391_vm8, %v10199_v10  ;;  %v10232_v10 = vshll.u32 %v10043_v11, 16 }
 0x75b   : > { %v10223_v14 = vsel %vm1391_vm3, %v27668_v36, %v10222_v12  ;;  %v10537_v6 = vsel %vm746_vm4, %v10529_v23, %v10536_v63  ;;  %v10548_v12 = vor.u32 %v10545_v27, %v10071_v34  ;;  %v10563_v23 = vshrl.u32 %v10500_v44, 16 }
 0x75c   : > { %v10234_v31 = vrot.slane %v10232_v10, 1  ;;  %v10502_v10 = vld [vmem:[#allocation2 + $0x90] sm:$0x80]  ;;  %v10581_v34 = vrot.slane %v10105_v60, 7 }
 0x75e   : > { %v10235_v11 = vsel %vm1391_vm3, %v27130_v0, %v10234_v31  ;;  %v10584_v27 = vor.u32 %v10581_v34, %v10107_v37 }
 0x761   : > { %22530 = vmatmul.mubr.msk.bf16.gmra.mrb[56].mxu0 %vm8391_vm8, %v10211_v56  ;;  %v10539_v56 = vshrl.u32 %v10496_v33, 16  ;;  %v10560_v33 = vor.u32 %v10557_v26, %v10083_v47  ;;  %v27704_v47 = vld [vmem:[%s25099_s0 + $0x80] sm:$0xff]  }
 0x762   : > { %22533 = vmatprep.mubr.msk.bf16.mxu0 %vm8391_vm8, %v10223_v14  ;;  %v10551_v14 = vshrl.u32 %v10498_v49, 16  ;;  %v10575_v49 = vshrl.u32 %v10502_v10, 16  ;;  %v10508_v10 = vld [vmem:[#allocation2 + $0xd8] sm:$0x80] }
 0x763   : > { %v10541_v20 = vrot.slane %v10539_v56, 7  ;;  %v10572_v56 = vor.u32 %v10569_v53, %v10095_v40 }
 0x764   : > { %v10553_v0 = vrot.slane %v10551_v14, 7  ;;  %v10577_v18 = vrot.slane %v10575_v49, 7  ;;  %v10506_v14 = vld [vmem:[#allocation2 + $0xc0] sm:$0x80] }
 0x765   : > { %v10549_v31 = vsel %vm746_vm4, %v10541_v20, %v10548_v12  ;;  %v10599_v40 = vshrl.u32 %v10506_v14, 16  ;;  %v10605_v12 = vrot.slane %v10129_v24, 7  ;;  %v30322_v14 = vshrl.u32 %v27607_v58, 16 }
 0x766   : > { %v10561_v63 = vsel %vm746_vm4, %v10553_v0, %v10560_v33  ;;  %v10585_v20 = vsel %vm746_vm4, %v10577_v18, %v10584_v27  ;;  %v10641_v27 = vrot.slane %v10165_v5, 7  ;;  %v10518_v5 = vld [vmem:[#allocation2 + $0x150] sm:$0x80] }
 0x767   : > { %v10601_v33 = vrot.slane %v10599_v40, 7  ;;  %v10608_v44 = vor.u32 %v10605_v12, %v10131_v8  ;;  %v10516_v12 = vld [vmem:[#allocation2 + $0x138] sm:$0x80] }
 0x769   : > { %22534 = vmatmul.mubr.msk.bf16.gmra.mrb[60].mxu0 %vm8391_vm8, %v10235_v11  ;;  %v10565_v11 = vrot.slane %v10563_v23, 7  ;;  %v10617_v23 = vrot.slane %v10141_v51, 7  ;;  %v10609_v24 = vsel %vm746_vm4, %v10601_v33, %v10608_v44  ;;  %v10514_v51 = vld [vmem:[#allocation2 + $0x120] sm:$0x80]  ;;  %v30325_v33 = vshrl.u32 %v27611_v48, 16 }
 0x76a   : > { %22541 = vmatprep.mubr.msk.bf16.mxu0 %vm8391_vm8, %v10537_v6  ;;  %v10504_v6 = vld [vmem:[#allocation2 + $0xa8] sm:$0x80] }
 0x76b   : > { %v10573_v60 = vsel %vm746_vm4, %v10565_v11, %v10572_v56  ;;  %v10587_v26 = vshrl.u32 %v10504_v6, 16  ;;  %v10620_v8 = vor.u32 %v10617_v23, %v10143_v59  ;;  %v10512_v11 = vld [vmem:[#allocation2 + $0x108] sm:$0x80]  ;;  %v10647_v6 = vshrl.u32 %v10514_v51, 16 }
 0x76c   : > { %v10635_v18 = vshrl.u32 %v10512_v11, 16  ;;  %v10653_v59 = vrot.slane %v30322_v14, 7  ;;  %v10665_v44 = vrot.slane %v30325_v33, 7  ;;  %v30326_v23 = vshll.u32 %v27611_v48, 16  ;;  %v24756_v33 = vld [vmem:[%s25099_s0 + $0x88] sm:$0xff]  }
 0x76d   : > { %v10589_v37 = vrot.slane %v10587_v26, 7 }
 0x771   : > { %22542 = vmatmul.mubr.msk.bf16.vlgmr.msra.gmra.mrb[32].mxu0 %vm8391_vm8, %v10549_v31  ;;  %v10611_v31 = vshrl.u32 %v10508_v10, 16 }
 0x772   : > { %22545 = vmatprep.mubr.msk.bf16.mxu0 %vm8391_vm8, %v10561_v63  ;;  %22574 = vmatpush3.bf16.msra.mxu0 %v27533_v32  ;;  %v10593_v32 = vrot.slane %v10117_v30, 7  ;;  %v10510_v30 = vld [vmem:[#allocation2 + $0xf0] sm:$0x80] }
 0x773   : > { %22575 = vmatprep.subr.bf16.mxu0 %v24754_v22  ;;  %v10623_v53 = vshrl.u32 %v10510_v30, 16  ;;  %v10613_v63 = vrot.slane %v10611_v31, 7  ;;  %v10671_v30 = vshrl.u32 %v10518_v5, 16 }
 0x774   : > { %v10596_v0 = vor.u32 %v10593_v32, %v10119_v55  ;;  %v10629_v55 = vrot.slane %v10153_v2, 7  ;;  %v10649_v32 = vrot.slane %v10647_v6, 7  ;;  %v10524_v6 = vld [vmem:[#allocation2 + $0x198] sm:$0x80] }
 0x775   : > { %v10625_v49 = vrot.slane %v10623_v53, 7  ;;  %v10621_v56 = vsel %vm746_vm4, %v10613_v63, %v10620_v8  ;;  %v10673_v53 = vrot.slane %v10671_v30, 7  ;;  %v10520_v8 = vld [vmem:[#allocation2 + $0x168] sm:$0x80]  ;;  %v11229_v30 = vld [vmem:[#allocation2 + $0xb8] sm:$0x1] }
 0x776   : > { %22576 = vmatpush3.bf16.msra.mxu0 %v24754_v22  ;;  %v10597_v22 = vsel %vm746_vm4, %v10589_v37, %v10596_v0  ;;  %v10632_v34 = vor.u32 %v10629_v55, %v10155_v7  ;;  %v30323_v7 = vshll.u32 %v27585_v16, 16  ;;  %v10659_v0 = vshrl.u32 %v10516_v12, 16 }
 0x777   : > { %22609 = vmatprep.subr.bf16.mxu0 %v27704_v47  ;;  %v30327_v55 = vshll.u32 %v27633_v45, 16  ;;  %v10683_v51 = vshrl.u32 %v10520_v8, 16 }
 0x778   : > { %v10633_v2 = vsel %vm746_vm4, %v10625_v49, %v10632_v34  ;;  %v10644_v26 = vor.u32 %v10641_v27, %v30323_v7  ;;  %v10661_v31 = vrot.slane %v10659_v0, 7  ;;  %v10522_v49 = vld [vmem:[#allocation2 + $0x180] sm:$0x80] }
 0x779   : > { %22546 = vmatmul.mubr.msk.bf16.gmra.mrb[36].mxu0 %vm8391_vm8, %v10573_v60  ;;  %v10637_v60 = vrot.slane %v10635_v18, 7  ;;  %v27759_v34 = vld [vmem:[#allocation2 + $0x1a0] sm:$0xff]  ;;  %v10695_v27 = vshrl.u32 %v10522_v49, 16  ;;  %v10685_v14 = vrot.slane %v10683_v51, 7 }
 0x77a   : > { %22549 = vmatprep.mubr.msk.bf16.mxu0 %vm8391_vm8, %v10585_v20  ;;  %v30324_v20 = vshll.u32 %v27607_v58, 16 }
 0x77b   : > { %v10645_v37 = vsel %vm746_vm4, %v10637_v60, %v10644_v26  ;;  %v10697_v7 = vrot.slane %v10695_v27, 7  ;;  %v10707_v26 = vshrl.u32 %v10524_v6, 16 }
 0x77c   : > { %v10656_v40 = vor.u32 %v10653_v59, %v30324_v20  ;;  %v30329_v59 = vshll.u32 %v27637_v43, 16  ;;  %v10714_v20 = vshll.u32 %v27759_v34, 16 }
 0x77d   : > { %v10705_v12 = vsel %vm746_vm4, %v10697_v7, %v27447_v62  ;;  %v10709_v5 = vrot.slane %v10707_v26, 7  ;;  %v11219_v62 = vld [vmem:[#allocation2 + $0x40] sm:$0x1] }
 0x77e   : > { %v10657_v10 = vsel %vm746_vm4, %v10649_v32, %v10656_v40 }
 0x781   : > { %22550 = vmatmul.mubr.msk.bf16.gmra.mrb[40].mxu0 %vm8391_vm8, %v10597_v22  ;;  %v10677_v22 = vrot.slane %v10201_v42, 7 }
 0x782   : > { %22553 = vmatprep.mubr.msk.bf16.mxu0 %vm8391_vm8, %v10609_v24  ;;  %v10668_v24 = vor.u32 %v10665_v44, %v30326_v23  ;;  %v11318_v23 = vshll.u32 %v11229_v30, 16 }
 0x783   : > { %v10680_v63 = vor.u32 %v10677_v22, %v30327_v55  ;;  %v11231_v22 = vld [vmem:[#allocation2 + $0xd0] sm:$0x1]  ;;  %v11233_v55 = vld [vmem:[#allocation2 + $0xe8] sm:$0x1] }
 0x784   : > { %v10669_v11 = vsel %vm746_vm4, %v10661_v31, %v10668_v24  ;;  %v11330_v24 = vshll.u32 %v11231_v22, 16  ;;  %v11342_v49 = vshll.u32 %v11233_v55, 16 }
 0x785   : > { %v10681_v18 = vsel %vm746_vm4, %v10673_v53, %v10680_v63  ;;  %v11235_v63 = vld [vmem:[#allocation2 + $0x100] sm:$0x1] }
 0x786   : > { %v11332_v53 = vrot.slane %v11330_v24, 1 }
 0x789   : > { %22554 = vmatmul.mubr.msk.bf16.gmra.mrb[44].mxu0 %vm8391_vm8, %v10621_v56  ;;  %v30328_v56 = vshrl.u32 %v27637_v43, 16 }
 0x78a   : > { %22557 = vmatprep.mubr.msk.bf16.mxu0 %vm8391_vm8, %v10633_v2  ;;  %v10711_v2 = vshrl.u32 %v27759_v34, 16 }
 0x78b   : > { %v10689_v42 = vrot.slane %v30328_v56, 7  ;;  %v11237_v56 = vld [vmem:[#allocation2 + $0x118] sm:$0x1] }
 0x78c   : > { %v10713_v32 = vrot.slane %v10711_v2, 7  ;;  %v11366_v27 = vshll.u32 %v11237_v56, 16 }
 0x78d   : > { %v10692_v60 = vor.u32 %v10689_v42, %v30329_v59  ;;  %v11239_v42 = vld [vmem:[#allocation2 + $0x130] sm:$0x1]  ;;  %v11241_v59 = vld [vmem:[#allocation2 + $0x148] sm:$0x1] }
 0x78e   : > { %v11378_v6 = vshll.u32 %v11239_v42, 16  ;;  %v11390_v26 = vshll.u32 %v11241_v59, 16 }
 0x78f   : > { %v10693_v40 = vsel %vm746_vm4, %v10685_v14, %v10692_v60  ;;  %v11243_v60 = vld [vmem:[#allocation2 + $0x160] sm:$0x1] }
 0x790   : > { %v11380_v14 = vrot.slane %v11378_v6, 1 }
 0x791   : > { %22558 = vmatmul.mubr.msk.bf16.gmra.mrb[48].mxu0 %vm8391_vm8, %v10645_v37  ;;  %v10716_v37 = vor.u32 %v10714_v20, %v10713_v32  ;;  %v11402_v32 = vshll.u32 %v11243_v60, 16 }
 0x792   : > { %22561 = vmatprep.mubr.msk.bf16.mxu0 %vm8391_vm8, %v10657_v10 }
 0x793   : > { %v10717_v0 = vsel %vm746_vm4, %v10709_v5, %v10716_v37  ;;  %v11245_v5 = vld [vmem:[#allocation2 + $0x178] sm:$0x1] }
 0x799   : > { %22562 = vmatmul.mubr.msk.bf16.gmra.mrb[52].mxu0 %vm8391_vm8, %v10669_v11  ;;  %v11354_v11 = vshll.u32 %v11235_v63, 16 }
 0x79a   : > { %22565 = vmatprep.mubr.msk.bf16.mxu0 %vm8391_vm8, %v10681_v18 }
 0x79b   : > { %v11356_v51 = vrot.slane %v11354_v11, 1 }
 0x7a1   : > { %22566 = vmatmul.mubr.msk.bf16.gmra.mrb[56].mxu0 %vm8391_vm8, %v10693_v40  ;;  %v11392_v40 = vrot.slane %v11390_v26, 1 }
 0x7a2   : > { %22569 = vmatprep.mubr.msk.bf16.mxu0 %vm8391_vm8, %v10705_v12  ;;  %v11404_v12 = vrot.slane %v11402_v32, 1 }
 0x7a9   : > { %22570 = vmatmul.mubr.msk.bf16.gmra.mrb[60].mxu0 %vm8391_vm8, %v10717_v0  ;;  %v11247_v0 = vld [vmem:[#allocation2 + $0x190] sm:$0x1] }
 0x7aa   : > { %22577 = vmatprep.mubr.msk.bf16.mxu0 %vm8391_vm8, %v27483_v9  ;;  %v11258_v9 = vshll.u32 %v11219_v62, 16  ;;  %v11414_v62 = vshll.u32 %v11245_v5, 16 }
 0x7b1   : > { %22578 = vmatmul.mubr.msk.bf16.vlgmr.msra.gmra.mrb[32].mxu0 %vm8391_vm8, %v27487_v61  ;;  %v24828_v61 = vld [vmem:[#allocation2 + $0x188] sm:$0xff] }
 0x7b2   : > { %22581 = vmatprep.mubr.msk.bf16.mxu0 %vm8391_vm8, %v27498_v46  ;;  %22610 = vmatpush3.bf16.msra.mxu0 %v27704_v47  ;;  %v11260_v46 = vrot.slane %v11258_v9, 1 }
 0x7b3   : > { %22611 = vmatprep.subr.bf16.mxu0 %v24756_v33 }
 0x7b6   : > { %22612 = vmatpush3.bf16.msra.mxu0 %v24756_v33  ;;  %v11393_v33 = vsel %vm1391_vm3, %v27647_v13, %v11392_v40  ;;  %v11435_v13 = vrot.slane %v10714_v20, 1  ;;  %v24757_v20 = vld [vmem:[%s25105_s19 + $0x14] sm:$0xff]  }
 0x7b7   : > { %22645 = vmatprep.subr.bf16.mxu1 %v24757_v20 }
 0x7b8   : > { %22646 = vmatpush3.bf16.msra.mxu1 %v24757_v20 }
 0x7b9   : > { %22582 = vmatmul.mubr.msk.bf16.gmra.mrb[36].mxu0 %vm8391_vm8, %v27502_v21  ;;  %v11221_v21 = vld [vmem:[#allocation2 + $0x58] sm:$0x1] }
 0x7ba   : > { %22585 = vmatprep.mubr.msk.bf16.mxu0 %vm8391_vm8, %v27525_v50  ;;  %v11223_v50 = vld [vmem:[#allocation2 + $0x70] sm:$0x1] }
 0x7c1   : > { %22586 = vmatmul.mubr.msk.bf16.gmra.mrb[40].mxu0 %vm8391_vm8, %v27529_v29  ;;  %v11270_v29 = vshll.u32 %v11221_v21, 16  ;;  %v11416_v21 = vrot.slane %v11414_v62, 1 }
 0x7c2   : > { %22589 = vmatprep.mubr.msk.bf16.mxu0 %vm8391_vm8, %v27555_v28  ;;  %v11261_v28 = vsel %vm1391_vm3, %v27507_v4, %v11260_v46  ;;  %v11249_v46 = vld [vmem:[#allocation2 + $0x1a8] sm:$0x1] }
 0x7c9   : > { %22590 = vmatmul.mubr.msk.bf16.gmra.mrb[44].mxu0 %vm8391_vm8, %v27559_v52  ;;  %v11282_v52 = vshll.u32 %v11223_v50, 16 }
 0x7ca   : > { %22593 = vmatprep.mubr.msk.bf16.mxu0 %vm8391_vm8, %v27581_v38  ;;  %v11272_v38 = vrot.slane %v11270_v29, 1 }
 0x7d1   : > { %22594 = vmatmul.mubr.msk.bf16.gmra.mrb[48].mxu0 %vm8391_vm8, %v27585_v16  ;;  %v11284_v16 = vrot.slane %v11282_v52, 1  ;;  %v11417_v52 = vsel %vm1391_vm3, %v27668_v36, %v11416_v21  ;;  %v24759_v36 = vld [vmem:[%s25105_s19 + $0x24] ss:$0 sps:$4 sm:$0xff]  }
 0x7d2   : > { %22597 = vmatprep.mubr.msk.bf16.mxu0 %vm8391_vm8, %v27607_v58  ;;  %v11225_v58 = vld [vmem:[#allocation2 + $0x88] sm:$0x1] }
 0x7d3   : > { %v11285_v47 = vsel %vm1391_vm3, %v27537_v15, %v11284_v16  ;;  %v11320_v15 = vrot.slane %v11318_v23, 1 }
 0x7d5   : > { %v11321_v8 = vsel %vm1391_vm3, %v27569_v1, %v11320_v15  ;;  %v11357_v1 = vsel %vm1391_vm3, %v27616_v41, %v11356_v51  ;;  %v11246_v41 = vld [vmem:[#allocation2 + $0x188] sm:$0xff]  ;;  %v27887_v51 = vld [vmem:[%s25105_s19] sm:$0xff]  }
 0x7d6   : > { %v11421_v37 = vshll.u32 %v11246_v41, 16  ;;  %v27881_v15 = vld [vmem:[#allocation2 + $0x8] sm:$0xff] }
 0x7d7   : > { %22651 = vmatprep.mubr.msk.bf16.mxu1 %vm12150_vm10, %v27881_v15 }
 0x7d8   : > { %v11423_v9 = vrot.slane %v11421_v37, 1 }
 0x7d9   : > { %22598 = vmatmul.mubr.msk.bf16.gmra.mrb[52].mxu0 %vm8391_vm8, %v27611_v48  ;;  %v11227_v48 = vld [vmem:[#allocation2 + $0xa0] sm:$0x1] }
 0x7da   : > { %22601 = vmatprep.mubr.msk.bf16.mxu0 %vm8391_vm8, %v27633_v45  ;;  %v11273_v45 = vsel %vm1391_vm3, %v27512_v39, %v11272_v38  ;;  %v11306_v44 = vshll.u32 %v11227_v48, 16  ;;  %v11436_v38 = vor.u32 %v11435_v13, %v10711_v2  ;;  %v24758_v48 = vld [vmem:[%s25105_s19 + $0x1c] sm:$0xff]  }
 0x7db   : > { %22647 = vmatprep.subr.bf16.mxu1 %v24758_v48 }
 0x7dc   : > { %v11308_v10 = vrot.slane %v11306_v44, 1  ;;  %22648 = vmatpush3.bf16.msra.mxu1 %v24758_v48 }
 0x7dd   : > { %24620 = vmatprep.subr.msk.bf16.mxu1 %vm4673_vm5, %v24759_v36 }
 0x7de   : > { %v11309_v39 = vsel %vm1391_vm3, %v27564_v35, %v11308_v10  ;;  %v11344_v35 = vrot.slane %v11342_v49, 1 }
 0x7e0   : > { %v11345_v18 = vsel %vm1391_vm3, %v27595_v54, %v11344_v35  ;;  %v11381_v54 = vsel %vm1391_vm3, %v27642_v19, %v11380_v14  ;;  %v11426_v19 = vshll.u32 %v11247_v0, 16 }
 0x7e1   : > { %22602 = vmatmul.mubr.msk.bf16.gmra.mrb[56].mxu0 %vm8391_vm8, %v27637_v43  ;;  %v11294_v43 = vshll.u32 %v11225_v58, 16 }
 0x7e2   : > { %22605 = vmatprep.mubr.msk.bf16.mxu0 %vm8391_vm8, %v24828_v61  ;;  %v11419_v61 = vshrl.u32 %v11246_v41, 16  ;;  %v11428_v29 = vrot.slane %v11426_v19, 1 }
 0x7e3   : > { %v11296_v4 = vrot.slane %v11294_v43, 1 }
 0x7e4   : > { %v11424_v50 = vor.u32 %v11423_v9, %v11419_v61 }
 0x7e5   : > { %v11297_v31 = vsel %vm1391_vm3, %v27542_v25, %v11296_v4  ;;  %v11333_v25 = vsel %vm1391_vm3, %v27590_v17, %v11332_v53  ;;  %v11368_v17 = vrot.slane %v11366_v27, 1 }
 0x7e7   : > { %v11369_v7 = vsel %vm1391_vm3, %v27621_v3, %v11368_v17  ;;  %v11405_v3 = vsel %vm1391_vm3, %v27664_v57, %v11404_v12  ;;  %v11429_v57 = vsel %vm1391_vm3, %v11424_v50, %v11428_v29 }
 0x7e9   : > { %22606 = vmatmul.mubr.msk.bf16.gmra.mrb[60].mxu0 %vm8391_vm8, %v27759_v34  ;;  %v27875_v34 = vld [vmem:[%s560_s11] ss:$0 sm:$0xff] }
 0x7ea   : > { %22613 = vmatprep.mubr.msk.bf16.mxu0 %vm8391_vm8, %v11261_v28  ;;  %v11438_v28 = vshll.u32 %v11249_v46, 16 }
 0x7ec   : > { %v11440_v16 = vrot.slane %v11438_v28, 1 }
 0x7ee   : > { %v11441_v58 = vsel %vm1391_vm3, %v11436_v38, %v11440_v16 }
 0x7f1   : > { %22614 = vmatmul.mubr.msk.bf16.vlgmr.msra.gmra.mrb[32].mxu0 %vm8391_vm8, %v11273_v45  ;;  %v12184_v45 = vsel %vm4673_vm5, %v24759_v36, 0 }
 0x7f2   : > { %22617 = vmatprep.mubr.msk.bf16.mxu0 %vm8391_vm8, %v11285_v47  ;;  %22650 = vmatpush3.bf16.msra.mxu1 %v12184_v45 }
 0x7f3   : > { %22683 = vmatprep.subr.bf16.mxu1 %v27887_v51 }
 0x7f9   : > { %22618 = vmatmul.mubr.msk.bf16.gmra.mrb[36].mxu0 %vm8391_vm8, %v11297_v31 }
 0x7fa   : > { %22621 = vmatprep.mubr.msk.bf16.mxu0 %vm8391_vm8, %v11309_v39 }
 0x801   : > { %22622 = vmatmul.mubr.msk.bf16.gmra.mrb[40].mxu0 %vm8391_vm8, %v11321_v8 }
 0x802   : > { %22625 = vmatprep.mubr.msk.bf16.mxu0 %vm8391_vm8, %v11333_v25 }
 0x809   : > { %22626 = vmatmul.mubr.msk.bf16.gmra.mrb[44].mxu0 %vm8391_vm8, %v11345_v18 }
 0x80a   : > { %22629 = vmatprep.mubr.msk.bf16.mxu0 %vm8391_vm8, %v11357_v1 }
 0x811   : > { %22630 = vmatmul.mubr.msk.bf16.gmra.mrb[48].mxu0 %vm8391_vm8, %v11369_v7 }
 0x812   : > { %22633 = vmatprep.mubr.msk.bf16.mxu0 %vm8391_vm8, %v11381_v54 }
 0x819   : > { %22634 = vmatmul.mubr.msk.bf16.gmra.mrb[52].mxu0 %vm8391_vm8, %v11393_v33 }
 0x81a   : > { %22637 = vmatprep.mubr.msk.bf16.mxu0 %vm8391_vm8, %v11405_v3 }
 0x821   : > { %22638 = vmatmul.mubr.msk.bf16.gmra.mrb[56].mxu0 %vm8391_vm8, %v11417_v52 }
 0x822   : > { %22641 = vmatprep.mubr.msk.bf16.mxu0 %vm8391_vm8, %v11429_v57 }
 0x829   : > { %22642 = vmatmul.mubr.msk.bf16.gmra.mrb[60].mxu0 %vm8391_vm8, %v11441_v58 }
 0x8c4   : > { %v22615_v2 = vpop.f32.mrb[32].mxu0 }
 0x8c5   : > { %v11709_v43 = vadd.f32 %v22615_v2, %v27875_v34  ;;  %v11541_v47 = vpop.f32.mrb[33].mxu0 }
 0x8c6   : > { %v11707_v44 = vadd.f32 %v27875_v34, %v11541_v47  ;;  %v22616_v4 = vpop.f32.mrb[34].mxu0 }
 0x8c7   : > { %v11741_v10 = vmul.f32 0.2, %v11709_v43  ;;  %v11710_v30 = vadd.f32 %v22616_v4, %v27875_v34  ;;  %v11544_v22 = vpop.f32.mrb[35].mxu0 }
 0x8c8   : > { %v11739_v31 = vmul.f32 0.2, %v11707_v44  ;;  %v11708_v23 = vadd.f32 %v27875_v34, %v11544_v22 }
 0x8c9   : > { %v11742_v39 = vmul.f32 0.2, %v11710_v30  ;;  %v11773_v53 = vmax.f32 %v11709_v43, %v11741_v10 }
 0x8ca   : > { %v11740_v24 = vmul.f32 0.2, %v11708_v23  ;;  %v11771_v63 = vmax.f32 %v11707_v44, %v11739_v31 }
 0x8cb   : > { %v11774_v55 = vmax.f32 %v11710_v30, %v11742_v39 }
 0x8cc   : > { %v11772_v8 = vmax.f32 %v11708_v23, %v11740_v24  ;;  %v22619_v49 = vpop.f32.mrb[36].mxu0 }
 0x8cd   : > { %v11713_v25 = vadd.f32 %v22619_v49, %v27875_v34  ;;  %v11557_v11 = vpop.f32.mrb[37].mxu0  ;;  %v11804_v35 = vpack.c.bf16 %v11774_v55, %v11773_v53 }
 0x8ce   : > { %v11711_v56 = vadd.f32 %v27875_v34, %v11557_v11  ;;  %v22620_v42 = vpop.f32.mrb[38].mxu0  ;;  %v11803_v18 = vpack.c.bf16 %v11772_v8, %v11771_v63 }
 0x8cf   : > { %v11745_v27 = vmul.f32 0.2, %v11713_v25  ;;  %v11714_v1 = vadd.f32 %v22620_v42, %v27875_v34  ;;  %11837 = vrot.lane.b32.xlu1 %v11804_v35, %s24930_s15  ;;  %v11560_v6 = vpop.f32.mrb[39].mxu0 }
 0x8d0   : > { %v11743_v17 = vmul.f32 0.2, %v11711_v56  ;;  %v11712_v14 = vadd.f32 %v27875_v34, %v11560_v6  ;;  %11835 = vrot.lane.b32.xlu0 %v11803_v18, %s24930_s15 }
 0x8d1   : > { %v11746_v59 = vmul.f32 0.2, %v11714_v1  ;;  %v11777_v7 = vmax.f32 %v11713_v25, %v11745_v27 }
 0x8d2   : > { %v11744_v60 = vmul.f32 0.2, %v11712_v14  ;;  %v11775_v54 = vmax.f32 %v11711_v56, %v11743_v17 }
 0x8d3   : > { %v11778_v26 = vmax.f32 %v11714_v1, %v11746_v59 }
 0x8d4   : > { %v11776_v32 = vmax.f32 %v11712_v14, %v11744_v60  ;;  %v22623_v41 = vpop.f32.mrb[40].mxu0 }
 0x8d5   : > { %v11717_v40 = vadd.f32 %v22623_v41, %v27875_v34  ;;  %v11573_v12 = vpop.f32.mrb[41].mxu0  ;;  %v11806_v5 = vpack.c.bf16 %v11778_v26, %v11777_v7 }
 0x8d6   : > { %v11715_v37 = vadd.f32 %v27875_v34, %v11573_v12  ;;  %v22624_v0 = vpop.f32.mrb[42].mxu0  ;;  %v11805_v33 = vpack.c.bf16 %v11776_v32, %v11775_v54 }
 0x8d7   : > { %v11749_v62 = vmul.f32 0.2, %v11717_v40  ;;  %v11718_v3 = vadd.f32 %v22624_v0, %v27875_v34  ;;  %11841 = vrot.lane.b32.xlu1 %v11806_v5, %s24930_s15  ;;  %v11576_v9 = vpop.f32.mrb[43].mxu0 }
 0x8d8   : > { %v11747_v19 = vmul.f32 0.2, %v11715_v37  ;;  %v11716_v61 = vadd.f32 %v27875_v34, %v11576_v9  ;;  %11839 = vrot.lane.b32.xlu0 %v11805_v33, %s24930_s15 }
 0x8d9   : > { %v11750_v46 = vmul.f32 0.2, %v11718_v3  ;;  %v11781_v50 = vmax.f32 %v11717_v40, %v11749_v62 }
 0x8da   : > { %v11748_v21 = vmul.f32 0.2, %v11716_v61  ;;  %v11779_v13 = vmax.f32 %v11715_v37, %v11747_v19 }
 0x8db   : > { %v11782_v29 = vmax.f32 %v11718_v3, %v11750_v46 }
 0x8dc   : > { %v11780_v28 = vmax.f32 %v11716_v61, %v11748_v21  ;;  %v22627_v52 = vpop.f32.mrb[44].mxu0 }
 0x8dd   : > { %v11721_v57 = vadd.f32 %v22627_v52, %v27875_v34  ;;  %v11589_v38 = vpop.f32.mrb[45].mxu0  ;;  %v11808_v16 = vpack.c.bf16 %v11782_v29, %v11781_v50 }
 0x8de   : > { %v11719_v58 = vadd.f32 %v27875_v34, %v11589_v38  ;;  %v22628_v20 = vpop.f32.mrb[46].mxu0  ;;  %v11807_v48 = vpack.c.bf16 %v11780_v28, %v11779_v13 }
 0x8df   : > { %v11753_v36 = vmul.f32 0.2, %v11721_v57  ;;  %v11722_v45 = vadd.f32 %v22628_v20, %v27875_v34  ;;  %11845 = vrot.lane.b32.xlu1 %v11808_v16, %s24930_s15  ;;  %v11592_v2 = vpop.f32.mrb[47].mxu0 }
 0x8e0   : > { %v11751_v43 = vmul.f32 0.2, %v11719_v58  ;;  %v11720_v47 = vadd.f32 %v27875_v34, %v11592_v2  ;;  %11843 = vrot.lane.b32.xlu0 %v11807_v48, %s24930_s15 }
 0x8e1   : > { %v11754_v44 = vmul.f32 0.2, %v11722_v45  ;;  %v11785_v10 = vmax.f32 %v11721_v57, %v11753_v36 }
 0x8e2   : > { %v11752_v4 = vmul.f32 0.2, %v11720_v47  ;;  %v11783_v22 = vmax.f32 %v11719_v58, %v11751_v43 }
 0x8e3   : > { %v11786_v30 = vmax.f32 %v11722_v45, %v11754_v44 }
 0x8e4   : > { %v11784_v31 = vmax.f32 %v11720_v47, %v11752_v4  ;;  %v22631_v23 = vpop.f32.mrb[48].mxu0 }
 0x8e5   : > { %v11725_v39 = vadd.f32 %v22631_v23, %v27875_v34  ;;  %v11605_v24 = vpop.f32.mrb[49].mxu0  ;;  %v11810_v53 = vpack.c.bf16 %v11786_v30, %v11785_v10 }
 0x8e6   : > { %v11723_v55 = vadd.f32 %v27875_v34, %v11605_v24  ;;  %v22632_v63 = vpop.f32.mrb[50].mxu0  ;;  %v11809_v8 = vpack.c.bf16 %v11784_v31, %v11783_v22 }
 0x8e7   : > { %v11757_v49 = vmul.f32 0.2, %v11725_v39  ;;  %v11726_v25 = vadd.f32 %v22632_v63, %v27875_v34  ;;  %11849 = vrot.lane.b32.xlu1 %v11810_v53, %s24930_s15  ;;  %v11608_v11 = vpop.f32.mrb[51].mxu0 }
 0x8e8   : > { %v11755_v35 = vmul.f32 0.2, %v11723_v55  ;;  %v11724_v56 = vadd.f32 %v27875_v34, %v11608_v11  ;;  %11847 = vrot.lane.b32.xlu0 %v11809_v8, %s24930_s15 }
 0x8e9   : > { %v11758_v42 = vmul.f32 0.2, %v11726_v25  ;;  %v11789_v27 = vmax.f32 %v11725_v39, %v11757_v49 }
 0x8ea   : > { %v11756_v18 = vmul.f32 0.2, %v11724_v56  ;;  %v11787_v6 = vmax.f32 %v11723_v55, %v11755_v35 }
 0x8eb   : > { %v11790_v1 = vmax.f32 %v11726_v25, %v11758_v42 }
 0x8ec   : > { %v11788_v17 = vmax.f32 %v11724_v56, %v11756_v18  ;;  %v22635_v14 = vpop.f32.mrb[52].mxu0 }
 0x8ed   : > { %v11729_v59 = vadd.f32 %v22635_v14, %v27875_v34  ;;  %v11621_v60 = vpop.f32.mrb[53].mxu0  ;;  %v11812_v7 = vpack.c.bf16 %v11790_v1, %v11789_v27  ;;  %v24761_v1 = vld [vmem:[%s25105_s19 + $0x8] sm:$0xff]  }
 0x8ee   : > { %v11727_v26 = vadd.f32 %v27875_v34, %v11621_v60  ;;  %v22636_v54 = vpop.f32.mrb[54].mxu0  ;;  %v11811_v32 = vpack.c.bf16 %v11788_v17, %v11787_v6 }
 0x8ef   : > { %v11761_v41 = vmul.f32 0.2, %v11729_v59  ;;  %v11730_v40 = vadd.f32 %v22636_v54, %v27875_v34  ;;  %11853 = vrot.lane.b32.xlu1 %v11812_v7, %s24930_s15  ;;  %v11624_v12 = vpop.f32.mrb[55].mxu0 }
 0x8f0   : > { %v11759_v5 = vmul.f32 0.2, %v11727_v26  ;;  %v11728_v37 = vadd.f32 %v27875_v34, %v11624_v12  ;;  %11851 = vrot.lane.b32.xlu0 %v11811_v32, %s24930_s15 }
 0x8f1   : > { %v11762_v0 = vmul.f32 0.2, %v11730_v40  ;;  %v11793_v62 = vmax.f32 %v11729_v59, %v11761_v41  ;;  %v24762_v59 = vld [vmem:[%s25105_s19 + $0x10] ss:$0 sps:$4 sm:$0xff]  }
 0x8f2   : > { %v11760_v33 = vmul.f32 0.2, %v11728_v37  ;;  %v11791_v9 = vmax.f32 %v11727_v26, %v11759_v5  ;;  %v12411_v7 = vsel %vm4673_vm5, %v24762_v59, 0  ;;  %v27951_v26 = vld [vmem:[%s25105_s19 + $0x28] sm:$0xff]  }
 0x8f3   : > { %v11794_v3 = vmax.f32 %v11730_v40, %v11762_v0 }
 0x8f4   : > { %v11792_v19 = vmax.f32 %v11728_v37, %v11760_v33  ;;  %v22639_v61 = vpop.f32.mrb[56].mxu0 }
 0x8f5   : > { %v11733_v46 = vadd.f32 %v22639_v61, %v27875_v34  ;;  %v11637_v21 = vpop.f32.mrb[57].mxu0  ;;  %v11814_v50 = vpack.c.bf16 %v11794_v3, %v11793_v62 }
 0x8f6   : > { %v11731_v29 = vadd.f32 %v27875_v34, %v11637_v21  ;;  %v22640_v13 = vpop.f32.mrb[58].mxu0  ;;  %v11813_v28 = vpack.c.bf16 %v11792_v19, %v11791_v9 }
 0x8f7   : > { %v11765_v52 = vmul.f32 0.2, %v11733_v46  ;;  %v11734_v57 = vadd.f32 %v22640_v13, %v27875_v34  ;;  %11857 = vrot.lane.b32.xlu1 %v11814_v50, %s24930_s15  ;;  %v11640_v38 = vpop.f32.mrb[59].mxu0  ;;  %v11937_v13 = vshrl.u32 %v27881_v15, 16 }
 0x8f8   : > { %v11763_v16 = vmul.f32 0.2, %v11731_v29  ;;  %v11732_v58 = vadd.f32 %v27875_v34, %v11640_v38  ;;  %11855 = vrot.lane.b32.xlu0 %v11813_v28, %s24930_s15  ;;  %v11900_v28 = vld [vmem:[#allocation2] sm:$0x80] }
 0x8f9   : > { %v11766_v20 = vmul.f32 0.2, %v11734_v57  ;;  %v11797_v36 = vmax.f32 %v11733_v46, %v11765_v52  ;;  %v11939_v52 = vrot.slane %v11937_v13, 7 }
 0x8fa   : > { %v11764_v48 = vmul.f32 0.2, %v11732_v58  ;;  %v11795_v2 = vmax.f32 %v11731_v29, %v11763_v16  ;;  %v11933_v16 = vshrl.u32 %v11900_v28, 16 }
 0x8fb   : > { %v11798_v45 = vmax.f32 %v11734_v57, %v11766_v20  ;;  %v11940_v57 = vshll.u32 %v27881_v15, 16 }
 0x8fc   : > { %v11796_v43 = vmax.f32 %v11732_v58, %v11764_v48  ;;  %v22643_v47 = vpop.f32.mrb[60].mxu0 }
 0x8fd   : > { %v11737_v44 = vadd.f32 %v22643_v47, %v27875_v34  ;;  %v11653_v4 = vpop.f32.mrb[61].mxu0  ;;  %v11816_v10 = vpack.c.bf16 %v11798_v45, %v11797_v36  ;;  %v11942_v36 = vor.u32 %v11940_v57, %v11939_v52  ;;  %v11935_v45 = vrot.slane %v11933_v16, 7  ;;  %v11902_v47 = vld [vmem:[#allocation2 + $0x18] sm:$0x80] }
 0x8fe   : > { %v11735_v30 = vadd.f32 %v27875_v34, %v11653_v4  ;;  %v22644_v22 = vpop.f32.mrb[62].mxu0  ;;  %v11815_v31 = vpack.c.bf16 %v11796_v43, %v11795_v2 }
 0x8ff   : > { %v11769_v23 = vmul.f32 0.2, %v11737_v44  ;;  %v11738_v39 = vadd.f32 %v22644_v22, %v27875_v34  ;;  %11861 = vrot.lane.b32.xlu1 %v11816_v10, %s24930_s15  ;;  %v11656_v24 = vpop.f32.mrb[63].mxu0  ;;  %v11943_v4 = vsel %vm746_vm4, %v11935_v45, %v11942_v36 }
 0x900   : > { %v11767_v53 = vmul.f32 0.2, %v11735_v30  ;;  %v11736_v55 = vadd.f32 %v27875_v34, %v11656_v24  ;;  %11859 = vrot.lane.b32.xlu0 %v11815_v31, %s24930_s15  ;;  %v11945_v31 = vshrl.u32 %v11902_v47, 16 }
 0x901   : > { %v11770_v63 = vmul.f32 0.2, %v11738_v39  ;;  %v11801_v49 = vmax.f32 %v11737_v44, %v11769_v23  ;;  %v11904_v44 = vld [vmem:[#allocation2 + $0x30] sm:$0x80] }
 0x902   : > { %v11768_v8 = vmul.f32 0.2, %v11736_v55  ;;  %v11799_v11 = vmax.f32 %v11735_v30, %v11767_v53  ;;  %v11957_v24 = vshrl.u32 %v11904_v44, 16 }
 0x903   : > { %v11802_v25 = vmax.f32 %v11738_v39, %v11770_v63 }
 0x904   : > { %v11800_v35 = vmax.f32 %v11736_v55, %v11768_v8 }
 0x905   : > { %v11818_v56 = vpack.c.bf16 %v11802_v25, %v11801_v49  ;;  %v11947_v25 = vrot.slane %v11945_v31, 7 }
 0x906   : > { %v11817_v42 = vpack.c.bf16 %v11800_v35, %v11799_v11 }
 0x907   : > { %11865 = vrot.lane.b32.xlu1 %v11818_v56, %s24930_s15 }
 0x908   : > { %11863 = vrot.lane.b32.xlu0 %v11817_v42, %s24930_s15  ;;  %v11959_v42 = vrot.slane %v11957_v24, 7 }
 0x941   : > { %v11838_v18 = vpop.permute.xlu1 %11837 }
 0x942   : > { %11885 = vst.msk [vmem:[#allocation2 + $0x38] sm:$0xff] %vm11883_vm11, %v11838_v18  ;;  %v11836_v34 = vpop.permute.xlu0 %11835 }
 0x943   : > { %11884 = vst.msk [vmem:[#allocation2 + $0x20] sm:$0xff] %vm11883_vm11, %v11836_v34  ;;  %v11906_v34 = vld [vmem:[#allocation2 + $0x48] sm:$0x80] }
 0x949   : > { %v11842_v27 = vpop.permute.xlu1 %11841  ;;  %v27942_v14 = vld [vmem:[#allocation2 + $0x38] sm:$0xff] }
 0x94a   : > { %11887 = vst.msk [vmem:[#allocation2 + $0x68] sm:$0xff] %vm11883_vm11, %v11842_v27  ;;  %v11840_v6 = vpop.permute.xlu0 %11839  ;;  %v27937_v17 = vld [vmem:[#allocation2 + $0x20] sm:$0xff]  ;;  %v11961_v43 = vshrl.u32 %v27942_v14, 16  ;;  %v11964_v8 = vshll.u32 %v27942_v14, 16 }
 0x94b   : > { %11886 = vst.msk [vmem:[#allocation2 + $0x50] sm:$0xff] %vm11883_vm11, %v11840_v6  ;;  %22652 = vmatmul.mubr.msk.bf16.vlgmr.msra.gmra.mrb[64].mxu1 %vm12150_vm10, %v27937_v17  ;;  %v11949_v2 = vshrl.u32 %v27937_v17, 16  ;;  %v11952_v53 = vshll.u32 %v27937_v17, 16  ;;  %v11908_v27 = vld [vmem:[#allocation2 + $0x60] sm:$0x80] }
 0x94c   : > { %22655 = vmatprep.mubr.msk.bf16.mxu1 %vm12150_vm10, %v27942_v14  ;;  %22684 = vmatpush3.bf16.msra.mxu1 %v27887_v51  ;;  %v11963_v39 = vrot.slane %v11961_v43, 7  ;;  %v12635_v15 = vrot.slane %v11964_v8, 1 }
 0x94d   : > { %22685 = vmatprep.subr.bf16.mxu1 %v24761_v1  ;;  %v11951_v30 = vrot.slane %v11949_v2, 7 }
 0x94e   : > { %v28052_v18 = vor.u32 %v11964_v8, %v11963_v39 }
 0x94f   : > { %v28043_v11 = vor.u32 %v11952_v53, %v11951_v30 }
 0x950   : > { %22686 = vmatpush3.bf16.msra.mxu1 %v24761_v1  ;;  %v24764_v1 = vld [vmem:[%s25105_s19 + $0x30] sm:$0xff]  }
 0x951   : > { %v11846_v60 = vpop.permute.xlu1 %11845  ;;  %24621 = vmatprep.subr.msk.bf16.mxu1 %vm4673_vm5, %v24762_v59  ;;  %v27959_v51 = vld [vmem:[#allocation2 + $0x68] sm:$0xff]  ;;  %v11955_v59 = vsel %vm746_vm4, %v11947_v25, %v28043_v11 }
 0x952   : > { %11889 = vst.msk [vmem:[#allocation2 + $0x98] sm:$0xff] %vm11883_vm11, %v11846_v60  ;;  %v11844_v54 = vpop.permute.xlu0 %11843  ;;  %v27954_v32 = vld [vmem:[#allocation2 + $0x50] sm:$0xff]  ;;  %v11985_v56 = vshrl.u32 %v27959_v51, 16  ;;  %v11969_v60 = vshrl.u32 %v11906_v34, 16 }
 0x953   : > { %11888 = vst.msk [vmem:[#allocation2 + $0x80] sm:$0xff] %vm11883_vm11, %v11844_v54  ;;  %22656 = vmatmul.mubr.msk.bf16.gmra.mrb[68].mxu1 %vm12150_vm10, %v27954_v32  ;;  %v11973_v49 = vshrl.u32 %v27954_v32, 16  ;;  %v11967_v54 = vsel %vm746_vm4, %v11959_v42, %v28052_v18 }
 0x954   : > { %22659 = vmatprep.mubr.msk.bf16.mxu1 %vm12150_vm10, %v27959_v51  ;;  %22688 = vmatpush3.bf16.msra.mxu1 %v12411_v7  ;;  %v11987_v7 = vrot.slane %v11985_v56, 7 }
 0x955   : > { %22721 = vmatprep.subr.bf16.mxu1 %v27951_v26  ;;  %v11975_v6 = vrot.slane %v11973_v49, 7 }
 0x959   : > { %v11850_v41 = vpop.permute.xlu1 %11849  ;;  %v27970_v5 = vld [vmem:[#allocation2 + $0x98] sm:$0xff] }
 0x95a   : > { %11891 = vst.msk [vmem:[#allocation2 + $0xc8] sm:$0xff] %vm11883_vm11, %v11850_v41  ;;  %v11848_v40 = vpop.permute.xlu0 %11847  ;;  %v27965_v12 = vld [vmem:[#allocation2 + $0x80] sm:$0xff]  ;;  %v11981_v41 = vshrl.u32 %v11908_v27, 16  ;;  %v12012_v39 = vshll.u32 %v27970_v5, 16 }
 0x95b   : > { %11890 = vst.msk [vmem:[#allocation2 + $0xb0] sm:$0xff] %vm11883_vm11, %v11848_v40  ;;  %22660 = vmatmul.mubr.msk.bf16.gmra.mrb[72].mxu1 %vm12150_vm10, %v27965_v12  ;;  %v11976_v40 = vshll.u32 %v27954_v32, 16  ;;  %v12000_v31 = vshll.u32 %v27965_v12, 16 }
 0x95c   : > { %22663 = vmatprep.mubr.msk.bf16.mxu1 %vm12150_vm10, %v27970_v5  ;;  %v11983_v28 = vrot.slane %v11981_v41, 7 }
 0x95d   : > { %v12647_v8 = vrot.slane %v11976_v40, 1 }
 0x961   : > { %v11854_v37 = vpop.permute.xlu1 %11853  ;;  %v27980_v62 = vld [vmem:[#allocation2 + $0xc8] sm:$0xff] }
 0x962   : > { %11893 = vst.msk [vmem:[#allocation2 + $0xf8] sm:$0xff] %vm11883_vm11, %v11854_v37  ;;  %v11852_v0 = vpop.permute.xlu0 %11851  ;;  %v27975_v33 = vld [vmem:[#allocation2 + $0xb0] sm:$0xff]  ;;  %v11988_v37 = vshll.u32 %v27959_v51, 16  ;;  %v30218_v42 = vshrl.u32 %v27980_v62, 16 }
 0x963   : > { %11892 = vst.msk [vmem:[#allocation2 + $0xe0] sm:$0xff] %vm11883_vm11, %v11852_v0  ;;  %22664 = vmatmul.mubr.msk.bf16.gmra.mrb[76].mxu1 %vm12150_vm10, %v27975_v33  ;;  %v24765_v0 = vld [vmem:[%s25105_s19 + $0x38] ss:$0 sps:$4 sm:$0xff]   ;;  %v30219_v24 = vshrl.u32 %v27975_v33, 16 }
 0x964   : > { %22667 = vmatprep.mubr.msk.bf16.mxu1 %vm12150_vm10, %v27980_v62  ;;  %v28077_v52 = vor.u32 %v11988_v37, %v11987_v7  ;;  %v12868_v16 = vsel %vm4673_vm5, %v24765_v0, 0 }
 0x969   : > { %v11858_v3 = vpop.permute.xlu1 %11857  ;;  %v27990_v61 = vld [vmem:[#allocation2 + $0xf8] sm:$0xff] }
 0x96a   : > { %11895 = vst.msk [vmem:[#allocation2 + $0x128] sm:$0xff] %vm11883_vm11, %v11858_v3  ;;  %v11856_v9 = vpop.permute.xlu0 %11855  ;;  %v27985_v19 = vld [vmem:[#allocation2 + $0xe0] sm:$0xff]  ;;  %v11997_v3 = vshrl.u32 %v27965_v12, 16 }
 0x96b   : > { %11894 = vst.msk [vmem:[#allocation2 + $0x110] sm:$0xff] %vm11883_vm11, %v11856_v9  ;;  %22668 = vmatmul.mubr.msk.bf16.gmra.mrb[80].mxu1 %vm12150_vm10, %v27985_v19  ;;  %v11971_v9 = vrot.slane %v11969_v60, 7 }
 0x96c   : > { %22671 = vmatprep.mubr.msk.bf16.mxu1 %vm12150_vm10, %v27990_v61  ;;  %v11999_v36 = vrot.slane %v11997_v3, 7 }
 0x96e   : > { %v28100_v25 = vor.u32 %v12000_v31, %v11999_v36  ;;  %v30208_v36 = vshrl.u32 %v27990_v61, 16 }
 0x971   : > { %v11862_v46 = vpop.permute.xlu1 %11861  ;;  %v28000_v29 = vld [vmem:[#allocation2 + $0x128] sm:$0xff] }
 0x972   : > { %11897 = vst.msk [vmem:[#allocation2 + $0x158] sm:$0xff] %vm11883_vm11, %v11862_v46  ;;  %v11860_v21 = vpop.permute.xlu0 %11859  ;;  %v27995_v50 = vld [vmem:[#allocation2 + $0x110] sm:$0xff]  ;;  %v28072_v46 = vor.u32 %v11976_v40, %v11975_v6  ;;  %v11916_v6 = vld [vmem:[#allocation2 + $0xc0] sm:$0x80] }
 0x973   : > { %11896 = vst.msk [vmem:[#allocation2 + $0x140] sm:$0xff] %vm11883_vm11, %v11860_v21  ;;  %22672 = vmatmul.mubr.msk.bf16.gmra.mrb[84].mxu1 %vm12150_vm10, %v27995_v50  ;;  %v12009_v21 = vshrl.u32 %v27970_v5, 16 }
 0x974   : > { %22675 = vmatprep.mubr.msk.bf16.mxu1 %vm12150_vm10, %v28000_v29  ;;  %v11979_v45 = vsel %vm746_vm4, %v11971_v9, %v28072_v46  ;;  %v12024_v9 = vshll.u32 %v27975_v33, 16 }
 0x975   : > { %v12011_v44 = vrot.slane %v12009_v21, 7 }
 0x977   : > { %v28105_v27 = vor.u32 %v12012_v39, %v12011_v44  ;;  %v11918_v44 = vld [vmem:[#allocation2 + $0xd8] sm:$0x80] }
 0x979   : > { %v11866_v38 = vpop.permute.xlu1 %11865  ;;  %v28014_v48 = vld [vmem:[#allocation2 + $0x158] sm:$0xff] }
 0x97a   : > { %11899 = vst.msk [vmem:[#allocation2 + $0x188] sm:$0xff] %vm11883_vm11, %v11866_v38  ;;  %v11864_v58 = vpop.permute.xlu0 %11863  ;;  %v28009_v20 = vld [vmem:[#allocation2 + $0x140] sm:$0xff]  ;;  %v11910_v38 = vld [vmem:[#allocation2 + $0x78] sm:$0x80] }
 0x97b   : > { %11898 = vst.msk [vmem:[#allocation2 + $0x170] sm:$0xff] %vm11883_vm11, %v11864_v58  ;;  %22676 = vmatmul.mubr.msk.bf16.gmra.mrb[88].mxu1 %vm12150_vm10, %v28009_v20  ;;  %v28082_v58 = vld [vmem:[%s25105_s19 + $0x3c] sm:$0xff]   ;;  %v11993_v47 = vshrl.u32 %v11910_v38, 16  ;;  %v30210_v38 = vshrl.u32 %v27985_v19, 16 }
 0x97c   : > { %22679 = vmatprep.mubr.msk.bf16.mxu1 %vm12150_vm10, %v28014_v48 }
 0x981   : > { %v28023_v10 = vld [vmem:[#allocation2 + $0x188] sm:$0xff] }
 0x982   : > { %v28027_v22 = vld [vmem:[#allocation2 + $0x170] sm:$0xff]  ;;  %v30206_v23 = vshll.u32 %v28023_v10, 16  ;;  %v30207_v55 = vshrl.u32 %v28023_v10, 16 }
 0x983   : > { %22680 = vmatmul.mubr.msk.bf16.gmra.mrb[92].mxu1 %vm12150_vm10, %v28027_v22 }
 0x984   : > { %22689 = vmatprep.mubr.msk.bf16.mxu1 %vm12150_vm10, %v11943_v4  ;;  %v14018_v63 = vrot.slane %v30206_v23, 1  ;;  %v11991_v4 = vsel %vm746_vm4, %v11983_v28, %v28077_v52  ;;  %v12036_v28 = vshll.u32 %v27980_v62, 16 }
 0x986   : > { %v28047_v35 = vor.u32 %v14018_v63, %v30207_v55  ;;  %v11995_v63 = vrot.slane %v11993_v47, 7 }
 0x988   : > { %v12003_v60 = vsel %vm746_vm4, %v11995_v63, %v28100_v25 }
 0x98b   : > { %22690 = vmatmul.mubr.msk.bf16.vlgmr.msra.gmra.mrb[64].mxu1 %vm12150_vm10, %v11955_v59  ;;  %v12023_v59 = vrot.slane %v30219_v24, 7 }
 0x98c   : > { %22693 = vmatprep.mubr.msk.bf16.mxu1 %vm12150_vm10, %v11967_v54  ;;  %22722 = vmatpush3.bf16.msra.mxu1 %v27951_v26  ;;  %v11912_v26 = vld [vmem:[#allocation2 + $0x90] sm:$0x80]  ;;  %v12035_v54 = vrot.slane %v30218_v42, 7 }
 0x98d   : > { %22723 = vmatprep.subr.bf16.mxu1 %v24764_v1  ;;  %v12005_v30 = vshrl.u32 %v11912_v26, 16 }
 0x98e   : > { %v28127_v47 = vor.u32 %v12036_v28, %v12035_v54  ;;  %v30209_v54 = vshrl.u32 %v27995_v50, 16 }
 0x98f   : > { %v12007_v34 = vrot.slane %v12005_v30, 7  ;;  %v12047_v30 = vrot.slane %v30210_v38, 7 }
 0x990   : > { %22724 = vmatpush3.bf16.msra.mxu1 %v24764_v1  ;;  %v11914_v1 = vld [vmem:[#allocation2 + $0xa8] sm:$0x80] }
 0x991   : > { %24622 = vmatprep.subr.msk.bf16.mxu1 %vm4673_vm5, %v24765_v0  ;;  %v12017_v7 = vshrl.u32 %v11914_v1, 16  ;;  %v12015_v41 = vsel %vm746_vm4, %v12007_v34, %v28105_v27  ;;  %v12029_v0 = vshrl.u32 %v11916_v6, 16  ;;  %v12041_v34 = vshrl.u32 %v11918_v44, 16 }
 0x992   : > { %v12059_v1 = vrot.slane %v30208_v36, 7  ;;  %v30214_v36 = vshll.u32 %v28000_v29, 16 }
 0x993   : > { %22694 = vmatmul.mubr.msk.bf16.gmra.mrb[68].mxu1 %vm12150_vm10, %v11979_v45  ;;  %v12019_v26 = vrot.slane %v12017_v7, 7  ;;  %v12031_v45 = vrot.slane %v12029_v0, 7  ;;  %v30212_v7 = vshll.u32 %v27990_v61, 16 }
 0x994   : > { %22697 = vmatprep.mubr.msk.bf16.mxu1 %vm12150_vm10, %v11991_v4  ;;  %22726 = vmatpush3.bf16.msra.mxu1 %v12868_v16  ;;  %v28122_v16 = vor.u32 %v12024_v9, %v12023_v59  ;;  %v11920_v4 = vld [vmem:[#allocation2 + $0xf0] sm:$0x80] }
 0x995   : > { %22759 = vmatprep.subr.bf16.mxu1 %v28082_v58  ;;  %v12039_v6 = vsel %vm746_vm4, %v12031_v45, %v28127_v47  ;;  %v12053_v59 = vshrl.u32 %v11920_v4, 16  ;;  %v28149_v45 = vor.u32 %v30212_v7, %v12059_v1  ;;  %v11922_v4 = vld [vmem:[#allocation2 + $0x108] sm:$0x80]  ;;  %v30213_v1 = vshll.u32 %v27995_v50, 16 }
 0x996   : > { %v12027_v63 = vsel %vm746_vm4, %v12019_v26, %v28122_v16  ;;  %v30211_v26 = vshrl.u32 %v28000_v29, 16 }
 0x997   : > { %v12055_v44 = vrot.slane %v12053_v59, 7 }
 0x999   : > { %v12063_v59 = vsel %vm746_vm4, %v12055_v44, %v28149_v45 }
 0x99b   : > { %22698 = vmatmul.mubr.msk.bf16.gmra.mrb[72].mxu1 %vm12150_vm10, %v12003_v60  ;;  %v30216_v60 = vshll.u32 %v27985_v19, 16 }
 0x99c   : > { %22701 = vmatprep.mubr.msk.bf16.mxu1 %vm12150_vm10, %v12015_v41  ;;  %v12043_v41 = vrot.slane %v12041_v34, 7  ;;  %v12065_v34 = vshrl.u32 %v11922_v4, 16  ;;  %v30217_v4 = vshrl.u32 %v28014_v48, 16 }
 0x99d   : > { %v28144_v0 = vor.u32 %v30216_v60, %v12047_v30  ;;  %v12083_v30 = vrot.slane %v30211_v26, 7  ;;  %v11928_v26 = vld [vmem:[#allocation2 + $0x150] sm:$0x80] }
 0x99e   : > { %v12067_v38 = vrot.slane %v12065_v34, 7 }
 0x99f   : > { %v12051_v23 = vsel %vm746_vm4, %v12043_v41, %v28144_v0  ;;  %v28171_v44 = vor.u32 %v30214_v36, %v12083_v30  ;;  %v12096_v30 = vshll.u32 %v28009_v20, 16  ;;  %v30221_v36 = vshll.u32 %v28014_v48, 16 }
 0x9a3   : > { %22702 = vmatmul.mubr.msk.bf16.gmra.mrb[76].mxu1 %vm12150_vm10, %v12027_v63  ;;  %v11924_v63 = vld [vmem:[#allocation2 + $0x120] sm:$0x80] }
 0x9a4   : > { %22705 = vmatprep.mubr.msk.bf16.mxu1 %vm12150_vm10, %v12039_v6  ;;  %v12071_v6 = vrot.slane %v30209_v54, 7  ;;  %v12077_v55 = vshrl.u32 %v11924_v63, 16  ;;  %v30215_v54 = vshrl.u32 %v28009_v20, 16  ;;  %v11926_v63 = vld [vmem:[#allocation2 + $0x138] sm:$0x80] }
 0x9a5   : > { %v12089_v34 = vshrl.u32 %v11926_v63, 16  ;;  %v12575_v63 = vld [vmem:[#allocation2 + $0x10] sm:$0x1] }
 0x9a6   : > { %v28166_v41 = vor.u32 %v30213_v1, %v12071_v6  ;;  %v12107_v6 = vrot.slane %v30217_v4, 7  ;;  %v12101_v1 = vshrl.u32 %v11928_v26, 16  ;;  %v11930_v26 = vld [vmem:[#allocation2 + $0x168] sm:$0x80] }
 0x9a7   : > { %v12091_v60 = vrot.slane %v12089_v34, 7  ;;  %v12113_v24 = vshrl.u32 %v11930_v26, 16  ;;  %v12579_v26 = vld [vmem:[#allocation2 + $0x40] sm:$0x1] }
 0x9a8   : > { %v12075_v7 = vsel %vm746_vm4, %v12067_v38, %v28166_v41  ;;  %v12103_v4 = vrot.slane %v12101_v1, 7 }
 0x9ab   : > { %22706 = vmatmul.mubr.msk.bf16.gmra.mrb[80].mxu1 %vm12150_vm10, %v12051_v23  ;;  %v12079_v23 = vrot.slane %v12077_v55, 7 }
 0x9ac   : > { %22709 = vmatprep.mubr.msk.bf16.mxu1 %vm12150_vm10, %v12063_v59  ;;  %v12095_v59 = vrot.slane %v30215_v54, 7  ;;  %v30220_v54 = vshrl.u32 %v28027_v22, 16 }
 0x9ad   : > { %v12087_v55 = vsel %vm746_vm4, %v12079_v23, %v28171_v44  ;;  %v12611_v23 = vrot.slane %v11940_v57, 1 }
 0x9ae   : > { %v28188_v38 = vor.u32 %v12096_v30, %v12095_v59  ;;  %v12119_v42 = vrot.slane %v30220_v54, 7  ;;  %v12120_v59 = vshll.u32 %v28027_v22, 16 }
 0x9af   : > { %v12612_v57 = vor.u32 %v12611_v23, %v11937_v13  ;;  %v12638_v13 = vshll.u32 %v12579_v26, 16  ;;  %v12636_v23 = vor.u32 %v12635_v15, %v11961_v43  ;;  %v24768_v43 = vld [vmem:[%s25105_s19 + $0x4c] ss:$0 sps:$4 sm:$0xff]   ;;  %v12585_v15 = vld [vmem:[#allocation2 + $0x88] sm:$0x1] }
 0x9b0   : > { %v12099_v34 = vsel %vm746_vm4, %v12091_v60, %v28188_v38  ;;  %v28209_v54 = vor.u32 %v12120_v59, %v12119_v42  ;;  %v12577_v60 = vld [vmem:[#allocation2 + $0x28] sm:$0x1] }
 0x9b3   : > { %22710 = vmatmul.mubr.msk.bf16.gmra.mrb[84].mxu1 %vm12150_vm10, %v12075_v7  ;;  %v28192_v7 = vor.u32 %v30221_v36, %v12107_v6  ;;  %v12626_v36 = vshll.u32 %v12577_v60, 16 }
 0x9b4   : > { %22713 = vmatprep.mubr.msk.bf16.mxu1 %vm12150_vm10, %v12087_v55  ;;  %v12614_v55 = vshll.u32 %v12575_v63, 16  ;;  %v12115_v63 = vrot.slane %v12113_v24, 7 }
 0x9b5   : > { %v12111_v1 = vsel %vm746_vm4, %v12103_v4, %v28192_v7  ;;  %v12628_v42 = vrot.slane %v12626_v36, 1 }
 0x9b6   : > { %v12616_v6 = vrot.slane %v12614_v55, 1  ;;  %v12123_v4 = vsel %vm746_vm4, %v12115_v63, %v28209_v54  ;;  %v12640_v55 = vrot.slane %v12638_v13, 1  ;;  %v12587_v13 = vld [vmem:[#allocation2 + $0xa0] sm:$0x1] }
 0x9b8   : > { %v12641_v26 = vsel %vm1391_vm3, %v12636_v23, %v12640_v55  ;;  %v12683_v23 = vrot.slane %v12012_v39, 1  ;;  %v12686_v55 = vshll.u32 %v12587_v13, 16  ;;  %v12695_v39 = vrot.slane %v12024_v9, 1  ;;  %v12593_v9 = vld [vmem:[#allocation2 + $0xe8] sm:$0x1] }
 0x9bb   : > { %22714 = vmatmul.mubr.msk.bf16.gmra.mrb[88].mxu1 %vm12150_vm10, %v12099_v34  ;;  %v12617_v34 = vsel %vm1391_vm3, %v12612_v57, %v12616_v6  ;;  %v12581_v57 = vld [vmem:[#allocation2 + $0x58] sm:$0x1]  ;;  %v24767_v6 = vld [vmem:[%s25105_s19 + $0x44] sm:$0xff]  }
 0x9bc   : > { %22717 = vmatprep.mubr.msk.bf16.mxu1 %vm12150_vm10, %v12111_v1  ;;  %v12623_v1 = vrot.slane %v11952_v53, 1  ;;  %v12583_v53 = vld [vmem:[#allocation2 + $0x70] sm:$0x1]  ;;  %v12650_v60 = vshll.u32 %v12581_v57, 16 }
 0x9bd   : > { %v12662_v36 = vshll.u32 %v12583_v53, 16 }
 0x9be   : > { %v12624_v24 = vor.u32 %v12623_v1, %v11949_v2  ;;  %v12659_v2 = vrot.slane %v11988_v37, 1  ;;  %v12652_v40 = vrot.slane %v12650_v60, 1  ;;  %v13357_v37 = vsel %vm4673_vm5, %v24768_v43, 0 }
 0x9bf   : > { %v12664_v1 = vrot.slane %v12662_v36, 1 }
 0x9c0   : > { %v12629_v63 = vsel %vm1391_vm3, %v12624_v24, %v12628_v42  ;;  %v28242_v24 = vld [vmem:[%s25105_s19 + $0x50] sm:$0xff]   ;;  %v12671_v42 = vrot.slane %v12000_v31, 1  ;;  %v12684_v31 = vor.u32 %v12683_v23, %v12009_v21  ;;  %v30330_v21 = vshrl.u32 %v27975_v33, 16 }
 0x9c2   : > { %v12672_v57 = vor.u32 %v12671_v42, %v11997_v3  ;;  %v12707_v3 = vrot.slane %v12036_v28, 1  ;;  %v12722_v42 = vshll.u32 %v12593_v9, 16  ;;  %v30339_v9 = vshrl.u32 %v28000_v29, 16 }
 0x9c3   : > { %22718 = vmatmul.mubr.msk.bf16.gmra.mrb[92].mxu1 %vm12150_vm10, %v12123_v4  ;;  %v12660_v4 = vor.u32 %v12659_v2, %v11985_v56 }
 0x9c4   : > { %22727 = vmatprep.mubr.msk.bf16.mxu1 %vm12150_vm10, %v12617_v34  ;;  %v12648_v34 = vor.u32 %v12647_v8, %v11973_v49  ;;  %v12674_v49 = vshll.u32 %v12585_v15, 16  ;;  %v12591_v8 = vld [vmem:[#allocation2 + $0xd0] sm:$0x1]  ;;  %v12595_v15 = vld [vmem:[#allocation2 + $0x100] sm:$0x1] }
 0x9c5   : > { %v12665_v56 = vsel %vm1391_vm3, %v12660_v4, %v12664_v1  ;;  %v12710_v36 = vshll.u32 %v12591_v8, 16  ;;  %v12734_v23 = vshll.u32 %v12595_v15, 16  ;;  %v12597_v8 = vld [vmem:[#allocation2 + $0x118] sm:$0x1] }
 0x9c6   : > { %v12676_v53 = vrot.slane %v12674_v49, 1  ;;  %v30333_v49 = vshll.u32 %v27990_v61, 16 }
 0x9c7   : > { %v12712_v1 = vrot.slane %v12710_v36, 1 }
 0x9c8   : > { %v12677_v60 = vsel %vm1391_vm3, %v12672_v57, %v12676_v53  ;;  %v12724_v53 = vrot.slane %v12722_v42, 1 }
 0x9cb   : > { %22728 = vmatmul.mubr.msk.bf16.vlgmr.msra.gmra.mrb[64].mxu1 %vm12150_vm10, %v12629_v63  ;;  %v12589_v63 = vld [vmem:[#allocation2 + $0xb8] sm:$0x1] }
 0x9cc   : > { %22731 = vmatprep.mubr.msk.bf16.mxu1 %vm12150_vm10, %v12641_v26  ;;  %22760 = vmatpush3.bf16.msra.mxu1 %v28082_v58  ;;  %v12653_v58 = vsel %vm1391_vm3, %v12648_v34, %v12652_v40  ;;  %v12698_v26 = vshll.u32 %v12589_v63, 16  ;;  %v30331_v40 = vshrl.u32 %v27980_v62, 16  ;;  %v12736_v63 = vrot.slane %v12734_v23, 1 }
 0x9cd   : > { %22761 = vmatprep.subr.bf16.mxu1 %v24767_v6  ;;  %v30340_v23 = vshll.u32 %v28014_v48, 16 }
 0x9ce   : > { %v12700_v34 = vrot.slane %v12698_v26, 1  ;;  %v12708_v4 = vor.u32 %v12707_v3, %v30331_v40  ;;  %v30336_v26 = vshll.u32 %v27995_v50, 16  ;;  %v12746_v3 = vshll.u32 %v12597_v8, 16 }
 0x9cf   : > { %v30338_v40 = vshrl.u32 %v27995_v50, 16 }
 0x9d0   : > { %22762 = vmatpush3.bf16.msra.mxu1 %v24767_v6  ;;  %v12688_v6 = vrot.slane %v12686_v55, 1  ;;  %v12713_v28 = vsel %vm1391_vm3, %v12708_v4, %v12712_v1  ;;  %v30334_v55 = vshrl.u32 %v27985_v19, 16  ;;  %v12748_v1 = vrot.slane %v12746_v3, 1 }
 0x9d1   : > { %24623 = vmatprep.subr.msk.bf16.mxu1 %vm4673_vm5, %v24768_v43  ;;  %v12696_v43 = vor.u32 %v12695_v39, %v30330_v21  ;;  %v30337_v21 = vshll.u32 %v28000_v29, 16 }
 0x9d2   : > { %v12689_v2 = vsel %vm1391_vm3, %v12684_v31, %v12688_v6  ;;  %v30335_v31 = vshrl.u32 %v27990_v61, 16 }
 0x9d3   : > { %22732 = vmatmul.mubr.msk.bf16.gmra.mrb[68].mxu1 %vm12150_vm10, %v12653_v58  ;;  %v12701_v13 = vsel %vm1391_vm3, %v12696_v43, %v12700_v34  ;;  %v12755_v43 = vrot.slane %v30337_v21, 1 }
 0x9d4   : > { %22735 = vmatprep.mubr.msk.bf16.mxu1 %vm12150_vm10, %v12665_v56  ;;  %22764 = vmatpush3.bf16.msra.mxu1 %v13357_v37  ;;  %v30332_v37 = vshll.u32 %v27985_v19, 16  ;;  %v12731_v56 = vrot.slane %v30333_v49, 1 }
 0x9d5   : > { %22797 = vmatprep.subr.bf16.mxu1 %v28242_v24  ;;  %v12756_v15 = vor.u32 %v12755_v43, %v30339_v9  ;;  %v30343_v43 = vshrl.u32 %v28027_v22, 16  ;;  %v13067_v9 = vld [vmem:[#allocation2 + $0x48] sm:$0x80] }
 0x9d6   : > { %v12719_v58 = vrot.slane %v30332_v37, 1  ;;  %v12732_v6 = vor.u32 %v12731_v56, %v30335_v31  ;;  %v12601_v37 = vld [vmem:[#allocation2 + $0x148] sm:$0x1] }
 0x9d7   : > { %v12770_v49 = vshll.u32 %v12601_v37, 16  ;;  %v13120_v37 = vshrl.u32 %v13067_v9, 16 }
 0x9d8   : > { %v12720_v57 = vor.u32 %v12719_v58, %v30334_v55  ;;  %v12737_v36 = vsel %vm1391_vm3, %v12732_v6, %v12736_v63  ;;  %v12603_v58 = vld [vmem:[#allocation2 + $0x160] sm:$0x1]  ;;  %v12779_v55 = vrot.slane %v30340_v23, 1  ;;  %v30342_v63 = vshrl.u32 %v28014_v48, 16 }
 0x9d9   : > { %v12772_v6 = vrot.slane %v12770_v49, 1  ;;  %v13071_v49 = vld [vmem:[#allocation2 + $0x78] sm:$0x80] }
 0x9da   : > { %v12725_v39 = vsel %vm1391_vm3, %v12720_v57, %v12724_v53  ;;  %v12782_v57 = vshll.u32 %v12603_v58, 16  ;;  %v30341_v53 = vshrl.u32 %v28009_v20, 16  ;;  %v12780_v8 = vor.u32 %v12779_v55, %v30342_v63  ;;  %v13073_v63 = vld [vmem:[#allocation2 + $0x90] sm:$0x80] }
 0x9db   : > { %22736 = vmatmul.mubr.msk.bf16.gmra.mrb[72].mxu1 %vm12150_vm10, %v12677_v60  ;;  %v12599_v60 = vld [vmem:[#allocation2 + $0x130] sm:$0x1] }
 0x9dc   : > { %22739 = vmatprep.mubr.msk.bf16.mxu1 %vm12150_vm10, %v12689_v2  ;;  %v12743_v2 = vrot.slane %v30336_v26, 1  ;;  %v12758_v34 = vshll.u32 %v12599_v60, 16  ;;  %v12784_v60 = vrot.slane %v12782_v57, 1 }
 0x9de   : > { %v12744_v4 = vor.u32 %v12743_v2, %v30338_v40  ;;  %v12791_v2 = vrot.slane %v12120_v59, 1 }
 0x9e0   : > { %v12749_v42 = vsel %vm1391_vm3, %v12744_v4, %v12748_v1  ;;  %v13065_v1 = vld [vmem:[#allocation2 + $0x30] sm:$0x80] }
 0x9e3   : > { %22740 = vmatmul.mubr.msk.bf16.gmra.mrb[76].mxu1 %vm12150_vm10, %v12701_v13  ;;  %v12760_v13 = vrot.slane %v12758_v34, 1  ;;  %v12792_v34 = vor.u32 %v12791_v2, %v30343_v43 }
 0x9e4   : > { %22743 = vmatprep.mubr.msk.bf16.mxu1 %vm12150_vm10, %v12713_v28  ;;  %v12767_v28 = vrot.slane %v12096_v30, 1  ;;  %v12605_v30 = vld [vmem:[#allocation2 + $0x178] sm:$0x1] }
 0x9e5   : > { %v12761_v56 = vsel %vm1391_vm3, %v12756_v15, %v12760_v13  ;;  %v12794_v3 = vshll.u32 %v12605_v30, 16  ;;  %v13108_v13 = vshrl.u32 %v13065_v1, 16  ;;  %v13156_v30 = vshrl.u32 %v13073_v63, 16  ;;  %v13083_v1 = vld [vmem:[#allocation2 + $0x108] sm:$0x80] }
 0x9e6   : > { %v12768_v31 = vor.u32 %v12767_v28, %v30341_v53  ;;  %v13069_v28 = vld [vmem:[#allocation2 + $0x60] sm:$0x80]  ;;  %v24771_v53 = vld [vmem:[%s25105_s19 + $0x60] ss:$0 sps:$4 sm:$0xff]  }
 0x9e7   : > { %v12796_v40 = vrot.slane %v12794_v3, 1  ;;  %v13110_v58 = vrot.slane %v13108_v13, 7  ;;  %v13132_v55 = vshrl.u32 %v13069_v28, 16  ;;  %v13077_v3 = vld [vmem:[#allocation2 + $0xc0] sm:$0x80]  ;;  %v13216_v13 = vshrl.u32 %v13083_v1, 16 }
 0x9e8   : > { %v12773_v26 = vsel %vm1391_vm3, %v12768_v31, %v12772_v6 }
 0x9e9   : > { %v12797_v15 = vsel %vm1391_vm3, %v12792_v34, %v12796_v40  ;;  %v13118_v23 = vsel %vm746_vm4, %v13110_v58, %v28052_v18  ;;  %v13134_v31 = vrot.slane %v13132_v55, 7  ;;  %v13606_v18 = vsel %vm4673_vm5, %v24771_v53, 0  ;;  %v13087_v58 = vld [vmem:[#allocation2 + $0x138] sm:$0x80]  ;;  %v13091_v55 = vld [vmem:[#allocation2 + $0x168] sm:$0x80] }
 0x9eb   : > { %22744 = vmatmul.mubr.msk.bf16.gmra.mrb[80].mxu1 %vm12150_vm10, %v12725_v39  ;;  %v13063_v39 = vld [vmem:[#allocation2 + $0x18] sm:$0x80] }
 0x9ec   : > { %22747 = vmatprep.mubr.msk.bf16.mxu1 %vm12150_vm10, %v12737_v36  ;;  %v12785_v36 = vsel %vm1391_vm3, %v12780_v8, %v12784_v60  ;;  %v13096_v21 = vshrl.u32 %v13063_v39, 16  ;;  %v13075_v8 = vld [vmem:[#allocation2 + $0xa8] sm:$0x80]  ;;  %v28330_v60 = vld [vmem:[%s25105_s19 + $0x64] sm:$0xff]  }
 0x9ed   : > { %v13168_v39 = vshrl.u32 %v13075_v8, 16 }
 0x9ee   : > { %v13098_v4 = vrot.slane %v13096_v21, 7 }
 0x9ef   : > { %v13170_v2 = vrot.slane %v13168_v39, 7  ;;  %v24773_v39 = vld [vmem:[%s25105_s19 + $0x6c] sm:$0xff]  }
 0x9f0   : > { %v13106_v59 = vsel %vm746_vm4, %v13098_v4, %v28043_v11  ;;  %v13144_v11 = vshrl.u32 %v13071_v49, 16  ;;  %v13081_v4 = vld [vmem:[#allocation2 + $0xf0] sm:$0x80]  ;;  %v13240_v49 = vshrl.u32 %v13087_v58, 16 }
 0x9f1   : > { %v13178_v43 = vsel %vm746_vm4, %v13170_v2, %v28122_v16  ;;  %v24775_v2 = vld [vmem:[%s25105_s19 + $0x78] sm:$0xff]  }
 0x9f2   : > { %v13146_v6 = vrot.slane %v13144_v11, 7 }
 0x9f3   : > { %22748 = vmatmul.mubr.msk.bf16.gmra.mrb[84].mxu1 %vm12150_vm10, %v12749_v42  ;;  %v13122_v42 = vrot.slane %v13120_v37, 7  ;;  %v13085_v37 = vld [vmem:[#allocation2 + $0x120] sm:$0x80] }
 0x9f4   : > { %22751 = vmatprep.mubr.msk.bf16.mxu1 %vm12150_vm10, %v12761_v56  ;;  %v24770_v56 = vld [vmem:[%s25105_s19 + $0x58] sm:$0xff]   ;;  %v13228_v28 = vshrl.u32 %v13085_v37, 16 }
 0x9f5   : > { %v13130_v57 = vsel %vm746_vm4, %v13122_v42, %v28072_v46  ;;  %v13142_v46 = vsel %vm746_vm4, %v13134_v31, %v28077_v52  ;;  %v13180_v52 = vshrl.u32 %v13077_v3, 16 }
 0x9f7   : > { %v13182_v34 = vrot.slane %v13180_v52, 7  ;;  %v28427_v52 = vld [vmem:[#allocation2 + $0x68] sm:$0xff] }
 0x9f9   : > { %v13190_v9 = vsel %vm746_vm4, %v13182_v34, %v28127_v47 }
 0x9fb   : > { %22752 = vmatmul.mubr.msk.bf16.gmra.mrb[88].mxu1 %vm12150_vm10, %v12773_v26  ;;  %v13158_v26 = vrot.slane %v13156_v30, 7  ;;  %v30345_v30 = vshll.u32 %v28023_v10, 16 }
 0x9fc   : > { %22755 = vmatprep.mubr.msk.bf16.mxu1 %vm12150_vm10, %v12785_v36  ;;  %v13079_v36 = vld [vmem:[#allocation2 + $0xd8] sm:$0x80] }
 0x9fd   : > { %v13166_v21 = vsel %vm746_vm4, %v13158_v26, %v28105_v27 }
 0xa03   : > { %22756 = vmatmul.mubr.msk.bf16.gmra.mrb[92].mxu1 %vm12150_vm10, %v12797_v15  ;;  %v13204_v15 = vshrl.u32 %v13081_v4, 16  ;;  %v13872_v4 = vshll.u32 %v28427_v52, 16 }
 0xa04   : > { %22765 = vmatprep.mubr.msk.bf16.mxu1 %vm12150_vm10, %v13106_v59  ;;  %v13218_v59 = vrot.slane %v13216_v13, 7  ;;  %v13810_v13 = vld [vmem:[#allocation2 + $0x88] sm:$0x1] }
 0xa05   : > { %v13206_v16 = vrot.slane %v13204_v15, 7  ;;  %v13808_v15 = vld [vmem:[#allocation2 + $0x70] sm:$0x1]  ;;  %v13874_v37 = vrot.slane %v13872_v4, 1 }
 0xa06   : > { %v13226_v47 = vsel %vm746_vm4, %v13218_v59, %v28166_v41  ;;  %v13877_v58 = vshll.u32 %v13808_v15, 16  ;;  %v28517_v15 = vld [vmem:[#allocation2 + $0x110] sm:$0xff] }
 0xa07   : > { %v13214_v42 = vsel %vm746_vm4, %v13206_v16, %v28149_v45  ;;  %v24776_v16 = vld [vmem:[%s25105_s19 + $0x80] sm:$0xff]  }
 0xa0b   : > { %22766 = vmatmul.mubr.msk.bf16.vlgmr.msra.gmra.mrb[64].mxu1 %vm12150_vm10, %v13118_v23  ;;  %v13089_v23 = vld [vmem:[#allocation2 + $0x150] sm:$0x80] }
 0xa0c   : > { %22769 = vmatprep.mubr.msk.bf16.mxu1 %vm12150_vm10, %v13130_v57  ;;  %22798 = vmatpush3.bf16.msra.mxu1 %v28242_v24  ;;  %v13154_v24 = vsel %vm746_vm4, %v13146_v6, %v28100_v25  ;;  %v13192_v25 = vshrl.u32 %v13079_v36, 16  ;;  %v13252_v11 = vshrl.u32 %v13089_v23, 16  ;;  %v13093_v6 = vld [vmem:[#allocation2 + $0x180] sm:$0x80] }
 0xa0d   : > { %22799 = vmatprep.subr.bf16.mxu1 %v24770_v56  ;;  %v13276_v8 = vshrl.u32 %v13093_v6, 16 }
 0xa0e   : > { %v13194_v40 = vrot.slane %v13192_v25, 7  ;;  %v13254_v41 = vrot.slane %v13252_v11, 7  ;;  %v28431_v25 = vld [vmem:[#allocation2 + $0x80] sm:$0xff]  ;;  %v13879_v11 = vrot.slane %v13877_v58, 1 }
 0xa0f   : > { %v13882_v23 = vshrl.u32 %v28431_v25, 16 }
 0xa10   : > { %22800 = vmatpush3.bf16.msra.mxu1 %v24770_v56  ;;  %v13202_v27 = vsel %vm746_vm4, %v13194_v40, %v28144_v0  ;;  %v13230_v0 = vrot.slane %v13228_v28, 7  ;;  %v13242_v56 = vrot.slane %v13240_v49, 7  ;;  %v13262_v63 = vsel %vm746_vm4, %v13254_v41, %v28192_v7  ;;  %v28454_v49 = vld [vmem:[#allocation2 + $0x98] sm:$0xff] }
 0xa11   : > { %24624 = vmatprep.subr.msk.bf16.mxu1 %vm4673_vm5, %v24771_v53  ;;  %v13264_v53 = vshrl.u32 %v13091_v55, 16  ;;  %v24777_v55 = vld [vmem:[%s25105_s19 + $0x88] ss:$0 sps:$4 sm:$0xff]  }
 0xa12   : > { %v13238_v57 = vsel %vm746_vm4, %v13230_v0, %v28171_v44  ;;  %v13250_v45 = vsel %vm746_vm4, %v13242_v56, %v28188_v38  ;;  %v30344_v44 = vshrl.u32 %v28023_v10, 16  ;;  %v13870_v0 = vshrl.u32 %v28427_v52, 16  ;;  %v28458_v56 = vld [vmem:[#allocation2 + $0xb0] sm:$0xff] }
 0xa13   : > { %22770 = vmatmul.mubr.msk.bf16.gmra.mrb[68].mxu1 %vm12150_vm10, %v13142_v46  ;;  %v13266_v31 = vrot.slane %v13264_v53, 7  ;;  %v13278_v46 = vrot.slane %v13276_v8, 7  ;;  %v13908_v6 = vshll.u32 %v28458_v56, 16  ;;  %v14584_v8 = vsel %vm4673_vm5, %v24777_v55, 0 }
 0xa14   : > { %22773 = vmatprep.mubr.msk.bf16.mxu1 %vm12150_vm10, %v13154_v24  ;;  %22802 = vmatpush3.bf16.msra.mxu1 %v13606_v18  ;;  %v13282_v18 = vrot.slane %v30344_v44, 7  ;;  %v28475_v44 = vld [vmem:[%s25105_s19 + $0x8c] sm:$0xff]  }
 0xa15   : > { %22835 = vmatprep.subr.bf16.mxu1 %v28330_v60  ;;  %v13274_v38 = vsel %vm746_vm4, %v13266_v31, %v28209_v54  ;;  %v24774_v54 = vld [vmem:[%s25105_s19 + $0x74] ss:$0 sps:$4 sm:$0xff]   ;;  %v13812_v31 = vld [vmem:[#allocation2 + $0xa0] sm:$0x1] }
 0xa16   : > { %v28373_v24 = vor.u32 %v30345_v30, %v13282_v18  ;;  %v14095_v26 = vsel %vm4673_vm5, %v24774_v54, 0 }
 0xa18   : > { %v13286_v7 = vsel %vm746_vm4, %v13278_v46, %v28373_v24  ;;  %v13901_v46 = vshll.u32 %v13812_v31, 16 }
 0xa1b   : > { %22774 = vmatmul.mubr.msk.bf16.gmra.mrb[72].mxu1 %vm12150_vm10, %v13166_v21 }
 0xa1c   : > { %22777 = vmatprep.mubr.msk.bf16.mxu1 %vm12150_vm10, %v13178_v43 }
 0xa23   : > { %22778 = vmatmul.mubr.msk.bf16.gmra.mrb[76].mxu1 %vm12150_vm10, %v13190_v9 }
 0xa24   : > { %22781 = vmatprep.mubr.msk.bf16.mxu1 %vm12150_vm10, %v13202_v27  ;;  %v13884_v27 = vshll.u32 %v28431_v25, 16 }
 0xa26   : > { %v13886_v28 = vrot.slane %v13884_v27, 1 }
 0xa28   : > { %v28469_v53 = vor.u32 %v13886_v28, %v13882_v23  ;;  %v13820_v28 = vld [vmem:[#allocation2 + $0x100] sm:$0x1] }
 0xa29   : > { %v13949_v31 = vshll.u32 %v13820_v28, 16 }
 0xa2b   : > { %22782 = vmatmul.mubr.msk.bf16.gmra.mrb[80].mxu1 %vm12150_vm10, %v13214_v42 }
 0xa2c   : > { %22785 = vmatprep.mubr.msk.bf16.mxu1 %vm12150_vm10, %v13226_v47  ;;  %v13889_v47 = vshll.u32 %v13810_v13, 16 }
 0xa2e   : > { %v13891_v41 = vrot.slane %v13889_v47, 1  ;;  %v30226_v47 = vshll.u32 %v28517_v15, 16 }
 0xa30   : > { %v13892_v30 = vsel %vm1391_vm3, %v28469_v53, %v13891_v41 }
 0xa33   : > { %22786 = vmatmul.mubr.msk.bf16.gmra.mrb[84].mxu1 %vm12150_vm10, %v13238_v57  ;;  %v28464_v57 = vor.u32 %v13874_v37, %v13870_v0 }
 0xa34   : > { %22789 = vmatprep.mubr.msk.bf16.mxu1 %vm12150_vm10, %v13250_v45  ;;  %v13896_v45 = vshll.u32 %v28454_v49, 16 }
 0xa35   : > { %v13880_v18 = vsel %vm1391_vm3, %v28464_v57, %v13879_v11 }
 0xa3b   : > { %22790 = vmatmul.mubr.msk.bf16.gmra.mrb[88].mxu1 %vm12150_vm10, %v13262_v63  ;;  %v13814_v63 = vld [vmem:[#allocation2 + $0xb8] sm:$0x1] }
 0xa3c   : > { %22793 = vmatprep.mubr.msk.bf16.mxu1 %vm12150_vm10, %v13274_v38  ;;  %v13898_v38 = vrot.slane %v13896_v45, 1 }
 0xa43   : > { %22794 = vmatmul.mubr.msk.bf16.gmra.mrb[92].mxu1 %vm12150_vm10, %v13286_v7  ;;  %v13910_v7 = vrot.slane %v13908_v6, 1 }
 0xa44   : > { %22803 = vmatprep.mubr.msk.bf16.mxu1 %vm12150_vm10, %v27937_v17  ;;  %v13801_v17 = vld [vmem:[#allocation2 + $0x20] sm:$0xff] }
 0xa4b   : > { %22804 = vmatmul.mubr.msk.bf16.vlgmr.msra.gmra.mrb[64].mxu1 %vm12150_vm10, %v27942_v14  ;;  %v13836_v14 = vshll.u32 %v13801_v17, 16 }
 0xa4c   : > { %22807 = vmatprep.mubr.msk.bf16.mxu1 %vm12150_vm10, %v27954_v32  ;;  %22836 = vmatpush3.bf16.msra.mxu1 %v28330_v60  ;;  %v13802_v32 = vld [vmem:[#allocation2 + $0x28] sm:$0x1]  ;;  %v13806_v60 = vld [vmem:[#allocation2 + $0x58] sm:$0x1] }
 0xa4d   : > { %22837 = vmatprep.subr.bf16.mxu1 %v24773_v39  ;;  %v13865_v21 = vshll.u32 %v13806_v60, 16 }
 0xa4f   : > { %v13867_v9 = vrot.slane %v13865_v21, 1 }
 0xa50   : > { %22838 = vmatpush3.bf16.msra.mxu1 %v24773_v39  ;;  %v13913_v39 = vshll.u32 %v13814_v63, 16 }
 0xa51   : > { %24625 = vmatprep.subr.msk.bf16.mxu1 %vm4673_vm5, %v24774_v54  ;;  %v28486_v54 = vld [vmem:[#allocation2 + $0xc8] sm:$0xff] }
 0xa53   : > { %22808 = vmatmul.mubr.msk.bf16.gmra.mrb[68].mxu1 %vm12150_vm10, %v27959_v51  ;;  %v13838_v51 = vrot.slane %v13836_v14, 1 }
 0xa54   : > { %22811 = vmatprep.mubr.msk.bf16.mxu1 %vm12150_vm10, %v27965_v12  ;;  %22840 = vmatpush3.bf16.msra.mxu1 %v14095_v26  ;;  %v13841_v12 = vshll.u32 %v13802_v32, 16  ;;  %v13894_v26 = vshrl.u32 %v28454_v49, 16  ;;  %v13903_v32 = vrot.slane %v13901_v46, 1 }
 0xa55   : > { %22873 = vmatprep.subr.bf16.mxu1 %v24775_v2 }
 0xa56   : > { %v28496_v14 = vor.u32 %v13898_v38, %v13894_v26  ;;  %v28539_v38 = vld [vmem:[#allocation2 + $0x128] sm:$0xff] }
 0xa58   : > { %v13904_v60 = vsel %vm1391_vm3, %v28496_v14, %v13903_v32  ;;  %v13951_v32 = vrot.slane %v13949_v31, 1 }
 0xa5b   : > { %22812 = vmatmul.mubr.msk.bf16.gmra.mrb[72].mxu1 %vm12150_vm10, %v27970_v5  ;;  %v28412_v5 = vld [vmem:[#allocation2 + $0x38] sm:$0xff] }
 0xa5c   : > { %22815 = vmatprep.mubr.msk.bf16.mxu1 %vm12150_vm10, %v27975_v33  ;;  %v28416_v33 = vld [vmem:[#allocation2 + $0x50] sm:$0xff]  ;;  %v13846_v43 = vshrl.u32 %v28412_v5, 16 }
 0xa5d   : > { %v13858_v34 = vshrl.u32 %v28416_v33, 16 }
 0xa63   : > { %22816 = vmatmul.mubr.msk.bf16.gmra.mrb[76].mxu1 %vm12150_vm10, %v27980_v62  ;;  %v13834_v62 = vshrl.u32 %v13801_v17, 16  ;;  %v13906_v17 = vshrl.u32 %v28458_v56, 16 }
 0xa64   : > { %22819 = vmatprep.mubr.msk.bf16.mxu1 %vm12150_vm10, %v27985_v19  ;;  %v13848_v19 = vshll.u32 %v28412_v5, 16 }
 0xa6b   : > { %22820 = vmatmul.mubr.msk.bf16.gmra.mrb[80].mxu1 %vm12150_vm10, %v27990_v61  ;;  %v13839_v61 = vor.u32 %v13838_v51, %v13834_v62  ;;  %v13920_v51 = vshll.u32 %v28486_v54, 16  ;;  %v13915_v62 = vrot.slane %v13913_v39, 1 }
 0xa6c   : > { %22823 = vmatprep.mubr.msk.bf16.mxu1 %vm12150_vm10, %v27995_v50  ;;  %v13843_v50 = vrot.slane %v13841_v12, 1  ;;  %v28501_v12 = vor.u32 %v13910_v7, %v13906_v17  ;;  %v13954_v7 = vshrl.u32 %v28517_v15, 16 }
 0xa73   : > { %22824 = vmatmul.mubr.msk.bf16.gmra.mrb[84].mxu1 %vm12150_vm10, %v28000_v29  ;;  %v13804_v29 = vld [vmem:[#allocation2 + $0x40] sm:$0x1] }
 0xa74   : > { %22827 = vmatprep.mubr.msk.bf16.mxu1 %vm12150_vm10, %v28009_v20  ;;  %v13860_v20 = vshll.u32 %v28416_v33, 16  ;;  %v13853_v3 = vshll.u32 %v13804_v29, 16  ;;  %v13818_v29 = vld [vmem:[#allocation2 + $0xe8] sm:$0x1] }
 0xa75   : > { %v13937_v21 = vshll.u32 %v13818_v29, 16 }
 0xa76   : > { %v13862_v36 = vrot.slane %v13860_v20, 1  ;;  %v13855_v40 = vrot.slane %v13853_v3, 1 }
 0xa78   : > { %v28441_v1 = vor.u32 %v13862_v36, %v13858_v34 }
 0xa7a   : > { %v13868_v42 = vsel %vm1391_vm3, %v28441_v1, %v13867_v9  ;;  %v13918_v9 = vshrl.u32 %v28486_v54, 16 }
 0xa7b   : > { %22828 = vmatmul.mubr.msk.bf16.gmra.mrb[88].mxu1 %vm12150_vm10, %v28014_v48  ;;  %v13850_v48 = vrot.slane %v13848_v19, 1 }
 0xa7c   : > { %22831 = vmatprep.mubr.msk.bf16.mxu1 %vm12150_vm10, %v28027_v22  ;;  %v13844_v22 = vsel %vm1391_vm3, %v13839_v61, %v13843_v50  ;;  %v13816_v61 = vld [vmem:[#allocation2 + $0xd0] sm:$0x1] }
 0xa7d   : > { %v13925_v3 = vshll.u32 %v13816_v61, 16 }
 0xa83   : > { %22832 = vmatmul.mubr.msk.bf16.gmra.mrb[92].mxu1 %vm12150_vm10, %v28023_v10  ;;  %v28436_v10 = vor.u32 %v13850_v48, %v13846_v43  ;;  %v13922_v48 = vrot.slane %v13920_v51, 1 }
 0xa84   : > { %22841 = vmatprep.mubr.msk.bf16.mxu1 %vm12150_vm10, %v13844_v22  ;;  %v13916_v22 = vsel %vm1391_vm3, %v28501_v12, %v13915_v62  ;;  %v30224_v62 = vshll.u32 %v28539_v38, 16 }
 0xa85   : > { %v13856_v59 = vsel %vm1391_vm3, %v28436_v10, %v13855_v40  ;;  %v28513_v40 = vld [vmem:[#allocation2 + $0xf8] sm:$0xff] }
 0xa86   : > { %v13944_v37 = vshll.u32 %v28513_v40, 16  ;;  %v13942_v46 = vshrl.u32 %v28513_v40, 16 }
 0xa88   : > { %v13946_v41 = vrot.slane %v13944_v37, 1 }
 0xa8a   : > { %v28548_v39 = vor.u32 %v13946_v41, %v13942_v46  ;;  %v28569_v41 = vld [vmem:[#allocation2 + $0x170] sm:$0xff] }
 0xa8b   : > { %22842 = vmatmul.mubr.msk.bf16.vlgmr.msra.gmra.mrb[64].mxu1 %vm12150_vm10, %v13856_v59  ;;  %v13927_v59 = vrot.slane %v13925_v3, 1  ;;  %v13826_v3 = vld [vmem:[#allocation2 + $0x148] sm:$0x1] }
 0xa8c   : > { %22845 = vmatprep.mubr.msk.bf16.mxu1 %vm12150_vm10, %v13868_v42  ;;  %22874 = vmatpush3.bf16.msra.mxu1 %v24775_v2  ;;  %v28490_v2 = vld [vmem:[#allocation2 + $0xe0] sm:$0xff]  ;;  %v13939_v42 = vrot.slane %v13937_v21, 1  ;;  %v13985_v28 = vshll.u32 %v13826_v3, 16  ;;  %v30227_v3 = vshll.u32 %v28569_v41, 16 }
 0xa8d   : > { %22875 = vmatprep.subr.bf16.mxu1 %v24776_v16  ;;  %v13932_v50 = vshll.u32 %v28490_v2, 16  ;;  %v13930_v13 = vshrl.u32 %v28490_v2, 16 }
 0xa8f   : > { %v13934_v36 = vrot.slane %v13932_v50, 1 }
 0xa90   : > { %22876 = vmatpush3.bf16.msra.mxu1 %v24776_v16  ;;  %v28522_v16 = vor.u32 %v13922_v48, %v13918_v9 }
 0xa91   : > { %24626 = vmatprep.subr.msk.bf16.mxu1 %vm4673_vm5, %v24777_v55  ;;  %v28527_v58 = vor.u32 %v13934_v36, %v13930_v13  ;;  %v13822_v55 = vld [vmem:[#allocation2 + $0x118] sm:$0x1]  ;;  %v13970_v36 = vrot.slane %v30224_v62, 1  ;;  %v30229_v62 = vshrl.u32 %v28569_v41, 16 }
 0xa92   : > { %v13928_v11 = vsel %vm1391_vm3, %v28522_v16, %v13927_v59 }
 0xa93   : > { %22846 = vmatmul.mubr.msk.bf16.gmra.mrb[68].mxu1 %vm12150_vm10, %v13880_v18  ;;  %v13940_v63 = vsel %vm1391_vm3, %v28527_v58, %v13939_v42  ;;  %v13961_v18 = vshll.u32 %v13822_v55, 16  ;;  %v28565_v55 = vld [vmem:[#allocation2 + $0x158] sm:$0xff] }
 0xa94   : > { %22849 = vmatprep.mubr.msk.bf16.mxu1 %vm12150_vm10, %v13892_v30  ;;  %22878 = vmatpush3.bf16.msra.mxu1 %v14584_v8  ;;  %v13958_v8 = vrot.slane %v30226_v47, 1  ;;  %v28543_v30 = vld [vmem:[#allocation2 + $0x140] sm:$0xff]  ;;  %v14290_v47 = vld [vmem:[#allocation2 + $0x30] sm:$0x80] }
 0xa95   : > { %22911 = vmatprep.subr.bf16.mxu1 %v28475_v44  ;;  %v13963_v29 = vrot.slane %v13961_v18, 1  ;;  %v30222_v48 = vshll.u32 %v28543_v30, 16  ;;  %v30223_v31 = vshrl.u32 %v28543_v30, 16  ;;  %v30225_v18 = vshll.u32 %v28565_v55, 16 }
 0xa96   : > { %v28553_v61 = vor.u32 %v13958_v8, %v13954_v7 }
 0xa97   : > { %v13982_v42 = vrot.slane %v30222_v48, 1  ;;  %v13994_v48 = vrot.slane %v30225_v18, 1  ;;  %v13832_v18 = vld [vmem:[#allocation2 + $0x190] sm:$0x1] }
 0xa98   : > { %v13964_v59 = vsel %vm1391_vm3, %v28553_v61, %v13963_v29  ;;  %v13987_v29 = vrot.slane %v13985_v28, 1 }
 0xa9b   : > { %22850 = vmatmul.mubr.msk.bf16.gmra.mrb[72].mxu1 %vm12150_vm10, %v13904_v60  ;;  %v13824_v60 = vld [vmem:[#allocation2 + $0x130] sm:$0x1] }
 0xa9c   : > { %22853 = vmatprep.mubr.msk.bf16.mxu1 %vm12150_vm10, %v13916_v22  ;;  %v13952_v22 = vsel %vm1391_vm3, %v28548_v39, %v13951_v32  ;;  %v13973_v21 = vshll.u32 %v13824_v60, 16  ;;  %v28579_v32 = vor.u32 %v13982_v42, %v30223_v31  ;;  %v13828_v60 = vld [vmem:[#allocation2 + $0x160] sm:$0x1]  ;;  %v14006_v42 = vrot.slane %v30227_v3, 1 }
 0xa9d   : > { %v13990_v31 = vshrl.u32 %v28565_v55, 16 }
 0xa9e   : > { %v13975_v8 = vrot.slane %v13973_v21, 1  ;;  %v13988_v21 = vsel %vm1391_vm3, %v28579_v32, %v13987_v29 }
 0xaa3   : > { %22854 = vmatmul.mubr.msk.bf16.gmra.mrb[76].mxu1 %vm12150_vm10, %v13928_v11  ;;  %v30228_v11 = vshrl.u32 %v28539_v38, 16 }
 0xaa4   : > { %22857 = vmatprep.mubr.msk.bf16.mxu1 %vm12150_vm10, %v13940_v63 }
 0xaa5   : > { %v28574_v63 = vor.u32 %v13970_v36, %v30228_v11  ;;  %v13997_v36 = vshll.u32 %v13828_v60, 16  ;;  %v14323_v11 = vshrl.u32 %v14290_v47, 16  ;;  %v14341_v47 = vrot.slane %v13858_v34, 7  ;;  %v14296_v34 = vld [vmem:[#allocation2 + $0x78] sm:$0x80] }
 0xaa7   : > { %v13999_v60 = vrot.slane %v13997_v36, 1 }
 0xaab   : > { %22858 = vmatmul.mubr.msk.bf16.gmra.mrb[80].mxu1 %vm12150_vm10, %v13952_v22  ;;  %v13830_v22 = vld [vmem:[#allocation2 + $0x178] sm:$0x1] }
 0xaac   : > { %22861 = vmatprep.mubr.msk.bf16.mxu1 %vm12150_vm10, %v13964_v59  ;;  %v13976_v59 = vsel %vm1391_vm3, %v28574_v63, %v13975_v8  ;;  %v14009_v28 = vshll.u32 %v13830_v22, 16  ;;  %v28596_v8 = vor.u32 %v13994_v48, %v13990_v31  ;;  %v14329_v48 = vrot.slane %v13846_v43, 7 }
 0xaae   : > { %v14011_v29 = vrot.slane %v14009_v28, 1  ;;  %v14000_v22 = vsel %vm1391_vm3, %v28596_v8, %v13999_v60  ;;  %v14332_v28 = vor.u32 %v14329_v48, %v13848_v19  ;;  %v14294_v60 = vld [vmem:[#allocation2 + $0x60] sm:$0x80]  ;;  %v24779_v48 = vld [vmem:[%s25105_s19 + $0x94] sm:$0xff]  }
 0xab3   : > { %22862 = vmatmul.mubr.msk.bf16.gmra.mrb[84].mxu1 %vm12150_vm10, %v13976_v59  ;;  %v28600_v59 = vor.u32 %v14006_v42, %v30229_v62  ;;  %v14325_v42 = vrot.slane %v14323_v11, 7  ;;  %v14292_v62 = vld [vmem:[#allocation2 + $0x48] sm:$0x80]  ;;  %v14353_v11 = vrot.slane %v13870_v0, 7  ;;  %v14365_v0 = vrot.slane %v13882_v23, 7 }
 0xab4   : > { %22865 = vmatprep.mubr.msk.bf16.mxu1 %vm12150_vm10, %v13988_v21  ;;  %v14021_v21 = vshll.u32 %v13832_v18, 16 }
 0xab5   : > { %v14012_v3 = vsel %vm1391_vm3, %v28600_v59, %v14011_v29  ;;  %v14333_v43 = vsel %vm746_vm4, %v14325_v42, %v14332_v28  ;;  %v14344_v29 = vor.u32 %v14341_v47, %v13860_v20  ;;  %v14359_v42 = vshrl.u32 %v14296_v34, 16 }
 0xab6   : > { %v14023_v36 = vrot.slane %v14021_v21, 1  ;;  %v14298_v21 = vld [vmem:[#allocation2 + $0x90] sm:$0x80] }
 0xab7   : > { %v14371_v20 = vshrl.u32 %v14298_v21, 16 }
 0xab8   : > { %v14024_v18 = vsel %vm1391_vm3, %v28047_v35, %v14023_v36 }
 0xab9   : > { %v14373_v23 = vrot.slane %v14371_v20, 7 }
 0xabb   : > { %22866 = vmatmul.mubr.msk.bf16.gmra.mrb[88].mxu1 %vm12150_vm10, %v14000_v22  ;;  %v14335_v22 = vshrl.u32 %v14292_v62, 16  ;;  %v14356_v62 = vor.u32 %v14353_v11, %v13872_v4  ;;  %v24780_v4 = vld [vmem:[%s25105_s19 + $0x9c] ss:$0 sps:$4 sm:$0xff]   ;;  %v28643_v11 = vld [vmem:[%s25105_s19 + $0xa0] sm:$0xff]  }
 0xabc   : > { %22869 = vmatprep.mubr.msk.bf16.mxu1 %vm12150_vm10, %v14012_v3  ;;  %v14347_v3 = vshrl.u32 %v14294_v60, 16  ;;  %v14377_v60 = vrot.slane %v13894_v26, 7  ;;  %v14833_v26 = vsel %vm4673_vm5, %v24780_v4, 0 }
 0xabd   : > { %v14337_v19 = vrot.slane %v14335_v22, 7  ;;  %v14368_v22 = vor.u32 %v14365_v0, %v13884_v27 }
 0xabe   : > { %v14349_v35 = vrot.slane %v14347_v3, 7  ;;  %v14380_v47 = vor.u32 %v14377_v60, %v13896_v45  ;;  %v14302_v3 = vld [vmem:[#allocation2 + $0xc0] sm:$0x80] }
 0xabf   : > { %v14345_v36 = vsel %vm746_vm4, %v14337_v19, %v14344_v29  ;;  %v14389_v29 = vrot.slane %v13906_v17, 7  ;;  %v14395_v45 = vshrl.u32 %v14302_v3, 16 }
 0xac0   : > { %v14357_v28 = vsel %vm746_vm4, %v14349_v35, %v14356_v62  ;;  %v14381_v27 = vsel %vm746_vm4, %v14373_v23, %v14380_v47  ;;  %v14401_v35 = vrot.slane %v13918_v9, 7  ;;  %v14413_v9 = vrot.slane %v13930_v13, 7  ;;  %v14310_v13 = vld [vmem:[#allocation2 + $0x120] sm:$0x80] }
 0xac1   : > { %v14392_v34 = vor.u32 %v14389_v29, %v13908_v6  ;;  %v14397_v21 = vrot.slane %v14395_v45, 7  ;;  %v14425_v6 = vrot.slane %v13942_v46, 7  ;;  %v14443_v3 = vshrl.u32 %v14310_v13, 16 }
 0xac2   : > { %v14404_v17 = vor.u32 %v14401_v35, %v13920_v51  ;;  %v14416_v51 = vor.u32 %v14413_v9, %v13932_v50  ;;  %v14312_v35 = vld [vmem:[#allocation2 + $0x138] sm:$0x80]  ;;  %v30350_v9 = vshll.u32 %v28543_v30, 16 }
 0xac3   : > { %22870 = vmatmul.mubr.msk.bf16.gmra.mrb[92].mxu1 %vm12150_vm10, %v14024_v18  ;;  %v14361_v18 = vrot.slane %v14359_v42, 7  ;;  %v14445_v29 = vrot.slane %v14443_v3, 7  ;;  %v14320_v3 = vld [vmem:[#allocation2 + $0x198] sm:$0x80] }
 0xac4   : > { %22879 = vmatprep.mubr.msk.bf16.mxu1 %vm12150_vm10, %v14333_v43  ;;  %v14300_v43 = vld [vmem:[#allocation2 + $0xa8] sm:$0x80] }
 0xac5   : > { %v14383_v19 = vshrl.u32 %v14300_v43, 16  ;;  %v14437_v43 = vrot.slane %v13954_v7, 7  ;;  %v14314_v7 = vld [vmem:[#allocation2 + $0x150] sm:$0x80] }
 0xac7   : > { %v14385_v62 = vrot.slane %v14383_v19, 7 }
 0xac9   : > { %v14393_v42 = vsel %vm746_vm4, %v14385_v62, %v14392_v34  ;;  %v14455_v34 = vshrl.u32 %v14312_v35, 16 }
 0xacb   : > { %22880 = vmatmul.mubr.msk.bf16.vlgmr.msra.gmra.mrb[64].mxu1 %vm12150_vm10, %v14345_v36  ;;  %v14306_v36 = vld [vmem:[#allocation2 + $0xf0] sm:$0x80] }
 0xacc   : > { %22883 = vmatprep.mubr.msk.bf16.mxu1 %vm12150_vm10, %v14357_v28  ;;  %22912 = vmatpush3.bf16.msra.mxu1 %v28475_v44  ;;  %v14369_v44 = vsel %vm746_vm4, %v14361_v18, %v14368_v22  ;;  %v14405_v28 = vsel %vm746_vm4, %v14397_v21, %v14404_v17  ;;  %v14419_v20 = vshrl.u32 %v14306_v36, 16  ;;  %v14428_v18 = vor.u32 %v14425_v6, %v13944_v37  ;;  %v14308_v22 = vld [vmem:[#allocation2 + $0x108] sm:$0x80] }
 0xacd   : > { %22913 = vmatprep.subr.bf16.mxu1 %v24779_v48  ;;  %v14431_v47 = vshrl.u32 %v14308_v22, 16  ;;  %v30347_v37 = vshll.u32 %v28517_v15, 16  ;;  %v30349_v21 = vshrl.u32 %v28543_v30, 16  ;;  %v14467_v36 = vshrl.u32 %v14314_v7, 16 }
 0xace   : > { %v30351_v6 = vshll.u32 %v28565_v55, 16 }
 0xacf   : > { %v14440_v19 = vor.u32 %v14437_v43, %v30347_v37  ;;  %v14461_v17 = vrot.slane %v30349_v21, 7  ;;  %v24782_v21 = vld [vmem:[%s25105_s19 + $0xa8] sm:$0xff]  }
 0xad0   : > { %22914 = vmatpush3.bf16.msra.mxu1 %v24779_v48  ;;  %v14304_v48 = vld [vmem:[#allocation2 + $0xd8] sm:$0x80] }
 0xad1   : > { %24627 = vmatprep.subr.msk.bf16.mxu1 %vm4673_vm5, %v24780_v4  ;;  %v14407_v0 = vshrl.u32 %v14304_v48, 16  ;;  %v14421_v4 = vrot.slane %v14419_v20, 7  ;;  %v14469_v20 = vrot.slane %v14467_v36, 7 }
 0xad3   : > { %22884 = vmatmul.mubr.msk.bf16.gmra.mrb[68].mxu1 %vm12150_vm10, %v14369_v44  ;;  %v14409_v60 = vrot.slane %v14407_v0, 7  ;;  %v14429_v46 = vsel %vm746_vm4, %v14421_v4, %v14428_v18  ;;  %v14433_v44 = vrot.slane %v14431_v47, 7  ;;  %v14457_v0 = vrot.slane %v14455_v34, 7  ;;  %v14318_v4 = vld [vmem:[#allocation2 + $0x180] sm:$0x80] }
 0xad4   : > { %22887 = vmatprep.mubr.msk.bf16.mxu1 %vm12150_vm10, %v14381_v27  ;;  %22916 = vmatpush3.bf16.msra.mxu1 %v14833_v26  ;;  %v30346_v26 = vshrl.u32 %v28539_v38, 16  ;;  %v30348_v27 = vshll.u32 %v28539_v38, 16  ;;  %v28694_v18 = vld [vmem:[#allocation2 + $0x1a0] sm:$0xff]  ;;  %v14491_v43 = vshrl.u32 %v14318_v4, 16 }
 0xad5   : > { %22949 = vmatprep.subr.bf16.mxu1 %v28643_v11  ;;  %v14417_v23 = vsel %vm746_vm4, %v14409_v60, %v14416_v51  ;;  %v14441_v62 = vsel %vm746_vm4, %v14433_v44, %v14440_v19  ;;  %v14316_v51 = vld [vmem:[#allocation2 + $0x168] sm:$0x80]  ;;  %v14503_v19 = vshrl.u32 %v14320_v3, 16  ;;  %v15045_v4 = vld [vmem:[#allocation2 + $0x100] sm:$0x1] }
 0xad6   : > { %v14449_v50 = vrot.slane %v30346_v26, 7  ;;  %v14479_v13 = vshrl.u32 %v14316_v51, 16  ;;  %v14493_v37 = vrot.slane %v14491_v43, 7  ;;  %v15043_v51 = vld [vmem:[#allocation2 + $0xe8] sm:$0x1] }
 0xad7   : > { %v14505_v7 = vrot.slane %v14503_v19, 7  ;;  %v15049_v43 = vld [vmem:[#allocation2 + $0x130] sm:$0x1]  ;;  %v15053_v19 = vld [vmem:[#allocation2 + $0x160] sm:$0x1] }
 0xad8   : > { %v14452_v45 = vor.u32 %v14449_v50, %v30348_v27  ;;  %v14481_v26 = vrot.slane %v14479_v13, 7  ;;  %v30353_v50 = vshll.u32 %v28569_v41, 16  ;;  %v14510_v27 = vshll.u32 %v28694_v18, 16 }
 0xad9   : > { %v14501_v35 = vsel %vm746_vm4, %v14493_v37, %v28373_v24  ;;  %v24783_v24 = vld [vmem:[%s25105_s19 + $0xb0] ss:$0 sps:$4 sm:$0xff]   ;;  %v15152_v13 = vshll.u32 %v15043_v51, 16  ;;  %v15051_v37 = vld [vmem:[#allocation2 + $0x148] sm:$0x1] }
 0xada   : > { %v14453_v48 = vsel %vm746_vm4, %v14445_v29, %v14452_v45 }
 0xadb   : > { %22888 = vmatmul.mubr.msk.bf16.gmra.mrb[72].mxu1 %vm12150_vm10, %v14393_v42  ;;  %v14473_v42 = vrot.slane %v13990_v31, 7 }
 0xadc   : > { %22891 = vmatprep.mubr.msk.bf16.mxu1 %vm12150_vm10, %v14405_v28  ;;  %v14464_v28 = vor.u32 %v14461_v17, %v30350_v9  ;;  %v15322_v17 = vsel %vm4673_vm5, %v24783_v24, 0  ;;  %v15041_v9 = vld [vmem:[#allocation2 + $0xd0] sm:$0x1] }
 0xadd   : > { %v14476_v60 = vor.u32 %v14473_v42, %v30351_v6  ;;  %v15140_v6 = vshll.u32 %v15041_v9, 16 }
 0xade   : > { %v14465_v22 = vsel %vm746_vm4, %v14457_v0, %v14464_v28  ;;  %v15039_v0 = vld [vmem:[#allocation2 + $0xb8] sm:$0x1] }
 0xadf   : > { %v14477_v47 = vsel %vm746_vm4, %v14469_v20, %v14476_v60  ;;  %v15128_v20 = vshll.u32 %v15039_v0, 16  ;;  %v15142_v60 = vrot.slane %v15140_v6, 1  ;;  %v28817_v6 = vld [vmem:[#allocation2 + $0x8] sm:$0xff] }
 0xae0   : > { %22993 = vmatprep.mubr.msk.bf16.mxu0 %vm15972_vm12, %v28817_v6 }
 0xae3   : > { %22892 = vmatmul.mubr.msk.bf16.gmra.mrb[76].mxu1 %vm12150_vm10, %v14417_v23  ;;  %v30352_v23 = vshrl.u32 %v28569_v41, 16 }
 0xae4   : > { %22895 = vmatprep.mubr.msk.bf16.mxu1 %vm12150_vm10, %v14429_v46  ;;  %v14507_v46 = vshrl.u32 %v28694_v18, 16 }
 0xae5   : > { %v14485_v31 = vrot.slane %v30352_v23, 7  ;;  %v15164_v23 = vshll.u32 %v15045_v4, 16 }
 0xae6   : > { %v14509_v29 = vrot.slane %v14507_v46, 7 }
 0xae7   : > { %v14488_v44 = vor.u32 %v14485_v31, %v30353_v50  ;;  %v15166_v31 = vrot.slane %v15164_v23, 1  ;;  %v15188_v50 = vshll.u32 %v15049_v43, 16 }
 0xae9   : > { %v14489_v45 = vsel %vm746_vm4, %v14481_v26, %v14488_v44  ;;  %v15190_v44 = vrot.slane %v15188_v50, 1 }
 0xaeb   : > { %22896 = vmatmul.mubr.msk.bf16.gmra.mrb[80].mxu1 %vm12150_vm10, %v14441_v62  ;;  %v14512_v62 = vor.u32 %v14510_v27, %v14509_v29 }
 0xaec   : > { %22899 = vmatprep.mubr.msk.bf16.mxu1 %vm12150_vm10, %v14453_v48 }
 0xaed   : > { %v14513_v34 = vsel %vm746_vm4, %v14505_v7, %v14512_v62 }
 0xaf3   : > { %22900 = vmatmul.mubr.msk.bf16.gmra.mrb[84].mxu1 %vm12150_vm10, %v14465_v22 }
 0xaf4   : > { %22903 = vmatprep.mubr.msk.bf16.mxu1 %vm12150_vm10, %v14477_v47  ;;  %v15047_v47 = vld [vmem:[#allocation2 + $0x118] sm:$0x1] }
 0xaf5   : > { %v15176_v26 = vshll.u32 %v15047_v47, 16 }
 0xafb   : > { %22904 = vmatmul.mubr.msk.bf16.gmra.mrb[88].mxu1 %vm12150_vm10, %v14489_v45  ;;  %v15200_v45 = vshll.u32 %v15051_v37, 16 }
 0xafc   : > { %22907 = vmatprep.mubr.msk.bf16.mxu1 %vm12150_vm10, %v14501_v35  ;;  %v15212_v35 = vshll.u32 %v15053_v19, 16 }
 0xafd   : > { %v15202_v7 = vrot.slane %v15200_v45, 1 }
 0xafe   : > { %v15214_v62 = vrot.slane %v15212_v35, 1 }
 0xb03   : > { %22908 = vmatmul.mubr.msk.bf16.gmra.mrb[92].mxu1 %vm12150_vm10, %v14513_v34  ;;  %v15055_v34 = vld [vmem:[#allocation2 + $0x178] sm:$0x1] }
 0xb04   : > { %22917 = vmatprep.mubr.msk.bf16.mxu1 %vm12150_vm10, %v28412_v5  ;;  %v15029_v5 = vld [vmem:[#allocation2 + $0x40] sm:$0x1] }
 0xb0b   : > { %22918 = vmatmul.mubr.msk.bf16.vlgmr.msra.gmra.mrb[64].mxu1 %vm12150_vm10, %v28416_v33  ;;  %v15068_v33 = vshll.u32 %v15029_v5, 16  ;;  %v15224_v5 = vshll.u32 %v15055_v34, 16 }
 0xb0c   : > { %22921 = vmatprep.mubr.msk.bf16.mxu1 %vm12150_vm10, %v28427_v52  ;;  %22950 = vmatpush3.bf16.msra.mxu1 %v28643_v11  ;;  %v24829_v52 = vld [vmem:[#allocation2 + $0x188] sm:$0xff] }
 0xb0d   : > { %22951 = vmatprep.subr.bf16.mxu1 %v24782_v21 }
 0xb10   : > { %22952 = vmatpush3.bf16.msra.mxu1 %v24782_v21 }
 0xb11   : > { %24628 = vmatprep.subr.msk.bf16.mxu1 %vm4673_vm5, %v24783_v24  ;;  %v15057_v24 = vld [vmem:[#allocation2 + $0x190] sm:$0x1] }
 0xb13   : > { %22922 = vmatmul.mubr.msk.bf16.gmra.mrb[68].mxu1 %vm12150_vm10, %v28431_v25  ;;  %v15070_v25 = vrot.slane %v15068_v33, 1 }
 0xb14   : > { %22925 = vmatprep.mubr.msk.bf16.mxu1 %vm12150_vm10, %v28454_v49  ;;  %22954 = vmatpush3.bf16.msra.mxu1 %v15322_v17  ;;  %v15031_v49 = vld [vmem:[#allocation2 + $0x58] sm:$0x1]  ;;  %v15203_v17 = vsel %vm1391_vm3, %v28579_v32, %v15202_v7  ;;  %v15245_v32 = vrot.slane %v14510_v27, 1 }
 0xb15   : > { %v24784_v27 = vld [vmem:[%s25114_s23 + $0x18] sm:$0xff]  }
 0xb16   : > { %22987 = vmatprep.subr.bf16.mxu0 %v24784_v27 }
 0xb17   : > { %22988 = vmatpush3.bf16.msra.mxu0 %v24784_v27 }
 0xb1b   : > { %22926 = vmatmul.mubr.msk.bf16.gmra.mrb[72].mxu1 %vm12150_vm10, %v28458_v56  ;;  %v15033_v56 = vld [vmem:[#allocation2 + $0x70] sm:$0x1] }
 0xb1c   : > { %22929 = vmatprep.mubr.msk.bf16.mxu1 %vm12150_vm10, %v28486_v54  ;;  %v15080_v54 = vshll.u32 %v15031_v49, 16  ;;  %v15226_v49 = vrot.slane %v15224_v5, 1 }
 0xb23   : > { %22930 = vmatmul.mubr.msk.bf16.gmra.mrb[76].mxu1 %vm12150_vm10, %v28490_v2  ;;  %v15071_v2 = vsel %vm1391_vm3, %v28436_v10, %v15070_v25  ;;  %v15059_v25 = vld [vmem:[#allocation2 + $0x1a8] sm:$0x1] }
 0xb24   : > { %22933 = vmatprep.mubr.msk.bf16.mxu1 %vm12150_vm10, %v28513_v40  ;;  %v15092_v40 = vshll.u32 %v15033_v56, 16 }
 0xb2b   : > { %22934 = vmatmul.mubr.msk.bf16.gmra.mrb[80].mxu1 %vm12150_vm10, %v28517_v15  ;;  %v15082_v15 = vrot.slane %v15080_v54, 1 }
 0xb2c   : > { %22937 = vmatprep.mubr.msk.bf16.mxu1 %vm12150_vm10, %v28539_v38  ;;  %v15094_v38 = vrot.slane %v15092_v40, 1  ;;  %v15227_v40 = vsel %vm1391_vm3, %v28600_v59, %v15226_v49  ;;  %v24786_v59 = vld [vmem:[%s25114_s23 + $0x28] sm:$0xff]  }
 0xb2e   : > { %v15095_v48 = vsel %vm1391_vm3, %v28464_v57, %v15094_v38  ;;  %v15130_v57 = vrot.slane %v15128_v20, 1 }
 0xb30   : > { %v15131_v22 = vsel %vm1391_vm3, %v28501_v12, %v15130_v57  ;;  %v15167_v12 = vsel %vm1391_vm3, %v28548_v39, %v15166_v31  ;;  %v15056_v39 = vld [vmem:[#allocation2 + $0x188] sm:$0xff] }
 0xb31   : > { %v15231_v21 = vshll.u32 %v15056_v39, 16 }
 0xb33   : > { %22938 = vmatmul.mubr.msk.bf16.gmra.mrb[84].mxu1 %vm12150_vm10, %v28543_v30  ;;  %v15035_v30 = vld [vmem:[#allocation2 + $0x88] sm:$0x1]  ;;  %v15233_v33 = vrot.slane %v15231_v21, 1 }
 0xb34   : > { %22941 = vmatprep.mubr.msk.bf16.mxu1 %vm12150_vm10, %v28565_v55  ;;  %v15037_v55 = vld [vmem:[#allocation2 + $0xa0] sm:$0x1]  ;;  %v15104_v11 = vshll.u32 %v15035_v30, 16 }
 0xb35   : > { %v15116_v36 = vshll.u32 %v15037_v55, 16  ;;  %v24785_v55 = vld [vmem:[%s25114_s23 + $0x20] sm:$0xff]  }
 0xb36   : > { %v15106_v10 = vrot.slane %v15104_v11, 1  ;;  %22989 = vmatprep.subr.bf16.mxu0 %v24785_v55 }
 0xb37   : > { %v15118_v42 = vrot.slane %v15116_v36, 1  ;;  %22990 = vmatpush3.bf16.msra.mxu0 %v24785_v55 }
 0xb38   : > { %v15107_v28 = vsel %vm1391_vm3, %v28469_v53, %v15106_v10  ;;  %v15143_v53 = vsel %vm1391_vm3, %v28522_v16, %v15142_v60  ;;  %v15178_v16 = vrot.slane %v15176_v26, 1  ;;  %22991 = vmatprep.subr.bf16.mxu0 %v24786_v59 }
 0xb3a   : > { %v15179_v29 = vsel %vm1391_vm3, %v28553_v61, %v15178_v16  ;;  %v15215_v61 = vsel %vm1391_vm3, %v28596_v8, %v15214_v62 }
 0xb3b   : > { %22942 = vmatmul.mubr.msk.bf16.gmra.mrb[88].mxu1 %vm12150_vm10, %v28569_v41  ;;  %v15083_v41 = vsel %vm1391_vm3, %v28441_v1, %v15082_v15  ;;  %v15119_v1 = vsel %vm1391_vm3, %v28496_v14, %v15118_v42  ;;  %v15154_v14 = vrot.slane %v15152_v13, 1  ;;  %v15246_v15 = vor.u32 %v15245_v32, %v14507_v46  ;;  %22992 = vmatpush3.bf16.msra.mxu0 %v24786_v59 }
 0xb3c   : > { %22945 = vmatprep.mubr.msk.bf16.mxu1 %vm12150_vm10, %v24829_v52  ;;  %v15229_v52 = vshrl.u32 %v15056_v39, 16 }
 0xb3d   : > { %v15155_v3 = vsel %vm1391_vm3, %v28527_v58, %v15154_v14  ;;  %v15191_v58 = vsel %vm1391_vm3, %v28574_v63, %v15190_v44  ;;  %v15236_v63 = vshll.u32 %v15057_v24, 16  ;;  %v28823_v14 = vld [vmem:[%s25114_s23] sm:$0xff]  }
 0xb3e   : > { %v15234_v56 = vor.u32 %v15233_v33, %v15229_v52  ;;  %23025 = vmatprep.subr.bf16.mxu0 %v28823_v14 }
 0xb3f   : > { %v15238_v54 = vrot.slane %v15236_v63, 1 }
 0xb41   : > { %v15239_v8 = vsel %vm1391_vm3, %v15234_v56, %v15238_v54 }
 0xb43   : > { %22946 = vmatmul.mubr.msk.bf16.gmra.mrb[92].mxu1 %vm12150_vm10, %v28694_v18  ;;  %v28811_v18 = vld [vmem:[%s563_s3] ss:$0 sm:$0xff]  ;;  %s24931_s3 = smov 40  }
 0xb44   : > { %22955 = vmatprep.mubr.msk.bf16.mxu1 %vm12150_vm10, %v15071_v2  ;;  %v15248_v2 = vshll.u32 %v15059_v25, 16 }
 0xb46   : > { %v15250_v38 = vrot.slane %v15248_v2, 1 }
 0xb48   : > { %v15251_v30 = vsel %vm1391_vm3, %v15246_v15, %v15250_v38 }
 0xb4b   : > { %22956 = vmatmul.mubr.msk.bf16.vlgmr.msra.gmra.mrb[64].mxu1 %vm12150_vm10, %v15083_v41 }
 0xb4c   : > { %22959 = vmatprep.mubr.msk.bf16.mxu1 %vm12150_vm10, %v15095_v48 }
 0xb53   : > { %22960 = vmatmul.mubr.msk.bf16.gmra.mrb[68].mxu1 %vm12150_vm10, %v15107_v28 }
 0xb54   : > { %22963 = vmatprep.mubr.msk.bf16.mxu1 %vm12150_vm10, %v15119_v1 }
 0xb5b   : > { %22964 = vmatmul.mubr.msk.bf16.gmra.mrb[72].mxu1 %vm12150_vm10, %v15131_v22 }
 0xb5c   : > { %22967 = vmatprep.mubr.msk.bf16.mxu1 %vm12150_vm10, %v15143_v53 }
 0xb63   : > { %22968 = vmatmul.mubr.msk.bf16.gmra.mrb[76].mxu1 %vm12150_vm10, %v15155_v3 }
 0xb64   : > { %22971 = vmatprep.mubr.msk.bf16.mxu1 %vm12150_vm10, %v15167_v12 }
 0xb6b   : > { %22972 = vmatmul.mubr.msk.bf16.gmra.mrb[80].mxu1 %vm12150_vm10, %v15179_v29 }
 0xb6c   : > { %22975 = vmatprep.mubr.msk.bf16.mxu1 %vm12150_vm10, %v15191_v58 }
 0xb73   : > { %22976 = vmatmul.mubr.msk.bf16.gmra.mrb[84].mxu1 %vm12150_vm10, %v15203_v17 }
 0xb74   : > { %22979 = vmatprep.mubr.msk.bf16.mxu1 %vm12150_vm10, %v15215_v61 }
 0xb7b   : > { %22980 = vmatmul.mubr.msk.bf16.gmra.mrb[88].mxu1 %vm12150_vm10, %v15227_v40 }
 0xb7c   : > { %22983 = vmatprep.mubr.msk.bf16.mxu1 %vm12150_vm10, %v15239_v8 }
 0xb83   : > { %22984 = vmatmul.mubr.msk.bf16.gmra.mrb[92].mxu1 %vm12150_vm10, %v15251_v30 }
 0xc1e   : > { %v22957_v46 = vpop.f32.mrb[64].mxu1 }
 0xc1f   : > { %v15526_v41 = vadd.f32 %v22957_v46, %v28811_v18  ;;  %v15358_v11 = vpop.f32.mrb[65].mxu1 }
 0xc20   : > { %v15524_v48 = vadd.f32 %v28811_v18, %v15358_v11  ;;  %v22958_v36 = vpop.f32.mrb[66].mxu1 }
 0xc21   : > { %v15558_v10 = vmul.f32 0.2, %v15526_v41  ;;  %v15527_v42 = vadd.f32 %v22958_v36, %v28811_v18  ;;  %v15361_v0 = vpop.f32.mrb[67].mxu1 }
 0xc22   : > { %v15556_v9 = vmul.f32 0.2, %v15524_v48  ;;  %v15525_v28 = vadd.f32 %v28811_v18, %v15361_v0 }
 0xc23   : > { %v15559_v20 = vmul.f32 0.2, %v15527_v42  ;;  %v15590_v57 = vmax.f32 %v15526_v41, %v15558_v10 }
 0xc24   : > { %v15557_v1 = vmul.f32 0.2, %v15525_v28  ;;  %v15588_v51 = vmax.f32 %v15524_v48, %v15556_v9 }
 0xc25   : > { %v15591_v60 = vmax.f32 %v15527_v42, %v15559_v20 }
 0xc26   : > { %v15589_v4 = vmax.f32 %v15525_v28, %v15557_v1  ;;  %v22961_v22 = vpop.f32.mrb[68].mxu1 }
 0xc27   : > { %v15530_v13 = vadd.f32 %v22961_v22, %v28811_v18  ;;  %v15374_v53 = vpop.f32.mrb[69].mxu1  ;;  %v15621_v23 = vpack.c.bf16 %v15591_v60, %v15590_v57 }
 0xc28   : > { %v15528_v31 = vadd.f32 %v28811_v18, %v15374_v53  ;;  %v22962_v47 = vpop.f32.mrb[70].mxu1  ;;  %v15620_v43 = vpack.c.bf16 %v15589_v4, %v15588_v51 }
 0xc29   : > { %v15562_v3 = vmul.f32 0.2, %v15530_v13  ;;  %v15531_v26 = vadd.f32 %v22962_v47, %v28811_v18  ;;  %15654 = vrot.lane.b32.xlu1 %v15621_v23, %s24931_s3  ;;  %v15377_v12 = vpop.f32.mrb[71].mxu1 }
 0xc2a   : > { %v15560_v50 = vmul.f32 0.2, %v15528_v31  ;;  %v15529_v16 = vadd.f32 %v28811_v18, %v15377_v12  ;;  %15652 = vrot.lane.b32.xlu0 %v15620_v43, %s24931_s3 }
 0xc2b   : > { %v15563_v44 = vmul.f32 0.2, %v15531_v26  ;;  %v15594_v19 = vmax.f32 %v15530_v13, %v15562_v3 }
 0xc2c   : > { %v15561_v37 = vmul.f32 0.2, %v15529_v16  ;;  %v15592_v45 = vmax.f32 %v15528_v31, %v15560_v50 }
 0xc2d   : > { %v15595_v29 = vmax.f32 %v15531_v26, %v15563_v44 }
 0xc2e   : > { %v15593_v58 = vmax.f32 %v15529_v16, %v15561_v37  ;;  %v22965_v35 = vpop.f32.mrb[72].mxu1 }
 0xc2f   : > { %v15534_v39 = vadd.f32 %v22965_v35, %v28811_v18  ;;  %v15390_v7 = vpop.f32.mrb[73].mxu1  ;;  %v15623_v62 = vpack.c.bf16 %v15595_v29, %v15594_v19 }
 0xc30   : > { %v15532_v34 = vadd.f32 %v28811_v18, %v15390_v7  ;;  %v22966_v21 = vpop.f32.mrb[74].mxu1  ;;  %v15622_v24 = vpack.c.bf16 %v15593_v58, %v15592_v45 }
 0xc31   : > { %v15566_v17 = vmul.f32 0.2, %v15534_v39  ;;  %v15535_v5 = vadd.f32 %v22966_v21, %v28811_v18  ;;  %15658 = vrot.lane.b32.xlu1 %v15623_v62, %s24931_s3  ;;  %v15393_v61 = vpop.f32.mrb[75].mxu1 }
 0xc32   : > { %v15564_v33 = vmul.f32 0.2, %v15532_v34  ;;  %v15533_v63 = vadd.f32 %v28811_v18, %v15393_v61  ;;  %15656 = vrot.lane.b32.xlu0 %v15622_v24, %s24931_s3 }
 0xc33   : > { %v15567_v52 = vmul.f32 0.2, %v15535_v5  ;;  %v15598_v49 = vmax.f32 %v15534_v39, %v15566_v17 }
 0xc34   : > { %v15565_v25 = vmul.f32 0.2, %v15533_v63  ;;  %v15596_v54 = vmax.f32 %v15532_v34, %v15564_v33 }
 0xc35   : > { %v15599_v56 = vmax.f32 %v15535_v5, %v15567_v52 }
 0xc36   : > { %v15597_v32 = vmax.f32 %v15533_v63, %v15565_v25  ;;  %v22969_v2 = vpop.f32.mrb[76].mxu1 }
 0xc37   : > { %v15538_v40 = vadd.f32 %v22969_v2, %v28811_v18  ;;  %v15406_v8 = vpop.f32.mrb[77].mxu1  ;;  %v15625_v15 = vpack.c.bf16 %v15599_v56, %v15598_v49 }
 0xc38   : > { %v15536_v38 = vadd.f32 %v28811_v18, %v15406_v8  ;;  %v22970_v30 = vpop.f32.mrb[78].mxu1  ;;  %v15624_v27 = vpack.c.bf16 %v15597_v32, %v15596_v54 }
 0xc39   : > { %v15570_v55 = vmul.f32 0.2, %v15538_v40  ;;  %v15539_v59 = vadd.f32 %v22970_v30, %v28811_v18  ;;  %15662 = vrot.lane.b32.xlu1 %v15625_v15, %s24931_s3  ;;  %v15409_v46 = vpop.f32.mrb[79].mxu1 }
 0xc3a   : > { %v15568_v41 = vmul.f32 0.2, %v15536_v38  ;;  %v15537_v11 = vadd.f32 %v28811_v18, %v15409_v46  ;;  %15660 = vrot.lane.b32.xlu0 %v15624_v27, %s24931_s3 }
 0xc3b   : > { %v15571_v48 = vmul.f32 0.2, %v15539_v59  ;;  %v15602_v10 = vmax.f32 %v15538_v40, %v15570_v55 }
 0xc3c   : > { %v15569_v36 = vmul.f32 0.2, %v15537_v11  ;;  %v15600_v0 = vmax.f32 %v15536_v38, %v15568_v41 }
 0xc3d   : > { %v15603_v42 = vmax.f32 %v15539_v59, %v15571_v48 }
 0xc3e   : > { %v15601_v9 = vmax.f32 %v15537_v11, %v15569_v36  ;;  %v22973_v28 = vpop.f32.mrb[80].mxu1 }
 0xc3f   : > { %v15542_v20 = vadd.f32 %v22973_v28, %v28811_v18  ;;  %v15422_v1 = vpop.f32.mrb[81].mxu1  ;;  %v15627_v57 = vpack.c.bf16 %v15603_v42, %v15602_v10 }
 0xc40   : > { %v15540_v60 = vadd.f32 %v28811_v18, %v15422_v1  ;;  %v22974_v51 = vpop.f32.mrb[82].mxu1  ;;  %v15626_v4 = vpack.c.bf16 %v15601_v9, %v15600_v0 }
 0xc41   : > { %v15574_v22 = vmul.f32 0.2, %v15542_v20  ;;  %v15543_v13 = vadd.f32 %v22974_v51, %v28811_v18  ;;  %15666 = vrot.lane.b32.xlu1 %v15627_v57, %s24931_s3  ;;  %v15425_v53 = vpop.f32.mrb[83].mxu1 }
 0xc42   : > { %v15572_v23 = vmul.f32 0.2, %v15540_v60  ;;  %v15541_v31 = vadd.f32 %v28811_v18, %v15425_v53  ;;  %15664 = vrot.lane.b32.xlu0 %v15626_v4, %s24931_s3 }
 0xc43   : > { %v15575_v47 = vmul.f32 0.2, %v15543_v13  ;;  %v15606_v3 = vmax.f32 %v15542_v20, %v15574_v22 }
 0xc44   : > { %v15573_v43 = vmul.f32 0.2, %v15541_v31  ;;  %v15604_v12 = vmax.f32 %v15540_v60, %v15572_v23 }
 0xc45   : > { %v15607_v26 = vmax.f32 %v15543_v13, %v15575_v47 }
 0xc46   : > { %v15605_v50 = vmax.f32 %v15541_v31, %v15573_v43  ;;  %v22977_v16 = vpop.f32.mrb[84].mxu1 }
 0xc47   : > { %v15546_v44 = vadd.f32 %v22977_v16, %v28811_v18  ;;  %v15438_v37 = vpop.f32.mrb[85].mxu1  ;;  %v15629_v19 = vpack.c.bf16 %v15607_v26, %v15606_v3  ;;  %v24788_v26 = vld [vmem:[%s25114_s23 + $0x8] sm:$0xff]  }
 0xc48   : > { %v15544_v29 = vadd.f32 %v28811_v18, %v15438_v37  ;;  %v22978_v45 = vpop.f32.mrb[86].mxu1  ;;  %v15628_v58 = vpack.c.bf16 %v15605_v50, %v15604_v12 }
 0xc49   : > { %v15578_v35 = vmul.f32 0.2, %v15546_v44  ;;  %v15547_v39 = vadd.f32 %v22978_v45, %v28811_v18  ;;  %15670 = vrot.lane.b32.xlu1 %v15629_v19, %s24931_s3  ;;  %v15441_v7 = vpop.f32.mrb[87].mxu1  ;;  %v28885_v19 = vld [vmem:[%s25114_s23 + $0x30] sm:$0xff]  }
 0xc4a   : > { %v15576_v62 = vmul.f32 0.2, %v15544_v29  ;;  %v15545_v34 = vadd.f32 %v28811_v18, %v15441_v7  ;;  %15668 = vrot.lane.b32.xlu0 %v15628_v58, %s24931_s3 }
 0xc4b   : > { %v15579_v21 = vmul.f32 0.2, %v15547_v39  ;;  %v15610_v17 = vmax.f32 %v15546_v44, %v15578_v35  ;;  %v24789_v44 = vld [vmem:[%s25114_s23 + $0x10] sm:$0xff]  }
 0xc4c   : > { %v15577_v24 = vmul.f32 0.2, %v15545_v34  ;;  %v15608_v61 = vmax.f32 %v15544_v29, %v15576_v62 }
 0xc4d   : > { %v15611_v5 = vmax.f32 %v15547_v39, %v15579_v21 }
 0xc4e   : > { %v15609_v33 = vmax.f32 %v15545_v34, %v15577_v24  ;;  %v22981_v63 = vpop.f32.mrb[88].mxu1 }
 0xc4f   : > { %v15550_v52 = vadd.f32 %v22981_v63, %v28811_v18  ;;  %v15454_v25 = vpop.f32.mrb[89].mxu1  ;;  %v15631_v49 = vpack.c.bf16 %v15611_v5, %v15610_v17 }
 0xc50   : > { %v15548_v56 = vadd.f32 %v28811_v18, %v15454_v25  ;;  %v22982_v54 = vpop.f32.mrb[90].mxu1  ;;  %v15630_v32 = vpack.c.bf16 %v15609_v33, %v15608_v61 }
 0xc51   : > { %v15582_v2 = vmul.f32 0.2, %v15550_v52  ;;  %v15551_v40 = vadd.f32 %v22982_v54, %v28811_v18  ;;  %15674 = vrot.lane.b32.xlu1 %v15631_v49, %s24931_s3  ;;  %v15457_v8 = vpop.f32.mrb[91].mxu1  ;;  %v15717_v54 = vld [vmem:[#allocation2] sm:$0x80] }
 0xc52   : > { %v15580_v15 = vmul.f32 0.2, %v15548_v56  ;;  %v15549_v38 = vadd.f32 %v28811_v18, %v15457_v8  ;;  %15672 = vrot.lane.b32.xlu0 %v15630_v32, %s24931_s3  ;;  %v15750_v8 = vshrl.u32 %v15717_v54, 16 }
 0xc53   : > { %v15583_v30 = vmul.f32 0.2, %v15551_v40  ;;  %v15614_v55 = vmax.f32 %v15550_v52, %v15582_v2  ;;  %v15757_v2 = vshll.u32 %v28817_v6, 16 }
 0xc54   : > { %v15581_v27 = vmul.f32 0.2, %v15549_v38  ;;  %v15612_v46 = vmax.f32 %v15548_v56, %v15580_v15  ;;  %v15754_v56 = vshrl.u32 %v28817_v6, 16 }
 0xc55   : > { %v15615_v59 = vmax.f32 %v15551_v40, %v15583_v30 }
 0xc56   : > { %v15613_v41 = vmax.f32 %v15549_v38, %v15581_v27  ;;  %v22985_v11 = vpop.f32.mrb[92].mxu1  ;;  %v15756_v32 = vrot.slane %v15754_v56, 7 }
 0xc57   : > { %v15554_v48 = vadd.f32 %v22985_v11, %v28811_v18  ;;  %v15470_v36 = vpop.f32.mrb[93].mxu1  ;;  %v15633_v10 = vpack.c.bf16 %v15615_v59, %v15614_v55  ;;  %v15752_v55 = vrot.slane %v15750_v8, 7  ;;  %v15721_v11 = vld [vmem:[#allocation2 + $0x30] sm:$0x80]  ;;  %v29014_v8 = vld [vmem:[%s25114_s23 + $0x48] sm:$0xff]  }
 0xc58   : > { %v15552_v42 = vadd.f32 %v28811_v18, %v15470_v36  ;;  %v22986_v0 = vpop.f32.mrb[94].mxu1  ;;  %v15632_v9 = vpack.c.bf16 %v15613_v41, %v15612_v46  ;;  %v15759_v27 = vor.u32 %v15757_v2, %v15756_v32  ;;  %v15719_v41 = vld [vmem:[#allocation2 + $0x18] sm:$0x80] }
 0xc59   : > { %v15586_v28 = vmul.f32 0.2, %v15554_v48  ;;  %v15555_v20 = vadd.f32 %v22986_v0, %v28811_v18  ;;  %15678 = vrot.lane.b32.xlu1 %v15633_v10, %s24931_s3  ;;  %v15473_v1 = vpop.f32.mrb[95].mxu1  ;;  %v15762_v0 = vshrl.u32 %v15719_v41, 16 }
 0xc5a   : > { %v15584_v57 = vmul.f32 0.2, %v15552_v42  ;;  %v15553_v60 = vadd.f32 %v28811_v18, %v15473_v1  ;;  %15676 = vrot.lane.b32.xlu0 %v15632_v9, %s24931_s3 }
 0xc5b   : > { %v15587_v51 = vmul.f32 0.2, %v15555_v20  ;;  %v15618_v22 = vmax.f32 %v15554_v48, %v15586_v28  ;;  %v15760_v48 = vsel %vm746_vm4, %v15752_v55, %v15759_v27 }
 0xc5c   : > { %v15585_v4 = vmul.f32 0.2, %v15553_v60  ;;  %v15616_v53 = vmax.f32 %v15552_v42, %v15584_v57 }
 0xc5d   : > { %v15619_v13 = vmax.f32 %v15555_v20, %v15587_v51  ;;  %v15774_v20 = vshrl.u32 %v15721_v11, 16 }
 0xc5e   : > { %v15617_v23 = vmax.f32 %v15553_v60, %v15585_v4 }
 0xc5f   : > { %v15635_v31 = vpack.c.bf16 %v15619_v13, %v15618_v22  ;;  %v15764_v22 = vrot.slane %v15762_v0, 7 }
 0xc60   : > { %v15634_v47 = vpack.c.bf16 %v15617_v23, %v15616_v53 }
 0xc61   : > { %15682 = vrot.lane.b32.xlu1 %v15635_v31, %s24931_s3  ;;  %v15776_v31 = vrot.slane %v15774_v20, 7 }
 0xc62   : > { %15680 = vrot.lane.b32.xlu0 %v15634_v47, %s24931_s3 }
 0xc9b   : > { %v15655_v43 = vpop.permute.xlu1 %15654 }
 0xc9c   : > { %15702 = vst.msk [vmem:[#allocation2 + $0x38] sm:$0xff] %vm15700_vm13, %v15655_v43  ;;  %v15653_v18 = vpop.permute.xlu0 %15652  ;;  %v15723_v43 = vld [vmem:[#allocation2 + $0x48] sm:$0x80] }
 0xc9d   : > { %15701 = vst.msk [vmem:[#allocation2 + $0x20] sm:$0xff] %vm15700_vm13, %v15653_v18  ;;  %v15725_v18 = vld [vmem:[#allocation2 + $0x60] sm:$0x80] }
 0xca3   : > { %v15659_v3 = vpop.permute.xlu1 %15658  ;;  %v28878_v16 = vld [vmem:[#allocation2 + $0x38] sm:$0xff] }
 0xca4   : > { %15704 = vst.msk [vmem:[#allocation2 + $0x68] sm:$0xff] %vm15700_vm13, %v15659_v3  ;;  %v15657_v12 = vpop.permute.xlu0 %15656  ;;  %v28873_v50 = vld [vmem:[#allocation2 + $0x20] sm:$0xff]  ;;  %v15778_v46 = vshrl.u32 %v28878_v16, 16  ;;  %v15781_v51 = vshll.u32 %v28878_v16, 16  ;;  %v24791_v3 = vld [vmem:[%s25114_s23 + $0x38] sm:$0xff]  }
 0xca5   : > { %15703 = vst.msk [vmem:[#allocation2 + $0x50] sm:$0xff] %vm15700_vm13, %v15657_v12  ;;  %22994 = vmatmul.mubr.msk.bf16.vlgmr.msra.gmra.mrb[64].mxu0 %vm15972_vm12, %v28873_v50  ;;  %v15766_v59 = vshrl.u32 %v28873_v50, 16  ;;  %v15769_v1 = vshll.u32 %v28873_v50, 16 }
 0xca6   : > { %22997 = vmatprep.mubr.msk.bf16.mxu0 %vm15972_vm12, %v28878_v16  ;;  %23026 = vmatpush3.bf16.msra.mxu0 %v28823_v14  ;;  %v15780_v28 = vrot.slane %v15778_v46, 7  ;;  %v16454_v6 = vrot.slane %v15781_v51, 1 }
 0xca7   : > { %23027 = vmatprep.subr.bf16.mxu0 %v24788_v26  ;;  %v15768_v10 = vrot.slane %v15766_v59, 7 }
 0xca8   : > { %v28986_v47 = vor.u32 %v15781_v51, %v15780_v28 }
 0xca9   : > { %v28977_v13 = vor.u32 %v15769_v1, %v15768_v10 }
 0xcaa   : > { %23028 = vmatpush3.bf16.msra.mxu0 %v24788_v26 }
 0xcab   : > { %v15663_v37 = vpop.permute.xlu1 %15662  ;;  %23029 = vmatprep.subr.bf16.mxu0 %v24789_v44  ;;  %v28893_v58 = vld [vmem:[#allocation2 + $0x68] sm:$0xff]  ;;  %v15772_v12 = vsel %vm746_vm4, %v15764_v22, %v28977_v13 }
 0xcac   : > { %15706 = vst.msk [vmem:[#allocation2 + $0x98] sm:$0xff] %vm15700_vm13, %v15663_v37  ;;  %v15661_v29 = vpop.permute.xlu0 %15660  ;;  %v28888_v45 = vld [vmem:[#allocation2 + $0x50] sm:$0xff]  ;;  %v15802_v23 = vshrl.u32 %v28893_v58, 16 }
 0xcad   : > { %15705 = vst.msk [vmem:[#allocation2 + $0x80] sm:$0xff] %vm15700_vm13, %v15661_v29  ;;  %22998 = vmatmul.mubr.msk.bf16.gmra.mrb[68].mxu0 %vm15972_vm12, %v28888_v45  ;;  %v15790_v4 = vshrl.u32 %v28888_v45, 16  ;;  %v15784_v29 = vsel %vm746_vm4, %v15776_v31, %v28986_v47 }
 0xcae   : > { %23001 = vmatprep.mubr.msk.bf16.mxu0 %vm15972_vm12, %v28893_v58  ;;  %23030 = vmatpush3.bf16.msra.mxu0 %v24789_v44  ;;  %v15786_v44 = vshrl.u32 %v15723_v43, 16  ;;  %v15804_v37 = vrot.slane %v15802_v23, 7 }
 0xcaf   : > { %23063 = vmatprep.subr.bf16.mxu0 %v28885_v19  ;;  %v15792_v26 = vrot.slane %v15790_v4, 7 }
 0xcb3   : > { %v15667_v14 = vpop.permute.xlu1 %15666  ;;  %v28904_v7 = vld [vmem:[#allocation2 + $0x98] sm:$0xff] }
 0xcb4   : > { %15708 = vst.msk [vmem:[#allocation2 + $0xc8] sm:$0xff] %vm15700_vm13, %v15667_v14  ;;  %v15665_v35 = vpop.permute.xlu0 %15664  ;;  %v28899_v39 = vld [vmem:[#allocation2 + $0x80] sm:$0xff]  ;;  %v15798_v14 = vshrl.u32 %v15725_v18, 16  ;;  %v15829_v0 = vshll.u32 %v28904_v7, 16  ;;  %v15731_v18 = vld [vmem:[#allocation2 + $0xa8] sm:$0x80] }
 0xcb5   : > { %15707 = vst.msk [vmem:[#allocation2 + $0xb0] sm:$0xff] %vm15700_vm13, %v15665_v35  ;;  %23002 = vmatmul.mubr.msk.bf16.gmra.mrb[72].mxu0 %vm15972_vm12, %v28899_v39  ;;  %v15793_v35 = vshll.u32 %v28888_v45, 16  ;;  %v15817_v10 = vshll.u32 %v28899_v39, 16 }
 0xcb6   : > { %23005 = vmatprep.mubr.msk.bf16.mxu0 %vm15972_vm12, %v28904_v7  ;;  %v15800_v54 = vrot.slane %v15798_v14, 7 }
 0xcb7   : > { %v16466_v51 = vrot.slane %v15793_v35, 1 }
 0xcbb   : > { %v15671_v62 = vpop.permute.xlu1 %15670  ;;  %v28914_v24 = vld [vmem:[#allocation2 + $0xc8] sm:$0xff] }
 0xcbc   : > { %15710 = vst.msk [vmem:[#allocation2 + $0xf8] sm:$0xff] %vm15700_vm13, %v15671_v62  ;;  %v15669_v34 = vpop.permute.xlu0 %15668  ;;  %v28909_v21 = vld [vmem:[#allocation2 + $0xb0] sm:$0xff]  ;;  %v15805_v62 = vshll.u32 %v28893_v58, 16  ;;  %v30242_v22 = vshrl.u32 %v28914_v24, 16 }
 0xcbd   : > { %15709 = vst.msk [vmem:[#allocation2 + $0xe0] sm:$0xff] %vm15700_vm13, %v15669_v34  ;;  %23006 = vmatmul.mubr.msk.bf16.gmra.mrb[76].mxu0 %vm15972_vm12, %v28909_v21  ;;  %v24792_v34 = vld [vmem:[%s25114_s23 + $0x40] sm:$0xff]   ;;  %v30243_v28 = vshrl.u32 %v28909_v21, 16 }
 0xcbe   : > { %23009 = vmatprep.mubr.msk.bf16.mxu0 %vm15972_vm12, %v28914_v24  ;;  %v29011_v32 = vor.u32 %v15805_v62, %v15804_v37  ;;  %v15852_v37 = vrot.slane %v30242_v22, 7 }
 0xcc0   : > { %v15808_v11 = vsel %vm746_vm4, %v15800_v54, %v29011_v32 }
 0xcc3   : > { %v15675_v17 = vpop.permute.xlu1 %15674  ;;  %v28924_v33 = vld [vmem:[#allocation2 + $0xf8] sm:$0xff] }
 0xcc4   : > { %15712 = vst.msk [vmem:[#allocation2 + $0x128] sm:$0xff] %vm15700_vm13, %v15675_v17  ;;  %v15673_v5 = vpop.permute.xlu0 %15672  ;;  %v28919_v61 = vld [vmem:[#allocation2 + $0xe0] sm:$0xff]  ;;  %v15814_v17 = vshrl.u32 %v28899_v39, 16 }
 0xcc5   : > { %15711 = vst.msk [vmem:[#allocation2 + $0x110] sm:$0xff] %vm15700_vm13, %v15673_v5  ;;  %23010 = vmatmul.mubr.msk.bf16.gmra.mrb[80].mxu0 %vm15972_vm12, %v28919_v61  ;;  %v15788_v5 = vrot.slane %v15786_v44, 7  ;;  %v15834_v44 = vshrl.u32 %v15731_v18, 16  ;;  %v30234_v54 = vshrl.u32 %v28919_v61, 16 }
 0xcc6   : > { %23013 = vmatprep.mubr.msk.bf16.mxu0 %vm15972_vm12, %v28924_v33 }
 0xccb   : > { %v15679_v63 = vpop.permute.xlu1 %15678  ;;  %v28934_v49 = vld [vmem:[#allocation2 + $0x128] sm:$0xff] }
 0xccc   : > { %15714 = vst.msk [vmem:[#allocation2 + $0x158] sm:$0xff] %vm15700_vm13, %v15679_v63  ;;  %v15677_v52 = vpop.permute.xlu0 %15676  ;;  %v28929_v25 = vld [vmem:[#allocation2 + $0x110] sm:$0xff]  ;;  %v29006_v63 = vor.u32 %v15793_v35, %v15792_v26  ;;  %v15840_v26 = vrot.slane %v30243_v28, 7 }
 0xccd   : > { %15713 = vst.msk [vmem:[#allocation2 + $0x140] sm:$0xff] %vm15700_vm13, %v15677_v52  ;;  %23014 = vmatmul.mubr.msk.bf16.gmra.mrb[84].mxu0 %vm15972_vm12, %v28929_v25  ;;  %v15826_v52 = vshrl.u32 %v28904_v7, 16 }
 0xcce   : > { %23017 = vmatprep.mubr.msk.bf16.mxu0 %vm15972_vm12, %v28934_v49  ;;  %v15796_v27 = vsel %vm746_vm4, %v15788_v5, %v29006_v63  ;;  %v15853_v5 = vshll.u32 %v28914_v24, 16 }
 0xccf   : > { %v15828_v41 = vrot.slane %v15826_v52, 7 }
 0xcd1   : > { %v29037_v43 = vor.u32 %v15829_v0, %v15828_v41  ;;  %v15735_v41 = vld [vmem:[#allocation2 + $0xd8] sm:$0x80] }
 0xcd3   : > { %v15683_v40 = vpop.permute.xlu1 %15682  ;;  %v28948_v30 = vld [vmem:[#allocation2 + $0x158] sm:$0xff] }
 0xcd4   : > { %15716 = vst.msk [vmem:[#allocation2 + $0x188] sm:$0xff] %vm15700_vm13, %v15683_v40  ;;  %v15681_v15 = vpop.permute.xlu0 %15680  ;;  %v28943_v38 = vld [vmem:[#allocation2 + $0x140] sm:$0xff]  ;;  %v15727_v40 = vld [vmem:[#allocation2 + $0x78] sm:$0x80] }
 0xcd5   : > { %15715 = vst.msk [vmem:[#allocation2 + $0x170] sm:$0xff] %vm15700_vm13, %v15681_v15  ;;  %23018 = vmatmul.mubr.msk.bf16.gmra.mrb[88].mxu0 %vm15972_vm12, %v28943_v38  ;;  %v15816_v15 = vrot.slane %v15814_v17, 7  ;;  %v15810_v55 = vshrl.u32 %v15727_v40, 16  ;;  %v15836_v40 = vrot.slane %v15834_v44, 7  ;;  %v30236_v44 = vshll.u32 %v28924_v33, 16 }
 0xcd6   : > { %23021 = vmatprep.mubr.msk.bf16.mxu0 %vm15972_vm12, %v28948_v30 }
 0xcd7   : > { %v15812_v20 = vrot.slane %v15810_v55, 7  ;;  %v29059_v55 = vor.u32 %v15853_v5, %v15852_v37  ;;  %v30233_v37 = vshrl.u32 %v28929_v25, 16 }
 0xcdb   : > { %v28957_v36 = vld [vmem:[#allocation2 + $0x188] sm:$0xff] }
 0xcdc   : > { %v28961_v42 = vld [vmem:[#allocation2 + $0x170] sm:$0xff]  ;;  %v30230_v9 = vshll.u32 %v28957_v36, 16  ;;  %v30231_v57 = vshrl.u32 %v28957_v36, 16 }
 0xcdd   : > { %23022 = vmatmul.mubr.msk.bf16.gmra.mrb[92].mxu0 %vm15972_vm12, %v28961_v42 }
 0xcde   : > { %23031 = vmatprep.mubr.msk.bf16.mxu0 %vm15972_vm12, %v15760_v48  ;;  %v17840_v60 = vrot.slane %v30230_v9, 1 }
 0xce0   : > { %v28981_v53 = vor.u32 %v17840_v60, %v30231_v57  ;;  %v29032_v60 = vor.u32 %v15817_v10, %v15816_v15  ;;  %v30232_v15 = vshrl.u32 %v28924_v33, 16 }
 0xce2   : > { %v15876_v18 = vrot.slane %v30232_v15, 7  ;;  %v30238_v15 = vshll.u32 %v28934_v49, 16 }
 0xce5   : > { %23032 = vmatmul.mubr.msk.bf16.vlgmr.msra.gmra.mrb[64].mxu0 %vm15972_vm12, %v15772_v12  ;;  %v15820_v12 = vsel %vm746_vm4, %v15812_v20, %v29032_v60 }
 0xce6   : > { %23035 = vmatprep.mubr.msk.bf16.mxu0 %vm15972_vm12, %v15784_v29  ;;  %23064 = vmatpush3.bf16.msra.mxu0 %v28885_v19  ;;  %v15729_v19 = vld [vmem:[#allocation2 + $0x90] sm:$0x80] }
 0xce7   : > { %23065 = vmatprep.subr.bf16.mxu0 %v24791_v3  ;;  %v15822_v48 = vshrl.u32 %v15729_v19, 16 }
 0xce9   : > { %v15824_v31 = vrot.slane %v15822_v48, 7  ;;  %v15864_v48 = vrot.slane %v30234_v54, 7 }
 0xcea   : > { %23066 = vmatpush3.bf16.msra.mxu0 %v24791_v3  ;;  %v15733_v3 = vld [vmem:[#allocation2 + $0xc0] sm:$0x80] }
 0xceb   : > { %23067 = vmatprep.subr.bf16.mxu0 %v24792_v34  ;;  %v15832_v29 = vsel %vm746_vm4, %v15824_v31, %v29037_v43  ;;  %v15846_v14 = vshrl.u32 %v15733_v3, 16  ;;  %v15858_v31 = vshrl.u32 %v15735_v41, 16 }
 0xced   : > { %23036 = vmatmul.mubr.msk.bf16.gmra.mrb[68].mxu0 %vm15972_vm12, %v15796_v27  ;;  %v15848_v27 = vrot.slane %v15846_v14, 7 }
 0xcee   : > { %23039 = vmatprep.mubr.msk.bf16.mxu0 %vm15972_vm12, %v15808_v11  ;;  %23068 = vmatpush3.bf16.msra.mxu0 %v24792_v34  ;;  %v15841_v34 = vshll.u32 %v28909_v21, 16  ;;  %v15737_v11 = vld [vmem:[#allocation2 + $0xf0] sm:$0x80] }
 0xcef   : > { %23101 = vmatprep.subr.bf16.mxu0 %v29014_v8  ;;  %v15856_v3 = vsel %vm746_vm4, %v15848_v27, %v29059_v55  ;;  %v29081_v27 = vor.u32 %v30236_v44, %v15876_v18  ;;  %v30237_v18 = vshll.u32 %v28929_v25, 16 }
 0xcf0   : > { %v29054_v19 = vor.u32 %v15841_v34, %v15840_v26  ;;  %v15870_v26 = vshrl.u32 %v15737_v11, 16  ;;  %v15739_v11 = vld [vmem:[#allocation2 + $0x108] sm:$0x80] }
 0xcf2   : > { %v15844_v20 = vsel %vm746_vm4, %v15836_v40, %v29054_v19  ;;  %v30235_v40 = vshrl.u32 %v28934_v49, 16  ;;  %v15872_v41 = vrot.slane %v15870_v26, 7 }
 0xcf4   : > { %v15880_v26 = vsel %vm746_vm4, %v15872_v41, %v29081_v27 }
 0xcf5   : > { %23040 = vmatmul.mubr.msk.bf16.gmra.mrb[72].mxu0 %vm15972_vm12, %v15820_v12  ;;  %v30240_v12 = vshll.u32 %v28919_v61, 16 }
 0xcf6   : > { %23043 = vmatprep.mubr.msk.bf16.mxu0 %vm15972_vm12, %v15832_v29  ;;  %v15860_v29 = vrot.slane %v15858_v31, 7  ;;  %v15882_v31 = vshrl.u32 %v15739_v11, 16  ;;  %v30241_v11 = vshrl.u32 %v28948_v30, 16 }
 0xcf7   : > { %v29076_v14 = vor.u32 %v30240_v12, %v15864_v48  ;;  %v15900_v48 = vrot.slane %v30235_v40, 7  ;;  %v15745_v40 = vld [vmem:[#allocation2 + $0x150] sm:$0x80] }
 0xcf8   : > { %v15884_v54 = vrot.slane %v15882_v31, 7 }
 0xcf9   : > { %v15868_v9 = vsel %vm746_vm4, %v15860_v29, %v29076_v14  ;;  %v29103_v41 = vor.u32 %v30238_v15, %v15900_v48  ;;  %v15913_v48 = vshll.u32 %v28943_v38, 16  ;;  %v30245_v15 = vshll.u32 %v28948_v30, 16 }
 0xcfd   : > { %23044 = vmatmul.mubr.msk.bf16.gmra.mrb[76].mxu0 %vm15972_vm12, %v15844_v20  ;;  %v15741_v20 = vld [vmem:[#allocation2 + $0x120] sm:$0x80] }
 0xcfe   : > { %23047 = vmatprep.mubr.msk.bf16.mxu0 %vm15972_vm12, %v15856_v3  ;;  %v15888_v3 = vrot.slane %v30233_v37, 7  ;;  %v15894_v57 = vshrl.u32 %v15741_v20, 16  ;;  %v30239_v37 = vshrl.u32 %v28943_v38, 16  ;;  %v15743_v20 = vld [vmem:[#allocation2 + $0x138] sm:$0x80] }
 0xcff   : > { %v15906_v31 = vshrl.u32 %v15743_v20, 16  ;;  %v16394_v20 = vld [vmem:[#allocation2 + $0x10] sm:$0x1] }
 0xd00   : > { %v29098_v29 = vor.u32 %v30237_v18, %v15888_v3  ;;  %v15924_v3 = vrot.slane %v30241_v11, 7  ;;  %v15918_v18 = vshrl.u32 %v15745_v40, 16  ;;  %v15747_v40 = vld [vmem:[#allocation2 + $0x168] sm:$0x80] }
 0xd01   : > { %v15908_v12 = vrot.slane %v15906_v31, 7  ;;  %v15930_v28 = vshrl.u32 %v15747_v40, 16  ;;  %v16398_v40 = vld [vmem:[#allocation2 + $0x40] sm:$0x1] }
 0xd02   : > { %v15892_v44 = vsel %vm746_vm4, %v15884_v54, %v29098_v29  ;;  %v15920_v11 = vrot.slane %v15918_v18, 7 }
 0xd05   : > { %23048 = vmatmul.mubr.msk.bf16.gmra.mrb[80].mxu0 %vm15972_vm12, %v15868_v9  ;;  %v15896_v9 = vrot.slane %v15894_v57, 7 }
 0xd06   : > { %23051 = vmatprep.mubr.msk.bf16.mxu0 %vm15972_vm12, %v15880_v26  ;;  %v15912_v26 = vrot.slane %v30239_v37, 7  ;;  %v30244_v37 = vshrl.u32 %v28961_v42, 16 }
 0xd07   : > { %v15904_v57 = vsel %vm746_vm4, %v15896_v9, %v29103_v41  ;;  %v16430_v9 = vrot.slane %v15757_v2, 1 }
 0xd08   : > { %v29120_v54 = vor.u32 %v15913_v48, %v15912_v26  ;;  %v15936_v22 = vrot.slane %v30244_v37, 7  ;;  %v15937_v26 = vshll.u32 %v28961_v42, 16 }
 0xd09   : > { %v16431_v2 = vor.u32 %v16430_v9, %v15754_v56  ;;  %v16457_v56 = vshll.u32 %v16398_v40, 16  ;;  %v16455_v9 = vor.u32 %v16454_v6, %v15778_v46  ;;  %v24795_v46 = vld [vmem:[%s25114_s23 + $0x58] sm:$0xff]   ;;  %v16404_v6 = vld [vmem:[#allocation2 + $0x88] sm:$0x1] }
 0xd0a   : > { %v15916_v31 = vsel %vm746_vm4, %v15908_v12, %v29120_v54  ;;  %v29141_v37 = vor.u32 %v15937_v26, %v15936_v22  ;;  %v16396_v12 = vld [vmem:[#allocation2 + $0x28] sm:$0x1] }
 0xd0d   : > { %23052 = vmatmul.mubr.msk.bf16.gmra.mrb[84].mxu0 %vm15972_vm12, %v15892_v44  ;;  %v29124_v44 = vor.u32 %v30245_v15, %v15924_v3  ;;  %v16445_v15 = vshll.u32 %v16396_v12, 16 }
 0xd0e   : > { %23055 = vmatprep.mubr.msk.bf16.mxu0 %vm15972_vm12, %v15904_v57  ;;  %v16433_v57 = vshll.u32 %v16394_v20, 16  ;;  %v15932_v20 = vrot.slane %v15930_v28, 7 }
 0xd0f   : > { %v15928_v18 = vsel %vm746_vm4, %v15920_v11, %v29124_v44  ;;  %v16447_v22 = vrot.slane %v16445_v15, 1  ;;  %v16478_v15 = vrot.slane %v15805_v62, 1  ;;  %v29172_v62 = vld [vmem:[%s25114_s23 + $0x60] sm:$0xff]  }
 0xd10   : > { %v16435_v3 = vrot.slane %v16433_v57, 1  ;;  %v15940_v11 = vsel %vm746_vm4, %v15932_v20, %v29141_v37  ;;  %v16459_v57 = vrot.slane %v16457_v56, 1  ;;  %v16406_v56 = vld [vmem:[#allocation2 + $0xa0] sm:$0x1] }
 0xd15   : > { %23056 = vmatmul.mubr.msk.bf16.gmra.mrb[88].mxu0 %vm15972_vm12, %v15916_v31  ;;  %v16436_v31 = vsel %vm1391_vm3, %v16431_v2, %v16435_v3  ;;  %v16400_v2 = vld [vmem:[#allocation2 + $0x58] sm:$0x1]  ;;  %v24794_v3 = vld [vmem:[%s25114_s23 + $0x50] sm:$0xff]  }
 0xd16   : > { %23059 = vmatprep.mubr.msk.bf16.mxu0 %vm15972_vm12, %v15928_v18  ;;  %v16442_v18 = vrot.slane %v15769_v1, 1  ;;  %v16402_v1 = vld [vmem:[#allocation2 + $0x70] sm:$0x1]  ;;  %v16469_v12 = vshll.u32 %v16400_v2, 16 }
 0xd17   : > { %v16481_v40 = vshll.u32 %v16402_v1, 16 }
 0xd18   : > { %v16443_v28 = vor.u32 %v16442_v18, %v15766_v59  ;;  %v16460_v59 = vsel %vm1391_vm3, %v16455_v9, %v16459_v57  ;;  %v16471_v35 = vrot.slane %v16469_v12, 1  ;;  %v16505_v9 = vshll.u32 %v16406_v56, 16 }
 0xd19   : > { %v16483_v18 = vrot.slane %v16481_v40, 1  ;;  %v30356_v56 = vshll.u32 %v28919_v61, 16 }
 0xd1a   : > { %v16448_v20 = vsel %vm1391_vm3, %v16443_v28, %v16447_v22  ;;  %v16493_v22 = vshll.u32 %v16404_v6, 16  ;;  %v16507_v1 = vrot.slane %v16505_v9, 1  ;;  %v30358_v9 = vshrl.u32 %v28919_v61, 16 }
 0xd1c   : > { %v16495_v2 = vrot.slane %v16493_v22, 1  ;;  %v30357_v22 = vshll.u32 %v28924_v33, 16 }
 0xd1d   : > { %23060 = vmatmul.mubr.msk.bf16.gmra.mrb[92].mxu0 %vm15972_vm12, %v15940_v11  ;;  %v16479_v11 = vor.u32 %v16478_v15, %v15802_v23  ;;  %v16502_v23 = vrot.slane %v15829_v0, 1  ;;  %v16514_v0 = vrot.slane %v15841_v34, 1  ;;  %v16412_v34 = vld [vmem:[#allocation2 + $0xe8] sm:$0x1] }
 0xd1e   : > { %23069 = vmatprep.mubr.msk.bf16.mxu0 %vm15972_vm12, %v16436_v31  ;;  %v16467_v31 = vor.u32 %v16466_v51, %v15790_v4 }
 0xd1f   : > { %v16484_v4 = vsel %vm1391_vm3, %v16479_v11, %v16483_v18  ;;  %v16414_v18 = vld [vmem:[#allocation2 + $0x100] sm:$0x1] }
 0xd20   : > { %v16472_v28 = vsel %vm1391_vm3, %v16467_v31, %v16471_v35  ;;  %v30355_v31 = vshrl.u32 %v28914_v24, 16 }
 0xd25   : > { %23070 = vmatmul.mubr.msk.bf16.vlgmr.msra.gmra.mrb[64].mxu0 %vm15972_vm12, %v16448_v20  ;;  %v16410_v20 = vld [vmem:[#allocation2 + $0xd0] sm:$0x1] }
 0xd26   : > { %23073 = vmatprep.mubr.msk.bf16.mxu0 %vm15972_vm12, %v16460_v59  ;;  %23102 = vmatpush3.bf16.msra.mxu0 %v29014_v8  ;;  %v16490_v8 = vrot.slane %v15817_v10, 1  ;;  %v16503_v10 = vor.u32 %v16502_v23, %v15826_v52  ;;  %v16529_v15 = vshll.u32 %v16410_v20, 16  ;;  %v30354_v52 = vshrl.u32 %v28909_v21, 16  ;;  %v16416_v20 = vld [vmem:[#allocation2 + $0x118] sm:$0x1] }
 0xd27   : > { %23103 = vmatprep.subr.bf16.mxu0 %v24794_v3  ;;  %v16553_v23 = vshll.u32 %v16414_v18, 16 }
 0xd28   : > { %v16491_v57 = vor.u32 %v16490_v8, %v15814_v17  ;;  %v16508_v59 = vsel %vm1391_vm3, %v16503_v10, %v16507_v1  ;;  %v16526_v17 = vrot.slane %v15853_v5, 1  ;;  %v16515_v40 = vor.u32 %v16514_v0, %v30354_v52 }
 0xd29   : > { %v16531_v11 = vrot.slane %v16529_v15, 1  ;;  %v16541_v8 = vshll.u32 %v16412_v34, 16  ;;  %v30359_v10 = vshrl.u32 %v28924_v33, 16  ;;  %v30361_v52 = vshll.u32 %v28934_v49, 16 }
 0xd2a   : > { %23104 = vmatpush3.bf16.msra.mxu0 %v24794_v3  ;;  %v16408_v3 = vld [vmem:[#allocation2 + $0xb8] sm:$0x1]  ;;  %v16496_v51 = vsel %vm1391_vm3, %v16491_v57, %v16495_v2  ;;  %v16527_v35 = vor.u32 %v16526_v17, %v30355_v31  ;;  %v16565_v17 = vshll.u32 %v16416_v20, 16  ;;  %v30362_v31 = vshrl.u32 %v28929_v25, 16 }
 0xd2b   : > { %23105 = vmatprep.subr.bf16.mxu0 %v24795_v46  ;;  %v16517_v12 = vshll.u32 %v16408_v3, 16  ;;  %v16543_v2 = vrot.slane %v16541_v8, 1  ;;  %v16555_v3 = vrot.slane %v16553_v23, 1  ;;  %v30363_v34 = vshrl.u32 %v28934_v49, 16 }
 0xd2c   : > { %v16532_v5 = vsel %vm1391_vm3, %v16527_v35, %v16531_v11  ;;  %v16567_v11 = vrot.slane %v16565_v17, 1  ;;  %v30364_v23 = vshll.u32 %v28948_v30, 16 }
 0xd2d   : > { %23074 = vmatmul.mubr.msk.bf16.gmra.mrb[68].mxu0 %vm15972_vm12, %v16472_v28  ;;  %v16538_v28 = vrot.slane %v30356_v56, 1  ;;  %v16420_v56 = vld [vmem:[#allocation2 + $0x148] sm:$0x1] }
 0xd2e   : > { %23077 = vmatprep.mubr.msk.bf16.mxu0 %vm15972_vm12, %v16484_v4  ;;  %23106 = vmatpush3.bf16.msra.mxu0 %v24795_v46  ;;  %v16519_v46 = vrot.slane %v16517_v12, 1  ;;  %v16550_v4 = vrot.slane %v30357_v22, 1  ;;  %v30360_v12 = vshll.u32 %v28929_v25, 16  ;;  %v16589_v22 = vshll.u32 %v16420_v56, 16 }
 0xd2f   : > { %23139 = vmatprep.subr.bf16.mxu0 %v29172_v62  ;;  %v16539_v57 = vor.u32 %v16538_v28, %v30358_v9  ;;  %v16422_v28 = vld [vmem:[#allocation2 + $0x160] sm:$0x1]  ;;  %v16598_v9 = vrot.slane %v30364_v23, 1 }
 0xd30   : > { %v16520_v6 = vsel %vm1391_vm3, %v16515_v40, %v16519_v46  ;;  %v16551_v1 = vor.u32 %v16550_v4, %v30359_v10  ;;  %v16574_v40 = vrot.slane %v30361_v52, 1 }
 0xd31   : > { %v16544_v0 = vsel %vm1391_vm3, %v16539_v57, %v16543_v2  ;;  %v16601_v57 = vshll.u32 %v16422_v28, 16  ;;  %v30365_v2 = vshrl.u32 %v28943_v38, 16 }
 0xd32   : > { %v16556_v15 = vsel %vm1391_vm3, %v16551_v1, %v16555_v3  ;;  %v16575_v18 = vor.u32 %v16574_v40, %v30363_v34  ;;  %v16591_v1 = vrot.slane %v16589_v22, 1  ;;  %v30366_v3 = vshrl.u32 %v28948_v30, 16  ;;  %v16887_v34 = vld [vmem:[#allocation2 + $0x48] sm:$0x80]  ;;  %v16891_v22 = vld [vmem:[#allocation2 + $0x78] sm:$0x80] }
 0xd33   : > { %v30367_v40 = vshrl.u32 %v28961_v42, 16  ;;  %v16940_v56 = vshrl.u32 %v16887_v34, 16 }
 0xd34   : > { %v16599_v20 = vor.u32 %v16598_v9, %v30366_v3  ;;  %v16893_v3 = vld [vmem:[#allocation2 + $0x90] sm:$0x80] }
 0xd35   : > { %23078 = vmatmul.mubr.msk.bf16.gmra.mrb[72].mxu0 %vm15972_vm12, %v16496_v51  ;;  %v16418_v51 = vld [vmem:[#allocation2 + $0x130] sm:$0x1] }
 0xd36   : > { %23081 = vmatprep.mubr.msk.bf16.mxu0 %vm15972_vm12, %v16508_v59  ;;  %v16562_v59 = vrot.slane %v30360_v12, 1  ;;  %v16577_v46 = vshll.u32 %v16418_v51, 16  ;;  %v16603_v51 = vrot.slane %v16601_v57, 1 }
 0xd38   : > { %v16563_v35 = vor.u32 %v16562_v59, %v30362_v31  ;;  %v16610_v59 = vrot.slane %v15937_v26, 1 }
 0xd3a   : > { %v16568_v8 = vsel %vm1391_vm3, %v16563_v35, %v16567_v11  ;;  %v16885_v11 = vld [vmem:[#allocation2 + $0x30] sm:$0x80] }
 0xd3d   : > { %23082 = vmatmul.mubr.msk.bf16.gmra.mrb[76].mxu0 %vm15972_vm12, %v16520_v6  ;;  %v16579_v6 = vrot.slane %v16577_v46, 1  ;;  %v16611_v46 = vor.u32 %v16610_v59, %v30367_v40  ;;  %v16897_v59 = vld [vmem:[#allocation2 + $0xc0] sm:$0x80] }
 0xd3e   : > { %23085 = vmatprep.mubr.msk.bf16.mxu0 %vm15972_vm12, %v16532_v5  ;;  %v16586_v5 = vrot.slane %v15913_v48, 1  ;;  %v16424_v48 = vld [vmem:[#allocation2 + $0x178] sm:$0x1] }
 0xd3f   : > { %v16580_v4 = vsel %vm1391_vm3, %v16575_v18, %v16579_v6  ;;  %v16613_v17 = vshll.u32 %v16424_v48, 16  ;;  %v16928_v6 = vshrl.u32 %v16885_v11, 16  ;;  %v16976_v48 = vshrl.u32 %v16893_v3, 16 }
 0xd40   : > { %v16587_v10 = vor.u32 %v16586_v5, %v30365_v2  ;;  %v16889_v5 = vld [vmem:[#allocation2 + $0x60] sm:$0x80]  ;;  %v24798_v2 = vld [vmem:[%s25114_s23 + $0x70] sm:$0xff]  }
 0xd41   : > { %v16615_v31 = vrot.slane %v16613_v17, 1  ;;  %v16930_v28 = vrot.slane %v16928_v6, 7  ;;  %v16952_v9 = vshrl.u32 %v16889_v5, 16  ;;  %v16899_v17 = vld [vmem:[#allocation2 + $0xd8] sm:$0x80] }
 0xd42   : > { %v16592_v12 = vsel %vm1391_vm3, %v16587_v10, %v16591_v1 }
 0xd43   : > { %v16616_v18 = vsel %vm1391_vm3, %v16611_v46, %v16615_v31  ;;  %v16938_v23 = vsel %vm746_vm4, %v16930_v28, %v28986_v47  ;;  %v16954_v10 = vrot.slane %v16952_v9, 7  ;;  %v29258_v47 = vld [vmem:[%s25114_s23 + $0x78] sm:$0xff]   ;;  %v16901_v31 = vld [vmem:[#allocation2 + $0xf0] sm:$0x80] }
 0xd44   : > { %v17024_v34 = vshrl.u32 %v16901_v31, 16 }
 0xd45   : > { %23086 = vmatmul.mubr.msk.bf16.gmra.mrb[80].mxu0 %vm15972_vm12, %v16544_v0  ;;  %v16883_v0 = vld [vmem:[#allocation2 + $0x18] sm:$0x80] }
 0xd46   : > { %23089 = vmatprep.mubr.msk.bf16.mxu0 %vm15972_vm12, %v16556_v15  ;;  %v16604_v15 = vsel %vm1391_vm3, %v16599_v20, %v16603_v51  ;;  %v16916_v52 = vshrl.u32 %v16883_v0, 16  ;;  %v16895_v20 = vld [vmem:[#allocation2 + $0xa8] sm:$0x80]  ;;  %v16962_v51 = vsel %vm746_vm4, %v16954_v10, %v29011_v32  ;;  %v16978_v0 = vrot.slane %v16976_v48, 7  ;;  %v16913_v10 = vld [vmem:[#allocation2 + $0x180] sm:$0x80] }
 0xd47   : > { %v17000_v32 = vshrl.u32 %v16897_v59, 16  ;;  %v17096_v3 = vshrl.u32 %v16913_v10, 16  ;;  %v30369_v48 = vshll.u32 %v28957_v36, 16  ;;  %v17636_v10 = vld [vmem:[#allocation2 + $0xb8] sm:$0x1] }
 0xd48   : > { %v16918_v35 = vrot.slane %v16916_v52, 7 }
 0xd49   : > { %v17002_v40 = vrot.slane %v17000_v32, 7 }
 0xd4a   : > { %v16926_v26 = vsel %vm746_vm4, %v16918_v35, %v28977_v13  ;;  %v16964_v13 = vshrl.u32 %v16891_v22, 16  ;;  %v16903_v35 = vld [vmem:[#allocation2 + $0x108] sm:$0x80] }
 0xd4b   : > { %v17010_v11 = vsel %vm746_vm4, %v17002_v40, %v29059_v55 }
 0xd4c   : > { %v16966_v1 = vrot.slane %v16964_v13, 7 }
 0xd4d   : > { %23090 = vmatmul.mubr.msk.bf16.gmra.mrb[84].mxu0 %vm15972_vm12, %v16568_v8  ;;  %v16942_v8 = vrot.slane %v16940_v56, 7  ;;  %v16907_v56 = vld [vmem:[#allocation2 + $0x138] sm:$0x80] }
 0xd4e   : > { %23093 = vmatprep.mubr.msk.bf16.mxu0 %vm15972_vm12, %v16580_v4  ;;  %v24797_v4 = vld [vmem:[%s25114_s23 + $0x68] sm:$0xff]   ;;  %v17060_v5 = vshrl.u32 %v16907_v56, 16 }
 0xd4f   : > { %v16950_v57 = vsel %vm746_vm4, %v16942_v8, %v29006_v63  ;;  %v16974_v63 = vsel %vm746_vm4, %v16966_v1, %v29032_v60  ;;  %v17012_v60 = vshrl.u32 %v16899_v17, 16 }
 0xd50   : > { %v17062_v22 = vrot.slane %v17060_v5, 7 }
 0xd51   : > { %v17014_v46 = vrot.slane %v17012_v60, 7 }
 0xd55   : > { %23094 = vmatmul.mubr.msk.bf16.gmra.mrb[88].mxu0 %vm15972_vm12, %v16592_v12 }
 0xd56   : > { %23097 = vmatprep.mubr.msk.bf16.mxu0 %vm15972_vm12, %v16604_v15  ;;  %v16986_v15 = vsel %vm746_vm4, %v16978_v0, %v29037_v43  ;;  %v17022_v43 = vsel %vm746_vm4, %v17014_v46, %v29076_v14  ;;  %v24802_v0 = vld [vmem:[%s25114_s23 + $0x90] sm:$0xff]  }
 0xd5d   : > { %23098 = vmatmul.mubr.msk.bf16.gmra.mrb[92].mxu0 %vm15972_vm12, %v16616_v18  ;;  %v17036_v18 = vshrl.u32 %v16903_v35, 16 }
 0xd5e   : > { %23107 = vmatprep.mubr.msk.bf16.mxu0 %vm15972_vm12, %v16926_v26  ;;  %v16905_v26 = vld [vmem:[#allocation2 + $0x120] sm:$0x80] }
 0xd5f   : > { %v17038_v6 = vrot.slane %v17036_v18, 7  ;;  %v17048_v8 = vshrl.u32 %v16905_v26, 16  ;;  %v24803_v18 = vld [vmem:[%s25114_s23 + $0x98] sm:$0xff]  }
 0xd61   : > { %v17046_v55 = vsel %vm746_vm4, %v17038_v6, %v29098_v29  ;;  %v17050_v14 = vrot.slane %v17048_v8, 7 }
 0xd63   : > { %v17058_v9 = vsel %vm746_vm4, %v17050_v14, %v29103_v41  ;;  %v30368_v41 = vshrl.u32 %v28957_v36, 16  ;;  %v29384_v14 = vld [vmem:[#allocation2 + $0xb0] sm:$0xff] }
 0xd65   : > { %23108 = vmatmul.mubr.msk.bf16.vlgmr.msra.gmra.mrb[64].mxu0 %vm15972_vm12, %v16938_v23  ;;  %v16911_v23 = vld [vmem:[#allocation2 + $0x168] sm:$0x80] }
 0xd66   : > { %23111 = vmatprep.mubr.msk.bf16.mxu0 %vm15972_vm12, %v16950_v57  ;;  %23140 = vmatpush3.bf16.msra.mxu0 %v29172_v62  ;;  %v16988_v62 = vshrl.u32 %v16895_v20, 16  ;;  %v17084_v13 = vshrl.u32 %v16911_v23, 16  ;;  %v17102_v20 = vrot.slane %v30368_v41, 7 }
 0xd67   : > { %23141 = vmatprep.subr.bf16.mxu0 %v24797_v4 }
 0xd68   : > { %v16990_v12 = vrot.slane %v16988_v62, 7  ;;  %v24800_v62 = vld [vmem:[%s25114_s23 + $0x80] sm:$0xff]  }
 0xd6a   : > { %23142 = vmatpush3.bf16.msra.mxu0 %v24797_v4  ;;  %v16998_v52 = vsel %vm746_vm4, %v16990_v12, %v29054_v19  ;;  %v17026_v19 = vrot.slane %v17024_v34, 7  ;;  %v16909_v4 = vld [vmem:[#allocation2 + $0x150] sm:$0x80] }
 0xd6b   : > { %23143 = vmatprep.subr.bf16.mxu0 %v24798_v2  ;;  %v17072_v57 = vshrl.u32 %v16909_v4, 16  ;;  %v24804_v4 = vld [vmem:[%s25114_s23 + $0xa0] sm:$0xff]  }
 0xd6c   : > { %v17034_v28 = vsel %vm746_vm4, %v17026_v19, %v29081_v27  ;;  %v17070_v27 = vsel %vm746_vm4, %v17062_v22, %v29120_v54 }
 0xd6d   : > { %23112 = vmatmul.mubr.msk.bf16.gmra.mrb[68].mxu0 %vm15972_vm12, %v16962_v51  ;;  %v17074_v29 = vrot.slane %v17072_v57, 7  ;;  %v17098_v51 = vrot.slane %v17096_v3, 7 }
 0xd6e   : > { %23115 = vmatprep.mubr.msk.bf16.mxu0 %vm15972_vm12, %v16974_v63  ;;  %23144 = vmatpush3.bf16.msra.mxu0 %v24798_v2  ;;  %v17086_v2 = vrot.slane %v17084_v13, 7  ;;  %v29301_v63 = vor.u32 %v30369_v48, %v17102_v20  ;;  %v17735_v48 = vshll.u32 %v17636_v10, 16 }
 0xd6f   : > { %23177 = vmatprep.subr.bf16.mxu0 %v29258_v47  ;;  %v17082_v1 = vsel %vm746_vm4, %v17074_v29, %v29124_v44  ;;  %v17634_v29 = vld [vmem:[#allocation2 + $0xa0] sm:$0x1] }
 0xd70   : > { %v17094_v54 = vsel %vm746_vm4, %v17086_v2, %v29141_v37  ;;  %v17106_v44 = vsel %vm746_vm4, %v17098_v51, %v29301_v63  ;;  %v24801_v37 = vld [vmem:[%s25114_s23 + $0x88] sm:$0xff]   ;;  %v17730_v2 = vshll.u32 %v29384_v14, 16  ;;  %v17723_v20 = vshll.u32 %v17634_v29, 16 }
 0xd72   : > { %v17732_v51 = vrot.slane %v17730_v2, 1 }
 0xd75   : > { %23116 = vmatmul.mubr.msk.bf16.gmra.mrb[72].mxu0 %vm15972_vm12, %v16986_v15  ;;  %v29353_v15 = vld [vmem:[#allocation2 + $0x68] sm:$0xff] }
 0xd76   : > { %23119 = vmatprep.mubr.msk.bf16.mxu0 %vm15972_vm12, %v16998_v52  ;;  %v29357_v52 = vld [vmem:[#allocation2 + $0x80] sm:$0xff]  ;;  %v17694_v46 = vshll.u32 %v29353_v15, 16  ;;  %v17692_v5 = vshrl.u32 %v29353_v15, 16 }
 0xd77   : > { %v17706_v34 = vshll.u32 %v29357_v52, 16  ;;  %v17704_v22 = vshrl.u32 %v29357_v52, 16 }
 0xd78   : > { %v17696_v6 = vrot.slane %v17694_v46, 1 }
 0xd7a   : > { %v29390_v23 = vor.u32 %v17696_v6, %v17692_v5 }
 0xd7d   : > { %23120 = vmatmul.mubr.msk.bf16.gmra.mrb[76].mxu0 %vm15972_vm12, %v17010_v11  ;;  %v17630_v11 = vld [vmem:[#allocation2 + $0x70] sm:$0x1] }
 0xd7e   : > { %23123 = vmatprep.mubr.msk.bf16.mxu0 %vm15972_vm12, %v17022_v43  ;;  %v17632_v43 = vld [vmem:[#allocation2 + $0x88] sm:$0x1]  ;;  %v17699_v26 = vshll.u32 %v17630_v11, 16 }
 0xd7f   : > { %v17711_v8 = vshll.u32 %v17632_v43, 16 }
 0xd81   : > { %v17713_v13 = vrot.slane %v17711_v8, 1  ;;  %v17644_v8 = vld [vmem:[#allocation2 + $0x118] sm:$0x1] }
 0xd85   : > { %23124 = vmatmul.mubr.msk.bf16.gmra.mrb[80].mxu0 %vm15972_vm12, %v17034_v28  ;;  %v17708_v28 = vrot.slane %v17706_v34, 1 }
 0xd86   : > { %23127 = vmatprep.mubr.msk.bf16.mxu0 %vm15972_vm12, %v17046_v55  ;;  %v29380_v55 = vld [vmem:[#allocation2 + $0x98] sm:$0xff] }
 0xd87   : > { %v17718_v57 = vshll.u32 %v29380_v55, 16 }
 0xd89   : > { %v17720_v41 = vrot.slane %v17718_v57, 1 }
 0xd8d   : > { %23128 = vmatmul.mubr.msk.bf16.gmra.mrb[84].mxu0 %vm15972_vm12, %v17058_v9  ;;  %v17701_v9 = vrot.slane %v17699_v26, 1 }
 0xd8e   : > { %23131 = vmatprep.mubr.msk.bf16.mxu0 %vm15972_vm12, %v17070_v27  ;;  %v29395_v27 = vor.u32 %v17708_v28, %v17704_v22 }
 0xd8f   : > { %v17702_v3 = vsel %vm1391_vm3, %v29390_v23, %v17701_v9 }
 0xd95   : > { %23132 = vmatmul.mubr.msk.bf16.gmra.mrb[88].mxu0 %vm15972_vm12, %v17082_v1  ;;  %v29399_v1 = vld [vmem:[%s25114_s23 + $0xa8] sm:$0xff]  }
 0xd96   : > { %23135 = vmatprep.mubr.msk.bf16.mxu0 %vm15972_vm12, %v17094_v54  ;;  %v17714_v54 = vsel %vm1391_vm3, %v29395_v27, %v17713_v13 }
 0xd9d   : > { %23136 = vmatmul.mubr.msk.bf16.gmra.mrb[92].mxu0 %vm15972_vm12, %v17106_v44  ;;  %v29410_v44 = vld [vmem:[#allocation2 + $0xc8] sm:$0xff] }
 0xd9e   : > { %23145 = vmatprep.mubr.msk.bf16.mxu0 %vm15972_vm12, %v28873_v50  ;;  %v17623_v50 = vld [vmem:[#allocation2 + $0x20] sm:$0xff] }
 0xda5   : > { %23146 = vmatmul.mubr.msk.bf16.vlgmr.msra.gmra.mrb[64].mxu0 %vm15972_vm12, %v28878_v16  ;;  %v17658_v16 = vshll.u32 %v17623_v50, 16 }
 0xda6   : > { %23149 = vmatprep.mubr.msk.bf16.mxu0 %vm15972_vm12, %v28888_v45  ;;  %23178 = vmatpush3.bf16.msra.mxu0 %v29258_v47  ;;  %v17624_v45 = vld [vmem:[#allocation2 + $0x28] sm:$0x1]  ;;  %v17628_v47 = vld [vmem:[#allocation2 + $0x58] sm:$0x1] }
 0xda7   : > { %23179 = vmatprep.subr.bf16.mxu0 %v24800_v62  ;;  %v17687_v17 = vshll.u32 %v17628_v47, 16 }
 0xda9   : > { %v17689_v35 = vrot.slane %v17687_v17, 1  ;;  %v29437_v17 = vld [vmem:[#allocation2 + $0xf8] sm:$0xff] }
 0xdaa   : > { %23180 = vmatpush3.bf16.msra.mxu0 %v24800_v62  ;;  %v17716_v62 = vshrl.u32 %v29380_v55, 16 }
 0xdab   : > { %23181 = vmatprep.subr.bf16.mxu0 %v24801_v37 }
 0xdad   : > { %23150 = vmatmul.mubr.msk.bf16.gmra.mrb[68].mxu0 %vm15972_vm12, %v28893_v58  ;;  %v17660_v58 = vrot.slane %v17658_v16, 1  ;;  %v17725_v16 = vrot.slane %v17723_v20, 1  ;;  %v17764_v20 = vshrl.u32 %v29437_v17, 16 }
 0xdae   : > { %23153 = vmatprep.mubr.msk.bf16.mxu0 %vm15972_vm12, %v28899_v39  ;;  %23182 = vmatpush3.bf16.msra.mxu0 %v24801_v37  ;;  %v17663_v39 = vshll.u32 %v17624_v45, 16  ;;  %v29414_v37 = vld [vmem:[#allocation2 + $0xe0] sm:$0xff]  ;;  %v17742_v45 = vshll.u32 %v29410_v44, 16 }
 0xdaf   : > { %23215 = vmatprep.subr.bf16.mxu0 %v24802_v0  ;;  %v17752_v11 = vshrl.u32 %v29414_v37, 16 }
 0xdb0   : > { %v17744_v47 = vrot.slane %v17742_v45, 1 }
 0xdb5   : > { %23154 = vmatmul.mubr.msk.bf16.gmra.mrb[72].mxu0 %vm15972_vm12, %v28904_v7  ;;  %v29338_v7 = vld [vmem:[#allocation2 + $0x38] sm:$0xff] }
 0xdb6   : > { %23157 = vmatprep.mubr.msk.bf16.mxu0 %vm15972_vm12, %v28909_v21  ;;  %v29342_v21 = vld [vmem:[#allocation2 + $0x50] sm:$0xff]  ;;  %v17668_v32 = vshrl.u32 %v29338_v7, 16 }
 0xdb7   : > { %v17680_v60 = vshrl.u32 %v29342_v21, 16 }
 0xdbd   : > { %23158 = vmatmul.mubr.msk.bf16.gmra.mrb[76].mxu0 %vm15972_vm12, %v28914_v24  ;;  %v17656_v24 = vshrl.u32 %v17623_v50, 16  ;;  %v29420_v50 = vor.u32 %v17720_v41, %v17716_v62  ;;  %v29463_v41 = vld [vmem:[#allocation2 + $0x128] sm:$0xff] }
 0xdbe   : > { %23161 = vmatprep.mubr.msk.bf16.mxu0 %vm15972_vm12, %v28919_v61  ;;  %v17670_v61 = vshll.u32 %v29338_v7, 16 }
 0xdc5   : > { %23162 = vmatmul.mubr.msk.bf16.gmra.mrb[80].mxu0 %vm15972_vm12, %v28924_v33  ;;  %v17661_v33 = vor.u32 %v17660_v58, %v17656_v24  ;;  %v17638_v24 = vld [vmem:[#allocation2 + $0xd0] sm:$0x1] }
 0xdc6   : > { %23165 = vmatprep.mubr.msk.bf16.mxu0 %vm15972_vm12, %v28929_v25  ;;  %v17665_v25 = vrot.slane %v17663_v39, 1  ;;  %v17737_v39 = vrot.slane %v17735_v48, 1 }
 0xdcd   : > { %23166 = vmatmul.mubr.msk.bf16.gmra.mrb[84].mxu0 %vm15972_vm12, %v28934_v49  ;;  %v17626_v49 = vld [vmem:[#allocation2 + $0x40] sm:$0x1] }
 0xdce   : > { %23169 = vmatprep.mubr.msk.bf16.mxu0 %vm15972_vm12, %v28943_v38  ;;  %v17682_v38 = vshll.u32 %v29342_v21, 16  ;;  %v17675_v12 = vshll.u32 %v17626_v49, 16  ;;  %v17726_v49 = vsel %vm1391_vm3, %v29420_v50, %v17725_v16 }
 0xdd0   : > { %v17684_v59 = vrot.slane %v17682_v38, 1  ;;  %v17677_v40 = vrot.slane %v17675_v12, 1 }
 0xdd2   : > { %v29367_v31 = vor.u32 %v17684_v59, %v17680_v60 }
 0xdd4   : > { %v17690_v56 = vsel %vm1391_vm3, %v29367_v31, %v17689_v35  ;;  %v29441_v35 = vld [vmem:[#allocation2 + $0x110] sm:$0xff] }
 0xdd5   : > { %23170 = vmatmul.mubr.msk.bf16.gmra.mrb[88].mxu0 %vm15972_vm12, %v28948_v30  ;;  %v17672_v30 = vrot.slane %v17670_v61, 1  ;;  %v30250_v28 = vshll.u32 %v29441_v35, 16 }
 0xdd6   : > { %23173 = vmatprep.mubr.msk.bf16.mxu0 %vm15972_vm12, %v28961_v42  ;;  %v17666_v42 = vsel %vm1391_vm3, %v17661_v33, %v17665_v25  ;;  %v17754_v33 = vshll.u32 %v29414_v37, 16  ;;  %v17640_v25 = vld [vmem:[#allocation2 + $0xe8] sm:$0x1] }
 0xdd7   : > { %v17759_v59 = vshll.u32 %v17640_v25, 16  ;;  %v17780_v10 = vrot.slane %v30250_v28, 1  ;;  %v18113_v28 = vld [vmem:[#allocation2 + $0x30] sm:$0x80] }
 0xdd9   : > { %v17761_v26 = vrot.slane %v17759_v59, 1 }
 0xddd   : > { %23174 = vmatmul.mubr.msk.bf16.gmra.mrb[92].mxu0 %vm15972_vm12, %v28957_v36  ;;  %v29362_v36 = vor.u32 %v17672_v30, %v17668_v32  ;;  %v17747_v30 = vshll.u32 %v17638_v24, 16 }
 0xdde   : > { %23183 = vmatprep.mubr.msk.bf16.mxu0 %vm15972_vm12, %v17666_v42  ;;  %v17756_v42 = vrot.slane %v17754_v33, 1 }
 0xddf   : > { %v17678_v19 = vsel %vm1391_vm3, %v29362_v36, %v17677_v40  ;;  %v17740_v40 = vshrl.u32 %v29410_v44, 16 }
 0xde0   : > { %v29451_v6 = vor.u32 %v17756_v42, %v17752_v11 }
 0xde1   : > { %v29446_v43 = vor.u32 %v17744_v47, %v17740_v40 }
 0xde2   : > { %v17762_v29 = vsel %vm1391_vm3, %v29451_v6, %v17761_v26 }
 0xde5   : > { %23184 = vmatmul.mubr.msk.bf16.vlgmr.msra.gmra.mrb[64].mxu0 %vm15972_vm12, %v17678_v19  ;;  %v17766_v19 = vshll.u32 %v29437_v17, 16 }
 0xde6   : > { %23187 = vmatprep.mubr.msk.bf16.mxu0 %vm15972_vm12, %v17690_v56  ;;  %23216 = vmatpush3.bf16.msra.mxu0 %v24802_v0  ;;  %v17728_v0 = vshrl.u32 %v29384_v14, 16  ;;  %v17642_v56 = vld [vmem:[#allocation2 + $0x100] sm:$0x1] }
 0xde7   : > { %23217 = vmatprep.subr.bf16.mxu0 %v24803_v18  ;;  %v17768_v9 = vrot.slane %v17766_v19, 1  ;;  %v17771_v13 = vshll.u32 %v17642_v56, 16 }
 0xde8   : > { %v29425_v58 = vor.u32 %v17732_v51, %v17728_v0  ;;  %v17776_v51 = vshrl.u32 %v29441_v35, 16 }
 0xde9   : > { %v29472_v48 = vor.u32 %v17768_v9, %v17764_v20  ;;  %v17773_v16 = vrot.slane %v17771_v13, 1  ;;  %v29493_v9 = vld [vmem:[#allocation2 + $0x170] sm:$0xff] }
 0xdea   : > { %23218 = vmatpush3.bf16.msra.mxu0 %v24803_v18  ;;  %v17738_v12 = vsel %vm1391_vm3, %v29425_v58, %v17737_v39  ;;  %v17749_v18 = vrot.slane %v17747_v30, 1  ;;  %v30248_v39 = vshll.u32 %v29463_v41, 16  ;;  %v29477_v24 = vor.u32 %v17780_v10, %v17776_v51  ;;  %v17648_v30 = vld [vmem:[#allocation2 + $0x148] sm:$0x1] }
 0xdeb   : > { %23219 = vmatprep.subr.bf16.mxu0 %v24804_v4  ;;  %v17807_v56 = vshll.u32 %v17648_v30, 16  ;;  %v30251_v30 = vshll.u32 %v29493_v9, 16 }
 0xdec   : > { %v17792_v42 = vrot.slane %v30248_v39, 1  ;;  %v30253_v39 = vshrl.u32 %v29493_v9, 16 }
 0xded   : > { %23188 = vmatmul.mubr.msk.bf16.gmra.mrb[68].mxu0 %vm15972_vm12, %v17702_v3  ;;  %v17783_v3 = vshll.u32 %v17644_v8, 16  ;;  %v29489_v8 = vld [vmem:[#allocation2 + $0x158] sm:$0xff] }
 0xdee   : > { %23191 = vmatprep.mubr.msk.bf16.mxu0 %vm15972_vm12, %v17714_v54  ;;  %23220 = vmatpush3.bf16.msra.mxu0 %v24804_v4  ;;  %v17750_v4 = vsel %vm1391_vm3, %v29446_v43, %v17749_v18  ;;  %v29467_v54 = vld [vmem:[#allocation2 + $0x140] sm:$0xff] }
 0xdef   : > { %23253 = vmatprep.subr.bf16.mxu0 %v29399_v1  ;;  %v17785_v25 = vrot.slane %v17783_v3, 1  ;;  %v30246_v47 = vshll.u32 %v29467_v54, 16  ;;  %v30247_v13 = vshrl.u32 %v29467_v54, 16  ;;  %v30249_v3 = vshll.u32 %v29489_v8, 16 }
 0xdf1   : > { %v17786_v18 = vsel %vm1391_vm3, %v29477_v24, %v17785_v25  ;;  %v17804_v26 = vrot.slane %v30246_v47, 1  ;;  %v17809_v25 = vrot.slane %v17807_v56, 1  ;;  %v17816_v47 = vrot.slane %v30249_v3, 1  ;;  %v17654_v3 = vld [vmem:[#allocation2 + $0x190] sm:$0x1] }
 0xdf5   : > { %23192 = vmatmul.mubr.msk.bf16.gmra.mrb[72].mxu0 %vm15972_vm12, %v17726_v49  ;;  %v17646_v49 = vld [vmem:[#allocation2 + $0x130] sm:$0x1] }
 0xdf6   : > { %23195 = vmatprep.mubr.msk.bf16.mxu0 %vm15972_vm12, %v17738_v12  ;;  %v17774_v12 = vsel %vm1391_vm3, %v29472_v48, %v17773_v16  ;;  %v17795_v59 = vshll.u32 %v17646_v49, 16  ;;  %v29503_v16 = vor.u32 %v17804_v26, %v30247_v13  ;;  %v17650_v49 = vld [vmem:[#allocation2 + $0x160] sm:$0x1]  ;;  %v17828_v26 = vrot.slane %v30251_v30, 1 }
 0xdf7   : > { %v17812_v13 = vshrl.u32 %v29489_v8, 16 }
 0xdf8   : > { %v17797_v10 = vrot.slane %v17795_v59, 1  ;;  %v17810_v59 = vsel %vm1391_vm3, %v29503_v16, %v17809_v25 }
 0xdfd   : > { %23196 = vmatmul.mubr.msk.bf16.gmra.mrb[76].mxu0 %vm15972_vm12, %v17750_v4  ;;  %v30252_v4 = vshrl.u32 %v29463_v41, 16 }
 0xdfe   : > { %23199 = vmatprep.mubr.msk.bf16.mxu0 %vm15972_vm12, %v17762_v29 }
 0xdff   : > { %v29498_v29 = vor.u32 %v17792_v42, %v30252_v4  ;;  %v17819_v42 = vshll.u32 %v17650_v49, 16  ;;  %v18146_v4 = vshrl.u32 %v18113_v28, 16  ;;  %v18164_v28 = vrot.slane %v17680_v60, 7  ;;  %v18119_v60 = vld [vmem:[#allocation2 + $0x78] sm:$0x80] }
 0xe01   : > { %v17821_v49 = vrot.slane %v17819_v42, 1 }
 0xe05   : > { %23200 = vmatmul.mubr.msk.bf16.gmra.mrb[80].mxu0 %vm15972_vm12, %v17774_v12  ;;  %v17652_v12 = vld [vmem:[#allocation2 + $0x178] sm:$0x1] }
 0xe06   : > { %23203 = vmatprep.mubr.msk.bf16.mxu0 %vm15972_vm12, %v17786_v18  ;;  %v17798_v18 = vsel %vm1391_vm3, %v29498_v29, %v17797_v10  ;;  %v17831_v56 = vshll.u32 %v17652_v12, 16  ;;  %v29520_v10 = vor.u32 %v17816_v47, %v17812_v13  ;;  %v18152_v47 = vrot.slane %v17668_v32, 7 }
 0xe08   : > { %v17833_v25 = vrot.slane %v17831_v56, 1  ;;  %v17822_v12 = vsel %vm1391_vm3, %v29520_v10, %v17821_v49  ;;  %v18155_v56 = vor.u32 %v18152_v47, %v17670_v61  ;;  %v18117_v49 = vld [vmem:[#allocation2 + $0x60] sm:$0x80]  ;;  %v24806_v47 = vld [vmem:[%s25114_s23 + $0xb0] sm:$0xff]  }
 0xe0d   : > { %23204 = vmatmul.mubr.msk.bf16.gmra.mrb[84].mxu0 %vm15972_vm12, %v17798_v18  ;;  %v29524_v18 = vor.u32 %v17828_v26, %v30253_v39  ;;  %v18148_v26 = vrot.slane %v18146_v4, 7  ;;  %v18115_v39 = vld [vmem:[#allocation2 + $0x48] sm:$0x80]  ;;  %v18176_v4 = vrot.slane %v17692_v5, 7  ;;  %v18188_v5 = vrot.slane %v17704_v22, 7 }
 0xe0e   : > { %23207 = vmatprep.mubr.msk.bf16.mxu0 %vm15972_vm12, %v17810_v59  ;;  %v17843_v59 = vshll.u32 %v17654_v3, 16 }
 0xe0f   : > { %v17834_v30 = vsel %vm1391_vm3, %v29524_v18, %v17833_v25  ;;  %v18156_v32 = vsel %vm746_vm4, %v18148_v26, %v18155_v56  ;;  %v18167_v25 = vor.u32 %v18164_v28, %v17682_v38  ;;  %v18182_v26 = vshrl.u32 %v18119_v60, 16 }
 0xe10   : > { %v17845_v42 = vrot.slane %v17843_v59, 1  ;;  %v18121_v59 = vld [vmem:[#allocation2 + $0x90] sm:$0x80] }
 0xe11   : > { %v18194_v38 = vshrl.u32 %v18121_v59, 16  ;;  %v18127_v59 = vld [vmem:[#allocation2 + $0xd8] sm:$0x80] }
 0xe12   : > { %v17846_v3 = vsel %vm1391_vm3, %v28981_v53, %v17845_v42 }
 0xe13   : > { %v18196_v22 = vrot.slane %v18194_v38, 7 }
 0xe15   : > { %23208 = vmatmul.mubr.msk.bf16.gmra.mrb[88].mxu0 %vm15972_vm12, %v17822_v12  ;;  %v18158_v12 = vshrl.u32 %v18115_v39, 16  ;;  %v18179_v39 = vor.u32 %v18176_v4, %v17694_v46  ;;  %v24807_v46 = vld [vmem:[%s25114_s23 + $0xb8] sm:$0xff]   ;;  %v29565_v4 = vld [vmem:[%s25114_s23 + $0xc0] sm:$0xff]  }
 0xe16   : > { %23211 = vmatprep.mubr.msk.bf16.mxu0 %vm15972_vm12, %v17834_v30  ;;  %v18170_v30 = vshrl.u32 %v18117_v49, 16  ;;  %v18200_v49 = vrot.slane %v17716_v62, 7 }
 0xe17   : > { %v18160_v61 = vrot.slane %v18158_v12, 7  ;;  %v18191_v12 = vor.u32 %v18188_v5, %v17706_v34 }
 0xe18   : > { %v18172_v53 = vrot.slane %v18170_v30, 7  ;;  %v18203_v28 = vor.u32 %v18200_v49, %v17718_v57  ;;  %v18125_v30 = vld [vmem:[#allocation2 + $0xc0] sm:$0x80]  ;;  %v18224_v57 = vrot.slane %v17740_v40, 7  ;;  %v18236_v40 = vrot.slane %v17752_v11, 7 }
 0xe19   : > { %v18168_v42 = vsel %vm746_vm4, %v18160_v61, %v18167_v25  ;;  %v18218_v25 = vshrl.u32 %v18125_v30, 16  ;;  %v18133_v11 = vld [vmem:[#allocation2 + $0x120] sm:$0x80]  ;;  %v30370_v30 = vshrl.u32 %v29463_v41, 16 }
 0xe1a   : > { %v18180_v56 = vsel %vm746_vm4, %v18172_v53, %v18179_v39  ;;  %v18204_v34 = vsel %vm746_vm4, %v18196_v22, %v18203_v28  ;;  %v18260_v28 = vrot.slane %v17776_v51, 7  ;;  %v18137_v51 = vld [vmem:[#allocation2 + $0x150] sm:$0x80] }
 0xe1b   : > { %v18220_v60 = vrot.slane %v18218_v25, 7 }
 0xe1d   : > { %23212 = vmatmul.mubr.msk.bf16.gmra.mrb[92].mxu0 %vm15972_vm12, %v17846_v3  ;;  %v18184_v3 = vrot.slane %v18182_v26, 7  ;;  %v18230_v26 = vshrl.u32 %v18127_v59, 16 }
 0xe1e   : > { %23221 = vmatprep.mubr.msk.bf16.mxu0 %vm15972_vm12, %v18156_v32  ;;  %v18123_v32 = vld [vmem:[#allocation2 + $0xa8] sm:$0x80] }
 0xe1f   : > { %v18192_v62 = vsel %vm746_vm4, %v18184_v3, %v18191_v12  ;;  %v18206_v61 = vshrl.u32 %v18123_v32, 16  ;;  %v18232_v38 = vrot.slane %v18230_v26, 7  ;;  %v18131_v3 = vld [vmem:[#allocation2 + $0x108] sm:$0x80]  ;;  %v18266_v32 = vshrl.u32 %v18133_v11, 16 }
 0xe20   : > { %v18254_v22 = vshrl.u32 %v18131_v3, 16 }
 0xe21   : > { %v18208_v53 = vrot.slane %v18206_v61, 7 }
 0xe25   : > { %23222 = vmatmul.mubr.msk.bf16.vlgmr.msra.gmra.mrb[64].mxu0 %vm15972_vm12, %v18168_v42 }
 0xe26   : > { %23225 = vmatprep.mubr.msk.bf16.mxu0 %vm15972_vm12, %v18180_v56  ;;  %23254 = vmatpush3.bf16.msra.mxu0 %v29399_v1  ;;  %v18212_v1 = vrot.slane %v17728_v0, 7  ;;  %v18227_v0 = vor.u32 %v18224_v57, %v17742_v45  ;;  %v18239_v45 = vor.u32 %v18236_v40, %v17754_v33  ;;  %v18272_v33 = vrot.slane %v30370_v30, 7  ;;  %v18135_v57 = vld [vmem:[#allocation2 + $0x138] sm:$0x80] }
 0xe27   : > { %23255 = vmatprep.subr.bf16.mxu0 %v24806_v47  ;;  %v30374_v40 = vshll.u32 %v29467_v54, 16 }
 0xe28   : > { %v18215_v39 = vor.u32 %v18212_v1, %v17730_v2  ;;  %v18228_v5 = vsel %vm746_vm4, %v18220_v60, %v18227_v0  ;;  %v18248_v2 = vrot.slane %v17764_v20, 7  ;;  %v18240_v12 = vsel %vm746_vm4, %v18232_v38, %v18239_v45  ;;  %v18139_v45 = vld [vmem:[#allocation2 + $0x168] sm:$0x80] }
 0xe29   : > { %v18268_v1 = vrot.slane %v18266_v32, 7  ;;  %v30373_v60 = vshrl.u32 %v29467_v54, 16  ;;  %v18302_v11 = vshrl.u32 %v18139_v45, 16  ;;  %v18143_v32 = vld [vmem:[#allocation2 + $0x198] sm:$0x80] }
 0xe2a   : > { %23256 = vmatpush3.bf16.msra.mxu0 %v24806_v47  ;;  %v18129_v47 = vld [vmem:[#allocation2 + $0xf0] sm:$0x80]  ;;  %v18216_v42 = vsel %vm746_vm4, %v18208_v53, %v18215_v39  ;;  %v18278_v39 = vshrl.u32 %v18135_v57, 16  ;;  %v18870_v45 = vld [vmem:[#allocation2 + $0x100] sm:$0x1] }
 0xe2b   : > { %23257 = vmatprep.subr.bf16.mxu0 %v24807_v46  ;;  %v18242_v56 = vshrl.u32 %v18129_v47, 16  ;;  %v18284_v0 = vrot.slane %v30373_v60, 7  ;;  %v18290_v47 = vshrl.u32 %v18137_v51, 16  ;;  %v18304_v30 = vrot.slane %v18302_v11, 7  ;;  %v24809_v60 = vld [vmem:[%s25114_s23 + $0xc8] sm:$0xff]  }
 0xe2c   : > { %v18280_v26 = vrot.slane %v18278_v39, 7  ;;  %v18989_v11 = vshll.u32 %v18870_v45, 16 }
 0xe2d   : > { %23226 = vmatmul.mubr.msk.bf16.gmra.mrb[68].mxu0 %vm15972_vm12, %v18192_v62  ;;  %v18244_v49 = vrot.slane %v18242_v56, 7  ;;  %v18256_v62 = vrot.slane %v18254_v22, 7  ;;  %v18292_v56 = vrot.slane %v18290_v47, 7 }
 0xe2e   : > { %23229 = vmatprep.mubr.msk.bf16.mxu0 %vm15972_vm12, %v18204_v34  ;;  %23258 = vmatpush3.bf16.msra.mxu0 %v24807_v46  ;;  %v18251_v46 = vor.u32 %v18248_v2, %v17766_v19  ;;  %v30371_v19 = vshll.u32 %v29441_v35, 16  ;;  %v30372_v34 = vshll.u32 %v29463_v41, 16  ;;  %v30375_v2 = vshll.u32 %v29489_v8, 16 }
 0xe2f   : > { %23291 = vmatprep.subr.bf16.mxu0 %v29565_v4 }
 0xe30   : > { %v18252_v20 = vsel %vm746_vm4, %v18244_v49, %v18251_v46  ;;  %v18263_v61 = vor.u32 %v18260_v28, %v30371_v19  ;;  %v18275_v25 = vor.u32 %v18272_v33, %v30372_v34  ;;  %v18141_v49 = vld [vmem:[#allocation2 + $0x180] sm:$0x80]  ;;  %v30377_v33 = vshll.u32 %v29493_v9, 16 }
 0xe31   : > { %v29616_v46 = vld [vmem:[#allocation2 + $0x1a0] sm:$0xff]  ;;  %v18314_v28 = vshrl.u32 %v18141_v49, 16 }
 0xe32   : > { %v18264_v53 = vsel %vm746_vm4, %v18256_v62, %v18263_v61  ;;  %v18276_v59 = vsel %vm746_vm4, %v18268_v1, %v18275_v25  ;;  %v18326_v61 = vshrl.u32 %v18143_v32, 16  ;;  %v18333_v34 = vshll.u32 %v29616_v46, 16 }
 0xe33   : > { %v18316_v19 = vrot.slane %v18314_v28, 7 }
 0xe34   : > { %v18328_v51 = vrot.slane %v18326_v61, 7 }
 0xe35   : > { %23230 = vmatmul.mubr.msk.bf16.gmra.mrb[72].mxu0 %vm15972_vm12, %v18216_v42  ;;  %v18296_v42 = vrot.slane %v17812_v13, 7  ;;  %v18324_v57 = vsel %vm746_vm4, %v18316_v19, %v29301_v63  ;;  %v24810_v63 = vld [vmem:[%s25114_s23 + $0xd0] sm:$0xff]   ;;  %v18878_v19 = vld [vmem:[#allocation2 + $0x160] sm:$0x1] }
 0xe36   : > { %23233 = vmatprep.mubr.msk.bf16.mxu0 %vm15972_vm12, %v18228_v5  ;;  %v18287_v5 = vor.u32 %v18284_v0, %v30374_v40 }
 0xe37   : > { %v18299_v38 = vor.u32 %v18296_v42, %v30375_v2  ;;  %v18864_v42 = vld [vmem:[#allocation2 + $0xb8] sm:$0x1] }
 0xe38   : > { %v18288_v3 = vsel %vm746_vm4, %v18280_v26, %v18287_v5  ;;  %v18866_v26 = vld [vmem:[#allocation2 + $0xd0] sm:$0x1]  ;;  %v18953_v5 = vshll.u32 %v18864_v42, 16 }
 0xe39   : > { %v18300_v22 = vsel %vm746_vm4, %v18292_v56, %v18299_v38  ;;  %v18965_v56 = vshll.u32 %v18866_v26, 16  ;;  %v18868_v38 = vld [vmem:[#allocation2 + $0xe8] sm:$0x1] }
 0xe3a   : > { %v19417_v26 = vld [vmem:[#allocation3 + $0x18] sm:$0xff] }
 0xe3b   : > { %v18967_v2 = vrot.slane %v18965_v56, 1  ;;  %v19415_v56 = vld [vmem:[#allocation3 + $0x8] sm:$0xff] }
 0xe3d   : > { %23234 = vmatmul.mubr.msk.bf16.gmra.mrb[76].mxu0 %vm15972_vm12, %v18240_v12  ;;  %v30376_v12 = vshrl.u32 %v29493_v9, 16 }
 0xe3e   : > { %23237 = vmatprep.mubr.msk.bf16.mxu0 %vm15972_vm12, %v18252_v20  ;;  %v18330_v20 = vshrl.u32 %v29616_v46, 16 }
 0xe3f   : > { %v18308_v13 = vrot.slane %v30376_v12, 7  ;;  %v18991_v12 = vrot.slane %v18989_v11, 1 }
 0xe40   : > { %v18332_v1 = vrot.slane %v18330_v20, 7 }
 0xe41   : > { %v18311_v62 = vor.u32 %v18308_v13, %v30377_v33  ;;  %v18872_v13 = vld [vmem:[#allocation2 + $0x118] sm:$0x1] }
 0xe42   : > { %v19001_v32 = vshll.u32 %v18872_v13, 16 }
 0xe43   : > { %v18312_v25 = vsel %vm746_vm4, %v18304_v30, %v18311_v62  ;;  %v18876_v62 = vld [vmem:[#allocation2 + $0x148] sm:$0x1] }
 0xe45   : > { %23238 = vmatmul.mubr.msk.bf16.gmra.mrb[80].mxu0 %vm15972_vm12, %v18264_v53  ;;  %v18335_v53 = vor.u32 %v18333_v34, %v18332_v1  ;;  %v19025_v1 = vshll.u32 %v18876_v62, 16 }
 0xe46   : > { %23241 = vmatprep.mubr.msk.bf16.mxu0 %vm15972_vm12, %v18276_v59 }
 0xe47   : > { %v18336_v39 = vsel %vm746_vm4, %v18328_v51, %v18335_v53  ;;  %v18880_v53 = vld [vmem:[#allocation2 + $0x178] sm:$0x1] }
 0xe4d   : > { %23242 = vmatmul.mubr.msk.bf16.gmra.mrb[84].mxu0 %vm15972_vm12, %v18288_v3  ;;  %v18977_v3 = vshll.u32 %v18868_v38, 16 }
 0xe4e   : > { %23245 = vmatprep.mubr.msk.bf16.mxu0 %vm15972_vm12, %v18300_v22  ;;  %v18874_v22 = vld [vmem:[#allocation2 + $0x130] sm:$0x1] }
 0xe4f   : > { %v19013_v30 = vshll.u32 %v18874_v22, 16 }
 0xe51   : > { %v19015_v33 = vrot.slane %v19013_v30, 1 }
 0xe55   : > { %23246 = vmatmul.mubr.msk.bf16.gmra.mrb[88].mxu0 %vm15972_vm12, %v18312_v25  ;;  %v19037_v25 = vshll.u32 %v18878_v19, 16 }
 0xe56   : > { %23249 = vmatprep.mubr.msk.bf16.mxu0 %vm15972_vm12, %v18324_v57  ;;  %v19027_v57 = vrot.slane %v19025_v1, 1  ;;  %v19419_v1 = vld [vmem:[#allocation3 + $0x28] sm:$0xff] }
 0xe57   : > { %v19039_v51 = vrot.slane %v19037_v25, 1 }
 0xe5d   : > { %23250 = vmatmul.mubr.msk.bf16.gmra.mrb[92].mxu0 %vm15972_vm12, %v18336_v39 }
 0xe5e   : > { %23259 = vmatprep.mubr.msk.bf16.mxu0 %vm15972_vm12, %v29338_v7  ;;  %v18854_v7 = vld [vmem:[#allocation2 + $0x40] sm:$0x1] }
 0xe65   : > { %23260 = vmatmul.mubr.msk.bf16.vlgmr.msra.gmra.mrb[64].mxu0 %vm15972_vm12, %v29342_v21  ;;  %v18893_v21 = vshll.u32 %v18854_v7, 16  ;;  %v19049_v7 = vshll.u32 %v18880_v53, 16 }
 0xe66   : > { %23263 = vmatprep.mubr.msk.bf16.mxu0 %vm15972_vm12, %v29353_v15  ;;  %23292 = vmatpush3.bf16.msra.mxu0 %v29565_v4  ;;  %v24830_v15 = vld [vmem:[#allocation2 + $0x188] sm:$0xff] }
 0xe67   : > { %23293 = vmatprep.subr.bf16.mxu0 %v24809_v60 }
 0xe6a   : > { %23294 = vmatpush3.bf16.msra.mxu0 %v24809_v60  ;;  %v18882_v60 = vld [vmem:[#allocation2 + $0x190] sm:$0x1] }
 0xe6b   : > { %23295 = vmatprep.subr.bf16.mxu0 %v24810_v63 }
 0xe6d   : > { %23264 = vmatmul.mubr.msk.bf16.gmra.mrb[68].mxu0 %vm15972_vm12, %v29357_v52  ;;  %v18895_v52 = vrot.slane %v18893_v21, 1 }
 0xe6e   : > { %23267 = vmatprep.mubr.msk.bf16.mxu0 %vm15972_vm12, %v29380_v55  ;;  %23296 = vmatpush3.bf16.msra.mxu0 %v24810_v63  ;;  %v18856_v55 = vld [vmem:[#allocation2 + $0x58] sm:$0x1]  ;;  %v19028_v63 = vsel %vm1391_vm3, %v29503_v16, %v19027_v57 }
 0xe75   : > { %23268 = vmatmul.mubr.msk.bf16.gmra.mrb[72].mxu0 %vm15972_vm12, %v29384_v14  ;;  %v18858_v14 = vld [vmem:[#allocation2 + $0x70] sm:$0x1] }
 0xe76   : > { %23271 = vmatprep.mubr.msk.bf16.mxu0 %vm15972_vm12, %v29410_v44  ;;  %v18905_v44 = vshll.u32 %v18856_v55, 16  ;;  %v19051_v55 = vrot.slane %v19049_v7, 1  ;;  %v19424_v7 = vld [vmem:[#allocation3 + $0x50] sm:$0xff] }
 0xe7d   : > { %23272 = vmatmul.mubr.msk.bf16.gmra.mrb[76].mxu0 %vm15972_vm12, %v29414_v37  ;;  %v18896_v37 = vsel %vm1391_vm3, %v29362_v36, %v18895_v52  ;;  %v18884_v52 = vld [vmem:[#allocation2 + $0x1a8] sm:$0x1] }
 0xe7e   : > { %23275 = vmatprep.mubr.msk.bf16.mxu0 %vm15972_vm12, %v29437_v17  ;;  %v18917_v17 = vshll.u32 %v18858_v14, 16  ;;  %v19073_v16 = vshll.u32 %v18884_v52, 16 }
 0xe85   : > { %23276 = vmatmul.mubr.msk.bf16.gmra.mrb[80].mxu0 %vm15972_vm12, %v29441_v35  ;;  %v18907_v35 = vrot.slane %v18905_v44, 1 }
 0xe86   : > { %23279 = vmatprep.mubr.msk.bf16.mxu0 %vm15972_vm12, %v29463_v41  ;;  %v18919_v41 = vrot.slane %v18917_v17, 1  ;;  %v19052_v17 = vsel %vm1391_vm3, %v29524_v18, %v19051_v55 }
 0xe88   : > { %v18920_v0 = vsel %vm1391_vm3, %v29390_v23, %v18919_v41  ;;  %v18955_v23 = vrot.slane %v18953_v5, 1  ;;  %v19075_v41 = vrot.slane %v19073_v16, 1 }
 0xe8a   : > { %v18956_v49 = vsel %vm1391_vm3, %v29425_v58, %v18955_v23  ;;  %v18992_v58 = vsel %vm1391_vm3, %v29472_v48, %v18991_v12  ;;  %v18881_v48 = vld [vmem:[#allocation2 + $0x188] sm:$0xff]  ;;  %v19420_v12 = vld [vmem:[#allocation3 + $0x30] sm:$0xff] }
 0xe8b   : > { %v19056_v39 = vshll.u32 %v18881_v48, 16 }
 0xe8d   : > { %23280 = vmatmul.mubr.msk.bf16.gmra.mrb[84].mxu0 %vm15972_vm12, %v29467_v54  ;;  %v18860_v54 = vld [vmem:[#allocation2 + $0x88] sm:$0x1]  ;;  %v19058_v21 = vrot.slane %v19056_v39, 1 }
 0xe8e   : > { %23283 = vmatprep.mubr.msk.bf16.mxu0 %vm15972_vm12, %v29489_v8  ;;  %v18862_v8 = vld [vmem:[#allocation2 + $0xa0] sm:$0x1]  ;;  %v18929_v4 = vshll.u32 %v18860_v54, 16 }
 0xe8f   : > { %v18941_v59 = vshll.u32 %v18862_v8, 16 }
 0xe90   : > { %v18931_v36 = vrot.slane %v18929_v4, 1  ;;  %v19416_v4 = vld [vmem:[#allocation3 + $0x10] sm:$0xff] }
 0xe91   : > { %v18943_v47 = vrot.slane %v18941_v59, 1  ;;  %v19414_v59 = vld [vmem:[#allocation3] sm:$0xff] }
 0xe92   : > { %v18932_v40 = vsel %vm1391_vm3, %v29395_v27, %v18931_v36  ;;  %v18968_v27 = vsel %vm1391_vm3, %v29446_v43, %v18967_v2  ;;  %v19003_v43 = vrot.slane %v19001_v32, 1  ;;  %v19418_v32 = vld [vmem:[#allocation3 + $0x20] sm:$0xff] }
 0xe94   : > { %v19004_v61 = vsel %vm1391_vm3, %v29477_v24, %v19003_v43  ;;  %v19040_v24 = vsel %vm1391_vm3, %v29520_v10, %v19039_v51 }
 0xe95   : > { %23284 = vmatmul.mubr.msk.bf16.gmra.mrb[88].mxu0 %vm15972_vm12, %v29493_v9  ;;  %v18908_v9 = vsel %vm1391_vm3, %v29367_v31, %v18907_v35  ;;  %v18944_v31 = vsel %vm1391_vm3, %v29420_v50, %v18943_v47  ;;  %v18979_v50 = vrot.slane %v18977_v3, 1 }
 0xe96   : > { %23287 = vmatprep.mubr.msk.bf16.mxu0 %vm15972_vm12, %v24830_v15  ;;  %v19054_v15 = vshrl.u32 %v18881_v48, 16 }
 0xe97   : > { %v18980_v28 = vsel %vm1391_vm3, %v29451_v6, %v18979_v50  ;;  %v19016_v6 = vsel %vm1391_vm3, %v29498_v29, %v19015_v33  ;;  %v19061_v29 = vshll.u32 %v18882_v60, 16  ;;  %v19421_v33 = vld [vmem:[#allocation3 + $0x38] sm:$0xff] }
 0xe98   : > { %v19059_v14 = vor.u32 %v19058_v21, %v19054_v15  ;;  %v19422_v15 = vld [vmem:[#allocation3 + $0x40] sm:$0xff] }
 0xe99   : > { %v19063_v44 = vrot.slane %v19061_v29, 1 }
 0xe9b   : > { %v19064_v10 = vsel %vm1391_vm3, %v19059_v14, %v19063_v44  ;;  %v19425_v44 = vld [vmem:[#allocation3 + $0x58] sm:$0xff] }
 0xe9d   : > { %23288 = vmatmul.mubr.msk.bf16.gmra.mrb[92].mxu0 %vm15972_vm12, %v29616_v46 }
 0xe9e   : > { %23297 = vmatprep.mubr.msk.bf16.mxu0 %vm15972_vm12, %v18896_v37  ;;  %v19070_v37 = vrot.slane %v18333_v34, 1  ;;  %v29728_v34 = vld [vmem:[%s566_s14] ss:$0 sm:$0xff] }
 0xea0   : > { %v19071_v35 = vor.u32 %v19070_v37, %v18330_v20 }
 0xea2   : > { %v19076_v54 = vsel %vm1391_vm3, %v19071_v35, %v19075_v41 }
 0xea5   : > { %23298 = vmatmul.mubr.msk.bf16.vlgmr.msra.gmra.mrb[64].mxu0 %vm15972_vm12, %v18908_v9 }
 0xea6   : > { %23301 = vmatprep.mubr.msk.bf16.mxu0 %vm15972_vm12, %v18920_v0 }
 0xead   : > { %23302 = vmatmul.mubr.msk.bf16.gmra.mrb[68].mxu0 %vm15972_vm12, %v18932_v40 }
 0xeae   : > { %23305 = vmatprep.mubr.msk.bf16.mxu0 %vm15972_vm12, %v18944_v31 }
 0xeb5   : > { %23306 = vmatmul.mubr.msk.bf16.gmra.mrb[72].mxu0 %vm15972_vm12, %v18956_v49 }
 0xeb6   : > { %23309 = vmatprep.mubr.msk.bf16.mxu0 %vm15972_vm12, %v18968_v27 }
 0xebd   : > { %23310 = vmatmul.mubr.msk.bf16.gmra.mrb[76].mxu0 %vm15972_vm12, %v18980_v28 }
 0xebe   : > { %23313 = vmatprep.mubr.msk.bf16.mxu0 %vm15972_vm12, %v18992_v58 }
 0xec5   : > { %23314 = vmatmul.mubr.msk.bf16.gmra.mrb[80].mxu0 %vm15972_vm12, %v19004_v61 }
 0xec6   : > { %23317 = vmatprep.mubr.msk.bf16.mxu0 %vm15972_vm12, %v19016_v6 }
 0xecd   : > { %23318 = vmatmul.mubr.msk.bf16.gmra.mrb[84].mxu0 %vm15972_vm12, %v19028_v63 }
 0xece   : > { %23321 = vmatprep.mubr.msk.bf16.mxu0 %vm15972_vm12, %v19040_v24 }
 0xed5   : > { %23322 = vmatmul.mubr.msk.bf16.gmra.mrb[88].mxu0 %vm15972_vm12, %v19052_v17 }
 0xed6   : > { %23325 = vmatprep.mubr.msk.bf16.mxu0 %vm15972_vm12, %v19064_v10  ;;  %v19423_v10 = vld [vmem:[#allocation3 + $0x48] sm:$0xff] }
 0xedd   : > { %23326 = vmatmul.mubr.msk.bf16.gmra.mrb[92].mxu0 %vm15972_vm12, %v19076_v54 }
 0xf78   : > { %v23299_v18 = vpop.f32.mrb[64].mxu0 }
 0xf79   : > { %v19352_v8 = vadd.f32 %v23299_v18, %v29728_v34  ;;  %v19184_v9 = vpop.f32.mrb[65].mxu0 }
 0xf7a   : > { %v19350_v0 = vadd.f32 %v29728_v34, %v19184_v9  ;;  %v23300_v46 = vpop.f32.mrb[66].mxu0 }
 0xf7b   : > { %v19384_v20 = vmul.f32 0.2, %v19352_v8  ;;  %v19353_v36 = vadd.f32 %v23300_v46, %v29728_v34  ;;  %v19187_v47 = vpop.f32.mrb[67].mxu0 }
 0xf7c   : > { %v19382_v42 = vmul.f32 0.2, %v19350_v0  ;;  %v19351_v40 = vadd.f32 %v29728_v34, %v19187_v47 }
 0xf7d   : > { %v29734_v5 = vadd.f32 %v19416_v4, %v19384_v20  ;;  %v19385_v31 = vmul.f32 0.2, %v19353_v36  ;;  %v19428_v20 = vld [vmem:[#allocation3 + $0x70] sm:$0xff] }
 0xf7e   : > { %v29736_v23 = vadd.f32 %v19414_v59, %v19382_v42  ;;  %v19383_v2 = vmul.f32 0.2, %v19351_v40  ;;  %v19426_v42 = vld [vmem:[#allocation3 + $0x60] sm:$0xff] }
 0xf7f   : > { %19480 = vst.msk [vmem:[#allocation3 + $0x10] sm:$0xff] %vm950_vm2, %v29734_v5  ;;  %v29740_v38 = vadd.f32 %v19417_v26, %v19385_v31 }
 0xf80   : > { %19478 = vst.msk [vmem:[#allocation3] sm:$0xff] %vm950_vm2, %v29736_v23  ;;  %v29744_v45 = vadd.f32 %v19415_v56, %v19383_v2  ;;  %v23303_v49 = vpop.f32.mrb[68].mxu0  ;;  %v19429_v56 = vld [vmem:[#allocation3 + $0x78] sm:$0xff] }
 0xf81   : > { %19481 = vst.msk [vmem:[#allocation3 + $0x18] sm:$0xff] %vm950_vm2, %v29740_v38  ;;  %v19511_v3 = vpack.c.bf16 %v29740_v38, %v29734_v5  ;;  %v19356_v27 = vadd.f32 %v23303_v49, %v29728_v34  ;;  %v19200_v11 = vpop.f32.mrb[69].mxu0 }
 0xf82   : > { %19479 = vst.msk [vmem:[#allocation3 + $0x8] sm:$0xff] %vm950_vm2, %v29744_v45  ;;  %v19510_v50 = vpack.c.bf16 %v29744_v45, %v29736_v23  ;;  %v19354_v13 = vadd.f32 %v29728_v34, %v19200_v11  ;;  %v23304_v22 = vpop.f32.mrb[70].mxu0 }
 0xf83   : > { %19527 = vst.msk [vmem:[#allocation2 + $0x38] sm:$0xff] %vm950_vm2, %v19511_v3  ;;  %v19388_v28 = vmul.f32 0.2, %v19356_v27  ;;  %v19357_v58 = vadd.f32 %v23304_v22, %v29728_v34  ;;  %v19203_v30 = vpop.f32.mrb[71].mxu0  ;;  %v19427_v27 = vld [vmem:[#allocation3 + $0x68] sm:$0xff] }
 0xf84   : > { %19526 = vst.msk [vmem:[#allocation2 + $0x20] sm:$0xff] %vm950_vm2, %v19510_v50  ;;  %v19386_v43 = vmul.f32 0.2, %v19354_v13  ;;  %v19355_v62 = vadd.f32 %v29728_v34, %v19203_v30 }
 0xf85   : > { %v29760_v19 = vadd.f32 %v19420_v12, %v19388_v28  ;;  %v19389_v61 = vmul.f32 0.2, %v19357_v58 }
 0xf86   : > { %v29762_v6 = vadd.f32 %v19418_v32, %v19386_v43  ;;  %v19387_v25 = vmul.f32 0.2, %v19355_v62  ;;  %v19432_v43 = vld [vmem:[#allocation3 + $0x90] sm:$0xff] }
 0xf87   : > { %19484 = vst.msk [vmem:[#allocation3 + $0x30] sm:$0xff] %vm950_vm2, %v29760_v19  ;;  %v29766_v48 = vadd.f32 %v19421_v33, %v19389_v61 }
 0xf88   : > { %19482 = vst.msk [vmem:[#allocation3 + $0x20] sm:$0xff] %vm950_vm2, %v29762_v6  ;;  %v29770_v57 = vadd.f32 %v19419_v1, %v19387_v25  ;;  %v23307_v51 = vpop.f32.mrb[72].mxu0  ;;  %v19430_v1 = vld [vmem:[#allocation3 + $0x80] sm:$0xff] }
 0xf89   : > { %19485 = vst.msk [vmem:[#allocation3 + $0x38] sm:$0xff] %vm950_vm2, %v29766_v48  ;;  %v19513_v53 = vpack.c.bf16 %v29766_v48, %v29760_v19  ;;  %v19360_v39 = vadd.f32 %v23307_v51, %v29728_v34  ;;  %v19216_v60 = vpop.f32.mrb[73].mxu0 }
 0xf8a   : > { %19483 = vst.msk [vmem:[#allocation3 + $0x28] sm:$0xff] %vm950_vm2, %v29770_v57  ;;  %v19512_v63 = vpack.c.bf16 %v29770_v57, %v29762_v6  ;;  %v19358_v24 = vadd.f32 %v29728_v34, %v19216_v60  ;;  %v23308_v21 = vpop.f32.mrb[74].mxu0 }
 0xf8b   : > { %19529 = vst.msk [vmem:[#allocation2 + $0x68] sm:$0xff] %vm950_vm2, %v19513_v53  ;;  %v19392_v29 = vmul.f32 0.2, %v19360_v39  ;;  %v19361_v52 = vadd.f32 %v23308_v21, %v29728_v34  ;;  %v19219_v55 = vpop.f32.mrb[75].mxu0  ;;  %v19433_v39 = vld [vmem:[#allocation3 + $0x98] sm:$0xff] }
 0xf8c   : > { %19528 = vst.msk [vmem:[#allocation2 + $0x50] sm:$0xff] %vm950_vm2, %v19512_v63  ;;  %v19390_v14 = vmul.f32 0.2, %v19358_v24  ;;  %v19359_v37 = vadd.f32 %v29728_v34, %v19219_v55  ;;  %v19431_v24 = vld [vmem:[#allocation3 + $0x88] sm:$0xff] }
 0xf8d   : > { %v29786_v16 = vadd.f32 %v19424_v7, %v19392_v29  ;;  %v19393_v17 = vmul.f32 0.2, %v19361_v52 }
 0xf8e   : > { %v29788_v35 = vadd.f32 %v19422_v15, %v19390_v14  ;;  %v19391_v41 = vmul.f32 0.2, %v19359_v37 }
 0xf8f   : > { %19488 = vst.msk [vmem:[#allocation3 + $0x50] sm:$0xff] %vm950_vm2, %v29786_v16  ;;  %v29792_v54 = vadd.f32 %v19425_v44, %v19393_v17 }
 0xf90   : > { %19486 = vst.msk [vmem:[#allocation3 + $0x40] sm:$0xff] %vm950_vm2, %v29788_v35  ;;  %v29796_v18 = vadd.f32 %v19423_v10, %v19391_v41  ;;  %v23311_v8 = vpop.f32.mrb[76].mxu0  ;;  %v19436_v10 = vld [vmem:[#allocation3 + $0xb0] sm:$0xff] }
 0xf91   : > { %19489 = vst.msk [vmem:[#allocation3 + $0x58] sm:$0xff] %vm950_vm2, %v29792_v54  ;;  %v19515_v9 = vpack.c.bf16 %v29792_v54, %v29786_v16  ;;  %v19364_v4 = vadd.f32 %v23311_v8, %v29728_v34  ;;  %v19232_v0 = vpop.f32.mrb[77].mxu0 }
 0xf92   : > { %19487 = vst.msk [vmem:[#allocation3 + $0x48] sm:$0xff] %vm950_vm2, %v29796_v18  ;;  %v19514_v46 = vpack.c.bf16 %v29796_v18, %v29788_v35  ;;  %v19362_v59 = vadd.f32 %v29728_v34, %v19232_v0  ;;  %v23312_v36 = vpop.f32.mrb[78].mxu0 }
 0xf93   : > { %19531 = vst.msk [vmem:[#allocation2 + $0x98] sm:$0xff] %vm950_vm2, %v19515_v9  ;;  %v19396_v47 = vmul.f32 0.2, %v19364_v4  ;;  %v19365_v26 = vadd.f32 %v23312_v36, %v29728_v34  ;;  %v19235_v40 = vpop.f32.mrb[79].mxu0  ;;  %v19434_v4 = vld [vmem:[#allocation3 + $0xa0] sm:$0xff] }
 0xf94   : > { %19530 = vst.msk [vmem:[#allocation2 + $0x80] sm:$0xff] %vm950_vm2, %v19514_v46  ;;  %v19394_v31 = vmul.f32 0.2, %v19362_v59  ;;  %v19363_v2 = vadd.f32 %v29728_v34, %v19235_v40  ;;  %v19437_v59 = vld [vmem:[#allocation3 + $0xb8] sm:$0xff] }
 0xf95   : > { %v29812_v49 = vadd.f32 %v19428_v20, %v19396_v47  ;;  %v19397_v3 = vmul.f32 0.2, %v19365_v26  ;;  %v19435_v26 = vld [vmem:[#allocation3 + $0xa8] sm:$0xff] }
 0xf96   : > { %v29814_v11 = vadd.f32 %v19426_v42, %v19394_v31  ;;  %v19395_v50 = vmul.f32 0.2, %v19363_v2 }
 0xf97   : > { %19492 = vst.msk [vmem:[#allocation3 + $0x70] sm:$0xff] %vm950_vm2, %v29812_v49  ;;  %v29818_v12 = vadd.f32 %v19429_v56, %v19397_v3 }
 0xf98   : > { %19490 = vst.msk [vmem:[#allocation3 + $0x60] sm:$0xff] %vm950_vm2, %v29814_v11  ;;  %v29822_v13 = vadd.f32 %v19427_v27, %v19395_v50  ;;  %v23315_v22 = vpop.f32.mrb[80].mxu0 }
 0xf99   : > { %19493 = vst.msk [vmem:[#allocation3 + $0x78] sm:$0xff] %vm950_vm2, %v29818_v12  ;;  %v19517_v28 = vpack.c.bf16 %v29818_v12, %v29812_v49  ;;  %v19368_v32 = vadd.f32 %v23315_v22, %v29728_v34  ;;  %v19248_v58 = vpop.f32.mrb[81].mxu0 }
 0xf9a   : > { %19491 = vst.msk [vmem:[#allocation3 + $0x68] sm:$0xff] %vm950_vm2, %v29822_v13  ;;  %v19516_v30 = vpack.c.bf16 %v29822_v13, %v29814_v11  ;;  %v19366_v33 = vadd.f32 %v29728_v34, %v19248_v58  ;;  %v23316_v62 = vpop.f32.mrb[82].mxu0 }
 0xf9b   : > { %19533 = vst.msk [vmem:[#allocation2 + $0xc8] sm:$0xff] %vm950_vm2, %v19517_v28  ;;  %v19400_v61 = vmul.f32 0.2, %v19368_v32  ;;  %v19369_v25 = vadd.f32 %v23316_v62, %v29728_v34  ;;  %v19251_v51 = vpop.f32.mrb[83].mxu0  ;;  %v19440_v32 = vld [vmem:[#allocation3 + $0xd0] sm:$0xff] }
 0xf9c   : > { %19532 = vst.msk [vmem:[#allocation2 + $0xb0] sm:$0xff] %vm950_vm2, %v19516_v30  ;;  %v19398_v53 = vmul.f32 0.2, %v19366_v33  ;;  %v19367_v60 = vadd.f32 %v29728_v34, %v19251_v51  ;;  %v19438_v33 = vld [vmem:[#allocation3 + $0xc0] sm:$0xff] }
 0xf9d   : > { %v29838_v63 = vadd.f32 %v19432_v43, %v19400_v61  ;;  %v19401_v7 = vmul.f32 0.2, %v19369_v25  ;;  %v19441_v25 = vld [vmem:[#allocation3 + $0xd8] sm:$0xff] }
 0xf9e   : > { %v29840_v21 = vadd.f32 %v19430_v1, %v19398_v53  ;;  %v19399_v29 = vmul.f32 0.2, %v19367_v60  ;;  %v19439_v60 = vld [vmem:[#allocation3 + $0xc8] sm:$0xff] }
 0xf9f   : > { %19496 = vst.msk [vmem:[#allocation3 + $0x90] sm:$0xff] %vm950_vm2, %v29838_v63  ;;  %v29844_v15 = vadd.f32 %v19433_v39, %v19401_v7 }
 0xfa0   : > { %19494 = vst.msk [vmem:[#allocation3 + $0x80] sm:$0xff] %vm950_vm2, %v29840_v21  ;;  %v29848_v52 = vadd.f32 %v19431_v24, %v19399_v29  ;;  %v23319_v55 = vpop.f32.mrb[84].mxu0 }
 0xfa1   : > { %19497 = vst.msk [vmem:[#allocation3 + $0x98] sm:$0xff] %vm950_vm2, %v29844_v15  ;;  %v19519_v14 = vpack.c.bf16 %v29844_v15, %v29838_v63  ;;  %v19372_v44 = vadd.f32 %v23319_v55, %v29728_v34  ;;  %v19264_v37 = vpop.f32.mrb[85].mxu0 }
 0xfa2   : > { %19495 = vst.msk [vmem:[#allocation3 + $0x88] sm:$0xff] %vm950_vm2, %v29848_v52  ;;  %v19518_v17 = vpack.c.bf16 %v29848_v52, %v29840_v21  ;;  %v19370_v41 = vadd.f32 %v29728_v34, %v19264_v37  ;;  %v23320_v8 = vpop.f32.mrb[86].mxu0 }
 0xfa3   : > { %19535 = vst.msk [vmem:[#allocation2 + $0xf8] sm:$0xff] %vm950_vm2, %v19519_v14  ;;  %v19404_v9 = vmul.f32 0.2, %v19372_v44  ;;  %v19373_v0 = vadd.f32 %v23320_v8, %v29728_v34  ;;  %v19267_v46 = vpop.f32.mrb[87].mxu0 }
 0xfa4   : > { %19534 = vst.msk [vmem:[#allocation2 + $0xe0] sm:$0xff] %vm950_vm2, %v19518_v17  ;;  %v19402_v20 = vmul.f32 0.2, %v19370_v41  ;;  %v19371_v36 = vadd.f32 %v29728_v34, %v19267_v46  ;;  %v19444_v41 = vld [vmem:[#allocation3 + $0xf0] sm:$0xff] }
 0xfa5   : > { %v29864_v47 = vadd.f32 %v19436_v10, %v19404_v9  ;;  %v19405_v42 = vmul.f32 0.2, %v19373_v0  ;;  %v19442_v0 = vld [vmem:[#allocation3 + $0xe0] sm:$0xff] }
 0xfa6   : > { %v29866_v40 = vadd.f32 %v19434_v4, %v19402_v20  ;;  %v19403_v31 = vmul.f32 0.2, %v19371_v36  ;;  %v19445_v36 = vld [vmem:[#allocation3 + $0xf8] sm:$0xff] }
 0xfa7   : > { %19500 = vst.msk [vmem:[#allocation3 + $0xb0] sm:$0xff] %vm950_vm2, %v29864_v47  ;;  %v29870_v56 = vadd.f32 %v19437_v59, %v19405_v42 }
 0xfa8   : > { %19498 = vst.msk [vmem:[#allocation3 + $0xa0] sm:$0xff] %vm950_vm2, %v29866_v40  ;;  %v29874_v2 = vadd.f32 %v19435_v26, %v19403_v31  ;;  %v23323_v3 = vpop.f32.mrb[88].mxu0 }
 0xfa9   : > { %19501 = vst.msk [vmem:[#allocation3 + $0xb8] sm:$0xff] %vm950_vm2, %v29870_v56  ;;  %v19521_v27 = vpack.c.bf16 %v29870_v56, %v29864_v47  ;;  %v19376_v50 = vadd.f32 %v23323_v3, %v29728_v34  ;;  %v19280_v22 = vpop.f32.mrb[89].mxu0  ;;  %v19443_v3 = vld [vmem:[#allocation3 + $0xe8] sm:$0xff] }
 0xfaa   : > { %19499 = vst.msk [vmem:[#allocation3 + $0xa8] sm:$0xff] %vm950_vm2, %v29874_v2  ;;  %v19520_v28 = vpack.c.bf16 %v29874_v2, %v29866_v40  ;;  %v19374_v58 = vadd.f32 %v29728_v34, %v19280_v22  ;;  %v23324_v30 = vpop.f32.mrb[90].mxu0 }
 0xfab   : > { %19537 = vst.msk [vmem:[#allocation2 + $0x128] sm:$0xff] %vm950_vm2, %v19521_v27  ;;  %v19408_v43 = vmul.f32 0.2, %v19376_v50  ;;  %v19377_v62 = vadd.f32 %v23324_v30, %v29728_v34  ;;  %v19283_v61 = vpop.f32.mrb[91].mxu0  ;;  %v19578_v30 = vld [vmem:[%s25076_s27] sm:$0xff] (!%p20864_p1) }
 0xfac   : > { %19536 = vst.msk [vmem:[#allocation2 + $0x110] sm:$0xff] %vm950_vm2, %v19520_v28  ;;  %v19406_v1 = vmul.f32 0.2, %v19374_v58  ;;  %v19375_v51 = vadd.f32 %v29728_v34, %v19283_v61  ;;  %v19546_v58 = vmul.f32 (!%p20864_p1), 0.2, %v29736_v23  ;;  %v19580_v61 = vld [vmem:[%s25076_s27 + $0x10] sm:$0xff] (!%p20864_p1) }
 0xfad   : > { %v29890_v53 = vadd.f32 %v19440_v32, %v19408_v43  ;;  %v19409_v39 = vmul.f32 0.2, %v19377_v62  ;;  %v19547_v43 = vmul.f32 (!%p20864_p1), 0.2, %v29744_v45  ;;  %v19548_v62 = vmul.f32 (!%p20864_p1), 0.2, %v29734_v5 }
 0xfae   : > { %v29892_v7 = vadd.f32 %v19438_v33, %v19406_v1  ;;  %v19407_v24 = vmul.f32 0.2, %v19375_v51  ;;  %v19579_v33 = vld [vmem:[%s25076_s27 + $0x8] sm:$0xff] (!%p20864_p1)  ;;  %v19549_v1 = vmul.f32 (!%p20864_p1), 0.2, %v29740_v38  ;;  %v19610_v51 = vadd.f32 (!%p20864_p1), %v19578_v30, %v19546_v58  ;;  %v19582_v23 = vld [vmem:[%s25076_s27 + $0x20] sm:$0xff] (!%p20864_p1) }
 0xfaf   : > { %19504 = vst.msk [vmem:[#allocation3 + $0xd0] sm:$0xff] %vm950_vm2, %v29890_v53  ;;  %v29896_v29 = vadd.f32 %v19441_v25, %v19409_v39  ;;  %v19581_v25 = vld [vmem:[%s25076_s27 + $0x18] sm:$0xff] (!%p20864_p1)  ;;  %v19611_v39 = vadd.f32 (!%p20864_p1), %v19579_v33, %v19547_v43  ;;  %v19583_v45 = vld [vmem:[%s25076_s27 + $0x28] sm:$0xff] (!%p20864_p1)  ;;  %v19553_v38 = vmul.f32 (!%p20864_p1), 0.2, %v29766_v48  ;;  %v19594_v30 = vld [vmem:[%s25076_s27 + $0x80] sm:$0xff] (!%p20864_p1) }
 0xfb0   : > { %19502 = vst.msk [vmem:[#allocation3 + $0xc0] sm:$0xff] %vm950_vm2, %v29892_v7  ;;  %v29900_v55 = vadd.f32 %v19439_v60, %v19407_v24  ;;  %v23327_v14 = vpop.f32.mrb[92].mxu0  ;;  %v19550_v60 = vmul.f32 (!%p20864_p1), 0.2, %v29762_v6  ;;  %v19551_v24 = vmul.f32 (!%p20864_p1), 0.2, %v29770_v57  ;;  %v19613_v5 = vadd.f32 (!%p20864_p1), %v19581_v25, %v19549_v1 }
 0xfb1   : > { %19505 = vst.msk [vmem:[#allocation3 + $0xd8] sm:$0xff] %vm950_vm2, %v29896_v29  ;;  %v19523_v44 = vpack.c.bf16 %v29896_v29, %v29890_v53  ;;  %v19380_v37 = vadd.f32 %v23327_v14, %v29728_v34  ;;  %v19296_v17 = vpop.f32.mrb[93].mxu0  ;;  %v19612_v14 = vadd.f32 (!%p20864_p1), %v19580_v61, %v19548_v62  ;;  %19642 = vst.msk [vmem:[%s25128_s4] sm:$0xff] (!%p20864_p1), %vm950_vm2, %v19610_v51  ;;  %v19562_v58 = vmul.f32 (!%p20864_p1), 0.2, %v29840_v21  ;;  %v19595_v43 = vld [vmem:[%s25076_s27 + $0x88] sm:$0xff] (!%p20864_p1) }
 0xfb2   : > { %19503 = vst.msk [vmem:[#allocation3 + $0xc8] sm:$0xff] %vm950_vm2, %v29900_v55  ;;  %v19522_v10 = vpack.c.bf16 %v29900_v55, %v29892_v7  ;;  %v19378_v8 = vadd.f32 %v29728_v34, %v19296_v17  ;;  %v23328_v9 = vpop.f32.mrb[94].mxu0  ;;  %v19585_v17 = vld [vmem:[%s25076_s27 + $0x38] sm:$0xff] (!%p20864_p1)  ;;  %19643 = vst.msk [vmem:[%s25128_s4 + $0x8] sm:$0xff] (!%p20864_p1), %vm950_vm2, %v19611_v39  ;;  %v19614_v6 = vadd.f32 (!%p20864_p1), %v19582_v23, %v19550_v60  ;;  %v19564_v62 = vmul.f32 (!%p20864_p1), 0.2, %v29838_v63 }
 0xfb3   : > { %19539 = vst.msk [vmem:[#allocation2 + $0x158] sm:$0xff] %vm950_vm2, %v19523_v44  ;;  %v19412_v4 = vmul.f32 0.2, %v19380_v37  ;;  %v19381_v46 = vadd.f32 %v23328_v9, %v29728_v34  ;;  %v19299_v20 = vpop.f32.mrb[95].mxu0  ;;  %v19552_v44 = vmul.f32 (!%p20864_p1), 0.2, %v29760_v19  ;;  %v19615_v57 = vadd.f32 (!%p20864_p1), %v19583_v45, %v19551_v24 }
 0xfb4   : > { %19538 = vst.msk [vmem:[#allocation2 + $0x140] sm:$0xff] %vm950_vm2, %v19522_v10  ;;  %v19410_v59 = vmul.f32 0.2, %v19378_v8  ;;  %v19379_v42 = vadd.f32 %v29728_v34, %v19299_v20  ;;  %v19584_v37 = vld [vmem:[%s25076_s27 + $0x30] sm:$0xff] (!%p20864_p1)  ;;  %v19554_v10 = vmul.f32 (!%p20864_p1), 0.2, %v29788_v35  ;;  %v19617_v9 = vadd.f32 (!%p20864_p1), %v19585_v17, %v19553_v38 }
 0xfb5   : > { %v29916_v26 = vadd.f32 %v19444_v41, %v19412_v4  ;;  %v19413_v31 = vmul.f32 0.2, %v19381_v46  ;;  %v19586_v41 = vld [vmem:[%s25076_s27 + $0x40] sm:$0xff] (!%p20864_p1)  ;;  %v19555_v19 = vmul.f32 (!%p20864_p1), 0.2, %v29796_v18  ;;  %v19587_v8 = vld [vmem:[%s25076_s27 + $0x48] sm:$0xff] (!%p20864_p1)  ;;  %v19616_v48 = vadd.f32 (!%p20864_p1), %v19584_v37, %v19552_v44 }
 0xfb6   : > { %v29918_v27 = vadd.f32 %v19442_v0, %v19410_v59  ;;  %v19411_v50 = vmul.f32 0.2, %v19379_v42  ;;  %19545 = sbr.rel (%p20864_p1) target bundleno = 4041 (0xfc9), region = 72  ;;  %19644 = vst.msk [vmem:[%s25128_s4 + $0x10] sm:$0xff] (!%p20864_p1), %vm950_vm2, %v19612_v14  ;;  %19645 = vst.msk [vmem:[%s25128_s4 + $0x18] sm:$0xff] (!%p20864_p1), %vm950_vm2, %v19613_v5  ;;  %v19588_v0 = vld [vmem:[%s25076_s27 + $0x50] sm:$0xff] (!%p20864_p1)  ;;  %v19618_v18 = vadd.f32 (!%p20864_p1), %v19586_v41, %v19554_v10 }
 0xfb7   : > { %19508 = vst.msk [vmem:[#allocation3 + $0xf0] sm:$0xff] %vm950_vm2, %v29916_v26  ;;  %v29922_v22 = vadd.f32 %v19445_v36, %v19413_v31  ;;  %v19556_v4 = vmul.f32 (!%p20864_p1), 0.2, %v29786_v16  ;;  %v19557_v35 = vmul.f32 (!%p20864_p1), 0.2, %v29792_v54  ;;  %v19589_v46 = vld [vmem:[%s25076_s27 + $0x58] sm:$0xff] (!%p20864_p1)  ;;  %v19619_v20 = vadd.f32 (!%p20864_p1), %v19587_v8, %v19555_v19 }
 0xfb8   : > { %19506 = vst.msk [vmem:[#allocation3 + $0xe0] sm:$0xff] %vm950_vm2, %v29918_v27  ;;  %v29926_v28 = vadd.f32 %v19443_v3, %v19411_v50  ;;  %19646 = vst.msk [vmem:[%s25128_s4 + $0x20] sm:$0xff] (!%p20864_p1), %vm950_vm2, %v19614_v6  ;;  %v19558_v59 = vmul.f32 (!%p20864_p1), 0.2, %v29814_v11  ;;  %v19590_v36 = vld [vmem:[%s25076_s27 + $0x60] sm:$0xff] (!%p20864_p1)  ;;  %v19591_v42 = vld [vmem:[%s25076_s27 + $0x68] sm:$0xff] (!%p20864_p1) }
 0xfb9   : > { %19509 = vst.msk [vmem:[#allocation3 + $0xf8] sm:$0xff] %vm950_vm2, %v29922_v22  ;;  %v19525_v34 = vpack.c.bf16 %v29922_v22, %v29916_v26  ;;  %19647 = vst.msk [vmem:[%s25128_s4 + $0x28] sm:$0xff] (!%p20864_p1), %vm950_vm2, %v19615_v57  ;;  %v19559_v16 = vmul.f32 (!%p20864_p1), 0.2, %v29822_v13  ;;  %v19620_v54 = vadd.f32 (!%p20864_p1), %v19588_v0, %v19556_v4  ;;  %v19621_v31 = vadd.f32 (!%p20864_p1), %v19589_v46, %v19557_v35  ;;  %v19592_v50 = vld [vmem:[%s25076_s27 + $0x70] sm:$0xff] (!%p20864_p1)  ;;  %v19597_v1 = vld [vmem:[%s25076_s27 + $0x98] sm:$0xff] (!%p20864_p1) }
 0xfba   : > { %19507 = vst.msk [vmem:[#allocation3 + $0xe8] sm:$0xff] %vm950_vm2, %v29926_v28  ;;  %v19524_v32 = vpack.c.bf16 %v29926_v28, %v29918_v27  ;;  %19648 = vst.msk [vmem:[%s25128_s4 + $0x30] sm:$0xff] (!%p20864_p1), %vm950_vm2, %v19616_v48  ;;  %v19560_v3 = vmul.f32 (!%p20864_p1), 0.2, %v29812_v49  ;;  %v19561_v11 = vmul.f32 (!%p20864_p1), 0.2, %v29818_v12  ;;  %v19622_v13 = vadd.f32 (!%p20864_p1), %v19590_v36, %v19558_v59 }
 0xfbb   : > { %19541 = vst.msk [vmem:[#allocation2 + $0x188] sm:$0xff] %vm950_vm2, %v19525_v34  ;;  %19649 = vst.msk [vmem:[%s25128_s4 + $0x38] sm:$0xff] (!%p20864_p1), %vm950_vm2, %v19617_v9  ;;  %v19593_v34 = vld [vmem:[%s25076_s27 + $0x78] sm:$0xff] (!%p20864_p1)  ;;  %v19563_v49 = vmul.f32 (!%p20864_p1), 0.2, %v29848_v52  ;;  %v19596_v61 = vld [vmem:[%s25076_s27 + $0x90] sm:$0xff] (!%p20864_p1)  ;;  %v19626_v52 = vadd.f32 (!%p20864_p1), %v19594_v30, %v19562_v58 }
 0xfbc   : > { %19540 = vst.msk [vmem:[#allocation2 + $0x170] sm:$0xff] %vm950_vm2, %v19524_v32  ;;  %19650 = vst.msk [vmem:[%s25128_s4 + $0x40] sm:$0xff] (!%p20864_p1), %vm950_vm2, %v19618_v18  ;;  %v19623_v32 = vadd.f32 (!%p20864_p1), %v19591_v42, %v19559_v16  ;;  %v19624_v12 = vadd.f32 (!%p20864_p1), %v19592_v50, %v19560_v3  ;;  %v19625_v33 = vadd.f32 (!%p20864_p1), %v19593_v34, %v19561_v11  ;;  %v19565_v21 = vmul.f32 (!%p20864_p1), 0.2, %v29844_v15  ;;  %v19598_v39 = vld [vmem:[%s25076_s27 + $0xa0] sm:$0xff] (!%p20864_p1)  ;;  %v19599_v60 = vld [vmem:[%s25076_s27 + $0xa8] sm:$0xff] (!%p20864_p1) }
 0xfbd   : > { %19651 = vst.msk [vmem:[%s25128_s4 + $0x48] sm:$0xff] %vm950_vm2, %v19619_v20  ;;  %19652 = vst.msk [vmem:[%s25128_s4 + $0x50] sm:$0xff] %vm950_vm2, %v19620_v54  ;;  %v19627_v25 = vadd.f32 %v19595_v43, %v19563_v49  ;;  %v19566_v51 = vmul.f32 0.2, %v29866_v40  ;;  %v19567_v63 = vmul.f32 0.2, %v29874_v2  ;;  %v19628_v15 = vadd.f32 %v19596_v61, %v19564_v62 }
 0xfbe   : > { %19653 = vst.msk [vmem:[%s25128_s4 + $0x58] sm:$0xff] %vm950_vm2, %v19621_v31  ;;  %19654 = vst.msk [vmem:[%s25128_s4 + $0x60] sm:$0xff] %vm950_vm2, %v19622_v13  ;;  %v19629_v23 = vadd.f32 %v19597_v1, %v19565_v21  ;;  %v19568_v24 = vmul.f32 0.2, %v29864_v47  ;;  %v19600_v45 = vld [vmem:[%s25076_s27 + $0xb0] sm:$0xff]  ;;  %v19601_v14 = vld [vmem:[%s25076_s27 + $0xb8] sm:$0xff] }
 0xfbf   : > { %19655 = vst.msk [vmem:[%s25128_s4 + $0x68] sm:$0xff] %vm950_vm2, %v19623_v32  ;;  %19656 = vst.msk [vmem:[%s25128_s4 + $0x70] sm:$0xff] %vm950_vm2, %v19624_v12  ;;  %v19569_v40 = vmul.f32 0.2, %v29870_v56  ;;  %v19630_v2 = vadd.f32 %v19598_v39, %v19566_v51  ;;  %v19631_v5 = vadd.f32 %v19599_v60, %v19567_v63  ;;  %v19570_v44 = vmul.f32 0.2, %v29892_v7 }
 0xfc0   : > { %19657 = vst.msk [vmem:[%s25128_s4 + $0x78] sm:$0xff] %vm950_vm2, %v19625_v33  ;;  %19658 = vst.msk [vmem:[%s25128_s4 + $0x80] sm:$0xff] %vm950_vm2, %v19626_v52  ;;  %v19602_v37 = vld [vmem:[%s25076_s27 + $0xc0] sm:$0xff]  ;;  %v19571_v47 = vmul.f32 0.2, %v29900_v55  ;;  %v19603_v38 = vld [vmem:[%s25076_s27 + $0xc8] sm:$0xff]  ;;  %v19632_v56 = vadd.f32 %v19600_v45, %v19568_v24 }
 0xfc1   : > { %19659 = vst.msk [vmem:[%s25128_s4 + $0x88] sm:$0xff] %vm950_vm2, %v19627_v25  ;;  %19660 = vst.msk [vmem:[%s25128_s4 + $0x90] sm:$0xff] %vm950_vm2, %v19628_v15  ;;  %v19633_v17 = vadd.f32 %v19601_v14, %v19569_v40  ;;  %v19572_v6 = vmul.f32 0.2, %v29890_v53  ;;  %v19604_v57 = vld [vmem:[%s25076_s27 + $0xd0] sm:$0xff]  ;;  %v19605_v10 = vld [vmem:[%s25076_s27 + $0xd8] sm:$0xff]  ;;  %v19634_v55 = vadd.f32 %v19602_v37, %v19570_v44 }
 0xfc2   : > { %19661 = vst.msk [vmem:[%s25128_s4 + $0x98] sm:$0xff] %vm950_vm2, %v19629_v23  ;;  %v19573_v7 = vmul.f32 0.2, %v29896_v29  ;;  %19662 = vst.msk [vmem:[%s25128_s4 + $0xa0] sm:$0xff] %vm950_vm2, %v19630_v2  ;;  %v19635_v41 = vadd.f32 %v19603_v38, %v19571_v47  ;;  %v19574_v19 = vmul.f32 0.2, %v29918_v27 }
 0xfc3   : > { %19663 = vst.msk [vmem:[%s25128_s4 + $0xa8] sm:$0xff] %vm950_vm2, %v19631_v5  ;;  %v19606_v8 = vld [vmem:[%s25076_s27 + $0xe0] sm:$0xff]  ;;  %v19575_v53 = vmul.f32 0.2, %v29926_v28  ;;  %v19607_v48 = vld [vmem:[%s25076_s27 + $0xe8] sm:$0xff]  ;;  %19664 = vst.msk [vmem:[%s25128_s4 + $0xb0] sm:$0xff] %vm950_vm2, %v19632_v56  ;;  %v19636_v29 = vadd.f32 %v19604_v57, %v19572_v6 }
 0xfc4   : > { %19665 = vst.msk [vmem:[%s25128_s4 + $0xb8] sm:$0xff] %vm950_vm2, %v19633_v17  ;;  %v19637_v9 = vadd.f32 %v19605_v10, %v19573_v7  ;;  %v19576_v4 = vmul.f32 0.2, %v29916_v26  ;;  %v19608_v0 = vld [vmem:[%s25076_s27 + $0xf0] sm:$0xff]  ;;  %v19577_v27 = vmul.f32 0.2, %v29922_v22  ;;  %v19638_v28 = vadd.f32 %v19606_v8, %v19574_v19 }
 0xfc5   : > { %v19609_v35 = vld [vmem:[%s25076_s27 + $0xf8] sm:$0xff]  ;;  %19666 = vst.msk [vmem:[%s25128_s4 + $0xc0] sm:$0xff] %vm950_vm2, %v19634_v55  ;;  %19667 = vst.msk [vmem:[%s25128_s4 + $0xc8] sm:$0xff] %vm950_vm2, %v19635_v41  ;;  %v19639_v46 = vadd.f32 %v19607_v48, %v19575_v53 }
 0xfc6   : > { %19668 = vst.msk [vmem:[%s25128_s4 + $0xd0] sm:$0xff] %vm950_vm2, %v19636_v29  ;;  %19669 = vst.msk [vmem:[%s25128_s4 + $0xd8] sm:$0xff] %vm950_vm2, %v19637_v9  ;;  %v19640_v18 = vadd.f32 %v19608_v0, %v19576_v4  ;;  %v19641_v20 = vadd.f32 %v19609_v35, %v19577_v27 }
 0xfc7   : > { %19670 = vst.msk [vmem:[%s25128_s4 + $0xe0] sm:$0xff] %vm950_vm2, %v19638_v28  ;;  %19671 = vst.msk [vmem:[%s25128_s4 + $0xe8] sm:$0xff] %vm950_vm2, %v19639_v46 }
 0xfc8   : > { %19672 = vst.msk [vmem:[%s25128_s4 + $0xf0] sm:$0xff] %vm950_vm2, %v19640_v18  ;;  %19673 = vst.msk [vmem:[%s25128_s4 + $0xf8] sm:$0xff] %vm950_vm2, %v19641_v20 }
 0xfc9 PF: > { %s30378_s20 = sld [smem:[#allocation10_spill]]  ;;  %s30381_s22 = sld [smem:[#allocation24_spill]] }
 0xfca   : > { %s30379_s27 = sld [smem:[#allocation8_spill]]  ;;  %s19688_s1 = sshll.u32 %s25128_s4, 4  ;;  %s30074_s1 = int_to_ptr.vmem [resolvable:$true] %s19688_s1 }
 0xfcb   : > { %s24831_s24 = scalar_lea.vmem %s30074_s1, 4096  ;;  %s24932_s18 = smov [#allocation4]  }
 0xfcc   : > { %p24832_p2 = scmp.ne.s32.totalorder %s30074_s1, %s24831_s24  ;;  %s24835_s16 = sshll.u32 %s24932_s18, 4  ;;  %s24836_s16 = int_to_ptr.vmem [resolvable:$false] %s24835_s16 }
 0xfcd   : > { %s24837_s17 = scalar_lea.vmem %s24836_s16, 8192  ;;  %p24838_p6 = scmp.lt.s32.totalorder %s30074_s1, %s24836_s16 }
 0xfce   : > { %p24833_p4 = pnand %p24832_p2, %p25044_p3  ;;  %p24839_p7 = scmp.lt.s32.totalorder %s24837_s17, %s24831_s24 }
 0xfcf   : > { %s20871_s11 = sshll.u32 %s30378_s20, 12  ;;  %s30382_s28 = smov %s30381_s22 }
 0xfd0   : > { %s30071_s14 = scalar_lea.hbm %s30381_s22, %s20871_s11  ;;  %s30383_s2 = sand.u32 1, %s30379_s27  }
 0xfd1   : > { %s30078_s21 = scalar_lea.sflag [#allocation5], %s30383_s2  ;;  %p24834_p5 = pneg %p24833_p4 }
 0xfd2   : > { %p24840_p8 = por %p24839_p7, %p24838_p6 }
 0xfd4   : > { %p24841_p10 = pnand %p24840_p8, %p24834_p5 }
 0xfd6   : > { %24844 = shalt.err (!%p24841_p10)
}
 0xfd7   : > { %s24845_s4 = scalar_lea.hbm %s30071_s14, 4096  ;;  %s24849_s15 = scalar_lea.hbm %s30382_s28, 8192 }
 0xfd8   : > { %p24846_p11 = scmp.ne.s32.totalorder %s30071_s14, %s24845_s4  ;;  %p24850_p0 = scmp.lt.u32.totalorder %s30071_s14, %s30382_s28 }
 0xfd9   : > { %p24851_p1 = scmp.lt.u32.totalorder %s24849_s15, %s24845_s4  ;;  %p24853_p4 = scmp.lt.u32.totalorder %s24845_s4, %s30071_s14 }
 0xfda   : > { %p24847_p12 = pnand %p24846_p11, %p25044_p3 }
 0xfdb   : > { %p24852_p2 = por %p24851_p1, %p24850_p0 }
 0xfdc   : > { %p24848_p13 = pneg %p24847_p12 }
 0xfdd   : > { %p24854_p5 = por %p24853_p4, %p24852_p2 }
 0xfdf   : > { %p24855_p6 = pnand %p24854_p5, %p24848_p13 }
 0xfe1   : > { %24858 = shalt.err (!%p24855_p6)
}
 0xfe2   : > { %s24933_s3 = smov 128   ;;  %s24934_s23 = smov 8  }
 0xfe3   : > { %24634 = dma.vmem_to_hbm [thread:$0]  (%p25044_p3), %s30074_s1, 4096, %s30071_s14, %s30078_s21, %s24933_s3, %s24933_s3, %s24934_s23  }
 0xfe4 PF: > { %s30384_s25 = sld [smem:[#allocation13_spill]]  ;;  %s30385_s20 = sld [smem:[#allocation7_spill]] }
 0xfea   : > { %p24640_p7 = scmp.ge.s32.totalorder %s30384_s25, 2  ;;  %s19703_s11 = sand.u32 1, %s30385_s20  }
 0xfeb   : > { %s19704_s12 = scalar_lea.sflag [#allocation5], %s19703_s11 }
 0xfec   : > { %p24637_p8 = pnand %p24640_p7, %p25054_p9 }
 0xfee   : > { %24892 = dma.done.wait (!%p24637_p8), %s19704_s12, 4096  }
 0xfef   : > { %24894 = vsyncadd (!%p24637_p8), %s19704_s12, 4294963200  ;;  %s24_s24 = sadd.s32 1, %s30384_s25   ;;  %s30387_s17 = sld [smem:[#allocation8_spill]] }
 0xff0   : > { %p21_p10 = scmp.ge.s32.totalorder %s24_s24, 8   ;;  %s30388_s18 = sld [smem:[#allocation9_spill]] }
 0xff1   : > { %s30389_s19 = sld [smem:[#allocation18_spill]]  ;;  %s30390_s20 = sld [smem:[#allocation11_spill]] }
 0xff2   : > { %s30391_s21 = sld [smem:[#allocation12_spill]]  ;;  %s30392_s22 = sld [smem:[#allocation14_spill]] }
 0xff3   : > { %s30393_s23 = sld [smem:[#allocation16_spill]]  ;;  %23 = sbr.rel (!%p21_p10) target bundleno = 12 (0xc), region = 181 }
 0xffa   :  { %19709 = vsyncpa [#allocation5], 1 }
 0xffb   :  { %19711 = vsyncpa [#allocation5 + $0x1], 1 }

</bundles_post_ra>
